<compile_context>
chip_gen: v5e
topology: v5e:2x2
jax: 0.10.0
libtpu: 0.0.40
codegen_flags: <defaults>
</compile_context>

<pallas_src>
import functools
import math

import jax
import jax.numpy as jnp
from jax.experimental import pallas as pl
from jax.experimental.pallas import tpu as pltpu


# ---------------------------------------------------------------------------
# Fused QueueBlock kernel (one batch element per grid step)
# ---------------------------------------------------------------------------
def _queue_block_kernel(x_ref, w1_ref, b1_ref, wd_ref, bd_ref, wh_ref, bh_ref,
                        ww_ref, bw_ref, w5_ref, b5_ref, mask_ref, o_ref,
                        pad_ref, *, Kd, Kh, Kw, HW, W, DHW, halo):
    f32 = jnp.float32
    bf16 = jnp.bfloat16

    def mm(w, act):
        # w: bf16 (Co, Ci), act: f32 (Ci, DHW) -> f32 (Co, DHW); MXU, f32 accumulate.
        return jnp.dot(w, act.astype(bf16), preferred_element_type=f32)

    # Zero the halo scratch once per grid step.  Each separable layer overwrites
    # only the centre; the halos stay zero => 'same' padding lives in VMEM.
    pad_ref[...] = jnp.zeros(pad_ref.shape, f32)

    masks = mask_ref[...]  # (Kh + Kw, DHW) f32 0/1 boundary masks (H rows, then W rows)

    def sep_conv1d(act, w_ref, b_ref, K, step, mask_base):
        """1-D 'same' conv (cross-correlation) along one axis, all channels mixed."""
        pad = (K - 1) // 2
        pad_ref[:, pl.ds(halo, DHW)] = act            # write centre; halos stay zero
        cout = w_ref.shape[1]
        acc = jnp.zeros((cout, DHW), f32)
        for k in range(K):                            # K is small (e.g. 3) -> unrolled
            delta = (k - pad) * step
            win = pad_ref[:, pl.ds(halo + delta, DHW)]
            if mask_base is not None and delta != 0:
                # zero the positions whose shifted source crossed an internal
                # (H or W) boundary; array-end positions already read halo zeros.
                win = win * masks[mask_base + k:mask_base + k + 1, :]
            acc = acc + mm(w_ref[k], win)
        return acc + b_ref[...]

    x = x_ref[0]                                      # (Cin, DHW) f32

    h = mm(w1_ref[...], x) + b1_ref[...]              # 1x1x1 conv: Cin -> Cmid
    h = sep_conv1d(h, wd_ref, bd_ref, Kd, HW, None)   # (Kd,1,1) conv along D
    h = sep_conv1d(h, wh_ref, bh_ref, Kh, W, 0)       # (1,Kh,1) conv along H
    h = sep_conv1d(h, ww_ref, bw_ref, Kw, 1, Kh)      # (1,1,Kw) conv along W
    out = mm(w5_ref[...], h) + b5_ref[...]            # 1x1x1 conv: Cmid -> Cout

    o_ref[0] = out.astype(o_ref.dtype)


def _boundary_masks(D, H, W, Kh, Kw):
    """0/1 masks marking valid shifted positions for the H- and W-axis taps."""
    h_flat = jnp.tile(jnp.repeat(jnp.arange(H), W), D)   # h index of each flat pos
    w_flat = jnp.tile(jnp.arange(W), D * H)              # w index of each flat pos
    rows = []
    pH = (Kh - 1) // 2
    for k in range(Kh):
        d = k - pH
        rows.append(((h_flat + d >= 0) & (h_flat + d < H)).astype(jnp.float32))
    pW = (Kw - 1) // 2
    for k in range(Kw):
        d = k - pW
        rows.append(((w_flat + d >= 0) & (w_flat + d < W)).astype(jnp.float32))
    return jnp.stack(rows, axis=0)                        # (Kh + Kw, D*H*W)


# ---------------------------------------------------------------------------
# Wrapper: one pallas_call for the whole QueueBlock
# ---------------------------------------------------------------------------
def queue_block_forward(params, x):
    """x: (N, Cin, D, H, W) f32 (NCDHW, like torch). Returns (N, Cout, D, H, W) f32."""
    N, Cin, D, H, W = x.shape
    DHW = D * H * W

    w1, b1 = params["pw_in"]     # (1, Cm, Cin) bf16, (Cm,) f32
    wd, bd = params["depth"]     # (Kd, Cm, Cm) bf16, (Cm,) f32
    wh, bh = params["height"]
    ww, bw = params["width"]
    w5, b5 = params["pw_out"]    # (1, Cout, Cm) bf16, (Cout,) f32

    Kd, Kh, Kw = wd.shape[0], wh.shape[0], ww.shape[0]
    Cm = wd.shape[1]
    Cout = w5.shape[1]

    w1_2d = w1[0]                                # (Cm, Cin)  bf16
    w5_2d = w5[0]                                # (Cout, Cm) bf16
    b1c = b1.reshape(Cm, 1)
    bdc = bd.reshape(Cm, 1)
    bhc = bh.reshape(Cm, 1)
    bwc = bw.reshape(Cm, 1)
    b5c = b5.reshape(Cout, 1)

    x_flat = x.reshape(N, Cin, DHW)              # pure reshape, channels stay major
    masks = _boundary_masks(D, H, W, Kh, Kw)
    Mrows = masks.shape[0]

    # Halo big enough for the largest tap shift; round to a lane tile for tidy stores.
    halo = max((Kd - 1) // 2 * H * W, (Kh - 1) // 2 * W, (Kw - 1) // 2)
    if halo > 0:
        halo = ((halo + 127) // 128) * 128

    kernel = functools.partial(_queue_block_kernel, Kd=Kd, Kh=Kh, Kw=Kw,
                               HW=H * W, W=W, DHW=DHW, halo=halo)

    out_flat = pl.pallas_call(
        kernel,
        out_shape=jax.ShapeDtypeStruct((N, Cout, DHW), jnp.float32),
        grid_spec=pltpu.PrefetchScalarGridSpec(
            num_scalar_prefetch=0,
            grid=(N,),
            in_specs=[
                pl.BlockSpec((1, Cin, DHW), lambda n: (n, 0, 0)),    # x (per batch)
                pl.BlockSpec((Cm, Cin), lambda n: (0, 0)),           # w1
                pl.BlockSpec((Cm, 1), lambda n: (0, 0)),             # b1
                pl.BlockSpec((Kd, Cm, Cm), lambda n: (0, 0, 0)),     # wd
                pl.BlockSpec((Cm, 1), lambda n: (0, 0)),             # bd
                pl.BlockSpec((Kh, Cm, Cm), lambda n: (0, 0, 0)),     # wh
                pl.BlockSpec((Cm, 1), lambda n: (0, 0)),             # bh
                pl.BlockSpec((Kw, Cm, Cm), lambda n: (0, 0, 0)),     # ww
                pl.BlockSpec((Cm, 1), lambda n: (0, 0)),             # bw
                pl.BlockSpec((Cout, Cm), lambda n: (0, 0)),          # w5
                pl.BlockSpec((Cout, 1), lambda n: (0, 0)),           # b5
                pl.BlockSpec((Mrows, DHW), lambda n: (0, 0)),        # boundary masks
            ],
            out_specs=pl.BlockSpec((1, Cout, DHW), lambda n: (n, 0, 0)),
            scratch_shapes=[pltpu.VMEM((Cm, DHW + 2 * halo), jnp.float32)],
        ),
        compiler_params=pltpu.CompilerParams(
            dimension_semantics=("parallel",),          # batch across TCs (v7x)
            vmem_limit_bytes=64 * 1024 * 1024,          # headroom for larger volumes
        ),
    )(x_flat, w1_2d, b1c, wd, bdc, wh, bhc, ww, bwc, w5_2d, b5c, masks)

    return out_flat.reshape(N, Cout, D, H, W)


# ---------------------------------------------------------------------------
# Parameter init (torch Conv3d default uniform bounds); weights stored bf16.
# ---------------------------------------------------------------------------
def init_queue_block(key, in_ch, out_ch, mid_ch, kd, kh, kw):
    ks = jax.random.split(key, 5)

    def conv_init(k, cin, cout, ksize):
        kw_, kb_ = jax.random.split(k)
        bound = 1.0 / math.sqrt(cin * ksize)
        w = jax.random.uniform(kw_, (ksize, cout, cin), jnp.float32, -bound, bound)
        b = jax.random.uniform(kb_, (cout,), jnp.float32, -bound, bound)
        return w.astype(jnp.bfloat16), b

    return {
        "pw_in": conv_init(ks[0], in_ch, mid_ch, 1),
        "depth": conv_init(ks[1], mid_ch, mid_ch, kd),
        "height": conv_init(ks[2], mid_ch, mid_ch, kh),
        "width": conv_init(ks[3], mid_ch, mid_ch, kw),
        "pw_out": conv_init(ks[4], mid_ch, out_ch, 1),
    }


# ---------------------------------------------------------------------------
# Pure-JAX reference (f32, lax.conv) for a numerical sanity check.
# ---------------------------------------------------------------------------
def queue_block_reference(params, x):
    f32 = jnp.float32

    def to5d(w, axis):  # (K, Co, Ci) -> (Co, Ci, kd, kh, kw) with K on `axis`
        K_, Co, Ci = w.shape
        shape = [Co, Ci, 1, 1, 1]
        shape[2 + axis] = K_
        return jnp.transpose(w.astype(f32), (1, 2, 0)).reshape(shape)

    def conv(h, w5d, b):
        y = jax.lax.conv_general_dilated(
            h, w5d, window_strides=(1, 1, 1), padding="SAME",
            dimension_numbers=("NCDHW", "OIDHW", "NCDHW"),
            precision=jax.lax.Precision.HIGHEST)
        return y + b.reshape(1, -1, 1, 1, 1)

    w1, b1 = params["pw_in"]
    wd, bd = params["depth"]
    wh, bh = params["height"]
    ww, bw = params["width"]
    w5, b5 = params["pw_out"]

    h = conv(x, to5d(w1, 0), b1)
    h = conv(h, to5d(wd, 0), bd)
    h = conv(h, to5d(wh, 1), bh)
    h = conv(h, to5d(ww, 2), bw)
    return conv(h, to5d(w5, 0), b5)


# ---------------------------------------------------------------------------
if __name__ == "__main__":
    key = jax.random.PRNGKey(0)
    kp, kx = jax.random.split(key)

    # QueueBlock(inputChannel=4, outputChannel=8, intermediateChannel=16,
    #            depthKernel=3, heightKernel=3, widthKernel=3, stride=1)
    in_ch, out_ch, mid_ch = 4, 8, 16
    kd = kh = kw = 3
    N, D, H, W = 2, 16, 16, 16

    params = init_queue_block(kp, in_ch, out_ch, mid_ch, kd, kh, kw)
    x = jax.random.normal(kx, (N, in_ch, D, H, W), jnp.float32)

    fwd = jax.jit(queue_block_forward)
    out = fwd(params, x)
    jax.block_until_ready(out)

    assert out.shape == (N, out_ch, D, H, W), out.shape
    assert bool(jnp.all(jnp.isfinite(out)))

    # numerical sanity check against an f32 XLA conv reference
    ref = jax.block_until_ready(queue_block_reference(params, x))
    max_err = float(jnp.max(jnp.abs(out - ref)))
    scale = float(jnp.max(jnp.abs(ref)))
    assert max_err <= 0.05 * scale + 1e-4, (max_err, scale)

    print("KERNEL_OK")
</pallas_src>

<mosaic_0001>
module attributes {stable_mosaic.version = 11 : i64} {
  func.func @_queue_block_kernel(%arg0: i32, %arg1: memref<1x4x4096xf32, #tpu.memory_space<vmem>>, %arg2: memref<16x4xbf16, #tpu.memory_space<vmem>>, %arg3: memref<16x1xf32, #tpu.memory_space<vmem>>, %arg4: memref<3x16x16xbf16, #tpu.memory_space<vmem>>, %arg5: memref<16x1xf32, #tpu.memory_space<vmem>>, %arg6: memref<3x16x16xbf16, #tpu.memory_space<vmem>>, %arg7: memref<16x1xf32, #tpu.memory_space<vmem>>, %arg8: memref<3x16x16xbf16, #tpu.memory_space<vmem>>, %arg9: memref<16x1xf32, #tpu.memory_space<vmem>>, %arg10: memref<8x16xbf16, #tpu.memory_space<vmem>>, %arg11: memref<8x1xf32, #tpu.memory_space<vmem>>, %arg12: memref<6x4096xf32, #tpu.memory_space<vmem>>, %arg13: memref<1x8x4096xf32, #tpu.memory_space<vmem>>, %arg14: memref<16x4608xf32, #tpu.memory_space<vmem>>) attributes {dimension_semantics = [#tpu.dimension_semantics<parallel>], iteration_bounds = array<i64: 2>, scalar_prefetch = 0 : i64, scratch_operands = 1 : i64, tpu.core_type = #tpu.core_type<tc>, window_params = [{transform_indices = @transform_0, window_bounds = array<i64: 1, 4, 4096>}, {pipeline_mode = #tpu.pipeline_mode<synchronous>, transform_indices = @transform_1, window_bounds = array<i64: 16, 4>}, {pipeline_mode = #tpu.pipeline_mode<synchronous>, transform_indices = @transform_2, window_bounds = array<i64: 16, 1>}, {pipeline_mode = #tpu.pipeline_mode<synchronous>, transform_indices = @transform_3, window_bounds = array<i64: 3, 16, 16>}, {pipeline_mode = #tpu.pipeline_mode<synchronous>, transform_indices = @transform_4, window_bounds = array<i64: 16, 1>}, {pipeline_mode = #tpu.pipeline_mode<synchronous>, transform_indices = @transform_5, window_bounds = array<i64: 3, 16, 16>}, {pipeline_mode = #tpu.pipeline_mode<synchronous>, transform_indices = @transform_6, window_bounds = array<i64: 16, 1>}, {pipeline_mode = #tpu.pipeline_mode<synchronous>, transform_indices = @transform_7, window_bounds = array<i64: 3, 16, 16>}, {pipeline_mode = #tpu.pipeline_mode<synchronous>, transform_indices = @transform_8, window_bounds = array<i64: 16, 1>}, {pipeline_mode = #tpu.pipeline_mode<synchronous>, transform_indices = @transform_9, window_bounds = array<i64: 8, 16>}, {pipeline_mode = #tpu.pipeline_mode<synchronous>, transform_indices = @transform_10, window_bounds = array<i64: 8, 1>}, {pipeline_mode = #tpu.pipeline_mode<synchronous>, transform_indices = @transform_11, window_bounds = array<i64: 6, 4096>}, {transform_indices = @transform_12, window_bounds = array<i64: 1, 8, 4096>}]} {
    %cst = arith.constant 0.000000e+00 : f32
    %0 = vector.broadcast %cst : f32 to vector<16x4608xf32>
    %c0 = arith.constant 0 : index
    %c0_0 = arith.constant 0 : index
    %1 = vector.load %arg14[%c0, %c0_0] : memref<16x4608xf32, #tpu.memory_space<vmem>>, vector<16x4608xf32>
    tpu.vector_store %arg14[%c0, %c0_0], %0 {strides = array<i32>} : memref<16x4608xf32, #tpu.memory_space<vmem>>, vector<16x4608xf32>,
    %c0_1 = arith.constant 0 : index
    %c0_2 = arith.constant 0 : index
    %2 = vector.load %arg12[%c0_1, %c0_2] : memref<6x4096xf32, #tpu.memory_space<vmem>>, vector<6x4096xf32>
    %c0_3 = arith.constant 0 : index
    %c0_4 = arith.constant 0 : index
    %c0_5 = arith.constant 0 : index
    %3 = vector.load %arg1[%c0_3, %c0_4, %c0_5] : memref<1x4x4096xf32, #tpu.memory_space<vmem>>, vector<1x4x4096xf32>
    %4 = vector.shape_cast %3 : vector<1x4x4096xf32> to vector<4x4096xf32>
    %c0_6 = arith.constant 0 : index
    %c0_7 = arith.constant 0 : index
    %5 = vector.load %arg2[%c0_6, %c0_7] : memref<16x4xbf16, #tpu.memory_space<vmem>>, vector<16x4xbf16>
    %6 = arith.truncf %4 : vector<4x4096xf32> to vector<4x4096xbf16>
    %cst_8 = arith.constant dense<0.000000e+00> : vector<16x4096xf32>
    %7 = tpu.matmul %5, %6, %cst_8 {dimension_numbers = #tpu.dot_dimension_numbers<[1], [0], [0], [1], [0, 0, 1, 1], [], []>} : vector<16x4xbf16>, vector<4x4096xbf16>, vector<16x4096xf32> -> vector<16x4096xf32>
    %c0_9 = arith.constant 0 : index
    %c0_10 = arith.constant 0 : index
    %8 = vector.load %arg3[%c0_9, %c0_10] : memref<16x1xf32, #tpu.memory_space<vmem>>, vector<16x1xf32>
    %9 = vector.broadcast %8 : vector<16x1xf32> to vector<16x4096xf32>
    %10 = arith.addf %7, %9 : vector<16x4096xf32>
    %c0_11 = arith.constant 0 : index
    %c256 = arith.constant 256 : index
    %11 = vector.load %arg14[%c0_11, %c256] : memref<16x4608xf32, #tpu.memory_space<vmem>>, vector<16x4096xf32>
    tpu.vector_store %arg14[%c0_11, %c256], %10 {strides = array<i32>} : memref<16x4608xf32, #tpu.memory_space<vmem>>, vector<16x4096xf32>,
    %cst_12 = arith.constant 0.000000e+00 : f32
    %12 = vector.broadcast %cst_12 : f32 to vector<16x4096xf32>
    %c0_13 = arith.constant 0 : index
    %c0_14 = arith.constant 0 : index
    %13 = vector.load %arg14[%c0_13, %c0_14] : memref<16x4608xf32, #tpu.memory_space<vmem>>, vector<16x4096xf32>
    %c0_15 = arith.constant 0 : index
    %c0_16 = arith.constant 0 : index
    %c0_17 = arith.constant 0 : index
    %14 = vector.load %arg4[%c0_15, %c0_16, %c0_17] : memref<3x16x16xbf16, #tpu.memory_space<vmem>>, vector<1x16x16xbf16>
    %15 = vector.shape_cast %14 : vector<1x16x16xbf16> to vector<16x16xbf16>
    %16 = arith.truncf %13 : vector<16x4096xf32> to vector<16x4096xbf16>
    %cst_18 = arith.constant dense<0.000000e+00> : vector<16x4096xf32>
    %17 = tpu.matmul %15, %16, %cst_18 {dimension_numbers = #tpu.dot_dimension_numbers<[1], [0], [0], [1], [0, 0, 1, 1], [], []>} : vector<16x16xbf16>, vector<16x4096xbf16>, vector<16x4096xf32> -> vector<16x4096xf32>
    %18 = arith.addf %12, %17 : vector<16x4096xf32>
    %c0_19 = arith.constant 0 : index
    %c256_20 = arith.constant 256 : index
    %19 = vector.load %arg14[%c0_19, %c256_20] : memref<16x4608xf32, #tpu.memory_space<vmem>>, vector<16x4096xf32>
    %c1 = arith.constant 1 : index
    %c0_21 = arith.constant 0 : index
    %c0_22 = arith.constant 0 : index
    %20 = vector.load %arg4[%c1, %c0_21, %c0_22] : memref<3x16x16xbf16, #tpu.memory_space<vmem>>, vector<1x16x16xbf16>
    %21 = vector.shape_cast %20 : vector<1x16x16xbf16> to vector<16x16xbf16>
    %22 = arith.truncf %19 : vector<16x4096xf32> to vector<16x4096xbf16>
    %cst_23 = arith.constant dense<0.000000e+00> : vector<16x4096xf32>
    %23 = tpu.matmul %21, %22, %cst_23 {dimension_numbers = #tpu.dot_dimension_numbers<[1], [0], [0], [1], [0, 0, 1, 1], [], []>} : vector<16x16xbf16>, vector<16x4096xbf16>, vector<16x4096xf32> -> vector<16x4096xf32>
    %24 = arith.addf %18, %23 : vector<16x4096xf32>
    %c0_24 = arith.constant 0 : index
    %c512 = arith.constant 512 : index
    %25 = vector.load %arg14[%c0_24, %c512] : memref<16x4608xf32, #tpu.memory_space<vmem>>, vector<16x4096xf32>
    %c2 = arith.constant 2 : index
    %c0_25 = arith.constant 0 : index
    %c0_26 = arith.constant 0 : index
    %26 = vector.load %arg4[%c2, %c0_25, %c0_26] : memref<3x16x16xbf16, #tpu.memory_space<vmem>>, vector<1x16x16xbf16>
    %27 = vector.shape_cast %26 : vector<1x16x16xbf16> to vector<16x16xbf16>
    %28 = arith.truncf %25 : vector<16x4096xf32> to vector<16x4096xbf16>
    %cst_27 = arith.constant dense<0.000000e+00> : vector<16x4096xf32>
    %29 = tpu.matmul %27, %28, %cst_27 {dimension_numbers = #tpu.dot_dimension_numbers<[1], [0], [0], [1], [0, 0, 1, 1], [], []>} : vector<16x16xbf16>, vector<16x4096xbf16>, vector<16x4096xf32> -> vector<16x4096xf32>
    %30 = arith.addf %24, %29 : vector<16x4096xf32>
    %c0_28 = arith.constant 0 : index
    %c0_29 = arith.constant 0 : index
    %31 = vector.load %arg5[%c0_28, %c0_29] : memref<16x1xf32, #tpu.memory_space<vmem>>, vector<16x1xf32>
    %32 = vector.broadcast %31 : vector<16x1xf32> to vector<16x4096xf32>
    %33 = arith.addf %30, %32 : vector<16x4096xf32>
    %c0_30 = arith.constant 0 : index
    %c256_31 = arith.constant 256 : index
    %34 = vector.load %arg14[%c0_30, %c256_31] : memref<16x4608xf32, #tpu.memory_space<vmem>>, vector<16x4096xf32>
    tpu.vector_store %arg14[%c0_30, %c256_31], %33 {strides = array<i32>} : memref<16x4608xf32, #tpu.memory_space<vmem>>, vector<16x4096xf32>,
    %cst_32 = arith.constant 0.000000e+00 : f32
    %35 = vector.broadcast %cst_32 : f32 to vector<16x4096xf32>
    %c0_33 = arith.constant 0 : index
    %c240 = arith.constant 240 : index
    %36 = vector.load %arg14[%c0_33, %c240] : memref<16x4608xf32, #tpu.memory_space<vmem>>, vector<16x4096xf32>
    %37 = vector.extract_strided_slice %2 {offsets = [0, 0], sizes = [1, 4096], strides = [1, 1]} : vector<6x4096xf32> to vector<1x4096xf32>
    %38 = vector.broadcast %37 : vector<1x4096xf32> to vector<16x4096xf32>
    %39 = arith.mulf %36, %38 : vector<16x4096xf32>
    %c0_34 = arith.constant 0 : index
    %c0_35 = arith.constant 0 : index
    %c0_36 = arith.constant 0 : index
    %40 = vector.load %arg6[%c0_34, %c0_35, %c0_36] : memref<3x16x16xbf16, #tpu.memory_space<vmem>>, vector<1x16x16xbf16>
    %41 = vector.shape_cast %40 : vector<1x16x16xbf16> to vector<16x16xbf16>
    %42 = arith.truncf %39 : vector<16x4096xf32> to vector<16x4096xbf16>
    %cst_37 = arith.constant dense<0.000000e+00> : vector<16x4096xf32>
    %43 = tpu.matmul %41, %42, %cst_37 {dimension_numbers = #tpu.dot_dimension_numbers<[1], [0], [0], [1], [0, 0, 1, 1], [], []>} : vector<16x16xbf16>, vector<16x4096xbf16>, vector<16x4096xf32> -> vector<16x4096xf32>
    %44 = arith.addf %35, %43 : vector<16x4096xf32>
    %c0_38 = arith.constant 0 : index
    %c256_39 = arith.constant 256 : index
    %45 = vector.load %arg14[%c0_38, %c256_39] : memref<16x4608xf32, #tpu.memory_space<vmem>>, vector<16x4096xf32>
    %c1_40 = arith.constant 1 : index
    %c0_41 = arith.constant 0 : index
    %c0_42 = arith.constant 0 : index
    %46 = vector.load %arg6[%c1_40, %c0_41, %c0_42] : memref<3x16x16xbf16, #tpu.memory_space<vmem>>, vector<1x16x16xbf16>
    %47 = vector.shape_cast %46 : vector<1x16x16xbf16> to vector<16x16xbf16>
    %48 = arith.truncf %45 : vector<16x4096xf32> to vector<16x4096xbf16>
    %cst_43 = arith.constant dense<0.000000e+00> : vector<16x4096xf32>
    %49 = tpu.matmul %47, %48, %cst_43 {dimension_numbers = #tpu.dot_dimension_numbers<[1], [0], [0], [1], [0, 0, 1, 1], [], []>} : vector<16x16xbf16>, vector<16x4096xbf16>, vector<16x4096xf32> -> vector<16x4096xf32>
    %50 = arith.addf %44, %49 : vector<16x4096xf32>
    %c0_44 = arith.constant 0 : index
    %c272 = arith.constant 272 : index
    %51 = vector.load %arg14[%c0_44, %c272] : memref<16x4608xf32, #tpu.memory_space<vmem>>, vector<16x4096xf32>
    %52 = vector.extract_strided_slice %2 {offsets = [2, 0], sizes = [1, 4096], strides = [1, 1]} : vector<6x4096xf32> to vector<1x4096xf32>
    %53 = vector.broadcast %52 : vector<1x4096xf32> to vector<16x4096xf32>
    %54 = arith.mulf %51, %53 : vector<16x4096xf32>
    %c2_45 = arith.constant 2 : index
    %c0_46 = arith.constant 0 : index
    %c0_47 = arith.constant 0 : index
    %55 = vector.load %arg6[%c2_45, %c0_46, %c0_47] : memref<3x16x16xbf16, #tpu.memory_space<vmem>>, vector<1x16x16xbf16>
    %56 = vector.shape_cast %55 : vector<1x16x16xbf16> to vector<16x16xbf16>
    %57 = arith.truncf %54 : vector<16x4096xf32> to vector<16x4096xbf16>
    %cst_48 = arith.constant dense<0.000000e+00> : vector<16x4096xf32>
    %58 = tpu.matmul %56, %57, %cst_48 {dimension_numbers = #tpu.dot_dimension_numbers<[1], [0], [0], [1], [0, 0, 1, 1], [], []>} : vector<16x16xbf16>, vector<16x4096xbf16>, vector<16x4096xf32> -> vector<16x4096xf32>
    %59 = arith.addf %50, %58 : vector<16x4096xf32>
    %c0_49 = arith.constant 0 : index
    %c0_50 = arith.constant 0 : index
    %60 = vector.load %arg7[%c0_49, %c0_50] : memref<16x1xf32, #tpu.memory_space<vmem>>, vector<16x1xf32>
    %61 = vector.broadcast %60 : vector<16x1xf32> to vector<16x4096xf32>
    %62 = arith.addf %59, %61 : vector<16x4096xf32>
    %c0_51 = arith.constant 0 : index
    %c256_52 = arith.constant 256 : index
    %63 = vector.load %arg14[%c0_51, %c256_52] : memref<16x4608xf32, #tpu.memory_space<vmem>>, vector<16x4096xf32>
    tpu.vector_store %arg14[%c0_51, %c256_52], %62 {strides = array<i32>} : memref<16x4608xf32, #tpu.memory_space<vmem>>, vector<16x4096xf32>,
    %cst_53 = arith.constant 0.000000e+00 : f32
    %64 = vector.broadcast %cst_53 : f32 to vector<16x4096xf32>
    %c0_54 = arith.constant 0 : index
    %c255 = arith.constant 255 : index
    %65 = vector.load %arg14[%c0_54, %c255] : memref<16x4608xf32, #tpu.memory_space<vmem>>, vector<16x4096xf32>
    %66 = vector.extract_strided_slice %2 {offsets = [3, 0], sizes = [1, 4096], strides = [1, 1]} : vector<6x4096xf32> to vector<1x4096xf32>
    %67 = vector.broadcast %66 : vector<1x4096xf32> to vector<16x4096xf32>
    %68 = arith.mulf %65, %67 : vector<16x4096xf32>
    %c0_55 = arith.constant 0 : index
    %c0_56 = arith.constant 0 : index
    %c0_57 = arith.constant 0 : index
    %69 = vector.load %arg8[%c0_55, %c0_56, %c0_57] : memref<3x16x16xbf16, #tpu.memory_space<vmem>>, vector<1x16x16xbf16>
    %70 = vector.shape_cast %69 : vector<1x16x16xbf16> to vector<16x16xbf16>
    %71 = arith.truncf %68 : vector<16x4096xf32> to vector<16x4096xbf16>
    %cst_58 = arith.constant dense<0.000000e+00> : vector<16x4096xf32>
    %72 = tpu.matmul %70, %71, %cst_58 {dimension_numbers = #tpu.dot_dimension_numbers<[1], [0], [0], [1], [0, 0, 1, 1], [], []>} : vector<16x16xbf16>, vector<16x4096xbf16>, vector<16x4096xf32> -> vector<16x4096xf32>
    %73 = arith.addf %64, %72 : vector<16x4096xf32>
    %c0_59 = arith.constant 0 : index
    %c256_60 = arith.constant 256 : index
    %74 = vector.load %arg14[%c0_59, %c256_60] : memref<16x4608xf32, #tpu.memory_space<vmem>>, vector<16x4096xf32>
    %c1_61 = arith.constant 1 : index
    %c0_62 = arith.constant 0 : index
    %c0_63 = arith.constant 0 : index
    %75 = vector.load %arg8[%c1_61, %c0_62, %c0_63] : memref<3x16x16xbf16, #tpu.memory_space<vmem>>, vector<1x16x16xbf16>
    %76 = vector.shape_cast %75 : vector<1x16x16xbf16> to vector<16x16xbf16>
    %77 = arith.truncf %74 : vector<16x4096xf32> to vector<16x4096xbf16>
    %cst_64 = arith.constant dense<0.000000e+00> : vector<16x4096xf32>
    %78 = tpu.matmul %76, %77, %cst_64 {dimension_numbers = #tpu.dot_dimension_numbers<[1], [0], [0], [1], [0, 0, 1, 1], [], []>} : vector<16x16xbf16>, vector<16x4096xbf16>, vector<16x4096xf32> -> vector<16x4096xf32>
    %79 = arith.addf %73, %78 : vector<16x4096xf32>
    %c0_65 = arith.constant 0 : index
    %c257 = arith.constant 257 : index
    %80 = vector.load %arg14[%c0_65, %c257] : memref<16x4608xf32, #tpu.memory_space<vmem>>, vector<16x4096xf32>
    %81 = vector.extract_strided_slice %2 {offsets = [5, 0], sizes = [1, 4096], strides = [1, 1]} : vector<6x4096xf32> to vector<1x4096xf32>
    %82 = vector.broadcast %81 : vector<1x4096xf32> to vector<16x4096xf32>
    %83 = arith.mulf %80, %82 : vector<16x4096xf32>
    %c2_66 = arith.constant 2 : index
    %c0_67 = arith.constant 0 : index
    %c0_68 = arith.constant 0 : index
    %84 = vector.load %arg8[%c2_66, %c0_67, %c0_68] : memref<3x16x16xbf16, #tpu.memory_space<vmem>>, vector<1x16x16xbf16>
    %85 = vector.shape_cast %84 : vector<1x16x16xbf16> to vector<16x16xbf16>
    %86 = arith.truncf %83 : vector<16x4096xf32> to vector<16x4096xbf16>
    %cst_69 = arith.constant dense<0.000000e+00> : vector<16x4096xf32>
    %87 = tpu.matmul %85, %86, %cst_69 {dimension_numbers = #tpu.dot_dimension_numbers<[1], [0], [0], [1], [0, 0, 1, 1], [], []>} : vector<16x16xbf16>, vector<16x4096xbf16>, vector<16x4096xf32> -> vector<16x4096xf32>
    %88 = arith.addf %79, %87 : vector<16x4096xf32>
    %c0_70 = arith.constant 0 : index
    %c0_71 = arith.constant 0 : index
    %89 = vector.load %arg9[%c0_70, %c0_71] : memref<16x1xf32, #tpu.memory_space<vmem>>, vector<16x1xf32>
    %90 = vector.broadcast %89 : vector<16x1xf32> to vector<16x4096xf32>
    %91 = arith.addf %88, %90 : vector<16x4096xf32>
    %c0_72 = arith.constant 0 : index
    %c0_73 = arith.constant 0 : index
    %92 = vector.load %arg10[%c0_72, %c0_73] : memref<8x16xbf16, #tpu.memory_space<vmem>>, vector<8x16xbf16>
    %93 = arith.truncf %91 : vector<16x4096xf32> to vector<16x4096xbf16>
    %cst_74 = arith.constant dense<0.000000e+00> : vector<8x4096xf32>
    %94 = tpu.matmul %92, %93, %cst_74 {dimension_numbers = #tpu.dot_dimension_numbers<[1], [0], [0], [1], [0, 0, 1, 1], [], []>} : vector<8x16xbf16>, vector<16x4096xbf16>, vector<8x4096xf32> -> vector<8x4096xf32>
    %c0_75 = arith.constant 0 : index
    %c0_76 = arith.constant 0 : index
    %95 = vector.load %arg11[%c0_75, %c0_76] : memref<8x1xf32, #tpu.memory_space<vmem>>, vector<8x1xf32>
    %96 = vector.broadcast %95 : vector<8x1xf32> to vector<8x4096xf32>
    %97 = arith.addf %94, %96 : vector<8x4096xf32>
    %c0_77 = arith.constant 0 : index
    %c0_78 = arith.constant 0 : index
    %c0_79 = arith.constant 0 : index
    %98 = vector.load %arg13[%c0_77, %c0_78, %c0_79] : memref<1x8x4096xf32, #tpu.memory_space<vmem>>, vector<1x8x4096xf32>
    %99 = vector.shape_cast %98 : vector<1x8x4096xf32> to vector<8x4096xf32>
    %100 = vector.shape_cast %97 : vector<8x4096xf32> to vector<1x8x4096xf32>
    tpu.vector_store %arg13[%c0_77, %c0_78, %c0_79], %100 {strides = array<i32>} : memref<1x8x4096xf32, #tpu.memory_space<vmem>>, vector<1x8x4096xf32>,
    return
  }
  func.func @transform_0(%arg0: i32) -> (i32, i32, i32) {
    %c0_i32 = arith.constant 0 : i32
    %c0_i32_0 = arith.constant 0 : i32
    %c0_i32_1 = arith.constant 0 : i32
    return %arg0, %c0_i32, %c0_i32_0 : i32, i32, i32
  }
  func.func @transform_1(%arg0: i32) -> (i32, i32) {
    %c0_i32 = arith.constant 0 : i32
    %c0_i32_0 = arith.constant 0 : i32
    %c0_i32_1 = arith.constant 0 : i32
    return %c0_i32, %c0_i32_0 : i32, i32
  }
  func.func @transform_2(%arg0: i32) -> (i32, i32) {
    %c0_i32 = arith.constant 0 : i32
    %c0_i32_0 = arith.constant 0 : i32
    %c0_i32_1 = arith.constant 0 : i32
    return %c0_i32, %c0_i32_0 : i32, i32
  }
  func.func @transform_3(%arg0: i32) -> (i32, i32, i32) {
    %c0_i32 = arith.constant 0 : i32
    %c0_i32_0 = arith.constant 0 : i32
    %c0_i32_1 = arith.constant 0 : i32
    %c0_i32_2 = arith.constant 0 : i32
    return %c0_i32, %c0_i32_0, %c0_i32_1 : i32, i32, i32
  }
  func.func @transform_4(%arg0: i32) -> (i32, i32) {
    %c0_i32 = arith.constant 0 : i32
    %c0_i32_0 = arith.constant 0 : i32
    %c0_i32_1 = arith.constant 0 : i32
    return %c0_i32, %c0_i32_0 : i32, i32
  }
  func.func @transform_5(%arg0: i32) -> (i32, i32, i32) {
    %c0_i32 = arith.constant 0 : i32
    %c0_i32_0 = arith.constant 0 : i32
    %c0_i32_1 = arith.constant 0 : i32
    %c0_i32_2 = arith.constant 0 : i32
    return %c0_i32, %c0_i32_0, %c0_i32_1 : i32, i32, i32
  }
  func.func @transform_6(%arg0: i32) -> (i32, i32) {
    %c0_i32 = arith.constant 0 : i32
    %c0_i32_0 = arith.constant 0 : i32
    %c0_i32_1 = arith.constant 0 : i32
    return %c0_i32, %c0_i32_0 : i32, i32
  }
  func.func @transform_7(%arg0: i32) -> (i32, i32, i32) {
    %c0_i32 = arith.constant 0 : i32
    %c0_i32_0 = arith.constant 0 : i32
    %c0_i32_1 = arith.constant 0 : i32
    %c0_i32_2 = arith.constant 0 : i32
    return %c0_i32, %c0_i32_0, %c0_i32_1 : i32, i32, i32
  }
  func.func @transform_8(%arg0: i32) -> (i32, i32) {
    %c0_i32 = arith.constant 0 : i32
    %c0_i32_0 = arith.constant 0 : i32
    %c0_i32_1 = arith.constant 0 : i32
    return %c0_i32, %c0_i32_0 : i32, i32
  }
  func.func @transform_9(%arg0: i32) -> (i32, i32) {
    %c0_i32 = arith.constant 0 : i32
    %c0_i32_0 = arith.constant 0 : i32
    %c0_i32_1 = arith.constant 0 : i32
    return %c0_i32, %c0_i32_0 : i32, i32
  }
  func.func @transform_10(%arg0: i32) -> (i32, i32) {
    %c0_i32 = arith.constant 0 : i32
    %c0_i32_0 = arith.constant 0 : i32
    %c0_i32_1 = arith.constant 0 : i32
    return %c0_i32, %c0_i32_0 : i32, i32
  }
  func.func @transform_11(%arg0: i32) -> (i32, i32) {
    %c0_i32 = arith.constant 0 : i32
    %c0_i32_0 = arith.constant 0 : i32
    %c0_i32_1 = arith.constant 0 : i32
    return %c0_i32, %c0_i32_0 : i32, i32
  }
  func.func @transform_12(%arg0: i32) -> (i32, i32, i32) {
    %c0_i32 = arith.constant 0 : i32
    %c0_i32_0 = arith.constant 0 : i32
    %c0_i32_1 = arith.constant 0 : i32
    return %arg0, %c0_i32, %c0_i32_0 : i32, i32, i32
  }
}

</mosaic_0001>

<bundles_post_ra>
// kernel: queue_block_forward.1
= control target key start
LH: loop header
LB: loop body
LE: loop exit
PB: predicated region body
PF: predicated region fallthrough
CT: control target
= control target key end

     0   :  { %s9461_s21 = smov 0   ;;  %s14184_s0 = inlined_call_operand.vmem [shape: f32[2,4,4096], index: 0, kind: input, shape index: {}]   ;;  %s14185_s1 = inlined_call_operand.vmem [shape: bf16[16,4], index: 1, kind: input, shape index: {}]   ;;  %s14186_s2 = inlined_call_operand.vmem [shape: f32[16,1], index: 2, kind: input, shape index: {}]   ;;  %s14187_s3 = inlined_call_operand.vmem [shape: bf16[3,16,16], index: 3, kind: input, shape index: {}]   ;;  %s14188_s4 = inlined_call_operand.vmem [shape: f32[16,1], index: 4, kind: input, shape index: {}]   ;;  %s14189_s5 = inlined_call_operand.vmem [shape: bf16[3,16,16], index: 5, kind: input, shape index: {}]   ;;  %s14190_s6 = inlined_call_operand.vmem [shape: f32[16,1], index: 6, kind: input, shape index: {}]   ;;  %s14191_s7 = inlined_call_operand.vmem [shape: bf16[3,16,16], index: 7, kind: input, shape index: {}]   ;;  %s14192_s8 = inlined_call_operand.vmem [shape: f32[16,1], index: 8, kind: input, shape index: {}]   ;;  %s14193_s9 = inlined_call_operand.vmem [shape: bf16[8,16], index: 9, kind: input, shape index: {}]   ;;  %s14194_s10 = inlined_call_operand.vmem [shape: f32[8,1], index: 10, kind: input, shape index: {}]   ;;  %s14195_s11 = inlined_call_operand.vmem [shape: f32[6,4096], index: 11, kind: input, shape index: {}]   ;;  %s14196_s12 = inlined_call_operand.vmem [shape: f32[2,8,4096], index: 12, kind: output, shape index: {}]  }
   0x1 LB: > { %s8869_s22 = sadd.s32 4294967295, %s9388_s21   ;;  %p8873_p0 = scmp.ge.s32.totalorder %s9388_s21, 1  ;;  %s9388_s21 = sphi %s9461_s21, %s22_s21  }
   0x2   : > { %p362_p1 = scmp.lt.s32.totalorder %s9388_s21, 3 }
   0x4   : > { %p363_p2 = pnand %p8873_p0, %p362_p1 }
   0x6   : > { %366 = sbr.rel (%p363_p2) target bundleno = 2013 (0x7dd), region = 68 }
   0xb   : > { %p404_p3 = scmp.lt.s32.totalorder %s8869_s22, 1  ;;  %v668_v0 = vld [vmem:[%s14186_s2] sm:$0xff]  ;;  %v9390_v1 = vmov 0   ;;  %v669_v5 = vld [vmem:[%s14186_s2 + $0x8] sm:$0xff]  ;;  %vm689_vm0 = vcmask 1041408   ;;  %vm685_vm1 = vcmask 31744  }
   0xc   : > { %9310 = vset.pattern.permute.xlu0 %v9390_v1  ;;  %9311 = vset.pattern.permute.xlu1 %v9390_v1  ;;  %v9495_v21 = vld [vmem:[%s14185_s1] sm:$0xff]  ;;  %vm1410_vm2 = vcmask 130048   ;;  %s9392_s27 = smov 112   ;;  %vm3271_vm3 = vcmask 916480   ;;  %s9394_s18 = smov 127   ;;  %vm5926_vm4 = vcmask 1039360  }
   0xd   : > { %s15058_s22 = smov (!%p404_p3, %s8869_s22), 1  ;;  %672 = vperm.xlu0 %9310, %v668_v0   ;;  %9312 = vset.pattern.permute.xlu2 %v9390_v1  ;;  %vm6687_vm5 = vcmask 7168  }
   0xe   : > { %s9284_s25 = sshll.u32 %s15058_s22, 7  ;;  %s9285_s19 = sshll.u32 %s15058_s22, 8 }
   0xf   : > { %s9478_s28 = scalar_lea.vmem %s14184_s0, %s9284_s25  ;;  %s9393_s25 = smov 16  }
  0x10   : > { %v519_v2 = vld [vmem:[%s9478_s28] sm:$0xff]  ;;  %v520_v3 = vld [vmem:[%s9478_s28 + $0x8] sm:$0xff]  ;;  %v521_v4 = vld [vmem:[%s9478_s28 + $0x10] sm:$0xff]  ;;  %s14109_s24 = scalar_lea.vmem %s14196_s12, %s9285_s19 }
  0x11   : > { %553 = vst [vmem:[#allocation1] ss:$2 sm:$0xff] %v519_v2  ;;  %v522_v6 = vld [vmem:[%s9478_s28 + $0x18] sm:$0xff]  ;;  %v523_v7 = vld [vmem:[%s9478_s28 + $0x20] sm:$0xff]  ;;  %v524_v8 = vld [vmem:[%s9478_s28 + $0x28] sm:$0xff] }
  0x12   : > { %555 = vst [vmem:[#allocation1 + $0x10] ss:$2 sm:$0xff] %v520_v3  ;;  %v525_v14 = vld [vmem:[%s9478_s28 + $0x30] sm:$0xff]  ;;  %v526_v25 = vld [vmem:[%s9478_s28 + $0x38] sm:$0xff]  ;;  %v527_v29 = vld [vmem:[%s9478_s28 + $0x40] sm:$0xff] }
  0x13   : > { %557 = vst [vmem:[#allocation1 + $0x20] ss:$2 sm:$0xff] %v521_v4  ;;  %v528_v35 = vld [vmem:[%s9478_s28 + $0x48] sm:$0xff]  ;;  %v529_v42 = vld [vmem:[%s9478_s28 + $0x50] sm:$0xff]  ;;  %v530_v49 = vld [vmem:[%s9478_s28 + $0x58] sm:$0xff] }
  0x14   : > { %559 = vst [vmem:[#allocation1 + $0x30] ss:$2 sm:$0xff] %v522_v6  ;;  %v531_v1 = vld [vmem:[%s9478_s28 + $0x60] sm:$0xff]  ;;  %v532_v2 = vld [vmem:[%s9478_s28 + $0x68] sm:$0xff] }
  0x15   : > { %677 = vperm.xlu0 %9310, %v669_v5  }
  0x18   : > { %v560_v9 = vld.sshfl [vmem:[#allocation1] sm:$0xff pattern:$0x75316420]  ;;  %v561_v10 = vld.sshfl [vmem:[#allocation1 + $0x8] sm:$0xff pattern:$0x75316420] }
  0x19   : > { %v636_v11 = vpack.c.bf16 %v560_v9, %v560_v9  ;;  %568 = vst [vmem:[#allocation1] ss:$2 sm:$0xff] %v523_v7  ;;  %v637_v12 = vpack.c.bf16 %v561_v10, %v561_v10  ;;  %v562_v13 = vld.sshfl [vmem:[#allocation1 + $0x10] sm:$0xff pattern:$0x75316420] }
  0x1a   : > { %v638_v15 = vpack.c.bf16 %v562_v13, %v562_v13  ;;  %v563_v16 = vld.sshfl [vmem:[#allocation1 + $0x18] sm:$0xff pattern:$0x75316420]  ;;  %v564_v17 = vld.sshfl [vmem:[#allocation1 + $0x20] sm:$0xff pattern:$0x75316420] }
  0x1b   : > { %v691_v18 = vsel %vm689_vm0, %v636_v11, 0  ;;  %v694_v19 = vsel %vm689_vm0, %v637_v12, 0  ;;  %569 = vst [vmem:[#allocation1 + $0x10] ss:$2 sm:$0xff] %v524_v8  ;;  %v639_v20 = vpack.c.bf16 %v563_v16, %v563_v16  ;;  %v640_v22 = vpack.c.bf16 %v564_v17, %v564_v17  ;;  %v534_v16 = vld [vmem:[%s9478_s28 + $0x78] sm:$0xff] }
  0x1c   : > { %793 = vmatpush.bf16.msra.mxu0 %v691_v18  ;;  %807 = vmatpush.bf16.msra.mxu1 %v694_v19  ;;  %v697_v23 = vsel %vm689_vm0, %v638_v15, 0  ;;  %v565_v24 = vld.sshfl [vmem:[#allocation1 + $0x28] sm:$0xff pattern:$0x75316420]  ;;  %v533_v15 = vld [vmem:[%s9478_s28 + $0x70] sm:$0xff] }
  0x1d   : > { %821 = vmatpush.bf16.msra.mxu2 %v697_v23  ;;  %v700_v26 = vsel %vm689_vm0, %v639_v20, 0  ;;  %v703_v27 = vsel %vm689_vm0, %v640_v22, 0  ;;  %570 = vst [vmem:[#allocation1 + $0x20] ss:$2 sm:$0xff] %v525_v14  ;;  %v641_v28 = vpack.c.bf16 %v565_v24, %v565_v24 }
  0x1e   : > { %835 = vmatpush.bf16.msra.mxu3 %v700_v26  ;;  %v566_v30 = vld.sshfl [vmem:[#allocation1 + $0x30] sm:$0xff pattern:$0x75316420]  ;;  %v567_v31 = vld.sshfl [vmem:[#allocation1 + $0x38] sm:$0xff pattern:$0x75316420] }
  0x1f   : > { %8882 = vmatmul.msk.bf16.vlgmr.msra.gmra.mxu0 %vm685_vm1, %v9495_v21  ;;  %8883 = vmatmul.msk.bf16.vlgmr.msra.gmra.mxu1 %vm685_vm1, %v9495_v21  ;;  %v706_v32 = vsel %vm689_vm0, %v641_v28, 0  ;;  %v642_v33 = vpack.c.bf16 %v566_v30, %v566_v30  ;;  %571 = vst [vmem:[#allocation1 + $0x30] ss:$2 sm:$0xff] %v526_v25  ;;  %v643_v34 = vpack.c.bf16 %v567_v31, %v567_v31 }
  0x20   : > { %849 = vmatpush.bf16.msrb.mxu0 %v703_v27  ;;  %8884 = vmatmul.msk.bf16.vlgmr.msra.gmra.mxu2 %vm685_vm1, %v9495_v21  ;;  %v572_v36 = vld.sshfl [vmem:[#allocation1] sm:$0xff pattern:$0x75316420]  ;;  %v573_v37 = vld.sshfl [vmem:[#allocation1 + $0x8] sm:$0xff pattern:$0x75316420] }
  0x21   : > { %863 = vmatpush.bf16.msrb.mxu1 %v706_v32  ;;  %8885 = vmatmul.msk.bf16.vlgmr.msra.gmra.mxu3 %vm685_vm1, %v9495_v21  ;;  %v709_v38 = vsel %vm689_vm0, %v642_v33, 0  ;;  %v712_v39 = vsel %vm689_vm0, %v643_v34, 0  ;;  %v644_v40 = vpack.c.bf16 %v572_v36, %v572_v36  ;;  %580 = vst [vmem:[#allocation1] ss:$2 sm:$0xff] %v527_v29  ;;  %v645_v41 = vpack.c.bf16 %v573_v37, %v573_v37 }
  0x22   : > { %877 = vmatpush.bf16.msrb.mxu2 %v709_v38  ;;  %891 = vmatpush.bf16.msrb.mxu3 %v712_v39  ;;  %v574_v43 = vld.sshfl [vmem:[#allocation1 + $0x10] sm:$0xff pattern:$0x75316420]  ;;  %v575_v44 = vld.sshfl [vmem:[#allocation1 + $0x18] sm:$0xff pattern:$0x75316420] }
  0x23   : > { %v715_v45 = vsel %vm689_vm0, %v644_v40, 0  ;;  %v718_v46 = vsel %vm689_vm0, %v645_v41, 0  ;;  %v646_v47 = vpack.c.bf16 %v574_v43, %v574_v43  ;;  %581 = vst [vmem:[#allocation1 + $0x10] ss:$2 sm:$0xff] %v528_v35  ;;  %v647_v48 = vpack.c.bf16 %v575_v44, %v575_v44 }
  0x24   : > { %905 = vmatpush.bf16.msra.mxu0 %v715_v45  ;;  %v576_v50 = vld.sshfl [vmem:[#allocation1 + $0x20] sm:$0xff pattern:$0x75316420]  ;;  %v577_v51 = vld.sshfl [vmem:[#allocation1 + $0x28] sm:$0xff pattern:$0x75316420] }
  0x25   : > { %919 = vmatpush.bf16.msra.mxu1 %v718_v46  ;;  %v721_v52 = vsel %vm689_vm0, %v646_v47, 0  ;;  %v724_v53 = vsel %vm689_vm0, %v647_v48, 0  ;;  %582 = vst [vmem:[#allocation1 + $0x20] ss:$2 sm:$0xff] %v529_v42  ;;  %v648_v56 = vpack.c.bf16 %v576_v50, %v576_v50  ;;  %v649_v57 = vpack.c.bf16 %v577_v51, %v577_v51 }
  0x26   : > { %933 = vmatpush.bf16.msra.mxu2 %v721_v52  ;;  %947 = vmatpush.bf16.msra.mxu3 %v724_v53  ;;  %v578_v54 = vld.sshfl [vmem:[#allocation1 + $0x30] sm:$0xff pattern:$0x75316420]  ;;  %v579_v55 = vld.sshfl [vmem:[#allocation1 + $0x38] sm:$0xff pattern:$0x75316420] }
  0x27   : > { %583 = vst [vmem:[#allocation1 + $0x30] ss:$2 sm:$0xff] %v530_v49  ;;  %v650_v58 = vpack.c.bf16 %v578_v54, %v578_v54  ;;  %v651_v59 = vpack.c.bf16 %v579_v55, %v579_v55  ;;  %v727_v60 = vsel %vm689_vm0, %v648_v56, 0  ;;  %v730_v61 = vsel %vm689_vm0, %v649_v57, 0 }
  0x28   : > { %v584_v0 = vld.sshfl [vmem:[#allocation1] sm:$0xff pattern:$0x75316420]  ;;  %v585_v3 = vld.sshfl [vmem:[#allocation1 + $0x8] sm:$0xff pattern:$0x75316420] }
  0x29   : > { %v733_v62 = vsel %vm689_vm0, %v650_v58, 0  ;;  %v736_v63 = vsel %vm689_vm0, %v651_v59, 0  ;;  %592 = vst [vmem:[#allocation1] ss:$2 sm:$0xff] %v531_v1  ;;  %v652_v6 = vpack.c.bf16 %v584_v0, %v584_v0  ;;  %v653_v7 = vpack.c.bf16 %v585_v3, %v585_v3 }
  0x2a   : > { %v586_v4 = vld.sshfl [vmem:[#allocation1 + $0x10] sm:$0xff pattern:$0x75316420]  ;;  %v587_v5 = vld.sshfl [vmem:[#allocation1 + $0x18] sm:$0xff pattern:$0x75316420] }
  0x2b   : > { %593 = vst [vmem:[#allocation1 + $0x10] ss:$2 sm:$0xff] %v532_v2  ;;  %v654_v8 = vpack.c.bf16 %v586_v4, %v586_v4  ;;  %v655_v9 = vpack.c.bf16 %v587_v5, %v587_v5  ;;  %v739_v10 = vsel %vm689_vm0, %v652_v6, 0  ;;  %v742_v11 = vsel %vm689_vm0, %v653_v7, 0  ;;  %v9615_v2 = vld [vmem:[%s14187_s3 + $0x8] sm:$0xff] }
  0x2c   : > { %v588_v14 = vld.sshfl [vmem:[#allocation1 + $0x20] sm:$0xff pattern:$0x75316420]  ;;  %v589_v17 = vld.sshfl [vmem:[#allocation1 + $0x28] sm:$0xff pattern:$0x75316420] }
  0x2d   : > { %v745_v12 = vsel %vm689_vm0, %v654_v8, 0  ;;  %v748_v13 = vsel %vm689_vm0, %v655_v9, 0  ;;  %594 = vst [vmem:[#allocation1 + $0x20] ss:$2 sm:$0xff] %v533_v15  ;;  %v656_v20 = vpack.c.bf16 %v588_v14, %v588_v14  ;;  %v657_v22 = vpack.c.bf16 %v589_v17, %v589_v17 }
  0x2e   : > { %v590_v18 = vld.sshfl [vmem:[#allocation1 + $0x30] sm:$0xff pattern:$0x75316420]  ;;  %v591_v19 = vld.sshfl [vmem:[#allocation1 + $0x38] sm:$0xff pattern:$0x75316420] }
  0x2f   : > { %8886 = vmatmul.msk.bf16.vlgmr.msrb.gmra.mxu0 %vm685_vm1, %v9495_v21  ;;  %8887 = vmatmul.msk.bf16.vlgmr.msrb.gmra.mxu1 %vm685_vm1, %v9495_v21  ;;  %595 = vst [vmem:[#allocation1 + $0x30] ss:$2 sm:$0xff] %v534_v16  ;;  %v658_v23 = vpack.c.bf16 %v590_v18, %v590_v18  ;;  %v659_v24 = vpack.c.bf16 %v591_v19, %v591_v19  ;;  %v751_v25 = vsel %vm689_vm0, %v656_v20, 0  ;;  %v754_v26 = vsel %vm689_vm0, %v657_v22, 0 }
  0x30   : > { %8888 = vmatmul.msk.bf16.vlgmr.msrb.gmra.mxu2 %vm685_vm1, %v9495_v21  ;;  %961 = vmatpush.bf16.msrb.mxu0 %v727_v60  ;;  %v596_v29 = vld.sshfl [vmem:[#allocation1] sm:$0xff pattern:$0x75316420]  ;;  %v597_v30 = vld.sshfl [vmem:[#allocation1 + $0x8] sm:$0xff pattern:$0x75316420] }
  0x31   : > { %8889 = vmatmul.msk.bf16.vlgmr.msrb.gmra.mxu3 %vm685_vm1, %v9495_v21  ;;  %975 = vmatpush.bf16.msrb.mxu1 %v730_v61  ;;  %v757_v27 = vsel %vm689_vm0, %v658_v23, 0  ;;  %v760_v28 = vsel %vm689_vm0, %v659_v24, 0  ;;  %v660_v33 = vpack.c.bf16 %v596_v29, %v596_v29  ;;  %v661_v34 = vpack.c.bf16 %v597_v30, %v597_v30 }
  0x32   : > { %989 = vmatpush.bf16.msrb.mxu2 %v733_v62  ;;  %1003 = vmatpush.bf16.msrb.mxu3 %v736_v63  ;;  %v598_v31 = vld.sshfl [vmem:[#allocation1 + $0x10] sm:$0xff pattern:$0x75316420]  ;;  %v599_v32 = vld.sshfl [vmem:[#allocation1 + $0x18] sm:$0xff pattern:$0x75316420] }
  0x33   : > { %v662_v35 = vpack.c.bf16 %v598_v31, %v598_v31  ;;  %v663_v36 = vpack.c.bf16 %v599_v32, %v599_v32  ;;  %v763_v37 = vsel %vm689_vm0, %v660_v33, 0  ;;  %v766_v38 = vsel %vm689_vm0, %v661_v34, 0 }
  0x34   : > { %v600_v41 = vld.sshfl [vmem:[#allocation1 + $0x20] sm:$0xff pattern:$0x75316420]  ;;  %v601_v42 = vld.sshfl [vmem:[#allocation1 + $0x28] sm:$0xff pattern:$0x75316420] }
  0x35   : > { %v769_v39 = vsel %vm689_vm0, %v662_v35, 0  ;;  %v772_v40 = vsel %vm689_vm0, %v663_v36, 0  ;;  %v664_v45 = vpack.c.bf16 %v600_v41, %v600_v41  ;;  %v665_v46 = vpack.c.bf16 %v601_v42, %v601_v42 }
  0x36   : > { %v602_v43 = vld.sshfl [vmem:[#allocation1 + $0x30] sm:$0xff pattern:$0x75316420]  ;;  %v603_v44 = vld.sshfl [vmem:[#allocation1 + $0x38] sm:$0xff pattern:$0x75316420] }
  0x37   : > { %v666_v47 = vpack.c.bf16 %v602_v43, %v602_v43  ;;  %v667_v48 = vpack.c.bf16 %v603_v44, %v603_v44  ;;  %v775_v49 = vsel %vm689_vm0, %v664_v45, 0  ;;  %v778_v50 = vsel %vm689_vm0, %v665_v46, 0 }
  0x39   : > { %v781_v51 = vsel %vm689_vm0, %v666_v47, 0  ;;  %v784_v52 = vsel %vm689_vm0, %v667_v48, 0 }
  0x3f   : > { %8890 = vmatmul.msk.bf16.vlgmr.msra.gmra.mxu0 %vm685_vm1, %v9495_v21  ;;  %8891 = vmatmul.msk.bf16.vlgmr.msra.gmra.mxu1 %vm685_vm1, %v9495_v21 }
  0x40   : > { %8892 = vmatmul.msk.bf16.vlgmr.msra.gmra.mxu2 %vm685_vm1, %v9495_v21  ;;  %1017 = vmatpush.bf16.msra.mxu0 %v739_v10 }
  0x41   : > { %8893 = vmatmul.msk.bf16.vlgmr.msra.gmra.mxu3 %vm685_vm1, %v9495_v21  ;;  %1031 = vmatpush.bf16.msra.mxu1 %v742_v11 }
  0x42   : > { %1045 = vmatpush.bf16.msra.mxu2 %v745_v12  ;;  %1059 = vmatpush.bf16.msra.mxu3 %v748_v13 }
  0x4f   : > { %8894 = vmatmul.msk.bf16.vlgmr.msrb.gmra.mxu0 %vm685_vm1, %v9495_v21  ;;  %8895 = vmatmul.msk.bf16.vlgmr.msrb.gmra.mxu1 %vm685_vm1, %v9495_v21 }
  0x50   : > { %8896 = vmatmul.msk.bf16.vlgmr.msrb.gmra.mxu2 %vm685_vm1, %v9495_v21  ;;  %1073 = vmatpush.bf16.msrb.mxu0 %v751_v25 }
  0x51   : > { %8897 = vmatmul.msk.bf16.vlgmr.msrb.gmra.mxu3 %vm685_vm1, %v9495_v21  ;;  %1087 = vmatpush.bf16.msrb.mxu1 %v754_v26 }
  0x52   : > { %1101 = vmatpush.bf16.msrb.mxu2 %v757_v27  ;;  %1115 = vmatpush.bf16.msrb.mxu3 %v760_v28 }
  0x5f   : > { %8898 = vmatmul.msk.bf16.vlgmr.msra.gmra.mxu0 %vm685_vm1, %v9495_v21  ;;  %8899 = vmatmul.msk.bf16.vlgmr.msra.gmra.mxu1 %vm685_vm1, %v9495_v21 }
  0x60   : > { %8900 = vmatmul.msk.bf16.vlgmr.msra.gmra.mxu2 %vm685_vm1, %v9495_v21  ;;  %1129 = vmatpush.bf16.msra.mxu0 %v763_v37 }
  0x61   : > { %8901 = vmatmul.msk.bf16.vlgmr.msra.gmra.mxu3 %vm685_vm1, %v9495_v21  ;;  %1143 = vmatpush.bf16.msra.mxu1 %v766_v38 }
  0x62   : > { %1157 = vmatpush.bf16.msra.mxu2 %v769_v39  ;;  %1171 = vmatpush.bf16.msra.mxu3 %v772_v40 }
  0x6f   : > { %8902 = vmatmul.msk.bf16.vlgmr.msrb.gmra.mxu0 %vm685_vm1, %v9495_v21  ;;  %8903 = vmatmul.msk.bf16.vlgmr.msrb.gmra.mxu1 %vm685_vm1, %v9495_v21 }
  0x70   : > { %8904 = vmatmul.msk.bf16.vlgmr.msrb.gmra.mxu2 %vm685_vm1, %v9495_v21  ;;  %1185 = vmatpush.bf16.msrb.mxu0 %v775_v49 }
  0x71   : > { %8905 = vmatmul.msk.bf16.vlgmr.msrb.gmra.mxu3 %vm685_vm1, %v9495_v21  ;;  %1199 = vmatpush.bf16.msrb.mxu1 %v778_v50 }
  0x72   : > { %1213 = vmatpush.bf16.msrb.mxu2 %v781_v51  ;;  %1227 = vmatpush.bf16.msrb.mxu3 %v784_v52 }
  0x7f   : > { %8906 = vmatmul.msk.bf16.vlgmr.msra.gmra.mxu0 %vm685_vm1, %v9495_v21  ;;  %8907 = vmatmul.msk.bf16.vlgmr.msra.gmra.mxu1 %vm685_vm1, %v9495_v21  ;;  %v9600_v53 = vpop.permute.xlu0 %672 }
  0x80   : > { %8908 = vmatmul.msk.bf16.vlgmr.msra.gmra.mxu2 %vm685_vm1, %v9495_v21 }
  0x81   : > { %8909 = vmatmul.msk.bf16.vlgmr.msra.gmra.mxu3 %vm685_vm1, %v9495_v21 }
  0x87   : > { %v9602_v56 = vpop.permute.xlu0 %677 }
  0x8f   : > { %8910 = vmatmul.msk.bf16.vlgmr.msrb.gmra.mxu0 %vm685_vm1, %v9495_v21  ;;  %8911 = vmatmul.msk.bf16.vlgmr.msrb.gmra.mxu1 %vm685_vm1, %v9495_v21 }
  0x90   : > { %8912 = vmatmul.msk.bf16.vlgmr.msrb.gmra.mxu2 %vm685_vm1, %v9495_v21 }
  0x91   : > { %8913 = vmatmul.msk.bf16.vlgmr.msrb.gmra.mxu3 %vm685_vm1, %v9495_v21 }
  0x9c   : > { %v795_v54 = vpop.f32.mrf.mxu0  ;;  %v809_v55 = vpop.f32.mrf.mxu1 }
  0x9d   : > { %v796_v60 = vadd.f32 %v795_v54, %v9600_v53  ;;  %v810_v63 = vadd.f32 %v809_v55, %v9600_v53 }
  0xa3   : > { %v823_v57 = vpop.f32.mrf.mxu2 }
  0xa4   : > { %v837_v58 = vpop.f32.mrf.mxu3  ;;  %v797_v59 = vpop.f32.mrf.mxu0  ;;  %v824_v4 = vadd.f32 %v823_v57, %v9600_v53 }
  0xa5   : > { %v798_v61 = vadd.f32 %v797_v59, %v9602_v56  ;;  %v811_v62 = vpop.f32.mrf.mxu1  ;;  %v838_v8 = vadd.f32 %v837_v58, %v9600_v53 }
  0xa6   : > { %v812_v0 = vadd.f32 %v811_v62, %v9602_v56 }
  0xa7   : > { %v9608_v1 = vpack.c.bf16 %v798_v61, %v796_v60 }
  0xa8   : > { %v9610_v21 = vpack.c.bf16 %v812_v0, %v810_v63 }
  0xa9   : > { %1421 = vmatpush.bf16.msra.mxu0 %v9608_v1 }
  0xaa   : > { %1435 = vmatpush.bf16.msra.mxu1 %v9610_v21 }
  0xab   : > { %v825_v3 = vpop.f32.mrf.mxu2 }
  0xac   : > { %v826_v5 = vadd.f32 %v825_v3, %v9602_v56  ;;  %v839_v6 = vpop.f32.mrf.mxu3  ;;  %v851_v7 = vpop.f32.mrf.mxu0  ;;  %8920 = vmatmul.msk.bf16.vlgmr.msra.gmra.mxu0 %vm1410_vm2, %v9615_v2 }
  0xad   : > { %v840_v9 = vadd.f32 %v839_v6, %v9602_v56  ;;  %v865_v10 = vpop.f32.mrf.mxu1  ;;  %8921 = vmatmul.msk.bf16.vlgmr.msra.gmra.mxu1 %vm1410_vm2, %v9615_v2  ;;  %v852_v16 = vadd.f32 %v851_v7, %v9600_v53 }
  0xae   : > { %v9627_v11 = vpack.c.bf16 %v826_v5, %v824_v4  ;;  %v866_v19 = vadd.f32 %v865_v10, %v9600_v53 }
  0xaf   : > { %v9629_v12 = vpack.c.bf16 %v840_v9, %v838_v8 }
  0xb0   : > { %1449 = vmatpush.bf16.msra.mxu2 %v9627_v11 }
  0xb1   : > { %1463 = vmatpush.bf16.msra.mxu3 %v9629_v12 }
  0xb3   : > { %v879_v13 = vpop.f32.mrf.mxu2  ;;  %8922 = vmatmul.msk.bf16.vlgmr.msra.gmra.mxu2 %vm1410_vm2, %v9615_v2 }
  0xb4   : > { %v893_v14 = vpop.f32.mrf.mxu3  ;;  %8923 = vmatmul.msk.bf16.vlgmr.msra.gmra.mxu3 %vm1410_vm2, %v9615_v2  ;;  %v853_v15 = vpop.f32.mrf.mxu0  ;;  %v880_v25 = vadd.f32 %v879_v13, %v9600_v53 }
  0xb5   : > { %v854_v17 = vadd.f32 %v853_v15, %v9602_v56  ;;  %v867_v18 = vpop.f32.mrf.mxu1  ;;  %v894_v29 = vadd.f32 %v893_v14, %v9600_v53 }
  0xb6   : > { %v868_v20 = vadd.f32 %v867_v18, %v9602_v56 }
  0xb7   : > { %v9641_v22 = vpack.c.bf16 %v854_v17, %v852_v16 }
  0xb8   : > { %v9643_v23 = vpack.c.bf16 %v868_v20, %v866_v19 }
  0xb9   : > { %1477 = vmatpush.bf16.msrb.mxu0 %v9641_v22 }
  0xba   : > { %1491 = vmatpush.bf16.msrb.mxu1 %v9643_v23 }
  0xbb   : > { %v881_v24 = vpop.f32.mrf.mxu2 }
  0xbc   : > { %v882_v26 = vadd.f32 %v881_v24, %v9602_v56  ;;  %v895_v27 = vpop.f32.mrf.mxu3  ;;  %v907_v28 = vpop.f32.mrf.mxu0  ;;  %8924 = vmatmul.msk.bf16.vlgmr.msrb.gmra.mxu0 %vm1410_vm2, %v9615_v2 }
  0xbd   : > { %v896_v30 = vadd.f32 %v895_v27, %v9602_v56  ;;  %v921_v31 = vpop.f32.mrf.mxu1  ;;  %8925 = vmatmul.msk.bf16.vlgmr.msrb.gmra.mxu1 %vm1410_vm2, %v9615_v2  ;;  %v908_v37 = vadd.f32 %v907_v28, %v9600_v53 }
  0xbe   : > { %v9655_v32 = vpack.c.bf16 %v882_v26, %v880_v25  ;;  %v922_v40 = vadd.f32 %v921_v31, %v9600_v53 }
  0xbf   : > { %v9657_v33 = vpack.c.bf16 %v896_v30, %v894_v29 }
  0xc0   : > { %1505 = vmatpush.bf16.msrb.mxu2 %v9655_v32 }
  0xc1   : > { %1519 = vmatpush.bf16.msrb.mxu3 %v9657_v33 }
  0xc3   : > { %v935_v34 = vpop.f32.mrf.mxu2  ;;  %8926 = vmatmul.msk.bf16.vlgmr.msrb.gmra.mxu2 %vm1410_vm2, %v9615_v2 }
  0xc4   : > { %v949_v35 = vpop.f32.mrf.mxu3  ;;  %8927 = vmatmul.msk.bf16.vlgmr.msrb.gmra.mxu3 %vm1410_vm2, %v9615_v2  ;;  %v909_v36 = vpop.f32.mrf.mxu0  ;;  %v936_v45 = vadd.f32 %v935_v34, %v9600_v53 }
  0xc5   : > { %v910_v38 = vadd.f32 %v909_v36, %v9602_v56  ;;  %v923_v39 = vpop.f32.mrf.mxu1  ;;  %v950_v49 = vadd.f32 %v949_v35, %v9600_v53 }
  0xc6   : > { %v924_v41 = vadd.f32 %v923_v39, %v9602_v56 }
  0xc7   : > { %v9669_v42 = vpack.c.bf16 %v910_v38, %v908_v37 }
  0xc8   : > { %v9671_v43 = vpack.c.bf16 %v924_v41, %v922_v40 }
  0xc9   : > { %1533 = vmatpush.bf16.msra.mxu0 %v9669_v42 }
  0xca   : > { %1547 = vmatpush.bf16.msra.mxu1 %v9671_v43 }
  0xcb   : > { %v937_v44 = vpop.f32.mrf.mxu2 }
  0xcc   : > { %v938_v46 = vadd.f32 %v937_v44, %v9602_v56  ;;  %v951_v47 = vpop.f32.mrf.mxu3  ;;  %v963_v48 = vpop.f32.mrf.mxu0  ;;  %8928 = vmatmul.msk.bf16.vlgmr.msra.gmra.mxu0 %vm1410_vm2, %v9615_v2 }
  0xcd   : > { %v952_v50 = vadd.f32 %v951_v47, %v9602_v56  ;;  %v977_v51 = vpop.f32.mrf.mxu1  ;;  %8929 = vmatmul.msk.bf16.vlgmr.msra.gmra.mxu1 %vm1410_vm2, %v9615_v2  ;;  %v964_v59 = vadd.f32 %v963_v48, %v9600_v53 }
  0xce   : > { %v9683_v52 = vpack.c.bf16 %v938_v46, %v936_v45  ;;  %v978_v62 = vadd.f32 %v977_v51, %v9600_v53 }
  0xcf   : > { %v9685_v54 = vpack.c.bf16 %v952_v50, %v950_v49 }
  0xd0   : > { %1561 = vmatpush.bf16.msra.mxu2 %v9683_v52 }
  0xd1   : > { %1575 = vmatpush.bf16.msra.mxu3 %v9685_v54 }
  0xd3   : > { %v991_v55 = vpop.f32.mrf.mxu2  ;;  %8930 = vmatmul.msk.bf16.vlgmr.msra.gmra.mxu2 %vm1410_vm2, %v9615_v2 }
  0xd4   : > { %v1005_v57 = vpop.f32.mrf.mxu3  ;;  %8931 = vmatmul.msk.bf16.vlgmr.msra.gmra.mxu3 %vm1410_vm2, %v9615_v2  ;;  %v965_v58 = vpop.f32.mrf.mxu0  ;;  %v992_v5 = vadd.f32 %v991_v55, %v9600_v53 }
  0xd5   : > { %v966_v60 = vadd.f32 %v965_v58, %v9602_v56  ;;  %v979_v61 = vpop.f32.mrf.mxu1  ;;  %v1006_v9 = vadd.f32 %v1005_v57, %v9600_v53 }
  0xd6   : > { %v980_v63 = vadd.f32 %v979_v61, %v9602_v56 }
  0xd7   : > { %v9697_v0 = vpack.c.bf16 %v966_v60, %v964_v59 }
  0xd8   : > { %v9699_v3 = vpack.c.bf16 %v980_v63, %v978_v62 }
  0xd9   : > { %1589 = vmatpush.bf16.msrb.mxu0 %v9697_v0 }
  0xda   : > { %1603 = vmatpush.bf16.msrb.mxu1 %v9699_v3 }
  0xdb   : > { %v993_v4 = vpop.f32.mrf.mxu2 }
  0xdc   : > { %v994_v6 = vadd.f32 %v993_v4, %v9602_v56  ;;  %v1007_v7 = vpop.f32.mrf.mxu3  ;;  %v1019_v8 = vpop.f32.mrf.mxu0  ;;  %8932 = vmatmul.msk.bf16.vlgmr.msrb.gmra.mxu0 %vm1410_vm2, %v9615_v2 }
  0xdd   : > { %v1008_v10 = vadd.f32 %v1007_v7, %v9602_v56  ;;  %v1033_v13 = vpop.f32.mrf.mxu1  ;;  %8933 = vmatmul.msk.bf16.vlgmr.msrb.gmra.mxu1 %vm1410_vm2, %v9615_v2  ;;  %v1020_v19 = vadd.f32 %v1019_v8, %v9600_v53 }
  0xde   : > { %v9711_v14 = vpack.c.bf16 %v994_v6, %v992_v5  ;;  %v1034_v25 = vadd.f32 %v1033_v13, %v9600_v53 }
  0xdf   : > { %v9713_v15 = vpack.c.bf16 %v1008_v10, %v1006_v9 }
  0xe0   : > { %1617 = vmatpush.bf16.msrb.mxu2 %v9711_v14 }
  0xe1   : > { %1631 = vmatpush.bf16.msrb.mxu3 %v9713_v15 }
  0xe3   : > { %v1047_v16 = vpop.f32.mrf.mxu2  ;;  %8934 = vmatmul.msk.bf16.vlgmr.msrb.gmra.mxu2 %vm1410_vm2, %v9615_v2 }
  0xe4   : > { %v1061_v17 = vpop.f32.mrf.mxu3  ;;  %8935 = vmatmul.msk.bf16.vlgmr.msrb.gmra.mxu3 %vm1410_vm2, %v9615_v2  ;;  %v1021_v18 = vpop.f32.mrf.mxu0  ;;  %v1048_v30 = vadd.f32 %v1047_v16, %v9600_v53 }
  0xe5   : > { %v1022_v20 = vadd.f32 %v1021_v18, %v9602_v56  ;;  %v1035_v24 = vpop.f32.mrf.mxu1  ;;  %v1062_v36 = vadd.f32 %v1061_v17, %v9600_v53 }
  0xe6   : > { %v1036_v26 = vadd.f32 %v1035_v24, %v9602_v56 }
  0xe7   : > { %v9725_v27 = vpack.c.bf16 %v1022_v20, %v1020_v19 }
  0xe8   : > { %v9727_v28 = vpack.c.bf16 %v1036_v26, %v1034_v25 }
  0xe9   : > { %1645 = vmatpush.bf16.msra.mxu0 %v9725_v27 }
  0xea   : > { %1659 = vmatpush.bf16.msra.mxu1 %v9727_v28 }
  0xeb   : > { %v1049_v29 = vpop.f32.mrf.mxu2 }
  0xec   : > { %v1050_v31 = vadd.f32 %v1049_v29, %v9602_v56  ;;  %v1063_v34 = vpop.f32.mrf.mxu3  ;;  %v1075_v35 = vpop.f32.mrf.mxu0  ;;  %8936 = vmatmul.msk.bf16.vlgmr.msra.gmra.mxu0 %vm1410_vm2, %v9615_v2 }
  0xed   : > { %v1064_v37 = vadd.f32 %v1063_v34, %v9602_v56  ;;  %v1089_v38 = vpop.f32.mrf.mxu1  ;;  %8937 = vmatmul.msk.bf16.vlgmr.msra.gmra.mxu1 %vm1410_vm2, %v9615_v2  ;;  %v1076_v46 = vadd.f32 %v1075_v35, %v9600_v53 }
  0xee   : > { %v9739_v39 = vpack.c.bf16 %v1050_v31, %v1048_v30  ;;  %v1090_v49 = vadd.f32 %v1089_v38, %v9600_v53 }
  0xef   : > { %v9741_v40 = vpack.c.bf16 %v1064_v37, %v1062_v36 }
  0xf0   : > { %1673 = vmatpush.bf16.msra.mxu2 %v9739_v39 }
  0xf1   : > { %1687 = vmatpush.bf16.msra.mxu3 %v9741_v40 }
  0xf3   : > { %v1103_v41 = vpop.f32.mrf.mxu2  ;;  %8938 = vmatmul.msk.bf16.vlgmr.msra.gmra.mxu2 %vm1410_vm2, %v9615_v2 }
  0xf4   : > { %v1117_v44 = vpop.f32.mrf.mxu3  ;;  %8939 = vmatmul.msk.bf16.vlgmr.msra.gmra.mxu3 %vm1410_vm2, %v9615_v2  ;;  %v1077_v45 = vpop.f32.mrf.mxu0  ;;  %v1104_v58 = vadd.f32 %v1103_v41, %v9600_v53 }
  0xf5   : > { %v1078_v47 = vadd.f32 %v1077_v45, %v9602_v56  ;;  %v1091_v48 = vpop.f32.mrf.mxu1  ;;  %v1118_v62 = vadd.f32 %v1117_v44, %v9600_v53 }
  0xf6   : > { %v1092_v50 = vadd.f32 %v1091_v48, %v9602_v56 }
  0xf7   : > { %v9753_v51 = vpack.c.bf16 %v1078_v47, %v1076_v46 }
  0xf8   : > { %v9755_v55 = vpack.c.bf16 %v1092_v50, %v1090_v49 }
  0xf9   : > { %1701 = vmatpush.bf16.msrb.mxu0 %v9753_v51 }
  0xfa   : > { %1715 = vmatpush.bf16.msrb.mxu1 %v9755_v55 }
  0xfb   : > { %v1105_v57 = vpop.f32.mrf.mxu2 }
  0xfc   : > { %v1106_v59 = vadd.f32 %v1105_v57, %v9602_v56  ;;  %v1119_v60 = vpop.f32.mrf.mxu3  ;;  %v1131_v61 = vpop.f32.mrf.mxu0  ;;  %8940 = vmatmul.msk.bf16.vlgmr.msrb.gmra.mxu0 %vm1410_vm2, %v9615_v2 }
  0xfd   : > { %v1120_v63 = vadd.f32 %v1119_v60, %v9602_v56  ;;  %v1145_v4 = vpop.f32.mrf.mxu1  ;;  %8941 = vmatmul.msk.bf16.vlgmr.msrb.gmra.mxu1 %vm1410_vm2, %v9615_v2  ;;  %v1132_v10 = vadd.f32 %v1131_v61, %v9600_v53 }
  0xfe   : > { %v9767_v5 = vpack.c.bf16 %v1106_v59, %v1104_v58  ;;  %v1146_v17 = vadd.f32 %v1145_v4, %v9600_v53  ;;  %v14197_v58 = vmov 0.0|0.0  }
  0xff   : > { %v9769_v6 = vpack.c.bf16 %v1120_v63, %v1118_v62 }
 0x100   : > { %1729 = vmatpush.bf16.msrb.mxu2 %v9767_v5 }
 0x101   : > { %1743 = vmatpush.bf16.msrb.mxu3 %v9769_v6 }
 0x103   : > { %v1159_v7 = vpop.f32.mrf.mxu2  ;;  %8942 = vmatmul.msk.bf16.vlgmr.msrb.gmra.mxu2 %vm1410_vm2, %v9615_v2 }
 0x104   : > { %v1173_v8 = vpop.f32.mrf.mxu3  ;;  %8943 = vmatmul.msk.bf16.vlgmr.msrb.gmra.mxu3 %vm1410_vm2, %v9615_v2  ;;  %v1133_v9 = vpop.f32.mrf.mxu0  ;;  %v1160_v25 = vadd.f32 %v1159_v7, %v9600_v53 }
 0x105   : > { %v1134_v13 = vadd.f32 %v1133_v9, %v9602_v56  ;;  %v1147_v16 = vpop.f32.mrf.mxu1  ;;  %v1174_v31 = vadd.f32 %v1173_v8, %v9600_v53 }
 0x106   : > { %v1148_v18 = vadd.f32 %v1147_v16, %v9602_v56 }
 0x107   : > { %v9781_v19 = vpack.c.bf16 %v1134_v13, %v1132_v10 }
 0x108   : > { %v9783_v20 = vpack.c.bf16 %v1148_v18, %v1146_v17 }
 0x109   : > { %1757 = vmatpush.bf16.msra.mxu0 %v9781_v19 }
 0x10a   : > { %1771 = vmatpush.bf16.msra.mxu1 %v9783_v20 }
 0x10b   : > { %v1161_v24 = vpop.f32.mrf.mxu2 }
 0x10c   : > { %v1162_v26 = vadd.f32 %v1161_v24, %v9602_v56  ;;  %v1175_v29 = vpop.f32.mrf.mxu3  ;;  %v1187_v30 = vpop.f32.mrf.mxu0  ;;  %8944 = vmatmul.msk.bf16.vlgmr.msra.gmra.mxu0 %vm1410_vm2, %v9615_v2 }
 0x10d   : > { %v1176_v34 = vadd.f32 %v1175_v29, %v9602_v56  ;;  %v1201_v35 = vpop.f32.mrf.mxu1  ;;  %8945 = vmatmul.msk.bf16.vlgmr.msra.gmra.mxu1 %vm1410_vm2, %v9615_v2  ;;  %v1188_v45 = vadd.f32 %v1187_v30, %v9600_v53  ;;  %v2937_v30 = vld [vmem:[%s14188_s4] sm:$0xff] }
 0x10e   : > { %v9795_v36 = vpack.c.bf16 %v1162_v26, %v1160_v25  ;;  %v1202_v48 = vadd.f32 %v1201_v35, %v9600_v53  ;;  %2941 = vperm.xlu1 %9311, %v2937_v30  }
 0x10f   : > { %v9797_v37 = vpack.c.bf16 %v1176_v34, %v1174_v31 }
 0x110   : > { %1785 = vmatpush.bf16.msra.mxu2 %v9795_v36 }
 0x111   : > { %1799 = vmatpush.bf16.msra.mxu3 %v9797_v37 }
 0x113   : > { %v1215_v38 = vpop.f32.mrf.mxu2  ;;  %8946 = vmatmul.msk.bf16.vlgmr.msra.gmra.mxu2 %vm1410_vm2, %v9615_v2 }
 0x114   : > { %v1229_v41 = vpop.f32.mrf.mxu3  ;;  %8947 = vmatmul.msk.bf16.vlgmr.msra.gmra.mxu3 %vm1410_vm2, %v9615_v2  ;;  %v1189_v44 = vpop.f32.mrf.mxu0  ;;  %v1216_v60 = vadd.f32 %v1215_v38, %v9600_v53 }
 0x115   : > { %v1190_v46 = vadd.f32 %v1189_v44, %v9602_v56  ;;  %v1203_v47 = vpop.f32.mrf.mxu1  ;;  %v1230_v63 = vadd.f32 %v1229_v41, %v9600_v53  ;;  %v9844_v53 = vld [vmem:[%s14187_s3] sm:$0xff]  ;;  %v2938_v41 = vld [vmem:[%s14188_s4 + $0x8] sm:$0xff] }
 0x116   : > { %v1204_v49 = vadd.f32 %v1203_v47, %v9602_v56  ;;  %2946 = vperm.xlu1 %9311, %v2938_v41  }
 0x117   : > { %v9809_v50 = vpack.c.bf16 %v1190_v46, %v1188_v45  ;;  %v9925_v46 = vld [vmem:[%s14195_s11 + $0x18] sm:$0x3f] }
 0x118   : > { %v9811_v57 = vpack.c.bf16 %v1204_v49, %v1202_v48  ;;  %v3146_v47 = vperm.slane %v9925_v46, 0  ;;  %v9940_v49 = vld [vmem:[%s14195_s11 + $0x20] sm:$0x3f] }
 0x119   : > { %1813 = vmatpush.bf16.msrb.mxu0 %v9809_v50 }
 0x11a   : > { %1827 = vmatpush.bf16.msrb.mxu1 %v9811_v57  ;;  %3213 = vrot.lane.b32.xlu0 %v3146_v47, %s9392_s27 }
 0x11b   : > { %v1217_v59 = vpop.f32.mrf.mxu2 }
 0x11c   : > { %v1218_v61 = vadd.f32 %v1217_v59, %v9602_v56  ;;  %v1231_v62 = vpop.f32.mrf.mxu3  ;;  %8948 = vmatmul.msk.bf16.vlgmr.msrb.gmra.mxu0 %vm1410_vm2, %v9615_v2 }
 0x11d   : > { %1877 = vmatpush.bf16.msra.mxu0 %v14197_v58  ;;  %v1232_v4 = vadd.f32 %v1231_v62, %v9602_v56  ;;  %8949 = vmatmul.msk.bf16.vlgmr.msrb.gmra.mxu1 %vm1410_vm2, %v9615_v2 }
 0x11e   : > { %1891 = vmatpush.bf16.msra.mxu1 %v14197_v58  ;;  %v9826_v7 = vpack.c.bf16 %v1218_v61, %v1216_v60  ;;  %v3147_v60 = vperm.slane %v9940_v49, 0 }
 0x11f   : > { %v9829_v8 = vpack.c.bf16 %v1232_v4, %v1230_v63  ;;  %v9953_v63 = vld [vmem:[%s14195_s11 + $0x30] sm:$0x3f]  ;;  %v9958_v4 = vld [vmem:[%s14195_s11 + $0x8] sm:$0x3f] }
 0x120   : > { %1841 = vmatpush.bf16.msrb.mxu2 %v9826_v7  ;;  %3215 = vrot.lane.b32.xlu1 %v3147_v60, %s9392_s27  ;;  %v3149_v30 = vperm.slane %v9953_v63, 0  ;;  %v3144_v41 = vperm.slane %v9958_v4, 0  ;;  %v9974_v60 = vld [vmem:[%s14195_s11 + $0x38] sm:$0x3f] }
 0x121   : > { %1933 = vmatpush.bf16.msrb.mxu0 %v9627_v11  ;;  %1855 = vmatpush.bf16.msrb.mxu3 %v9829_v8 }
 0x122   : > { %1947 = vmatpush.bf16.msrb.mxu1 %v9629_v12  ;;  %3219 = vrot.lane.b32.xlu0 %v3149_v30, %s9392_s27  ;;  %v9988_v30 = vld [vmem:[%s14195_s11 + $0x10] sm:$0x3f] }
 0x123   : > { %8950 = vmatmul.msk.bf16.vlgmr.msrb.gmra.mxu2 %vm1410_vm2, %v9615_v2  ;;  %3209 = vrot.lane.b32.xlu2 %v3144_v41, %s9392_s27  ;;  %v3145_v41 = vperm.slane %v9988_v30, 0 }
 0x124   : > { %1905 = vmatpush.bf16.msra.mxu2 %v9608_v1  ;;  %8951 = vmatmul.msk.bf16.vlgmr.msrb.gmra.mxu3 %vm1410_vm2, %v9615_v2 }
 0x125   : > { %1919 = vmatpush.bf16.msra.mxu3 %v9610_v21 }
 0x128   : > { %1961 = vmatpush.bf16.msrb.mxu2 %v9641_v22 }
 0x129   : > { %1975 = vmatpush.bf16.msrb.mxu3 %v9643_v23  ;;  %v9846_v56 = vpop.f32.mrf.mxu0 }
 0x12a   : > { %v9848_v1 = vpop.f32.mrf.mxu1 }
 0x12b   : > { %3211 = vrot.lane.b32.xlu2 %v3145_v41, %s9392_s27  ;;  %v499_v41 = vld [vmem:[%s14195_s11 + $0x60] sm:$0x3f] }
 0x12c   : > { %8956 = vmatmul.msk.bf16.vlgmr.msra.gmra.mxu0 %vm1410_vm2, %v9844_v53 }
 0x12d   : > { %8957 = vmatmul.msk.bf16.vlgmr.msra.gmra.mxu1 %vm1410_vm2, %v9844_v53  ;;  %1989 = vmatpush.bf16.msra.mxu0 %v9655_v32 }
 0x12e   : > { %2003 = vmatpush.bf16.msra.mxu1 %v9657_v33 }
 0x131   : > { %v9856_v21 = vpop.f32.mrf.mxu0 }
 0x132   : > { %v9858_v2 = vpop.f32.mrf.mxu1 }
 0x133   : > { %8958 = vmatmul.msk.bf16.vlgmr.msra.gmra.mxu2 %vm1410_vm2, %v9844_v53 }
 0x134   : > { %8959 = vmatmul.msk.bf16.vlgmr.msra.gmra.mxu3 %vm1410_vm2, %v9844_v53  ;;  %2017 = vmatpush.bf16.msra.mxu2 %v9669_v42 }
 0x135   : > { %2031 = vmatpush.bf16.msra.mxu3 %v9671_v43 }
 0x136   : > { %v9866_v9 = vpop.f32.mrf.mxu2 }
 0x137   : > { %v9868_v10 = vpop.f32.mrf.mxu3 }
 0x139   : > { %v9870_v13 = vpop.f32.mrf.mxu0 }
 0x13a   : > { %v9872_v16 = vpop.f32.mrf.mxu1 }
 0x13c   : > { %8960 = vmatmul.msk.bf16.vlgmr.msrb.gmra.mxu0 %vm1410_vm2, %v9844_v53 }
 0x13d   : > { %8961 = vmatmul.msk.bf16.vlgmr.msrb.gmra.mxu1 %vm1410_vm2, %v9844_v53  ;;  %2045 = vmatpush.bf16.msrb.mxu0 %v9683_v52 }
 0x13e   : > { %2059 = vmatpush.bf16.msrb.mxu1 %v9685_v54  ;;  %v9880_v17 = vpop.f32.mrf.mxu2 }
 0x13f   : > { %v9882_v18 = vpop.f32.mrf.mxu3 }
 0x141   : > { %v9884_v24 = vpop.f32.mrf.mxu0 }
 0x142   : > { %v9886_v25 = vpop.f32.mrf.mxu1 }
 0x143   : > { %8962 = vmatmul.msk.bf16.vlgmr.msrb.gmra.mxu2 %vm1410_vm2, %v9844_v53 }
 0x144   : > { %8963 = vmatmul.msk.bf16.vlgmr.msrb.gmra.mxu3 %vm1410_vm2, %v9844_v53  ;;  %2073 = vmatpush.bf16.msrb.mxu2 %v9697_v0 }
 0x145   : > { %2087 = vmatpush.bf16.msrb.mxu3 %v9699_v3 }
 0x146   : > { %v9894_v26 = vpop.f32.mrf.mxu2 }
 0x147   : > { %v9896_v29 = vpop.f32.mrf.mxu3 }
 0x149   : > { %v9901_v31 = vpop.f32.mrf.mxu0 }
 0x14a   : > { %v9903_v34 = vpop.f32.mrf.mxu1 }
 0x14b   : > { %14292 = vst [vmem:[#allocation3_spill] sm:$0xff] %v9903_v34 }
 0x14c   : > { %8964 = vmatmul.msk.bf16.vlgmr.msra.gmra.mxu0 %vm1410_vm2, %v9844_v53 }
 0x14d   : > { %8965 = vmatmul.msk.bf16.vlgmr.msra.gmra.mxu1 %vm1410_vm2, %v9844_v53  ;;  %2101 = vmatpush.bf16.msra.mxu0 %v9711_v14 }
 0x14e   : > { %2115 = vmatpush.bf16.msra.mxu1 %v9713_v15  ;;  %v9911_v35 = vpop.f32.mrf.mxu2 }
 0x14f   : > { %14293 = vst [vmem:[#allocation4_spill] sm:$0xff] %v9911_v35  ;;  %v9913_v38 = vpop.f32.mrf.mxu3 }
 0x150   : > { %14294 = vst [vmem:[#allocation5_spill] sm:$0xff] %v9913_v38 }
 0x151   : > { %v9918_v44 = vpop.f32.mrf.mxu0 }
 0x152   : > { %14295 = vst [vmem:[#allocation6_spill] sm:$0xff] %v9918_v44  ;;  %v9920_v45 = vpop.f32.mrf.mxu1 }
 0x153   : > { %14296 = vst [vmem:[#allocation7_spill] sm:$0xff] %v9920_v45  ;;  %8966 = vmatmul.msk.bf16.vlgmr.msra.gmra.mxu2 %vm1410_vm2, %v9844_v53 }
 0x154   : > { %8967 = vmatmul.msk.bf16.vlgmr.msra.gmra.mxu3 %vm1410_vm2, %v9844_v53  ;;  %2129 = vmatpush.bf16.msra.mxu2 %v9725_v27 }
 0x155   : > { %2143 = vmatpush.bf16.msra.mxu3 %v9727_v28 }
 0x156   : > { %v9935_v48 = vpop.f32.mrf.mxu2 }
 0x157   : > { %14297 = vst [vmem:[#allocation8_spill] sm:$0xff] %v9935_v48  ;;  %v9942_v59 = vpop.f32.mrf.mxu3 }
 0x158   : > { %14298 = vst [vmem:[#allocation9_spill] sm:$0xff] %v9942_v59 }
 0x159   : > { %v9945_v61 = vpop.f32.mrf.mxu0 }
 0x15a   : > { %14299 = vst [vmem:[#allocation10_spill] sm:$0xff] %v9945_v61  ;;  %v9948_v62 = vpop.f32.mrf.mxu1 }
 0x15b   : > { %14300 = vst [vmem:[#allocation11_spill] sm:$0xff] %v9948_v62  ;;  %v3150_v62 = vperm.slane %v9974_v60, 0 }
 0x15c   : > { %8968 = vmatmul.msk.bf16.vlgmr.msrb.gmra.mxu0 %vm1410_vm2, %v9844_v53 }
 0x15d   : > { %8969 = vmatmul.msk.bf16.vlgmr.msrb.gmra.mxu1 %vm1410_vm2, %v9844_v53  ;;  %2157 = vmatpush.bf16.msrb.mxu0 %v9739_v39 }
 0x15e   : > { %2171 = vmatpush.bf16.msrb.mxu1 %v9741_v40  ;;  %v9968_v47 = vpop.f32.mrf.mxu2  ;;  %3221 = vrot.lane.b32.xlu1 %v3150_v62, %s9392_s27 }
 0x15f   : > { %14301 = vst [vmem:[#allocation12_spill] sm:$0xff] %v9968_v47  ;;  %v9976_v58 = vpop.f32.mrf.mxu3  ;;  %v487_v47 = vld [vmem:[%s14195_s11] sm:$0x3f] }
 0x160   : > { %14302 = vst [vmem:[#allocation13_spill] sm:$0xff] %v9976_v58  ;;  %v3143_v58 = vperm.slane %v487_v47, 0 }
 0x161   : > { %v9980_v61 = vpop.f32.mrf.mxu0 }
 0x162   : > { %14303 = vst [vmem:[#allocation14_spill] sm:$0xff] %v9980_v61  ;;  %v9983_v59 = vpop.f32.mrf.mxu1  ;;  %3207 = vrot.lane.b32.xlu0 %v3143_v58, %s9392_s27  ;;  %v498_v58 = vld [vmem:[%s14195_s11 + $0x58] sm:$0x3f] }
 0x163   : > { %14304 = vst [vmem:[#allocation15_spill] sm:$0xff] %v9983_v59  ;;  %8970 = vmatmul.msk.bf16.vlgmr.msrb.gmra.mxu2 %vm1410_vm2, %v9844_v53  ;;  %v496_v59 = vld [vmem:[%s14195_s11 + $0x48] sm:$0x3f]  ;;  %v3154_v44 = vperm.slane %v498_v58, 0  ;;  %v3155_v58 = vperm.slane %v499_v41, 0 }
 0x164   : > { %8971 = vmatmul.msk.bf16.vlgmr.msrb.gmra.mxu3 %vm1410_vm2, %v9844_v53  ;;  %2185 = vmatpush.bf16.msrb.mxu2 %v9753_v51  ;;  %v3152_v47 = vperm.slane %v496_v59, 0 }
 0x165   : > { %2199 = vmatpush.bf16.msrb.mxu3 %v9755_v55 }
 0x166   : > { %v10000_v62 = vpop.f32.mrf.mxu2  ;;  %3225 = vrot.lane.b32.xlu1 %v3152_v47, %s9392_s27 }
 0x167   : > { %14305 = vst [vmem:[#allocation16_spill] sm:$0xff] %v10000_v62  ;;  %v10006_v61 = vpop.f32.mrf.mxu3  ;;  %v10017_v62 = vld [vmem:[%s14195_s11 + $0x28] sm:$0x3f] }
 0x168   : > { %14306 = vst [vmem:[#allocation17_spill] sm:$0xff] %v10006_v61  ;;  %v3148_v61 = vperm.slane %v10017_v62, 0 }
 0x169   : > { %v10009_v48 = vpop.f32.mrf.mxu0 }
 0x16a   : > { %14307 = vst [vmem:[#allocation18_spill] sm:$0xff] %v10009_v48  ;;  %v10012_v45 = vpop.f32.mrf.mxu1  ;;  %3229 = vrot.lane.b32.xlu0 %v3154_v44, %s9392_s27  ;;  %3217 = vrot.lane.b32.xlu2 %v3148_v61, %s9392_s27  ;;  %v501_v44 = vld [vmem:[%s14195_s11 + $0x70] sm:$0x3f] }
 0x16b   : > { %14308 = vst [vmem:[#allocation19_spill] sm:$0xff] %v10012_v45  ;;  %v3157_v41 = vperm.slane %v501_v44, 0 }
 0x16c   : > { %8972 = vmatmul.msk.bf16.vlgmr.msra.gmra.mxu0 %vm1410_vm2, %v9844_v53 }
 0x16d   : > { %8973 = vmatmul.msk.bf16.vlgmr.msra.gmra.mxu1 %vm1410_vm2, %v9844_v53  ;;  %2213 = vmatpush.bf16.msra.mxu0 %v9767_v5 }
 0x16e   : > { %2227 = vmatpush.bf16.msra.mxu1 %v9769_v6  ;;  %v10029_v59 = vpop.f32.mrf.mxu2  ;;  %3231 = vrot.lane.b32.xlu1 %v3155_v58, %s9392_s27 }
 0x16f   : > { %14309 = vst [vmem:[#allocation20_spill] sm:$0xff] %v10029_v59  ;;  %v10035_v47 = vpop.f32.mrf.mxu3  ;;  %v10046_v59 = vld [vmem:[%s14195_s11 + $0x40] sm:$0x3f] }
 0x170   : > { %14310 = vst [vmem:[#allocation21_spill] sm:$0xff] %v10035_v47  ;;  %v3151_v61 = vperm.slane %v10046_v59, 0 }
 0x171   : > { %v10038_v45 = vpop.f32.mrf.mxu0 }
 0x172   : > { %14311 = vst [vmem:[#allocation22_spill] sm:$0xff] %v10038_v45  ;;  %v10041_v48 = vpop.f32.mrf.mxu1  ;;  %3235 = vrot.lane.b32.xlu0 %v3157_v41, %s9392_s27  ;;  %3223 = vrot.lane.b32.xlu2 %v3151_v61, %s9392_s27  ;;  %v505_v41 = vld [vmem:[%s14195_s11 + $0x90] sm:$0x3f]  ;;  %v506_v61 = vld [vmem:[%s14195_s11 + $0x98] sm:$0x3f] }
 0x173   : > { %14312 = vst [vmem:[#allocation23_spill] sm:$0xff] %v10041_v48  ;;  %8974 = vmatmul.msk.bf16.vlgmr.msra.gmra.mxu2 %vm1410_vm2, %v9844_v53  ;;  %v502_v48 = vld [vmem:[%s14195_s11 + $0x78] sm:$0x3f]  ;;  %v3161_v35 = vperm.slane %v505_v41, 0 }
 0x174   : > { %8975 = vmatmul.msk.bf16.vlgmr.msra.gmra.mxu3 %vm1410_vm2, %v9844_v53  ;;  %2241 = vmatpush.bf16.msra.mxu2 %v9781_v19  ;;  %v3158_v44 = vperm.slane %v502_v48, 0 }
 0x175   : > { %2255 = vmatpush.bf16.msra.mxu3 %v9783_v20 }
 0x176   : > { %v10058_v58 = vpop.f32.mrf.mxu2  ;;  %3237 = vrot.lane.b32.xlu1 %v3158_v44, %s9392_s27  ;;  %v3162_v44 = vperm.slane %v506_v61, 0 }
 0x177   : > { %14313 = vst [vmem:[#allocation24_spill] sm:$0xff] %v10058_v58  ;;  %v10064_v45 = vpop.f32.mrf.mxu3  ;;  %v497_v58 = vld [vmem:[%s14195_s11 + $0x50] sm:$0x3f] }
 0x178   : > { %14314 = vst [vmem:[#allocation25_spill] sm:$0xff] %v10064_v45  ;;  %v3153_v38 = vperm.slane %v497_v58, 0 }
 0x179   : > { %v10067_v47 = vpop.f32.mrf.mxu0 }
 0x17a   : > { %14315 = vst [vmem:[#allocation26_spill] sm:$0xff] %v10067_v47  ;;  %v10070_v34 = vpop.f32.mrf.mxu1  ;;  %3243 = vrot.lane.b32.xlu0 %v3161_v35, %s9392_s27  ;;  %3227 = vrot.lane.b32.xlu2 %v3153_v38, %s9392_s27  ;;  %v510_v35 = vld [vmem:[%s14195_s11 + $0xb8] sm:$0x3f] }
 0x17b   : > { %14316 = vst [vmem:[#allocation27_spill] sm:$0xff] %v10070_v34  ;;  %v3166_v38 = vperm.slane %v510_v35, 0 }
 0x17c   : > { %8976 = vmatmul.msk.bf16.vlgmr.msrb.gmra.mxu0 %vm1410_vm2, %v9844_v53 }
 0x17d   : > { %8977 = vmatmul.msk.bf16.vlgmr.msrb.gmra.mxu1 %vm1410_vm2, %v9844_v53  ;;  %2269 = vmatpush.bf16.msrb.mxu0 %v9795_v36 }
 0x17e   : > { %2283 = vmatpush.bf16.msrb.mxu1 %v9797_v37  ;;  %v10084_v48 = vpop.f32.mrf.mxu2  ;;  %3245 = vrot.lane.b32.xlu1 %v3162_v44, %s9392_s27  ;;  %v508_v44 = vld [vmem:[%s14195_s11 + $0xa8] sm:$0x3f] }
 0x17f   : > { %14317 = vst [vmem:[#allocation28_spill] sm:$0xff] %v10084_v48  ;;  %v10090_v58 = vpop.f32.mrf.mxu3  ;;  %v500_v48 = vld [vmem:[%s14195_s11 + $0x68] sm:$0x3f] }
 0x180   : > { %14318 = vst [vmem:[#allocation29_spill] sm:$0xff] %v10090_v58  ;;  %v3156_v58 = vperm.slane %v500_v48, 0  ;;  %v3164_v48 = vperm.slane %v508_v44, 0  ;;  %v511_v44 = vld [vmem:[%s14195_s11 + $0xc0] sm:$0x3f] }
 0x181   : > { %v10093_v41 = vpop.f32.mrf.mxu0 }
 0x182   : > { %14319 = vst [vmem:[#allocation30_spill] sm:$0xff] %v10093_v41  ;;  %v10096_v34 = vpop.f32.mrf.mxu1  ;;  %3253 = vrot.lane.b32.xlu0 %v3166_v38, %s9392_s27  ;;  %3233 = vrot.lane.b32.xlu2 %v3156_v58, %s9392_s27  ;;  %v512_v38 = vld [vmem:[%s14195_s11 + $0xc8] sm:$0x3f] }
 0x183   : > { %14320 = vst [vmem:[#allocation31_spill] sm:$0xff] %v10096_v34  ;;  %8978 = vmatmul.msk.bf16.vlgmr.msrb.gmra.mxu2 %vm1410_vm2, %v9844_v53  ;;  %v3168_v45 = vperm.slane %v512_v38, 0 }
 0x184   : > { %8979 = vmatmul.msk.bf16.vlgmr.msrb.gmra.mxu3 %vm1410_vm2, %v9844_v53  ;;  %2297 = vmatpush.bf16.msrb.mxu2 %v9809_v50 }
 0x185   : > { %2311 = vmatpush.bf16.msrb.mxu3 %v9811_v57 }
 0x186   : > { %v10110_v61 = vpop.f32.mrf.mxu2  ;;  %3249 = vrot.lane.b32.xlu1 %v3164_v48, %s9392_s27  ;;  %v3167_v48 = vperm.slane %v511_v44, 0 }
 0x187   : > { %14321 = vst [vmem:[#allocation32_spill] sm:$0xff] %v10110_v61  ;;  %v10116_v34 = vpop.f32.mrf.mxu3  ;;  %v503_v61 = vld [vmem:[%s14195_s11 + $0x80] sm:$0x3f] }
 0x188   : > { %14322 = vst [vmem:[#allocation33_spill] sm:$0xff] %v10116_v34  ;;  %v3159_v47 = vperm.slane %v503_v61, 0 }
 0x189   : > { %v10119_v35 = vpop.f32.mrf.mxu0 }
 0x18a   : > { %14323 = vst [vmem:[#allocation34_spill] sm:$0xff] %v10119_v35  ;;  %v10122_v41 = vpop.f32.mrf.mxu1  ;;  %3257 = vrot.lane.b32.xlu0 %v3168_v45, %s9392_s27  ;;  %3239 = vrot.lane.b32.xlu2 %v3159_v47, %s9392_s27  ;;  %v515_v45 = vld [vmem:[%s14195_s11 + $0xe0] sm:$0x3f] }
 0x18b   : > { %14324 = vst [vmem:[#allocation35_spill] sm:$0xff] %v10122_v41  ;;  %v3171_v47 = vperm.slane %v515_v45, 0 }
 0x18c   : > { %8980 = vmatmul.msk.bf16.vlgmr.msra.gmra.mxu0 %vm1410_vm2, %v9844_v53 }
 0x18d   : > { %8981 = vmatmul.msk.bf16.vlgmr.msra.gmra.mxu1 %vm1410_vm2, %v9844_v53  ;;  %2432 = vmatpush.bf16.msra.mxu0 %v9627_v11 }
 0x18e   : > { %2446 = vmatpush.bf16.msra.mxu1 %v9629_v12  ;;  %v10136_v58 = vpop.f32.mrf.mxu2  ;;  %3255 = vrot.lane.b32.xlu1 %v3167_v48, %s9392_s27  ;;  %v504_v12 = vld [vmem:[%s14195_s11 + $0x88] sm:$0x3f]  ;;  %v513_v48 = vld [vmem:[%s14195_s11 + $0xd0] sm:$0x3f] }
 0x18f   : > { %14325 = vst [vmem:[#allocation36_spill] sm:$0xff] %v10136_v58  ;;  %v10142_v61 = vpop.f32.mrf.mxu3  ;;  %v3160_v41 = vperm.slane %v504_v12, 0  ;;  %v3169_v12 = vperm.slane %v513_v48, 0  ;;  %v518_v48 = vld [vmem:[%s14195_s11 + $0xf8] sm:$0x3f] }
 0x190   : > { %14326 = vst [vmem:[#allocation37_spill] sm:$0xff] %v10142_v61 }
 0x191   : > { %v10145_v38 = vpop.f32.mrf.mxu0 }
 0x192   : > { %14327 = vst [vmem:[#allocation38_spill] sm:$0xff] %v10145_v38  ;;  %v10148_v11 = vpop.f32.mrf.mxu1  ;;  %3263 = vrot.lane.b32.xlu0 %v3171_v47, %s9392_s27  ;;  %3241 = vrot.lane.b32.xlu2 %v3160_v41, %s9392_s27  ;;  %v517_v47 = vld [vmem:[%s14195_s11 + $0xf0] sm:$0x3f] }
 0x193   : > { %14328 = vst [vmem:[#allocation39_spill] sm:$0xff] %v10148_v11  ;;  %8982 = vmatmul.msk.bf16.vlgmr.msra.gmra.mxu2 %vm1410_vm2, %v9844_v53  ;;  %v3173_v38 = vperm.slane %v517_v47, 0 }
 0x194   : > { %8983 = vmatmul.msk.bf16.vlgmr.msra.gmra.mxu3 %vm1410_vm2, %v9844_v53  ;;  %2460 = vmatpush.bf16.msra.mxu2 %v9641_v22 }
 0x195   : > { %2474 = vmatpush.bf16.msra.mxu3 %v9643_v23  ;;  %v507_v23 = vld [vmem:[%s14195_s11 + $0xa0] sm:$0x3f] }
 0x196   : > { %v10162_v44 = vpop.f32.mrf.mxu2  ;;  %3259 = vrot.lane.b32.xlu1 %v3169_v12, %s9392_s27 }
 0x197   : > { %14329 = vst [vmem:[#allocation40_spill] sm:$0xff] %v10162_v44  ;;  %v10168_v11 = vpop.f32.mrf.mxu3  ;;  %v3163_v44 = vperm.slane %v507_v23, 0  ;;  %v3174_v23 = vperm.slane %v518_v48, 0 }
 0x198   : > { %14330 = vst [vmem:[#allocation41_spill] sm:$0xff] %v10168_v11 }
 0x199   : > { %v10171_v45 = vpop.f32.mrf.mxu0 }
 0x19a   : > { %14331 = vst [vmem:[#allocation42_spill] sm:$0xff] %v10171_v45  ;;  %v10174_v22 = vpop.f32.mrf.mxu1  ;;  %3267 = vrot.lane.b32.xlu0 %v3173_v38, %s9392_s27  ;;  %3247 = vrot.lane.b32.xlu2 %v3163_v44, %s9392_s27 }
 0x19b   : > { %14332 = vst [vmem:[#allocation43_spill] sm:$0xff] %v10174_v22  ;;  %v4615_v22 = vperm.slane %v9958_v4, 2  ;;  %v10222_v4 = vld [vmem:[%s14187_s3 + $0x10] sm:$0xff] }
 0x19c   : > { %8984 = vmatmul.msk.bf16.vlgmr.msrb.gmra.mxu0 %vm1410_vm2, %v9844_v53 }
 0x19d   : > { %8985 = vmatmul.msk.bf16.vlgmr.msrb.gmra.mxu1 %vm1410_vm2, %v9844_v53  ;;  %2488 = vmatpush.bf16.msrb.mxu0 %v9655_v32 }
 0x19e   : > { %2502 = vmatpush.bf16.msrb.mxu1 %v9657_v33  ;;  %v10188_v41 = vpop.f32.mrf.mxu2  ;;  %3269 = vrot.lane.b32.xlu1 %v3174_v23, %s9392_s27  ;;  %v509_v33 = vld [vmem:[%s14195_s11 + $0xb0] sm:$0x3f]  ;;  %v4616_v23 = vperm.slane %v9988_v30, 2 }
 0x19f   : > { %14333 = vst [vmem:[#allocation44_spill] sm:$0xff] %v10188_v41  ;;  %v10194_v12 = vpop.f32.mrf.mxu3  ;;  %v3165_v38 = vperm.slane %v509_v33, 0  ;;  %v4618_v33 = vperm.slane %v9940_v49, 2 }
 0x1a0   : > { %14334 = vst [vmem:[#allocation45_spill] sm:$0xff] %v10194_v12 }
 0x1a1   : > { %v10197_v47 = vpop.f32.mrf.mxu0 }
 0x1a2   : > { %14335 = vst [vmem:[#allocation46_spill] sm:$0xff] %v10197_v47  ;;  %v10200_v32 = vpop.f32.mrf.mxu1  ;;  %4680 = vrot.lane.b32.xlu0 %v4615_v22, %s9393_s25  ;;  %3251 = vrot.lane.b32.xlu2 %v3165_v38, %s9392_s27 }
 0x1a3   : > { %14336 = vst [vmem:[#allocation47_spill] sm:$0xff] %v10200_v32  ;;  %8986 = vmatmul.msk.bf16.vlgmr.msrb.gmra.mxu2 %vm1410_vm2, %v9844_v53 }
 0x1a4   : > { %8987 = vmatmul.msk.bf16.vlgmr.msrb.gmra.mxu3 %vm1410_vm2, %v9844_v53  ;;  %2516 = vmatpush.bf16.msrb.mxu2 %v9669_v42 }
 0x1a5   : > { %2530 = vmatpush.bf16.msrb.mxu3 %v9671_v43  ;;  %v514_v43 = vld [vmem:[%s14195_s11 + $0xd8] sm:$0x3f] }
 0x1a6   : > { %v10212_v44 = vpop.f32.mrf.mxu2  ;;  %4682 = vrot.lane.b32.xlu1 %v4616_v23, %s9393_s25  ;;  %v3170_v22 = vperm.slane %v514_v43, 0  ;;  %v516_v43 = vld [vmem:[%s14195_s11 + $0xe8] sm:$0x3f] }
 0x1a7   : > { %14337 = vst [vmem:[#allocation48_spill] sm:$0xff] %v10212_v44  ;;  %v10215_v48 = vpop.f32.mrf.mxu3  ;;  %v4619_v44 = vperm.slane %v10017_v62, 2 }
 0x1a8   : > { %14338 = vst [vmem:[#allocation49_spill] sm:$0xff] %v10215_v48 }
 0x1a9   : > { %v10224_v53 = vpop.f32.mrf.mxu0 }
 0x1aa   : > { %v10227_v42 = vpop.f32.mrf.mxu1  ;;  %4686 = vrot.lane.b32.xlu0 %v4618_v33, %s9393_s25  ;;  %3261 = vrot.lane.b32.xlu2 %v3170_v22, %s9392_s27 }
 0x1ac   : > { %8994 = vmatmul.msk.bf16.vlgmr.msra.gmra.mxu0 %vm1410_vm2, %v10222_v4 }
 0x1ad   : > { %8995 = vmatmul.msk.bf16.vlgmr.msra.gmra.mxu1 %vm1410_vm2, %v10222_v4  ;;  %2544 = vmatpush.bf16.msra.mxu0 %v9683_v52  ;;  %v3172_v52 = vperm.slane %v516_v43, 0  ;;  %v4617_v43 = vperm.slane %v9925_v46, 2  ;;  %v10285_v46 = vpop.permute.xlu1 %2941 }
 0x1ae   : > { %2558 = vmatpush.bf16.msra.mxu1 %v9685_v54  ;;  %v10239_v30 = vpop.f32.mrf.mxu2 }
 0x1af   : > { %14339 = vst [vmem:[#allocation50_spill] sm:$0xff] %v10239_v30  ;;  %v10242_v38 = vpop.f32.mrf.mxu3  ;;  %v10267_v30 = vpop.permute.xlu2 %3209 }
 0x1b0   : > { %14340 = vst [vmem:[#allocation51_spill] sm:$0xff] %v10242_v38 }
 0x1b1   : > { %v10245_v23 = vpop.f32.mrf.mxu0 }
 0x1b2   : > { %v10247_v49 = vpop.f32.mrf.mxu1  ;;  %3265 = vrot.lane.b32.xlu2 %v3172_v52, %s9392_s27 }
 0x1b3   : > { %8996 = vmatmul.msk.bf16.vlgmr.msra.gmra.mxu2 %vm1410_vm2, %v10222_v4 }
 0x1b4   : > { %8997 = vmatmul.msk.bf16.vlgmr.msra.gmra.mxu3 %vm1410_vm2, %v10222_v4  ;;  %2572 = vmatpush.bf16.msra.mxu2 %v9697_v0 }
 0x1b5   : > { %2586 = vmatpush.bf16.msra.mxu3 %v9699_v3  ;;  %v10307_v62 = vpop.permute.xlu1 %2946 }
 0x1b6   : > { %v10258_v54 = vpop.f32.mrf.mxu2 }
 0x1b7   : > { %v10260_v22 = vpop.f32.mrf.mxu3 }
 0x1b9   : > { %v10263_v33 = vpop.f32.mrf.mxu0 }
 0x1ba   : > { %v10265_v38 = vpop.f32.mrf.mxu1  ;;  %4684 = vrot.lane.b32.xlu2 %v4617_v43, %s9393_s25 }
 0x1bc   : > { %8998 = vmatmul.msk.bf16.vlgmr.msrb.gmra.mxu0 %vm1410_vm2, %v10222_v4 }
 0x1bd   : > { %8999 = vmatmul.msk.bf16.vlgmr.msrb.gmra.mxu1 %vm1410_vm2, %v10222_v4  ;;  %2600 = vmatpush.bf16.msrb.mxu0 %v9711_v14  ;;  %v10294_v14 = vpop.permute.xlu2 %3211 }
 0x1be   : > { %2614 = vmatpush.bf16.msrb.mxu1 %v9713_v15  ;;  %v10276_v0 = vpop.f32.mrf.mxu2 }
 0x1bf   : > { %v10278_v3 = vpop.f32.mrf.mxu3 }
 0x1c1   : > { %v10281_v52 = vpop.f32.mrf.mxu0 }
 0x1c2   : > { %v10283_v48 = vpop.f32.mrf.mxu1  ;;  %4688 = vrot.lane.b32.xlu2 %v4619_v44, %s9393_s25 }
 0x1c3   : > { %9000 = vmatmul.msk.bf16.vlgmr.msrb.gmra.mxu2 %vm1410_vm2, %v10222_v4 }
 0x1c4   : > { %9001 = vmatmul.msk.bf16.vlgmr.msrb.gmra.mxu3 %vm1410_vm2, %v10222_v4  ;;  %2628 = vmatpush.bf16.msrb.mxu2 %v9725_v27 }
 0x1c5   : > { %2642 = vmatpush.bf16.msrb.mxu3 %v9727_v28  ;;  %v10315_v28 = vpop.permute.xlu0 %3213  ;;  %v10319_v12 = vpop.permute.xlu2 %3217 }
 0x1c6   : > { %v10296_v15 = vpop.f32.mrf.mxu2 }
 0x1c7   : > { %v10298_v43 = vpop.f32.mrf.mxu3 }
 0x1c9   : > { %v10301_v32 = vpop.f32.mrf.mxu0 }
 0x1ca   : > { %v10303_v47 = vpop.f32.mrf.mxu1 }
 0x1cc   : > { %9002 = vmatmul.msk.bf16.vlgmr.msra.gmra.mxu0 %vm1410_vm2, %v10222_v4 }
 0x1cd   : > { %9003 = vmatmul.msk.bf16.vlgmr.msra.gmra.mxu1 %vm1410_vm2, %v10222_v4  ;;  %2656 = vmatpush.bf16.msra.mxu0 %v9739_v39  ;;  %v10337_v61 = vpop.permute.xlu0 %3219  ;;  %v10341_v58 = vpop.permute.xlu2 %3223 }
 0x1ce   : > { %2670 = vmatpush.bf16.msra.mxu1 %v9741_v40  ;;  %v10313_v27 = vpop.f32.mrf.mxu2  ;;  %v10333_v40 = vpop.permute.xlu1 %3215  ;;  %14344 = vst [vmem:[#allocation55_spill] sm:$0xff] %v10341_v58 }
 0x1cf   : > { %v10317_v44 = vpop.f32.mrf.mxu3 }
 0x1d1   : > { %v10321_v41 = vpop.f32.mrf.mxu0 }
 0x1d2   : > { %v10323_v45 = vpop.f32.mrf.mxu1 }
 0x1d3   : > { %9004 = vmatmul.msk.bf16.vlgmr.msra.gmra.mxu2 %vm1410_vm2, %v10222_v4 }
 0x1d4   : > { %9005 = vmatmul.msk.bf16.vlgmr.msra.gmra.mxu3 %vm1410_vm2, %v10222_v4  ;;  %2684 = vmatpush.bf16.msra.mxu2 %v9753_v51 }
 0x1d5   : > { %2698 = vmatpush.bf16.msra.mxu3 %v9755_v55  ;;  %v10365_v58 = vpop.permute.xlu2 %3227 }
 0x1d6   : > { %v10331_v39 = vpop.f32.mrf.mxu2  ;;  %14349 = vst [vmem:[#allocation60_spill] sm:$0xff] %v10365_v58 }
 0x1d7   : > { %14341 = vst [vmem:[#allocation52_spill] sm:$0xff] %v10331_v39  ;;  %v10335_v11 = vpop.f32.mrf.mxu3 }
 0x1d8   : > { %14342 = vst [vmem:[#allocation53_spill] sm:$0xff] %v10335_v11  ;;  %v10355_v11 = vpop.permute.xlu1 %3221 }
 0x1d9   : > { %v10339_v35 = vpop.f32.mrf.mxu0 }
 0x1da   : > { %14343 = vst [vmem:[#allocation54_spill] sm:$0xff] %v10339_v35  ;;  %v10343_v34 = vpop.f32.mrf.mxu1 }
 0x1db   : > { %14345 = vst [vmem:[#allocation56_spill] sm:$0xff] %v10343_v34  ;;  %v10361_v34 = vpop.permute.xlu0 %3207 }
 0x1dc   : > { %9006 = vmatmul.msk.bf16.vlgmr.msrb.gmra.mxu0 %vm1410_vm2, %v10222_v4 }
 0x1dd   : > { %9007 = vmatmul.msk.bf16.vlgmr.msrb.gmra.mxu1 %vm1410_vm2, %v10222_v4  ;;  %2712 = vmatpush.bf16.msrb.mxu0 %v9767_v5 }
 0x1de   : > { %2726 = vmatpush.bf16.msrb.mxu1 %v9769_v6  ;;  %v10351_v51 = vpop.f32.mrf.mxu2 }
 0x1df   : > { %v10353_v55 = vpop.f32.mrf.mxu3 }
 0x1e0   : > { %14346 = vst [vmem:[#allocation57_spill] sm:$0xff] %v10353_v55  ;;  %v10379_v55 = vpop.permute.xlu1 %3225 }
 0x1e1   : > { %v10357_v35 = vpop.f32.mrf.mxu0 }
 0x1e2   : > { %14347 = vst [vmem:[#allocation58_spill] sm:$0xff] %v10357_v35  ;;  %v10359_v39 = vpop.f32.mrf.mxu1 }
 0x1e3   : > { %14348 = vst [vmem:[#allocation59_spill] sm:$0xff] %v10359_v39  ;;  %9008 = vmatmul.msk.bf16.vlgmr.msrb.gmra.mxu2 %vm1410_vm2, %v10222_v4  ;;  %v10383_v58 = vpop.permute.xlu0 %3229 }
 0x1e4   : > { %9009 = vmatmul.msk.bf16.vlgmr.msrb.gmra.mxu3 %vm1410_vm2, %v10222_v4  ;;  %2740 = vmatpush.bf16.msrb.mxu2 %v9781_v19  ;;  %v10388_v19 = vpop.permute.xlu2 %3233 }
 0x1e5   : > { %2754 = vmatpush.bf16.msrb.mxu3 %v9783_v20  ;;  %14354 = vst [vmem:[#allocation65_spill] sm:$0xff] %v10388_v19 }
 0x1e6   : > { %v10371_v5 = vpop.f32.mrf.mxu2 }
 0x1e7   : > { %14350 = vst [vmem:[#allocation61_spill] sm:$0xff] %v10371_v5  ;;  %v10373_v6 = vpop.f32.mrf.mxu3 }
 0x1e8   : > { %14351 = vst [vmem:[#allocation62_spill] sm:$0xff] %v10373_v6 }
 0x1e9   : > { %v10375_v35 = vpop.f32.mrf.mxu0 }
 0x1ea   : > { %14352 = vst [vmem:[#allocation63_spill] sm:$0xff] %v10375_v35  ;;  %v10377_v39 = vpop.f32.mrf.mxu1 }
 0x1eb   : > { %14353 = vst [vmem:[#allocation64_spill] sm:$0xff] %v10377_v39 }
 0x1ec   : > { %9010 = vmatmul.msk.bf16.vlgmr.msra.gmra.mxu0 %vm1410_vm2, %v10222_v4 }
 0x1ed   : > { %9011 = vmatmul.msk.bf16.vlgmr.msra.gmra.mxu1 %vm1410_vm2, %v10222_v4  ;;  %2768 = vmatpush.bf16.msra.mxu0 %v9795_v36  ;;  %v10404_v36 = vpop.permute.xlu1 %3231 }
 0x1ee   : > { %2782 = vmatpush.bf16.msra.mxu1 %v9797_v37  ;;  %v10391_v20 = vpop.f32.mrf.mxu2 }
 0x1ef   : > { %14355 = vst [vmem:[#allocation66_spill] sm:$0xff] %v10391_v20  ;;  %v10393_v35 = vpop.f32.mrf.mxu3  ;;  %v10409_v20 = vpop.permute.xlu0 %3235 }
 0x1f0   : > { %14356 = vst [vmem:[#allocation67_spill] sm:$0xff] %v10393_v35 }
 0x1f1   : > { %v10395_v39 = vpop.f32.mrf.mxu0  ;;  %14360 = vst [vmem:[#allocation71_spill] sm:$0xff] %v10409_v20 }
 0x1f2   : > { %14357 = vst [vmem:[#allocation68_spill] sm:$0xff] %v10395_v39  ;;  %v10397_v6 = vpop.f32.mrf.mxu1  ;;  %v10413_v39 = vpop.permute.xlu2 %3239 }
 0x1f3   : > { %14358 = vst [vmem:[#allocation69_spill] sm:$0xff] %v10397_v6  ;;  %9012 = vmatmul.msk.bf16.vlgmr.msra.gmra.mxu2 %vm1410_vm2, %v10222_v4 }
 0x1f4   : > { %9013 = vmatmul.msk.bf16.vlgmr.msra.gmra.mxu3 %vm1410_vm2, %v10222_v4  ;;  %2796 = vmatpush.bf16.msra.mxu2 %v9809_v50  ;;  %14362 = vst [vmem:[#allocation73_spill] sm:$0xff] %v10413_v39 }
 0x1f5   : > { %2810 = vmatpush.bf16.msra.mxu3 %v9811_v57  ;;  %v10427_v57 = vpop.permute.xlu1 %3237 }
 0x1f6   : > { %v10407_v37 = vpop.f32.mrf.mxu2  ;;  %14366 = vst [vmem:[#allocation77_spill] sm:$0xff] %v10427_v57 }
 0x1f7   : > { %14359 = vst [vmem:[#allocation70_spill] sm:$0xff] %v10407_v37  ;;  %v10411_v35 = vpop.f32.mrf.mxu3  ;;  %v10431_v39 = vpop.permute.xlu0 %3243 }
 0x1f8   : > { %14361 = vst [vmem:[#allocation72_spill] sm:$0xff] %v10411_v35 }
 0x1f9   : > { %v10415_v6 = vpop.f32.mrf.mxu0  ;;  %14368 = vst [vmem:[#allocation79_spill] sm:$0xff] %v10431_v39 }
 0x1fa   : > { %14363 = vst [vmem:[#allocation74_spill] sm:$0xff] %v10415_v6  ;;  %v10417_v5 = vpop.f32.mrf.mxu1 }
 0x1fb   : > { %14364 = vst [vmem:[#allocation75_spill] sm:$0xff] %v10417_v5  ;;  %v10435_v5 = vpop.permute.xlu2 %3241 }
 0x1fc   : > { %9014 = vmatmul.msk.bf16.vlgmr.msrb.gmra.mxu0 %vm1410_vm2, %v10222_v4  ;;  %14370 = vst [vmem:[#allocation81_spill] sm:$0xff] %v10435_v5 }
 0x1fd   : > { %9015 = vmatmul.msk.bf16.vlgmr.msrb.gmra.mxu1 %vm1410_vm2, %v10222_v4  ;;  %2824 = vmatpush.bf16.msrb.mxu0 %v9826_v7  ;;  %v14372_v7 = vmov 0.0|0.0  }
 0x1fe   : > { %2838 = vmatpush.bf16.msrb.mxu1 %v9829_v8  ;;  %v10425_v50 = vpop.f32.mrf.mxu2 }
 0x1ff   : > { %14365 = vst [vmem:[#allocation76_spill] sm:$0xff] %v10425_v50  ;;  %v10429_v35 = vpop.f32.mrf.mxu3  ;;  %v10449_v50 = vpop.permute.xlu1 %3245 }
 0x200   : > { %14367 = vst [vmem:[#allocation78_spill] sm:$0xff] %v10429_v35 }
 0x201   : > { %v10433_v6 = vpop.f32.mrf.mxu0  ;;  %14375 = vst [vmem:[#allocation85_spill] sm:$0xff] %v10449_v50 }
 0x202   : > { %14369 = vst [vmem:[#allocation80_spill] sm:$0xff] %v10433_v6  ;;  %v10437_v37 = vpop.f32.mrf.mxu1 }
 0x203   : > { %14371 = vst [vmem:[#allocation82_spill] sm:$0xff] %v10437_v37  ;;  %9016 = vmatmul.msk.bf16.vlgmr.msrb.gmra.mxu2 %vm1410_vm2, %v10222_v4  ;;  %v10455_v37 = vpop.permute.xlu0 %3253  ;;  %v10457_v5 = vpop.permute.xlu2 %3247 }
 0x204   : > { %9017 = vmatmul.msk.bf16.vlgmr.msrb.gmra.mxu3 %vm1410_vm2, %v10222_v4  ;;  %2852 = vmatpush.bf16.msrb.mxu2 %v14372_v7  ;;  %14378 = vst [vmem:[#allocation88_spill] sm:$0xff] %v10455_v37 }
 0x205   : > { %2866 = vmatpush.bf16.msrb.mxu3 %v14372_v7  ;;  %14379 = vst [vmem:[#allocation89_spill] sm:$0xff] %v10457_v5 }
 0x206   : > { %v10445_v8 = vpop.f32.mrf.mxu2 }
 0x207   : > { %14373 = vst [vmem:[#allocation83_spill] sm:$0xff] %v10445_v8  ;;  %v10447_v35 = vpop.f32.mrf.mxu3 }
 0x208   : > { %14374 = vst [vmem:[#allocation84_spill] sm:$0xff] %v10447_v35 }
 0x209   : > { %v10451_v6 = vpop.f32.mrf.mxu0 }
 0x20a   : > { %14376 = vst [vmem:[#allocation86_spill] sm:$0xff] %v10451_v6  ;;  %v10453_v39 = vpop.f32.mrf.mxu1  ;;  %v10471_v6 = vpop.permute.xlu1 %3249 }
 0x20b   : > { %14377 = vst [vmem:[#allocation87_spill] sm:$0xff] %v10453_v39  ;;  %v10477_v39 = vpop.permute.xlu0 %3257  ;;  %v10479_v37 = vpop.permute.xlu2 %3251 }
 0x20c   : > { %9018 = vmatmul.msk.bf16.vlgmr.msra.gmra.mxu0 %vm1410_vm2, %v10222_v4  ;;  %14384 = vst [vmem:[#allocation94_spill] sm:$0xff] %v10471_v6 }
 0x20d   : > { %9019 = vmatmul.msk.bf16.vlgmr.msra.gmra.mxu1 %vm1410_vm2, %v10222_v4  ;;  %14385 = vst [vmem:[#allocation95_spill] sm:$0xff] %v10477_v39 }
 0x20e   : > { %v10463_v7 = vpop.f32.mrf.mxu2  ;;  %14386 = vst [vmem:[#allocation96_spill] sm:$0xff] %v10479_v37  ;;  %v1894_v37 = vadd.f32 %v10227_v42, %v9848_v1 }
 0x20f   : > { %14380 = vst [vmem:[#allocation90_spill] sm:$0xff] %v10463_v7  ;;  %v10465_v8 = vpop.f32.mrf.mxu3 }
 0x210   : > { %14381 = vst [vmem:[#allocation91_spill] sm:$0xff] %v10465_v8  ;;  %v3336_v8 = vmul.f32 0.0, %v10361_v34 }
 0x211   : > { %v10467_v35 = vpop.f32.mrf.mxu0 }
 0x212   : > { %14382 = vst [vmem:[#allocation92_spill] sm:$0xff] %v10467_v35  ;;  %v10469_v50 = vpop.f32.mrf.mxu1  ;;  %v3404_v6 = vpack.c.bf16 %v3336_v8, %v3336_v8  ;;  %v10492_v57 = vpop.permute.xlu1 %3255 }
 0x213   : > { %14383 = vst [vmem:[#allocation93_spill] sm:$0xff] %v10469_v50  ;;  %9020 = vmatmul.msk.bf16.vlgmr.msra.gmra.mxu2 %vm1410_vm2, %v10222_v4 }
 0x214   : > { %9021 = vmatmul.msk.bf16.vlgmr.msra.gmra.mxu3 %vm1410_vm2, %v10222_v4  ;;  %14391 = vst [vmem:[#allocation101_spill] sm:$0xff] %v10492_v57  ;;  %3966 = vrot.lane.b32.xlu0 %v3404_v6, %s9393_s25 }
 0x216   : > { %v10481_v5 = vpop.f32.mrf.mxu2 }
 0x217   : > { %14387 = vst [vmem:[#allocation97_spill] sm:$0xff] %v10481_v5  ;;  %v10484_v7 = vpop.f32.mrf.mxu3  ;;  %v10499_v5 = vpop.permute.xlu0 %3263 }
 0x218   : > { %14388 = vst [vmem:[#allocation98_spill] sm:$0xff] %v10484_v7 }
 0x219   : > { %v10486_v35 = vpop.f32.mrf.mxu0  ;;  %14393 = vst [vmem:[#allocation103_spill] sm:$0xff] %v10499_v5 }
 0x21a   : > { %14389 = vst [vmem:[#allocation99_spill] sm:$0xff] %v10486_v35  ;;  %v10488_v50 = vpop.f32.mrf.mxu1  ;;  %v10503_v35 = vpop.permute.xlu2 %3261 }
 0x21b   : > { %14390 = vst [vmem:[#allocation100_spill] sm:$0xff] %v10488_v50  ;;  %v10515_v6 = vpop.permute.xlu1 %3259 }
 0x21c   : > { %9022 = vmatmul.msk.bf16.vlgmr.msrb.gmra.mxu0 %vm1410_vm2, %v10222_v4  ;;  %14395 = vst [vmem:[#allocation105_spill] sm:$0xff] %v10503_v35 }
 0x21d   : > { %9023 = vmatmul.msk.bf16.vlgmr.msrb.gmra.mxu1 %vm1410_vm2, %v10222_v4  ;;  %14399 = vst [vmem:[#allocation109_spill] sm:$0xff] %v10515_v6 }
 0x21e   : > { %v10497_v39 = vpop.f32.mrf.mxu2 }
 0x21f   : > { %14392 = vst [vmem:[#allocation102_spill] sm:$0xff] %v10497_v39  ;;  %v10501_v7 = vpop.f32.mrf.mxu3  ;;  %v10519_v5 = vpop.permute.xlu0 %3267 }
 0x220   : > { %14394 = vst [vmem:[#allocation104_spill] sm:$0xff] %v10501_v7 }
 0x221   : > { %v10505_v50 = vpop.f32.mrf.mxu0  ;;  %14401 = vst [vmem:[#allocation111_spill] sm:$0xff] %v10519_v5 }
 0x222   : > { %14396 = vst [vmem:[#allocation106_spill] sm:$0xff] %v10505_v50  ;;  %v10507_v8 = vpop.f32.mrf.mxu1  ;;  %v10521_v35 = vpop.permute.xlu2 %3265 }
 0x223   : > { %14397 = vst [vmem:[#allocation107_spill] sm:$0xff] %v10507_v8  ;;  %9024 = vmatmul.msk.bf16.vlgmr.msrb.gmra.mxu2 %vm1410_vm2, %v10222_v4  ;;  %v1880_v8 = vadd.f32 %v10224_v53, %v9846_v56  ;;  %v10533_v5 = vpop.permute.xlu1 %3269 }
 0x224   : > { %9025 = vmatmul.msk.bf16.vlgmr.msrb.gmra.mxu3 %vm1410_vm2, %v10222_v4  ;;  %14402 = vst [vmem:[#allocation112_spill] sm:$0xff] %v10521_v35  ;;  %v1896_v35 = vadd.f32 %v10247_v49, %v9858_v2  ;;  %v1908_v2 = vadd.f32 %v10258_v54, %v9866_v9  ;;  %v1922_v9 = vadd.f32 %v10260_v22, %v9868_v10  ;;  %v10574_v10 = vld [vmem:[%s14189_s5 + $0x8] sm:$0xff] }
 0x225   : > { %14403 = vst [vmem:[#allocation113_spill] sm:$0xff] %v10533_v5 }
 0x226   : > { %v10513_v57 = vpop.f32.mrf.mxu2 }
 0x227   : > { %14398 = vst [vmem:[#allocation108_spill] sm:$0xff] %v10513_v57  ;;  %v10517_v39 = vpop.f32.mrf.mxu3  ;;  %v10540_v42 = vpop.permute.xlu0 %4680 }
 0x228   : > { %14400 = vst [vmem:[#allocation110_spill] sm:$0xff] %v10517_v39  ;;  %v1882_v39 = vadd.f32 %v10245_v23, %v9856_v21  ;;  %v3272_v23 = vsel %vm3271_vm3, %v10361_v34, %v10267_v30 }
 0x229   : > { %v2434_v7 = vpop.f32.mrf.mxu0 }
 0x22a   : > { %v2448_v50 = vpop.f32.mrf.mxu1  ;;  %v2873_v20 = vadd.f32 %v2434_v7, %v1880_v8  ;;  %v4685_v7 = vpop.permute.xlu2 %4684 }
 0x22b   : > { %v2874_v57 = vadd.f32 %v2448_v50, %v1894_v37  ;;  %v4683_v22 = vpop.permute.xlu1 %4682 }
 0x22c   : > { %v10538_v56 = vadd.f32 %v10285_v46, %v2873_v20 }
 0x22d   : > { %v10543_v37 = vadd.f32 %v10285_v46, %v2874_v57 }
 0x22e   : > { %v10527_v4 = vpop.f32.mrf.mxu2  ;;  %14404 = vst [vmem:[#allocation114_spill] sm:$0xff] %v10538_v56  ;;  %v3337_v57 = vmul.f32 %v3272_v23, %v10538_v56 }
 0x22f   : > { %v10529_v19 = vpop.f32.mrf.mxu3  ;;  %14405 = vst [vmem:[#allocation115_spill] sm:$0xff] %v10543_v37 }
 0x231   : > { %v2436_v6 = vpop.f32.mrf.mxu0 }
 0x232   : > { %v2905_v1 = vadd.f32 %v2436_v6, %v1882_v39  ;;  %v2450_v53 = vpop.f32.mrf.mxu1  ;;  %v3273_v39 = vsel %vm3271_vm3, %v10267_v30, %v10294_v14  ;;  %v1936_v30 = vadd.f32 %v10263_v33, %v9870_v13  ;;  %v1950_v13 = vadd.f32 %v10265_v38, %v9872_v16  ;;  %v4687_v16 = vpop.permute.xlu0 %4686 }
 0x233   : > { %v2906_v50 = vadd.f32 %v2450_v53, %v1896_v35  ;;  %v3338_v6 = vmul.f32 %v3273_v39, %v10543_v37  ;;  %v1910_v33 = vadd.f32 %v10276_v0, %v9880_v17  ;;  %v10595_v17 = vadd.f32 %v10296_v15, %v9894_v26 }
 0x234   : > { %v10546_v21 = vadd.f32 %v10307_v62, %v2905_v1  ;;  %v4744_v0 = vsel %vm1410_vm2, %v4683_v22, %v4685_v7  ;;  %v4745_v15 = vsel %vm1410_vm2, %v4685_v7, %v4687_v16 }
 0x235   : > { %v10554_v49 = vadd.f32 %v10307_v62, %v2906_v50 }
 0x236   : > { %14406 = vst [vmem:[#allocation116_spill] sm:$0xff] %v10546_v21  ;;  %v2462_v20 = vpop.f32.mrf.mxu2  ;;  %v3440_v35 = vpack.c.bf16 %v10546_v21, %v10538_v56  ;;  %v3370_v8 = vmul.f32 %v3272_v23, %v10546_v21 }
 0x237   : > { %v2476_v54 = vpop.f32.mrf.mxu3  ;;  %v3441_v34 = vpack.c.bf16 %v10554_v49, %v10543_v37  ;;  %v3371_v1 = vmul.f32 %v3273_v39, %v10554_v49  ;;  %v2875_v53 = vadd.f32 %v2462_v20, %v1908_v2  ;;  %v1924_v2 = vadd.f32 %v10278_v3, %v9882_v18 }
 0x238   : > { %3487 = vmatpush.bf16.msra.mxu0 %v3440_v35  ;;  %v3405_v50 = vpack.c.bf16 %v3370_v8, %v3337_v57  ;;  %v2876_v56 = vadd.f32 %v2476_v54, %v1922_v9  ;;  %v1938_v39 = vadd.f32 %v10281_v52, %v9884_v24  ;;  %v1952_v20 = vadd.f32 %v10283_v48, %v9886_v25  ;;  %v10603_v25 = vpop.permute.xlu2 %4688 }
 0x239   : > { %3501 = vmatpush.bf16.msra.mxu1 %v3441_v34  ;;  %v2490_v23 = vpop.f32.mrf.mxu0  ;;  %v3406_v21 = vpack.c.bf16 %v3371_v1, %v3338_v6  ;;  %v2951_v35 = vadd.f32 %v10285_v46, %v2875_v53  ;;  %v3274_v18 = vsel %vm3271_vm3, %v10294_v14, %v10315_v28  ;;  %v4743_v24 = vsel %vm1410_vm2, %v10540_v42, %v4683_v22 }
 0x23a   : > { %v2877_v5 = vadd.f32 %v2490_v23, %v1936_v30  ;;  %v2504_v37 = vpop.f32.mrf.mxu1  ;;  %3968 = vrot.lane.b32.xlu1 %v3405_v50, %s9393_s25  ;;  %v2952_v38 = vadd.f32 %v10285_v46, %v2876_v56  ;;  %v3275_v48 = vsel %vm3271_vm3, %v10315_v28, %v10333_v40  ;;  %v3276_v14 = vsel %vm3271_vm3, %v10333_v40, %v10319_v12 }
 0x23b   : > { %3970 = vrot.lane.b32.xlu2 %v3406_v21, %s9393_s25  ;;  %9032 = vmatmul.msk.bf16.vlgmr.msra.gmra.mxu0 %vm1410_vm2, %v10574_v10  ;;  %v2878_v3 = vadd.f32 %v2504_v37, %v1950_v13  ;;  %v4622_v57 = vperm.slane %v10046_v59, 2  ;;  %v3277_v28 = vsel %vm3271_vm3, %v10319_v12, %v10337_v61  ;;  %v10618_v8 = vmul.f32 %v4743_v24, %v2951_v35 }
 0x23c   : > { %9033 = vmatmul.msk.bf16.vlgmr.msra.gmra.mxu1 %vm1410_vm2, %v10574_v10  ;;  %v2953_v26 = vadd.f32 %v10285_v46, %v2877_v5  ;;  %v4746_v5 = vsel %vm1410_vm2, %v4687_v16, %v10603_v25  ;;  %v10622_v9 = vmul.f32 %v4744_v0, %v2952_v38  ;;  %v3339_v7 = vmul.f32 %v3274_v18, %v2951_v35 }
 0x23d   : > { %v3340_v34 = vmul.f32 %v3275_v48, %v2952_v38  ;;  %v2954_v6 = vadd.f32 %v10285_v46, %v2878_v3 }
 0x23e   : > { %v2464_v52 = vpop.f32.mrf.mxu2  ;;  %v10626_v59 = vmul.f32 %v4745_v15, %v2953_v26 }
 0x23f   : > { %v2907_v56 = vadd.f32 %v2464_v52, %v1910_v33  ;;  %v2478_v21 = vpop.f32.mrf.mxu3 }
 0x240   : > { %v2908_v37 = vadd.f32 %v2478_v21, %v1924_v2  ;;  %v10645_v21 = vmul.f32 %v3277_v28, %v2954_v6 }
 0x241   : > { %v2983_v40 = vadd.f32 %v10307_v62, %v2907_v56  ;;  %v2492_v54 = vpop.f32.mrf.mxu0  ;;  %v10636_v56 = vmul.f32 %v3276_v14, %v2953_v26 }
 0x242   : > { %v2984_v1 = vadd.f32 %v10307_v62, %v2908_v37  ;;  %v2909_v12 = vadd.f32 %v2492_v54, %v1938_v39  ;;  %v2506_v30 = vpop.f32.mrf.mxu1 }
 0x243   : > { %v2910_v53 = vadd.f32 %v2506_v30, %v1952_v20  ;;  %v3442_v50 = vpack.c.bf16 %v2983_v40, %v2951_v35  ;;  %v3372_v23 = vmul.f32 %v3274_v18, %v2983_v40  ;;  %4694 = vrot.lane.b32.xlu2 %v4622_v57, %s9393_s25  ;;  %v10630_v22 = vmul.f32 %v4743_v24, %v2983_v40 }
 0x244   : > { %v2985_v13 = vadd.f32 %v10307_v62, %v2909_v12  ;;  %v3443_v33 = vpack.c.bf16 %v2984_v1, %v2952_v38  ;;  %v3373_v2 = vmul.f32 %v3275_v48, %v2984_v1  ;;  %v10633_v16 = vmul.f32 %v4744_v0, %v2984_v1 }
 0x245   : > { %v2986_v3 = vadd.f32 %v10307_v62, %v2910_v53  ;;  %3515 = vmatpush.bf16.msra.mxu2 %v3442_v50  ;;  %v3407_v52 = vpack.c.bf16 %v3372_v23, %v3339_v7  ;;  %v10651_v40 = vmul.f32 %v4746_v5, %v2954_v6  ;;  %v1978_v7 = vadd.f32 %v10298_v43, %v9896_v29  ;;  %v14407_v50 = vld [vmem:[#allocation4_spill] sm:$0xff]  ;;  %v14408_v43 = vld [vmem:[#allocation5_spill] sm:$0xff] }
 0x246   : > { %3529 = vmatpush.bf16.msra.mxu3 %v3443_v33  ;;  %v2518_v20 = vpop.f32.mrf.mxu2  ;;  %v3408_v35 = vpack.c.bf16 %v3373_v2, %v3340_v34  ;;  %v3444_v18 = vpack.c.bf16 %v2985_v13, %v2953_v26  ;;  %v10640_v24 = vmul.f32 %v3276_v14, %v2985_v13  ;;  %v10649_v37 = vmul.f32 %v4745_v15, %v2985_v13 }
 0x247   : > { %v2532_v48 = vpop.f32.mrf.mxu3  ;;  %3972 = vrot.lane.b32.xlu0 %v3407_v52, %s9393_s25  ;;  %v3445_v0 = vpack.c.bf16 %v2986_v3, %v2954_v6  ;;  %v10647_v57 = vmul.f32 %v3277_v28, %v2986_v3  ;;  %v10658_v14 = vmul.f32 %v4746_v5, %v2986_v3  ;;  %v2879_v34 = vadd.f32 %v2518_v20, %v10595_v17 }
 0x248   : > { %3974 = vrot.lane.b32.xlu1 %v3408_v35, %s9393_s25  ;;  %9034 = vmatmul.msk.bf16.vlgmr.msra.gmra.mxu2 %vm1410_vm2, %v10574_v10  ;;  %v3409_v26 = vpack.c.bf16 %v10640_v24, %v10636_v56  ;;  %v4620_v1 = vperm.slane %v9953_v63, 2  ;;  %v2880_v12 = vadd.f32 %v2532_v48, %v1978_v7  ;;  %v4621_v30 = vperm.slane %v9974_v60, 2  ;;  %v14409_v60 = vld [vmem:[#allocation3_spill] sm:$0xff] }
 0x249   : > { %9035 = vmatmul.msk.bf16.vlgmr.msra.gmra.mxu3 %vm1410_vm2, %v10574_v10  ;;  %3543 = vmatpush.bf16.msrb.mxu0 %v3444_v18  ;;  %v2546_v28 = vpop.f32.mrf.mxu0  ;;  %v3410_v15 = vpack.c.bf16 %v10647_v57, %v10645_v21  ;;  %v1992_v53 = vadd.f32 %v10301_v32, %v9901_v31  ;;  %v1966_v29 = vadd.f32 %v10313_v27, %v14407_v50  ;;  %v14410_v31 = vld [vmem:[#allocation6_spill] sm:$0xff] }
 0x24a   : > { %3557 = vmatpush.bf16.msrb.mxu1 %v3445_v0  ;;  %v2560_v6 = vpop.f32.mrf.mxu1  ;;  %v1980_v17 = vadd.f32 %v10317_v44, %v14408_v43  ;;  %v10684_v63 = vadd.f32 %v10285_v46, %v2879_v34  ;;  %v2006_v13 = vadd.f32 %v10303_v47, %v14409_v60  ;;  %v1994_v32 = vadd.f32 %v10321_v41, %v14410_v31  ;;  %v14411_v44 = vld [vmem:[#allocation7_spill] sm:$0xff] }
 0x24b   : > { %v2881_v33 = vadd.f32 %v2546_v28, %v1992_v53  ;;  %v10692_v27 = vadd.f32 %v10285_v46, %v2880_v12  ;;  %v2008_v20 = vadd.f32 %v10323_v45, %v14411_v44  ;;  %v3278_v47 = vsel %vm3271_vm3, %v10337_v61, %v10355_v11  ;;  %v14412_v0 = vld [vmem:[#allocation55_spill] sm:$0xff] }
 0x24c   : > { %9036 = vmatmul.msk.bf16.vlgmr.msrb.gmra.mxu0 %vm1410_vm2, %v10574_v10  ;;  %v2882_v35 = vadd.f32 %v2560_v6, %v2006_v13  ;;  %v3279_v41 = vsel %vm3271_vm3, %v10355_v11, %v14412_v0  ;;  %v3343_v45 = vmul.f32 %v3278_v47, %v10684_v63  ;;  %v3280_v31 = vsel %vm3271_vm3, %v14412_v0, %v10379_v55  ;;  %v14419_v0 = vld [vmem:[#allocation10_spill] sm:$0xff] }
 0x24d   : > { %9037 = vmatmul.msk.bf16.vlgmr.msrb.gmra.mxu1 %vm1410_vm2, %v10574_v10  ;;  %v10711_v7 = vadd.f32 %v10285_v46, %v2881_v33  ;;  %v3344_v12 = vmul.f32 %v3279_v41, %v10692_v27  ;;  %v14415_v33 = vld [vmem:[#allocation8_spill] sm:$0xff] }
 0x24e   : > { %v2520_v23 = vpop.f32.mrf.mxu2  ;;  %v10724_v53 = vadd.f32 %v10285_v46, %v2882_v35 }
 0x24f   : > { %v2911_v2 = vadd.f32 %v2520_v23, %v1966_v29  ;;  %v2534_v3 = vpop.f32.mrf.mxu3  ;;  %4690 = vrot.lane.b32.xlu0 %v4620_v1, %s9393_s25 }
 0x250   : > { %v2912_v52 = vadd.f32 %v2534_v3, %v1980_v17  ;;  %4692 = vrot.lane.b32.xlu1 %v4621_v30, %s9393_s25  ;;  %14413 = vst [vmem:[#allocation4_spill] sm:$0xff] %v10724_v53 }
 0x251   : > { %v10701_v18 = vadd.f32 %v10307_v62, %v2911_v2  ;;  %v2548_v48 = vpop.f32.mrf.mxu0  ;;  %v14416_v2 = vld [vmem:[#allocation52_spill] sm:$0xff] }
 0x252   : > { %v10707_v21 = vadd.f32 %v10307_v62, %v2912_v52  ;;  %v2913_v57 = vadd.f32 %v2548_v48, %v1994_v32  ;;  %v2562_v28 = vpop.f32.mrf.mxu1  ;;  %v2020_v3 = vadd.f32 %v14416_v2, %v14415_v33  ;;  %v14417_v32 = vld [vmem:[#allocation9_spill] sm:$0xff] }
 0x253   : > { %v2914_v61 = vadd.f32 %v2562_v28, %v2008_v20  ;;  %v3446_v34 = vpack.c.bf16 %v10701_v18, %v10684_v63  ;;  %v3376_v6 = vmul.f32 %v3278_v47, %v10701_v18  ;;  %v14418_v52 = vld [vmem:[#allocation53_spill] sm:$0xff] }
 0x254   : > { %v10717_v1 = vadd.f32 %v10307_v62, %v2913_v57  ;;  %v3447_v11 = vpack.c.bf16 %v10707_v21, %v10692_v27  ;;  %v3377_v30 = vmul.f32 %v3279_v41, %v10707_v21  ;;  %v2034_v44 = vadd.f32 %v14418_v52, %v14417_v32  ;;  %v14420_v57 = vld [vmem:[#allocation54_spill] sm:$0xff] }
 0x255   : > { %v10727_v50 = vadd.f32 %v10307_v62, %v2914_v61  ;;  %3571 = vmatpush.bf16.msrb.mxu2 %v3446_v34  ;;  %v3411_v29 = vpack.c.bf16 %v3376_v6, %v3343_v45  ;;  %v3345_v41 = vmul.f32 %v3280_v31, %v10711_v7  ;;  %v2048_v28 = vadd.f32 %v14420_v57, %v14419_v0  ;;  %v14421_v45 = vld [vmem:[#allocation12_spill] sm:$0xff]  ;;  %v14422_v34 = vld [vmem:[#allocation11_spill] sm:$0xff]  ;;  %v14428_v32 = vld [vmem:[#allocation58_spill] sm:$0xff] }
 0x256   : > { %3585 = vmatpush.bf16.msrb.mxu3 %v3447_v11  ;;  %v2574_v43 = vpop.f32.mrf.mxu2  ;;  %v3412_v17 = vpack.c.bf16 %v3377_v30, %v3344_v12  ;;  %v3448_v23 = vpack.c.bf16 %v10717_v1, %v10711_v7  ;;  %v3378_v35 = vmul.f32 %v3280_v31, %v10717_v1  ;;  %v2022_v61 = vadd.f32 %v10351_v51, %v14421_v45  ;;  %v14423_v6 = vld [vmem:[#allocation56_spill] sm:$0xff]  ;;  %v14424_v12 = vld [vmem:[#allocation13_spill] sm:$0xff]  ;;  %v14427_v31 = vld [vmem:[#allocation14_spill] sm:$0xff] }
 0x257   : > { %14414 = vst [vmem:[#allocation5_spill] sm:$0xff] %v10727_v50  ;;  %v2588_v60 = vpop.f32.mrf.mxu3  ;;  %3978 = vrot.lane.b32.xlu0 %v3410_v15, %s9393_s25  ;;  %v3449_v13 = vpack.c.bf16 %v10727_v50, %v10724_v53  ;;  %v2883_v20 = vadd.f32 %v2574_v43, %v2020_v3  ;;  %v2062_v11 = vadd.f32 %v14423_v6, %v14422_v34  ;;  %v14425_v30 = vld [vmem:[#allocation57_spill] sm:$0xff] }
 0x258   : > { %3982 = vrot.lane.b32.xlu2 %v3412_v17, %s9393_s25  ;;  %3980 = vrot.lane.b32.xlu1 %v3411_v29, %s9393_s25  ;;  %v2884_v48 = vadd.f32 %v2588_v60, %v2034_v44  ;;  %v2036_v29 = vadd.f32 %v14425_v30, %v14424_v12  ;;  %v14426_v60 = vld [vmem:[#allocation60_spill] sm:$0xff]  ;;  %v2050_v52 = vadd.f32 %v14428_v32, %v14427_v31  ;;  %v14429_v44 = vld [vmem:[#allocation15_spill] sm:$0xff]  ;;  %v14433_v32 = vld [vmem:[#allocation65_spill] sm:$0xff] }
 0x259   : > { %9038 = vmatmul.msk.bf16.vlgmr.msrb.gmra.mxu2 %vm1410_vm2, %v10574_v10  ;;  %9039 = vmatmul.msk.bf16.vlgmr.msrb.gmra.mxu3 %vm1410_vm2, %v10574_v10  ;;  %v2602_v15 = vpop.f32.mrf.mxu0  ;;  %v10762_v43 = vadd.f32 %v10285_v46, %v2883_v20  ;;  %v3281_v51 = vsel %vm3271_vm3, %v10379_v55, %v14426_v60  ;;  %v14430_v20 = vld [vmem:[#allocation59_spill] sm:$0xff] }
 0x25a   : > { %3599 = vmatpush.bf16.msra.mxu0 %v3448_v23  ;;  %3613 = vmatpush.bf16.msra.mxu1 %v3449_v13  ;;  %v2616_v47 = vpop.f32.mrf.mxu1  ;;  %v3413_v23 = vpack.c.bf16 %v3378_v35, %v3345_v41  ;;  %v3282_v13 = vsel %vm3271_vm3, %v14426_v60, %v10383_v58  ;;  %v2885_v33 = vadd.f32 %v2602_v15, %v2048_v28 }
 0x25b   : > { %v2064_v35 = vadd.f32 %v14430_v20, %v14429_v44  ;;  %v10779_v55 = vadd.f32 %v10285_v46, %v2884_v48  ;;  %v3283_v15 = vsel %vm3271_vm3, %v10383_v58, %v10404_v36  ;;  %v2886_v0 = vadd.f32 %v2616_v47, %v2062_v11  ;;  %v14434_v44 = vld [vmem:[#allocation16_spill] sm:$0xff]  ;;  %v14435_v20 = vld [vmem:[#allocation61_spill] sm:$0xff] }
 0x25c   : > { %v3346_v45 = vmul.f32 %v3281_v51, %v10724_v53  ;;  %v10795_v34 = vadd.f32 %v10285_v46, %v2885_v33 }
 0x25d   : > { %9041 = vmatmul.msk.bf16.vlgmr.msra.gmra.mxu1 %vm1410_vm2, %v10574_v10  ;;  %9040 = vmatmul.msk.bf16.vlgmr.msra.gmra.mxu0 %vm1410_vm2, %v10574_v10  ;;  %v3348_v30 = vmul.f32 %v3283_v15, %v10779_v55 }
 0x25e   : > { %v2576_v17 = vpop.f32.mrf.mxu2 }
 0x25f   : > { %v2915_v2 = vadd.f32 %v2576_v17, %v2022_v61  ;;  %v2590_v3 = vpop.f32.mrf.mxu3  ;;  %3976 = vrot.lane.b32.xlu0 %v3409_v26, %s9393_s25  ;;  %v3379_v26 = vmul.f32 %v3281_v51, %v10727_v50  ;;  %v3347_v61 = vmul.f32 %v3282_v13, %v10762_v43  ;;  %v10808_v17 = vadd.f32 %v10285_v46, %v2886_v0 }
 0x260   : > { %v2916_v41 = vadd.f32 %v2590_v3, %v2036_v29  ;;  %3984 = vrot.lane.b32.xlu2 %v3413_v23, %s9393_s25 }
 0x261   : > { %v10786_v56 = vadd.f32 %v10307_v62, %v2915_v2  ;;  %v2604_v24 = vpop.f32.mrf.mxu0  ;;  %14431 = vst [vmem:[#allocation3_spill] sm:$0xff] %v10808_v17  ;;  %v3414_v60 = vpack.c.bf16 %v3379_v26, %v3346_v45  ;;  %v14437_v45 = vld [vmem:[#allocation62_spill] sm:$0xff] }
 0x262   : > { %v10790_v57 = vadd.f32 %v10307_v62, %v2916_v41  ;;  %v2917_v28 = vadd.f32 %v2604_v24, %v2050_v52  ;;  %v2618_v48 = vpop.f32.mrf.mxu1  ;;  %v3284_v52 = vsel %vm3271_vm3, %v10404_v36, %v14433_v32  ;;  %v9313_v36 = vld [vmem:[%s14195_s11] sm:$0x3f] }
 0x263   : > { %v2918_v58 = vadd.f32 %v2618_v48, %v2064_v35  ;;  %v3450_v47 = vpack.c.bf16 %v10786_v56, %v10762_v43  ;;  %v3380_v6 = vmul.f32 %v3282_v13, %v10786_v56  ;;  %v2076_v35 = vadd.f32 %v14435_v20, %v14434_v44  ;;  %v14436_v48 = vld [vmem:[#allocation17_spill] sm:$0xff] }
 0x264   : > { %v10801_v11 = vadd.f32 %v10307_v62, %v2917_v28  ;;  %v3451_v12 = vpack.c.bf16 %v10790_v57, %v10779_v55  ;;  %v3381_v29 = vmul.f32 %v3283_v15, %v10790_v57  ;;  %v4614_v26 = vperm.slane %v9313_v36, 2  ;;  %v14445_v36 = vld [vmem:[#allocation19_spill] sm:$0xff] }
 0x265   : > { %v10811_v23 = vadd.f32 %v10307_v62, %v2918_v58  ;;  %3627 = vmatpush.bf16.msra.mxu2 %v3450_v47  ;;  %v3415_v51 = vpack.c.bf16 %v3380_v6, %v3347_v61  ;;  %v3349_v28 = vmul.f32 %v3284_v52, %v10795_v34  ;;  %v2090_v61 = vadd.f32 %v14437_v45, %v14436_v48  ;;  %v9314_v58 = vld [vmem:[%s14195_s11 + $0x48] sm:$0x3f]  ;;  %v14438_v6 = vld [vmem:[#allocation20_spill] sm:$0xff] }
 0x266   : > { %3641 = vmatpush.bf16.msra.mxu3 %v3451_v12  ;;  %v2630_v13 = vpop.f32.mrf.mxu2  ;;  %v3416_v33 = vpack.c.bf16 %v3381_v29, %v3348_v30  ;;  %v3452_v2 = vpack.c.bf16 %v10801_v11, %v10795_v34  ;;  %v3382_v15 = vmul.f32 %v3284_v52, %v10801_v11  ;;  %v4623_v47 = vperm.slane %v9314_v58, 2  ;;  %v14439_v12 = vld [vmem:[#allocation66_spill] sm:$0xff]  ;;  %v14444_v52 = vld [vmem:[#allocation71_spill] sm:$0xff] }
 0x267   : > { %14432 = vst [vmem:[#allocation6_spill] sm:$0xff] %v10811_v23  ;;  %v2644_v3 = vpop.f32.mrf.mxu3  ;;  %3986 = vrot.lane.b32.xlu0 %v3414_v60, %s9393_s25  ;;  %3988 = vrot.lane.b32.xlu1 %v3415_v51, %s9393_s25  ;;  %v3453_v31 = vpack.c.bf16 %v10811_v23, %v10808_v17  ;;  %v2887_v24 = vadd.f32 %v2630_v13, %v2076_v35  ;;  %v14440_v60 = vld [vmem:[#allocation18_spill] sm:$0xff]  ;;  %v14441_v51 = vld [vmem:[#allocation63_spill] sm:$0xff] }
 0x268   : > { %3990 = vrot.lane.b32.xlu2 %v3416_v33, %s9393_s25  ;;  %3655 = vmatpush.bf16.msrb.mxu0 %v3452_v2  ;;  %v2078_v30 = vadd.f32 %v14439_v12, %v14438_v6  ;;  %v3417_v29 = vpack.c.bf16 %v3382_v15, %v3349_v28  ;;  %v2104_v13 = vadd.f32 %v14441_v51, %v14440_v60  ;;  %v14442_v33 = vld [vmem:[#allocation21_spill] sm:$0xff]  ;;  %v14443_v2 = vld [vmem:[#allocation67_spill] sm:$0xff]  ;;  %v14446_v15 = vld [vmem:[#allocation64_spill] sm:$0xff] }
 0x269   : > { %9042 = vmatmul.msk.bf16.vlgmr.msra.gmra.mxu2 %vm1410_vm2, %v10574_v10  ;;  %9043 = vmatmul.msk.bf16.vlgmr.msra.gmra.mxu3 %vm1410_vm2, %v10574_v10  ;;  %v2658_v41 = vpop.f32.mrf.mxu0  ;;  %v3285_v44 = vsel %vm3271_vm3, %v14433_v32, %v14444_v52  ;;  %v2888_v20 = vadd.f32 %v2644_v3, %v2090_v61  ;;  %v2118_v28 = vadd.f32 %v14446_v15, %v14445_v36  ;;  %v14447_v6 = vld [vmem:[#allocation22_spill] sm:$0xff]  ;;  %v14448_v12 = vld [vmem:[#allocation68_spill] sm:$0xff]  ;;  %v14449_v51 = vld [vmem:[#allocation77_spill] sm:$0xff] }
 0x26a   : > { %3669 = vmatpush.bf16.msrb.mxu1 %v3453_v31  ;;  %v2672_v0 = vpop.f32.mrf.mxu1  ;;  %v2092_v31 = vadd.f32 %v14443_v2, %v14442_v33  ;;  %v10855_v48 = vadd.f32 %v10285_v46, %v2887_v24  ;;  %v2106_v60 = vadd.f32 %v14448_v12, %v14447_v6  ;;  %v3286_v3 = vsel %vm3271_vm3, %v14444_v52, %v14449_v51  ;;  %v14450_v33 = vld [vmem:[#allocation23_spill] sm:$0xff]  ;;  %v14451_v24 = vld [vmem:[#allocation69_spill] sm:$0xff] }
 0x26b   : > { %v2889_v32 = vadd.f32 %v2658_v41, %v2104_v13  ;;  %v2120_v2 = vadd.f32 %v14451_v24, %v14450_v33  ;;  %v10874_v15 = vadd.f32 %v10285_v46, %v2888_v20  ;;  %v3350_v12 = vmul.f32 %v3285_v44, %v10808_v17 }
 0x26d   : > { %9045 = vmatmul.msk.bf16.vlgmr.msrb.gmra.mxu1 %vm1410_vm2, %v10574_v10  ;;  %9044 = vmatmul.msk.bf16.vlgmr.msrb.gmra.mxu0 %vm1410_vm2, %v10574_v10 }
 0x26e   : > { %v2632_v35 = vpop.f32.mrf.mxu2 }
 0x26f   : > { %v2919_v45 = vadd.f32 %v2632_v35, %v2078_v30  ;;  %v2646_v58 = vpop.f32.mrf.mxu3  ;;  %4678 = vrot.lane.b32.xlu0 %v4614_v26, %s9393_s25  ;;  %3992 = vrot.lane.b32.xlu1 %v3417_v29, %s9393_s25  ;;  %v2890_v30 = vadd.f32 %v2672_v0, %v2118_v28  ;;  %v9315_v29 = vld [vmem:[%s14195_s11 + $0x58] sm:$0x3f]  ;;  %v3351_v28 = vmul.f32 %v3286_v3, %v10855_v48 }
 0x270   : > { %v2920_v61 = vadd.f32 %v2646_v58, %v2092_v31  ;;  %4696 = vrot.lane.b32.xlu2 %v4623_v47, %s9393_s25  ;;  %v4625_v36 = vperm.slane %v9315_v29, 2  ;;  %v3383_v31 = vmul.f32 %v3285_v44, %v10811_v23  ;;  %v10885_v58 = vadd.f32 %v10285_v46, %v2889_v32 }
 0x271   : > { %v10868_v35 = vadd.f32 %v10307_v62, %v2919_v45  ;;  %v2660_v26 = vpop.f32.mrf.mxu0 }
 0x272   : > { %v10877_v41 = vadd.f32 %v10307_v62, %v2920_v61  ;;  %v2921_v47 = vadd.f32 %v2660_v26, %v2106_v60  ;;  %v2674_v13 = vpop.f32.mrf.mxu1  ;;  %14452 = vst [vmem:[#allocation7_spill] sm:$0xff] %v10885_v58  ;;  %v10894_v60 = vadd.f32 %v10285_v46, %v2890_v30  ;;  %v3418_v32 = vpack.c.bf16 %v3383_v31, %v3350_v12  ;;  %v14456_v30 = vld [vmem:[#allocation24_spill] sm:$0xff]  ;;  %v14457_v26 = vld [vmem:[#allocation70_spill] sm:$0xff]  ;;  %v14459_v31 = vld [vmem:[#allocation81_spill] sm:$0xff] }
 0x273   : > { %v2922_v0 = vadd.f32 %v2674_v13, %v2120_v2  ;;  %v3454_v52 = vpack.c.bf16 %v10868_v35, %v10855_v48  ;;  %v3384_v45 = vmul.f32 %v3286_v3, %v10868_v35  ;;  %v2132_v29 = vadd.f32 %v14457_v26, %v14456_v30  ;;  %v14462_v26 = vld [vmem:[#allocation79_spill] sm:$0xff] }
 0x274   : > { %v10888_v20 = vadd.f32 %v10307_v62, %v2921_v47  ;;  %v3455_v6 = vpack.c.bf16 %v10877_v41, %v10874_v15  ;;  %14454 = vst [vmem:[#allocation8_spill] sm:$0xff] %v10894_v60  ;;  %v14458_v47 = vld [vmem:[#allocation73_spill] sm:$0xff] }
 0x275   : > { %v10897_v61 = vadd.f32 %v10307_v62, %v2922_v0  ;;  %3683 = vmatpush.bf16.msrb.mxu2 %v3454_v52  ;;  %v3419_v33 = vpack.c.bf16 %v3384_v45, %v3351_v28  ;;  %v3287_v13 = vsel %vm3271_vm3, %v14449_v51, %v14458_v47  ;;  %v3288_v0 = vsel %vm3271_vm3, %v14458_v47, %v14459_v31  ;;  %v14460_v28 = vld [vmem:[#allocation25_spill] sm:$0xff]  ;;  %v14461_v45 = vld [vmem:[#allocation72_spill] sm:$0xff] }
 0x276   : > { %14453 = vst [vmem:[#allocation55_spill] sm:$0xff] %v10888_v20  ;;  %3697 = vmatpush.bf16.msrb.mxu3 %v3455_v6  ;;  %v2686_v3 = vpop.f32.mrf.mxu2  ;;  %v3456_v24 = vpack.c.bf16 %v10888_v20, %v10885_v58  ;;  %v3385_v52 = vmul.f32 %v3287_v13, %v10877_v41  ;;  %v2146_v6 = vadd.f32 %v14461_v45, %v14460_v28  ;;  %v14463_v28 = vld [vmem:[#allocation26_spill] sm:$0xff]  ;;  %v14466_v45 = vld [vmem:[#allocation76_spill] sm:$0xff] }
 0x277   : > { %14455 = vst [vmem:[#allocation52_spill] sm:$0xff] %v10897_v61  ;;  %v2700_v2 = vpop.f32.mrf.mxu3  ;;  %3996 = vrot.lane.b32.xlu0 %v3419_v33, %s9393_s25  ;;  %4700 = vrot.lane.b32.xlu1 %v4625_v36, %s9393_s25  ;;  %v3457_v44 = vpack.c.bf16 %v10897_v61, %v10894_v60  ;;  %v2891_v51 = vadd.f32 %v2686_v3, %v2132_v29  ;;  %v14464_v3 = vld [vmem:[#allocation74_spill] sm:$0xff]  ;;  %v14465_v29 = vld [vmem:[#allocation28_spill] sm:$0xff] }
 0x278   : > { %3994 = vrot.lane.b32.xlu2 %v3418_v32, %s9393_s25  ;;  %3711 = vmatpush.bf16.msra.mxu0 %v3456_v24  ;;  %v3386_v33 = vmul.f32 %v3288_v0, %v10888_v20  ;;  %v9316_v32 = vld [vmem:[%s14195_s11 + $0x50] sm:$0x3f]  ;;  %v3352_v30 = vmul.f32 %v3287_v13, %v10874_v15  ;;  %v3289_v47 = vsel %vm3271_vm3, %v14459_v31, %v14462_v26  ;;  %v14467_v13 = vld [vmem:[#allocation29_spill] sm:$0xff] }
 0x279   : > { %9046 = vmatmul.msk.bf16.vlgmr.msrb.gmra.mxu2 %vm1410_vm2, %v10574_v10  ;;  %9047 = vmatmul.msk.bf16.vlgmr.msrb.gmra.mxu3 %vm1410_vm2, %v10574_v10  ;;  %v2714_v36 = vpop.f32.mrf.mxu0  ;;  %v4624_v24 = vperm.slane %v9316_v32, 2  ;;  %v2892_v5 = vadd.f32 %v2700_v2, %v2146_v6  ;;  %v3353_v54 = vmul.f32 %v3288_v0, %v10885_v58  ;;  %v2134_v39 = vadd.f32 %v14466_v45, %v14465_v29  ;;  %v14468_v32 = vld [vmem:[#allocation78_spill] sm:$0xff]  ;;  %v14469_v31 = vld [vmem:[#allocation85_spill] sm:$0xff] }
 0x27a   : > { %3725 = vmatpush.bf16.msra.mxu1 %v3457_v44  ;;  %v2728_v12 = vpop.f32.mrf.mxu1  ;;  %v2160_v44 = vadd.f32 %v14464_v3, %v14463_v28  ;;  %v3420_v38 = vpack.c.bf16 %v3385_v52, %v3352_v30  ;;  %v2148_v23 = vadd.f32 %v14468_v32, %v14467_v13  ;;  %v3290_v2 = vsel %vm3271_vm3, %v14462_v26, %v14469_v31  ;;  %v14471_v3 = vld [vmem:[#allocation27_spill] sm:$0xff]  ;;  %v14473_v13 = vld [vmem:[#allocation30_spill] sm:$0xff]  ;;  %v14474_v32 = vld [vmem:[#allocation80_spill] sm:$0xff] }
 0x27b   : > { %v10944_v0 = vadd.f32 %v10285_v46, %v2891_v51  ;;  %v3421_v28 = vpack.c.bf16 %v3386_v33, %v3353_v54  ;;  %v14472_v52 = vld [vmem:[#allocation75_spill] sm:$0xff]  ;;  %v2162_v20 = vadd.f32 %v14474_v32, %v14473_v13  ;;  %v14475_v58 = vld [vmem:[#allocation89_spill] sm:$0xff]  ;;  %v10956_v26 = vadd.f32 %v10285_v46, %v2892_v5 }
 0x27c   : > { %v2174_v30 = vadd.f32 %v14472_v52, %v14471_v3  ;;  %v2893_v29 = vadd.f32 %v2714_v36, %v2160_v44  ;;  %v3291_v51 = vsel %vm3271_vm3, %v14469_v31, %v14475_v58  ;;  %v14477_v36 = vld [vmem:[#allocation31_spill] sm:$0xff] }
 0x27d   : > { %9049 = vmatmul.msk.bf16.vlgmr.msra.gmra.mxu1 %vm1410_vm2, %v10574_v10  ;;  %9048 = vmatmul.msk.bf16.vlgmr.msra.gmra.mxu0 %vm1410_vm2, %v10574_v10  ;;  %14470 = vst [vmem:[#allocation9_spill] sm:$0xff] %v10944_v0  ;;  %v3355_v5 = vmul.f32 %v3290_v2, %v10944_v0  ;;  %v3356_v13 = vmul.f32 %v3291_v51, %v10956_v26 }
 0x27e   : > { %v2688_v6 = vpop.f32.mrf.mxu2  ;;  %14476 = vst [vmem:[#allocation53_spill] sm:$0xff] %v10956_v26  ;;  %v2894_v44 = vadd.f32 %v2728_v12, %v2174_v30 }
 0x27f   : > { %v2923_v45 = vadd.f32 %v2688_v6, %v2134_v39  ;;  %v2702_v17 = vpop.f32.mrf.mxu3  ;;  %4698 = vrot.lane.b32.xlu0 %v4624_v24, %s9393_s25  ;;  %3998 = vrot.lane.b32.xlu1 %v3420_v38, %s9393_s25  ;;  %v14478_v39 = vld [vmem:[#allocation82_spill] sm:$0xff]  ;;  %v3387_v6 = vmul.f32 %v3289_v47, %v10897_v61 }
 0x280   : > { %v2924_v54 = vadd.f32 %v2702_v17, %v2148_v23  ;;  %4000 = vrot.lane.b32.xlu2 %v3421_v28, %s9393_s25  ;;  %v2176_v33 = vadd.f32 %v14478_v39, %v14477_v36  ;;  %v3354_v17 = vmul.f32 %v3289_v47, %v10894_v60  ;;  %v10971_v23 = vadd.f32 %v10285_v46, %v2893_v29  ;;  %v14496_v60 = vld [vmem:[#allocation35_spill] sm:$0xff] }
 0x281   : > { %v10962_v24 = vadd.f32 %v10307_v62, %v2923_v45  ;;  %v2716_v38 = vpop.f32.mrf.mxu0  ;;  %v10984_v47 = vadd.f32 %v10285_v46, %v2894_v44  ;;  %v14483_v44 = vld [vmem:[#allocation32_spill] sm:$0xff] }
 0x282   : > { %v10966_v3 = vadd.f32 %v10307_v62, %v2924_v54  ;;  %v2925_v31 = vadd.f32 %v2716_v38, %v2162_v20  ;;  %v2730_v52 = vpop.f32.mrf.mxu1  ;;  %v3422_v36 = vpack.c.bf16 %v3387_v6, %v3354_v17 }
 0x283   : > { %14479 = vst [vmem:[#allocation10_spill] sm:$0xff] %v10962_v24  ;;  %v2926_v28 = vadd.f32 %v2730_v52, %v2176_v33  ;;  %v3458_v12 = vpack.c.bf16 %v10962_v24, %v10944_v0  ;;  %v3388_v30 = vmul.f32 %v3290_v2, %v10962_v24  ;;  %v14499_v24 = vld [vmem:[#allocation92_spill] sm:$0xff] }
 0x284   : > { %14480 = vst [vmem:[#allocation54_spill] sm:$0xff] %v10966_v3  ;;  %v10977_v45 = vadd.f32 %v10307_v62, %v2925_v31  ;;  %v3459_v20 = vpack.c.bf16 %v10966_v3, %v10956_v26  ;;  %v3389_v32 = vmul.f32 %v3291_v51, %v10966_v3  ;;  %v14484_v31 = vld [vmem:[#allocation83_spill] sm:$0xff]  ;;  %v14498_v26 = vld [vmem:[#allocation38_spill] sm:$0xff] }
 0x285   : > { %14481 = vst [vmem:[#allocation12_spill] sm:$0xff] %v10984_v47  ;;  %v10987_v29 = vadd.f32 %v10307_v62, %v2926_v28  ;;  %3739 = vmatpush.bf16.msra.mxu2 %v3458_v12  ;;  %v3423_v54 = vpack.c.bf16 %v3388_v30, %v3355_v5  ;;  %v2188_v52 = vadd.f32 %v14484_v31, %v14483_v44  ;;  %v14485_v28 = vld [vmem:[#allocation33_spill] sm:$0xff]  ;;  %v14486_v12 = vld [vmem:[#allocation84_spill] sm:$0xff] }
 0x286   : > { %3753 = vmatpush.bf16.msra.mxu3 %v3459_v20  ;;  %v2742_v2 = vpop.f32.mrf.mxu2  ;;  %v3424_v39 = vpack.c.bf16 %v3389_v32, %v3356_v13  ;;  %v3460_v33 = vpack.c.bf16 %v10977_v45, %v10971_v23  ;;  %v2202_v30 = vadd.f32 %v14486_v12, %v14485_v28  ;;  %v9317_v20 = vld [vmem:[%s14195_s11 + $0x60] sm:$0x3f]  ;;  %v14487_v32 = vld [vmem:[#allocation36_spill] sm:$0xff]  ;;  %v14493_v28 = vld [vmem:[#allocation37_spill] sm:$0xff]  ;;  %v2218_v0 = vadd.f32 %v14499_v24, %v14498_v26 }
 0x287   : > { %14482 = vst [vmem:[#allocation11_spill] sm:$0xff] %v10987_v29  ;;  %v2756_v38 = vpop.f32.mrf.mxu3  ;;  %4002 = vrot.lane.b32.xlu1 %v3422_v36, %s9393_s25  ;;  %v3461_v51 = vpack.c.bf16 %v10987_v29, %v10984_v47  ;;  %v2895_v17 = vadd.f32 %v2742_v2, %v2188_v52  ;;  %v4626_v13 = vperm.slane %v9317_v20, 2  ;;  %v14490_v31 = vld [vmem:[#allocation96_spill] sm:$0xff]  ;;  %v14491_v2 = vld [vmem:[#allocation34_spill] sm:$0xff]  ;;  %v14494_v12 = vld [vmem:[#allocation91_spill] sm:$0xff] }
 0x288   : > { %4004 = vrot.lane.b32.xlu2 %v3423_v54, %s9393_s25  ;;  %4006 = vrot.lane.b32.xlu0 %v3424_v39, %s9393_s25  ;;  %v14488_v54 = vld [vmem:[#allocation90_spill] sm:$0xff]  ;;  %v2204_v20 = vadd.f32 %v14494_v12, %v14493_v28  ;;  %v14501_v28 = vld [vmem:[#allocation39_spill] sm:$0xff] }
 0x289   : > { %9050 = vmatmul.msk.bf16.vlgmr.msra.gmra.mxu2 %vm1410_vm2, %v10574_v10  ;;  %9051 = vmatmul.msk.bf16.vlgmr.msra.gmra.mxu3 %vm1410_vm2, %v10574_v10  ;;  %v2770_v6 = vpop.f32.mrf.mxu0  ;;  %v2190_v36 = vadd.f32 %v14488_v54, %v14487_v32  ;;  %v14489_v39 = vld [vmem:[#allocation94_spill] sm:$0xff]  ;;  %v14495_v32 = vld [vmem:[#allocation88_spill] sm:$0xff]  ;;  %v2896_v54 = vadd.f32 %v2756_v38, %v2202_v30  ;;  %v11031_v50 = vadd.f32 %v10285_v46, %v2895_v17 }
 0x28a   : > { %3767 = vmatpush.bf16.msrb.mxu0 %v3460_v33  ;;  %3781 = vmatpush.bf16.msrb.mxu1 %v3461_v51  ;;  %v2784_v5 = vpop.f32.mrf.mxu1  ;;  %v3292_v44 = vsel %vm3271_vm3, %v14475_v58, %v14489_v39  ;;  %v3293_v33 = vsel %vm3271_vm3, %v14489_v39, %v14490_v31  ;;  %v14492_v51 = vld [vmem:[#allocation86_spill] sm:$0xff]  ;;  %v3294_v58 = vsel %vm3271_vm3, %v14490_v31, %v14495_v32  ;;  %v14497_v39 = vld [vmem:[#allocation87_spill] sm:$0xff]  ;;  %v14502_v31 = vld [vmem:[#allocation93_spill] sm:$0xff] }
 0x28b   : > { %v2216_v52 = vadd.f32 %v14492_v51, %v14491_v2  ;;  %v2230_v3 = vadd.f32 %v14497_v39, %v14496_v60  ;;  %v14500_v51 = vpack.c.bf16 %v10633_v16, %v10622_v9  ;;  %v2232_v38 = vadd.f32 %v14502_v31, %v14501_v28 }
 0x28c   : > { %v14503_v60 = vpack.c.bf16 %v10630_v22, %v10618_v8  ;;  %v3357_v9 = vmul.f32 %v3292_v44, %v10971_v23  ;;  %v3390_v16 = vmul.f32 %v3292_v44, %v10977_v45  ;;  %v11050_v17 = vadd.f32 %v10285_v46, %v2896_v54 }
 0x28d   : > { %9053 = vmatmul.msk.bf16.vlgmr.msrb.gmra.mxu1 %vm1410_vm2, %v10574_v10  ;;  %9052 = vmatmul.msk.bf16.vlgmr.msrb.gmra.mxu0 %vm1410_vm2, %v10574_v10  ;;  %v2897_v30 = vadd.f32 %v2770_v6, %v2216_v52  ;;  %v2898_v26 = vadd.f32 %v2784_v5, %v2230_v3  ;;  %v3391_v8 = vmul.f32 %v3293_v33, %v10987_v29 }
 0x28e   : > { %v2744_v61 = vpop.f32.mrf.mxu2  ;;  %v3359_v3 = vmul.f32 %v3294_v58, %v11031_v50 }
 0x28f   : > { %v2927_v53 = vadd.f32 %v2744_v61, %v2190_v36  ;;  %v2758_v2 = vpop.f32.mrf.mxu3  ;;  %4952 = vrot.lane.b32.xlu1 %v14500_v51, %s9392_s27  ;;  %v11061_v44 = vadd.f32 %v10285_v46, %v2897_v30  ;;  %v11070_v54 = vadd.f32 %v10285_v46, %v2898_v26  ;;  %v14506_v30 = vld [vmem:[#allocation40_spill] sm:$0xff]  ;;  %v14508_v26 = vld [vmem:[#allocation101_spill] sm:$0xff] }
 0x290   : > { %v2928_v12 = vadd.f32 %v2758_v2, %v2204_v20  ;;  %4702 = vrot.lane.b32.xlu2 %v4626_v13, %s9393_s25  ;;  %4950 = vrot.lane.b32.xlu0 %v14503_v60, %s9392_s27  ;;  %v3358_v20 = vmul.f32 %v3293_v33, %v10984_v47 }
 0x291   : > { %v11045_v61 = vadd.f32 %v10307_v62, %v2927_v53  ;;  %v2772_v24 = vpop.f32.mrf.mxu0 }
 0x292   : > { %v11053_v6 = vadd.f32 %v10307_v62, %v2928_v12  ;;  %v2929_v13 = vadd.f32 %v2772_v24, %v2218_v0  ;;  %v2786_v36 = vpop.f32.mrf.mxu1  ;;  %v3426_v28 = vpack.c.bf16 %v3391_v8, %v3358_v20  ;;  %v14507_v12 = vld [vmem:[#allocation97_spill] sm:$0xff]  ;;  %v3295_v24 = vsel %vm3271_vm3, %v14495_v32, %v14508_v26  ;;  %v14511_v20 = vld [vmem:[#allocation42_spill] sm:$0xff] }
 0x293   : > { %14504 = vst [vmem:[#allocation56_spill] sm:$0xff] %v11045_v61  ;;  %v2930_v22 = vadd.f32 %v2786_v36, %v2232_v38  ;;  %v3462_v53 = vpack.c.bf16 %v11045_v61, %v11031_v50  ;;  %v3392_v5 = vmul.f32 %v3294_v58, %v11045_v61  ;;  %v3425_v58 = vpack.c.bf16 %v3390_v16, %v3357_v9  ;;  %v14510_v36 = vld [vmem:[#allocation98_spill] sm:$0xff] }
 0x294   : > { %v11064_v52 = vadd.f32 %v10307_v62, %v2929_v13  ;;  %v3463_v0 = vpack.c.bf16 %v11053_v6, %v11050_v17  ;;  %v2244_v60 = vadd.f32 %v14507_v12, %v14506_v30  ;;  %v3393_v16 = vmul.f32 %v3295_v24, %v11053_v6  ;;  %v14509_v13 = vld [vmem:[#allocation41_spill] sm:$0xff]  ;;  %v14514_v30 = vld [vmem:[#allocation102_spill] sm:$0xff] }
 0x295   : > { %v11073_v39 = vadd.f32 %v10307_v62, %v2930_v22  ;;  %3795 = vmatpush.bf16.msrb.mxu2 %v3462_v53  ;;  %v3427_v2 = vpack.c.bf16 %v3392_v5, %v3359_v3  ;;  %v2258_v8 = vadd.f32 %v14510_v36, %v14509_v13  ;;  %v3360_v53 = vmul.f32 %v3295_v24, %v11050_v17  ;;  %v9318_v5 = vld [vmem:[%s14195_s11 + $0x78] sm:$0x3f]  ;;  %v14518_v24 = vld [vmem:[#allocation43_spill] sm:$0xff]  ;;  %v14519_v13 = vld [vmem:[#allocation100_spill] sm:$0xff] }
 0x296   : > { %3809 = vmatpush.bf16.msrb.mxu3 %v3463_v0  ;;  %v2798_v51 = vpop.f32.mrf.mxu2  ;;  %v3464_v31 = vpack.c.bf16 %v11064_v52, %v11061_v44  ;;  %v4629_v0 = vperm.slane %v9318_v5, 2  ;;  %v2286_v36 = vadd.f32 %v14519_v13, %v14518_v24  ;;  %v14521_v5 = vld [vmem:[#allocation105_spill] sm:$0xff]  ;;  %v14525_v24 = vpack.c.bf16 %v10649_v37, %v10626_v59 }
 0x297   : > { %14505 = vst [vmem:[#allocation13_spill] sm:$0xff] %v11073_v39  ;;  %v2812_v38 = vpop.f32.mrf.mxu3  ;;  %4008 = vrot.lane.b32.xlu1 %v3425_v58, %s9393_s25  ;;  %v3465_v33 = vpack.c.bf16 %v11073_v39, %v11070_v54  ;;  %v2899_v22 = vadd.f32 %v2798_v51, %v2244_v60  ;;  %v3428_v29 = vpack.c.bf16 %v3393_v16, %v3360_v53  ;;  %v14515_v51 = vld [vmem:[#allocation45_spill] sm:$0xff] }
 0x298   : > { %4010 = vrot.lane.b32.xlu2 %v3426_v28, %s9393_s25  ;;  %4012 = vrot.lane.b32.xlu0 %v3427_v2, %s9393_s25  ;;  %v2900_v3 = vadd.f32 %v2812_v38, %v2258_v8  ;;  %v14512_v2 = vld [vmem:[#allocation99_spill] sm:$0xff]  ;;  %v14513_v28 = vld [vmem:[#allocation44_spill] sm:$0xff] }
 0x299   : > { %9054 = vmatmul.msk.bf16.vlgmr.msrb.gmra.mxu2 %vm1410_vm2, %v10574_v10  ;;  %9055 = vmatmul.msk.bf16.vlgmr.msrb.gmra.mxu3 %vm1410_vm2, %v10574_v10  ;;  %v2826_v9 = vpop.f32.mrf.mxu0  ;;  %v2272_v58 = vadd.f32 %v14512_v2, %v14511_v20  ;;  %v2246_v12 = vadd.f32 %v14514_v30, %v14513_v28  ;;  %v14520_v8 = vld [vmem:[#allocation103_spill] sm:$0xff]  ;;  %v14522_v28 = vld [vmem:[#allocation46_spill] sm:$0xff] }
 0x29a   : > { %3823 = vmatpush.bf16.msra.mxu0 %v3464_v31  ;;  %3837 = vmatpush.bf16.msra.mxu1 %v3465_v33  ;;  %v2840_v32 = vpop.f32.mrf.mxu1  ;;  %v14516_v31 = vld [vmem:[#allocation104_spill] sm:$0xff]  ;;  %v11109_v33 = vadd.f32 %v10285_v46, %v2899_v22  ;;  %v3299_v16 = vsel %vm3271_vm3, %v14521_v5, %v14520_v8  ;;  %v14523_v30 = vld [vmem:[#allocation106_spill] sm:$0xff]  ;;  %v11122_v22 = vadd.f32 %v10285_v46, %v2900_v3 }
 0x29b   : > { %v2260_v38 = vadd.f32 %v14516_v31, %v14515_v51  ;;  %v2901_v53 = vadd.f32 %v2826_v9, %v2272_v58  ;;  %v2274_v47 = vadd.f32 %v14523_v30, %v14522_v28  ;;  %v11119_v51 = vpop.permute.xlu2 %3970  ;;  %v14526_v9 = vld [vmem:[#allocation47_spill] sm:$0xff]  ;;  %v2902_v13 = vadd.f32 %v2840_v32, %v2286_v36 }
 0x29c   : > { %14517 = vst [vmem:[#allocation57_spill] sm:$0xff] %v11109_v33  ;;  %v14527_v58 = vld [vmem:[#allocation107_spill] sm:$0xff] }
 0x29d   : > { %9057 = vmatmul.msk.bf16.vlgmr.msra.gmra.mxu1 %vm1410_vm2, %v10574_v10  ;;  %9056 = vmatmul.msk.bf16.vlgmr.msra.gmra.mxu0 %vm1410_vm2, %v10574_v10  ;;  %14524 = vst [vmem:[#allocation60_spill] sm:$0xff] %v11122_v22 }
 0x29e   : > { %v2800_v60 = vpop.f32.mrf.mxu2 }
 0x29f   : > { %v2931_v20 = vadd.f32 %v2800_v60, %v2246_v12  ;;  %v2814_v2 = vpop.f32.mrf.mxu3  ;;  %4014 = vrot.lane.b32.xlu1 %v3428_v29, %s9393_s25  ;;  %v2288_v12 = vadd.f32 %v14527_v58, %v14526_v9  ;;  %v14528_v29 = vld [vmem:[#allocation109_spill] sm:$0xff]  ;;  %v11158_v58 = vadd.f32 %v10285_v46, %v2902_v13  ;;  %v14531_v13 = vld [vmem:[#allocation95_spill] sm:$0xff] }
 0x2a0   : > { %v2932_v31 = vadd.f32 %v2814_v2, %v2260_v38  ;;  %4954 = vrot.lane.b32.xlu2 %v14525_v24, %s9392_s27  ;;  %4708 = vrot.lane.b32.xlu0 %v4629_v0, %s9393_s25  ;;  %v3298_v60 = vsel %vm3271_vm3, %v14528_v29, %v14521_v5  ;;  %v9319_v0 = vld [vmem:[%s14195_s11 + $0x68] sm:$0x3f]  ;;  %v11145_v24 = vadd.f32 %v10285_v46, %v2901_v53 }
 0x2a1   : > { %v11135_v28 = vadd.f32 %v10307_v62, %v2931_v20  ;;  %v2828_v3 = vpop.f32.mrf.mxu0  ;;  %v3363_v37 = vmul.f32 %v3298_v60, %v11109_v33  ;;  %v4627_v30 = vperm.slane %v9319_v0, 2  ;;  %v3297_v0 = vsel %vm3271_vm3, %v14531_v13, %v14528_v29 }
 0x2a2   : > { %v11138_v38 = vadd.f32 %v10307_v62, %v2932_v31  ;;  %v2933_v2 = vadd.f32 %v2828_v3, %v2274_v47  ;;  %v2842_v59 = vpop.f32.mrf.mxu1  ;;  %v3364_v31 = vmul.f32 %v3299_v16, %v11122_v22  ;;  %v3395_v29 = vmul.f32 %v3297_v0, %v11073_v39  ;;  %v9320_v39 = vld [vmem:[%s14195_s11 + $0x70] sm:$0x3f] }
 0x2a3   : > { %14529 = vst [vmem:[#allocation14_spill] sm:$0xff] %v11135_v28  ;;  %v2934_v32 = vadd.f32 %v2842_v59, %v2288_v12  ;;  %v3466_v36 = vpack.c.bf16 %v11135_v28, %v11109_v33  ;;  %v3396_v5 = vmul.f32 %v3298_v60, %v11135_v28  ;;  %v4628_v61 = vperm.slane %v9320_v39, 2 }
 0x2a4   : > { %14530 = vst [vmem:[#allocation58_spill] sm:$0xff] %v11138_v38  ;;  %v11151_v20 = vadd.f32 %v10307_v62, %v2933_v2  ;;  %v3467_v47 = vpack.c.bf16 %v11138_v38, %v11122_v22  ;;  %v3397_v9 = vmul.f32 %v3299_v16, %v11138_v38  ;;  %v3362_v38 = vmul.f32 %v3297_v0, %v11070_v54 }
 0x2a5   : > { %v11161_v53 = vadd.f32 %v10307_v62, %v2934_v32  ;;  %3851 = vmatpush.bf16.msra.mxu2 %v3466_v36  ;;  %v3431_v12 = vpack.c.bf16 %v3396_v5, %v3363_v37  ;;  %v11173_v37 = vpop.permute.xlu2 %4694  ;;  %v14532_v32 = vld [vmem:[#allocation48_spill] sm:$0xff] }
 0x2a6   : > { %3865 = vmatpush.bf16.msra.mxu3 %v3467_v47  ;;  %v2854_v60 = vpop.f32.mrf.mxu2  ;;  %v3432_v3 = vpack.c.bf16 %v3397_v9, %v3364_v31  ;;  %v3468_v2 = vpack.c.bf16 %v11151_v20, %v11145_v24  ;;  %v14533_v36 = vld [vmem:[#allocation108_spill] sm:$0xff]  ;;  %v14535_v31 = vld [vmem:[#allocation49_spill] sm:$0xff]  ;;  %v14536_v9 = vld [vmem:[#allocation110_spill] sm:$0xff] }
 0x2a7   : > { %v2868_v59 = vpop.f32.mrf.mxu3  ;;  %4704 = vrot.lane.b32.xlu1 %v4627_v30, %s9393_s25  ;;  %v3469_v16 = vpack.c.bf16 %v11161_v53, %v11158_v58  ;;  %v2300_v5 = vadd.f32 %v14533_v36, %v14532_v32  ;;  %v14534_v47 = vld [vmem:[#allocation112_spill] sm:$0xff] }
 0x2a8   : > { %4020 = vrot.lane.b32.xlu2 %v3431_v12, %s9393_s25  ;;  %4022 = vrot.lane.b32.xlu0 %v3432_v3, %s9393_s25  ;;  %v3300_v30 = vsel %vm3271_vm3, %v14520_v8, %v14534_v47  ;;  %v2314_v12 = vadd.f32 %v14536_v9, %v14535_v31  ;;  %v3967_v3 = vpop.permute.xlu0 %3966  ;;  %v14537_v8 = vld [vmem:[#allocation50_spill] sm:$0xff]  ;;  %v14539_v9 = vld [vmem:[#allocation113_spill] sm:$0xff] }
 0x2a9   : > { %9058 = vmatmul.msk.bf16.vlgmr.msra.gmra.mxu2 %vm1410_vm2, %v10574_v10  ;;  %9059 = vmatmul.msk.bf16.vlgmr.msra.gmra.mxu3 %vm1410_vm2, %v10574_v10  ;;  %v3398_v32 = vmul.f32 %v3300_v30, %v11151_v20  ;;  %v2903_v36 = vadd.f32 %v2854_v60, %v2300_v5  ;;  %v2302_v28 = vadd.f32 %v10527_v4, %v14537_v8  ;;  %v14538_v4 = vld [vmem:[#allocation51_spill] sm:$0xff] }
 0x2aa   : > { %3893 = vmatpush.bf16.msrb.mxu1 %v3469_v16  ;;  %3879 = vmatpush.bf16.msrb.mxu0 %v3468_v2  ;;  %v2904_v22 = vadd.f32 %v2868_v59, %v2314_v12  ;;  %v3365_v31 = vmul.f32 %v3300_v30, %v11145_v24  ;;  %v3430_v16 = vpack.c.bf16 %v3395_v29, %v3362_v38  ;;  %v14540_v12 = vld [vmem:[#allocation111_spill] sm:$0xff] }
 0x2ab   : > { %v2316_v59 = vadd.f32 %v10529_v19, %v14538_v4  ;;  %v11205_v39 = vadd.f32 %v10285_v46, %v2903_v36  ;;  %v9321_v4 = vld [vmem:[%s14189_s5 + $0x8] sm:$0xff] }
 0x2ac   : > { %v3969_v33 = vpop.permute.xlu1 %3968  ;;  %v3433_v5 = vpack.c.bf16 %v3398_v32, %v3365_v31 }
 0x2ad   : > { %v4033_v2 = vsel %vm1410_vm2, %v3967_v3, %v3969_v33  ;;  %v4034_v60 = vsel %vm1410_vm2, %v3969_v33, %v11119_v51  ;;  %9060 = vmatmul.msk.bf16.vlgmr.msrb.gmra.mxu0 %vm1410_vm2, %v10574_v10  ;;  %9061 = vmatmul.msk.bf16.vlgmr.msrb.gmra.mxu1 %vm1410_vm2, %v10574_v10  ;;  %v3296_v33 = vsel %vm3271_vm3, %v14508_v26, %v14531_v13 }
 0x2ae   : > { %v2856_v0 = vpop.f32.mrf.mxu2  ;;  %4107 = vmatpush.bf16.msra.mxu0 %v4033_v2  ;;  %4121 = vmatpush.bf16.msra.mxu1 %v4034_v60  ;;  %v11212_v10 = vadd.f32 %v10285_v46, %v2904_v22  ;;  %v3302_v3 = vsel %vm3271_vm3, %v14540_v12, %v14539_v9  ;;  %v3361_v13 = vmul.f32 %v3296_v33, %v11061_v44 }
 0x2af   : > { %v2935_v38 = vadd.f32 %v2856_v0, %v2302_v28  ;;  %v2870_v30 = vpop.f32.mrf.mxu3  ;;  %4018 = vrot.lane.b32.xlu1 %v3430_v16, %s9393_s25  ;;  %v3394_v28 = vmul.f32 %v3296_v33, %v11064_v52  ;;  %v3301_v60 = vsel %vm3271_vm3, %v14534_v47, %v14540_v12 }
 0x2b0   : > { %v2936_v29 = vadd.f32 %v2870_v30, %v2316_v59  ;;  %4706 = vrot.lane.b32.xlu2 %v4628_v61, %s9393_s25  ;;  %4024 = vrot.lane.b32.xlu0 %v3433_v5, %s9393_s25  ;;  %v3367_v61 = vmul.f32 %v3302_v3, %v11205_v39  ;;  %v3368_v8 = vmul.f32 %v14539_v9, %v11212_v10 }
 0x2b1   : > { %v11217_v19 = vadd.f32 %v10307_v62, %v2935_v38  ;;  %v3429_v16 = vpack.c.bf16 %v3394_v28, %v3361_v13  ;;  %v3399_v0 = vmul.f32 %v3301_v60, %v11161_v53  ;;  %v3366_v33 = vmul.f32 %v3301_v60, %v11158_v58  ;;  %v9322_v13 = vld [vmem:[%s14195_s11 + $0x80] sm:$0x3f] }
 0x2b2   : > { %v11224_v32 = vadd.f32 %v10307_v62, %v2936_v29  ;;  %v11226_v26 = vpop.permute.xlu2 %3982  ;;  %v11258_v29 = vld [vmem:[%s14189_s5] sm:$0xff] }
 0x2b3   : > { %v3470_v46 = vpack.c.bf16 %v11217_v19, %v11205_v39  ;;  %v3400_v22 = vmul.f32 %v3302_v3, %v11217_v19  ;;  %v3434_v28 = vpack.c.bf16 %v3399_v0, %v3366_v33  ;;  %v9323_v33 = vld [vmem:[%s14195_s11 + $0x88] sm:$0x3f] }
 0x2b4   : > { %v3471_v36 = vpack.c.bf16 %v11224_v32, %v11212_v10  ;;  %v3401_v62 = vmul.f32 %v14539_v9, %v11224_v32 }
 0x2b5   : > { %3907 = vmatpush.bf16.msrb.mxu2 %v3470_v46  ;;  %v3435_v31 = vpack.c.bf16 %v3400_v22, %v3367_v61 }
 0x2b6   : > { %3921 = vmatpush.bf16.msrb.mxu3 %v3471_v36  ;;  %v3436_v2 = vpack.c.bf16 %v3401_v62, %v3368_v8  ;;  %v4630_v36 = vperm.slane %v9322_v13, 2 }
 0x2b7   : > { %4016 = vrot.lane.b32.xlu1 %v3429_v16, %s9393_s25 }
 0x2b8   : > { %4028 = vrot.lane.b32.xlu2 %v3435_v31, %s9393_s25  ;;  %4030 = vrot.lane.b32.xlu0 %v3436_v2, %s9393_s25 }
 0x2b9   : > { %9062 = vmatmul.msk.bf16.vlgmr.msrb.gmra.mxu2 %vm1410_vm2, %v9321_v4  ;;  %9063 = vmatmul.msk.bf16.vlgmr.msrb.gmra.mxu3 %vm1410_vm2, %v9321_v4  ;;  %v3973_v59 = vpop.permute.xlu0 %3972 }
 0x2ba   : > { %v3985_v5 = vpop.permute.xlu2 %3984  ;;  %v3975_v38 = vpop.permute.xlu1 %3974  ;;  %v4035_v47 = vsel %vm1410_vm2, %v11119_v51, %v3973_v59 }
 0x2bb   : > { %4135 = vmatpush.bf16.msra.mxu2 %v4035_v47  ;;  %v4036_v30 = vsel %vm1410_vm2, %v3973_v59, %v3975_v38 }
 0x2bc   : > { %4149 = vmatpush.bf16.msra.mxu3 %v4036_v30  ;;  %v4041_v30 = vsel %vm1410_vm2, %v11226_v26, %v3985_v5 }
 0x2bd   : > { %9068 = vmatmul.msk.bf16.vlgmr.msra.gmra.mxu0 %vm1410_vm2, %v11258_v29  ;;  %9069 = vmatmul.msk.bf16.vlgmr.msra.gmra.mxu1 %vm1410_vm2, %v11258_v29 }
 0x2bf   : > { %4026 = vrot.lane.b32.xlu1 %v3434_v28, %s9393_s25  ;;  %v4631_v28 = vperm.slane %v9323_v33, 2 }
 0x2c1   : > { %v4691_v51 = vpop.permute.xlu0 %4690 }
 0x2c2   : > { %v4747_v9 = vsel %vm1410_vm2, %v10603_v25, %v4691_v51  ;;  %v3991_v12 = vpop.permute.xlu2 %3990  ;;  %v4693_v3 = vpop.permute.xlu1 %4692 }
 0x2c3   : > { %v4812_v46 = vmul.f32 %v4747_v9, %v10684_v63  ;;  %v4845_v61 = vmul.f32 %v4747_v9, %v10701_v18  ;;  %v4748_v22 = vsel %vm1410_vm2, %v4691_v51, %v4693_v3  ;;  %v4749_v25 = vsel %vm1410_vm2, %v4693_v3, %v11173_v37 }
 0x2c4   : > { %v4813_v8 = vmul.f32 %v4748_v22, %v10692_v27  ;;  %v4846_v62 = vmul.f32 %v4748_v22, %v10707_v21  ;;  %v4814_v63 = vmul.f32 %v4749_v25, %v10711_v7  ;;  %v4847_v18 = vmul.f32 %v4749_v25, %v10717_v1  ;;  %v14542_v25 = vld [vmem:[#allocation116_spill] sm:$0xff] }
 0x2c5   : > { %v4881_v31 = vpack.c.bf16 %v4845_v61, %v4812_v46  ;;  %v11316_v61 = vld [vmem:[%s14195_s11 + $0xa0] sm:$0x3f] }
 0x2c6   : > { %v4882_v16 = vpack.c.bf16 %v4846_v62, %v4813_v8  ;;  %v4883_v7 = vpack.c.bf16 %v4847_v18, %v4814_v63  ;;  %v4634_v22 = vperm.slane %v11316_v61, 2  ;;  %v14541_v62 = vld [vmem:[#allocation114_spill] sm:$0xff] }
 0x2c7   : > { %4958 = vrot.lane.b32.xlu2 %v4881_v31, %s9392_s27  ;;  %4710 = vrot.lane.b32.xlu1 %v4630_v36, %s9393_s25 }
 0x2c8   : > { %4960 = vrot.lane.b32.xlu0 %v4882_v16, %s9392_s27 }
 0x2c9   : > { %9070 = vmatmul.msk.bf16.vlgmr.msra.gmra.mxu2 %vm1410_vm2, %v11258_v29  ;;  %9071 = vmatmul.msk.bf16.vlgmr.msra.gmra.mxu3 %vm1410_vm2, %v11258_v29  ;;  %v3979_v27 = vpop.permute.xlu0 %3978 }
 0x2ca   : > { %v11286_v21 = vpop.permute.xlu2 %4696  ;;  %v3981_v2 = vpop.permute.xlu1 %3980 }
 0x2cb   : > { %v4039_v60 = vsel %vm1410_vm2, %v3979_v27, %v3981_v2  ;;  %v4040_v4 = vsel %vm1410_vm2, %v3981_v2, %v11226_v26 }
 0x2cc   : > { %4191 = vmatpush.bf16.msrb.mxu2 %v4039_v60  ;;  %4205 = vmatpush.bf16.msrb.mxu3 %v4040_v4 }
 0x2cf   : > { %4962 = vrot.lane.b32.xlu1 %v4883_v7, %s9392_s27 }
 0x2d1   : > { %v3977_v1 = vpop.permute.xlu0 %3976 }
 0x2d2   : > { %v3995_v59 = vpop.permute.xlu2 %3994  ;;  %v4037_v0 = vsel %vm1410_vm2, %v3975_v38, %v3977_v1  ;;  %v4038_v47 = vsel %vm1410_vm2, %v3977_v1, %v3979_v27  ;;  %v14543_v27 = vld [vmem:[#allocation115_spill] sm:$0xff] }
 0x2d3   : > { %4163 = vmatpush.bf16.msrb.mxu0 %v4037_v0  ;;  %4177 = vmatpush.bf16.msrb.mxu1 %v4038_v47 }
 0x2d6   : > { %9072 = vmatmul.msk.bf16.vlgmr.msrb.gmra.mxu0 %vm1410_vm2, %v11258_v29  ;;  %9073 = vmatmul.msk.bf16.vlgmr.msrb.gmra.mxu1 %vm1410_vm2, %v11258_v29 }
 0x2d7   : > { %4219 = vmatpush.bf16.msra.mxu0 %v4041_v30  ;;  %4712 = vrot.lane.b32.xlu1 %v4631_v28, %s9393_s25  ;;  %v9325_v30 = vld [vmem:[%s14195_s11 + $0x90] sm:$0x3f] }
 0x2d8   : > { %v4632_v33 = vperm.slane %v9325_v30, 2 }
 0x2d9   : > { %9074 = vmatmul.msk.bf16.vlgmr.msrb.gmra.mxu2 %vm1410_vm2, %v11258_v29  ;;  %9075 = vmatmul.msk.bf16.vlgmr.msrb.gmra.mxu3 %vm1410_vm2, %v11258_v29  ;;  %v3987_v26 = vpop.permute.xlu0 %3986  ;;  %v3989_v38 = vpop.permute.xlu1 %3988 }
 0x2da   : > { %v11308_v51 = vpop.permute.xlu2 %4000  ;;  %v4042_v9 = vsel %vm1410_vm2, %v3985_v5, %v3987_v26  ;;  %v4043_v3 = vsel %vm1410_vm2, %v3987_v26, %v3989_v38  ;;  %v4044_v46 = vsel %vm1410_vm2, %v3989_v38, %v3991_v12  ;;  %v11355_v26 = vld [vmem:[%s14195_s11 + $0x98] sm:$0x3f] }
 0x2db   : > { %4233 = vmatpush.bf16.msra.mxu1 %v4042_v9  ;;  %4247 = vmatpush.bf16.msra.mxu2 %v4043_v3  ;;  %v4633_v38 = vperm.slane %v11355_v26, 2 }
 0x2dc   : > { %4261 = vmatpush.bf16.msra.mxu3 %v4044_v46 }
 0x2df   : > { %4718 = vrot.lane.b32.xlu1 %v4634_v22, %s9393_s25 }
 0x2e1   : > { %v4679_v13 = vpop.permute.xlu0 %4678  ;;  %v3993_v36 = vpop.permute.xlu1 %3992 }
 0x2e2   : > { %v11320_v8 = vpop.permute.xlu2 %4004  ;;  %v4742_v5 = vsel %vm1410_vm2, %v4679_v13, %v10540_v42  ;;  %v4806_v31 = vmul.f32 %v4679_v13, %v14541_v62  ;;  %v4839_v16 = vmul.f32 %v4679_v13, %v14542_v25  ;;  %v4045_v63 = vsel %vm1410_vm2, %v3991_v12, %v3993_v36  ;;  %v11336_v42 = vpop.f32.mrf.mxu2 }
 0x2e3   : > { %4275 = vmatpush.bf16.msrb.mxu0 %v4045_v63  ;;  %v4046_v18 = vsel %vm1410_vm2, %v3993_v36, %v3995_v59  ;;  %v4807_v2 = vmul.f32 %v4742_v5, %v14543_v27  ;;  %v4840_v60 = vmul.f32 %v4742_v5, %v10554_v49  ;;  %v11338_v12 = vpop.f32.mrf.mxu3  ;;  %v11380_v27 = vld [vmem:[%s14195_s11 + $0xb0] sm:$0x3f] }
 0x2e4   : > { %4289 = vmatpush.bf16.msrb.mxu1 %v4046_v18  ;;  %v4875_v4 = vpack.c.bf16 %v4839_v16, %v4806_v31 }
 0x2e5   : > { %v4876_v7 = vpack.c.bf16 %v4840_v60, %v4807_v2  ;;  %v4636_v2 = vperm.slane %v11380_v27, 2 }
 0x2e6   : > { %4946 = vrot.lane.b32.xlu2 %v4875_v4, %s9392_s27  ;;  %9076 = vmatmul.msk.bf16.vlgmr.msra.gmra.mxu0 %vm1410_vm2, %v11258_v29 }
 0x2e7   : > { %4948 = vrot.lane.b32.xlu0 %v4876_v7, %s9392_s27  ;;  %9077 = vmatmul.msk.bf16.vlgmr.msra.gmra.mxu1 %vm1410_vm2, %v11258_v29  ;;  %v11383_v7 = vpop.f32.mrf.mxu0 }
 0x2e9   : > { %9078 = vmatmul.msk.bf16.vlgmr.msra.gmra.mxu2 %vm1410_vm2, %v11258_v29  ;;  %9079 = vmatmul.msk.bf16.vlgmr.msra.gmra.mxu3 %vm1410_vm2, %v11258_v29  ;;  %v3997_v49 = vpop.permute.xlu0 %3996  ;;  %v4701_v1 = vpop.permute.xlu1 %4700 }
 0x2ea   : > { %v11344_v0 = vpop.permute.xlu2 %4702  ;;  %v4047_v47 = vsel %vm1410_vm2, %v3995_v59, %v3997_v49  ;;  %v11363_v13 = vpop.f32.mrf.mxu2 }
 0x2eb   : > { %v4753_v28 = vsel %vm1410_vm2, %v4701_v1, %v11344_v0  ;;  %4303 = vmatpush.bf16.msrb.mxu2 %v4047_v47  ;;  %v11371_v62 = vpop.f32.mrf.mxu3  ;;  %v11407_v47 = vld [vmem:[%s14195_s11 + $0xa8] sm:$0x3f] }
 0x2ec   : > { %v4818_v9 = vmul.f32 %v4753_v28, %v10795_v34  ;;  %v4851_v59 = vmul.f32 %v4753_v28, %v10801_v11  ;;  %v4635_v30 = vperm.slane %v11407_v47, 2 }
 0x2ee   : > { %4714 = vrot.lane.b32.xlu2 %v4632_v33, %s9393_s25  ;;  %v4887_v3 = vpack.c.bf16 %v4851_v59, %v4818_v9 }
 0x2ef   : > { %4716 = vrot.lane.b32.xlu0 %v4633_v38, %s9393_s25  ;;  %v14545_v38 = vpack.c.bf16 %v10658_v14, %v10651_v40  ;;  %v11438_v40 = vld [vmem:[%s14195_s11 + $0xb8] sm:$0x3f] }
 0x2f0   : > { %4970 = vrot.lane.b32.xlu1 %v4887_v3, %s9392_s27  ;;  %v4637_v14 = vperm.slane %v11438_v40, 2 }
 0x2f1   : > { %v4699_v46 = vpop.permute.xlu0 %4698  ;;  %v3999_v22 = vpop.permute.xlu1 %3998 }
 0x2f2   : > { %v4751_v36 = vsel %vm1410_vm2, %v11286_v21, %v4699_v46  ;;  %v4752_v5 = vsel %vm1410_vm2, %v4699_v46, %v4701_v1  ;;  %v4048_v34 = vsel %vm1410_vm2, %v3997_v49, %v3999_v22  ;;  %v4049_v11 = vsel %vm1410_vm2, %v3999_v22, %v11308_v51  ;;  %v4011_v18 = vpop.permute.xlu2 %4010  ;;  %v11410_v33 = vpop.f32.mrf.mxu2  ;;  %v11432_v46 = vld [vmem:[%s14195_s11 + $0xc0] sm:$0x3f] }
 0x2f3   : > { %v4816_v31 = vmul.f32 %v4751_v36, %v10762_v43  ;;  %v4817_v25 = vmul.f32 %v4752_v5, %v10779_v55  ;;  %v4849_v16 = vmul.f32 %v4751_v36, %v10786_v56  ;;  %v4850_v63 = vmul.f32 %v4752_v5, %v10790_v57  ;;  %4317 = vmatpush.bf16.msrb.mxu3 %v4048_v34  ;;  %v11387_v43 = vpop.f32.mrf.mxu1  ;;  %v11412_v28 = vpop.f32.mrf.mxu3 }
 0x2f4   : > { %4331 = vmatpush.bf16.msra.mxu0 %v4049_v11  ;;  %14544 = vst [vmem:[#allocation15_spill] sm:$0xff] %v11412_v28  ;;  %v4638_v22 = vperm.slane %v11432_v46, 2  ;;  %v14624_v28 = vld [vmem:[#allocation11_spill] sm:$0xff] }
 0x2f5   : > { %v4885_v60 = vpack.c.bf16 %v4849_v16, %v4816_v31  ;;  %v4886_v4 = vpack.c.bf16 %v4850_v63, %v4817_v25 }
 0x2f6   : > { %9080 = vmatmul.msk.bf16.vlgmr.msrb.gmra.mxu0 %vm1410_vm2, %v11258_v29 }
 0x2f7   : > { %4966 = vrot.lane.b32.xlu2 %v4885_v60, %s9392_s27  ;;  %4968 = vrot.lane.b32.xlu0 %v4886_v4, %s9392_s27 }
 0x2f8   : > { %4722 = vrot.lane.b32.xlu1 %v4636_v2, %s9393_s25  ;;  %9081 = vmatmul.msk.bf16.vlgmr.msrb.gmra.mxu1 %vm1410_vm2, %v11258_v29 }
 0x2f9   : > { %9082 = vmatmul.msk.bf16.vlgmr.msrb.gmra.mxu2 %vm1410_vm2, %v11258_v29  ;;  %9083 = vmatmul.msk.bf16.vlgmr.msrb.gmra.mxu3 %vm1410_vm2, %v11258_v29  ;;  %v4003_v55 = vpop.permute.xlu1 %4002 }
 0x2fa   : > { %v4007_v56 = vpop.permute.xlu0 %4006  ;;  %v4050_v57 = vsel %vm1410_vm2, %v11308_v51, %v4003_v55  ;;  %v4051_v49 = vsel %vm1410_vm2, %v4003_v55, %v11320_v8  ;;  %v11414_v51 = vpop.permute.xlu2 %4954 }
 0x2fb   : > { %4345 = vmatpush.bf16.msra.mxu1 %v4050_v57  ;;  %4359 = vmatpush.bf16.msra.mxu2 %v4051_v49  ;;  %v4052_v1 = vsel %vm1410_vm2, %v11320_v8, %v4007_v56  ;;  %v11421_v8 = vpop.f32.mrf.mxu0  ;;  %v11423_v9 = vpop.f32.mrf.mxu1 }
 0x2fc   : > { %4373 = vmatpush.bf16.msra.mxu3 %v4052_v1  ;;  %v11441_v36 = vpop.f32.mrf.mxu2  ;;  %v11445_v5 = vpop.f32.mrf.mxu3 }
 0x2fd   : > { %14546 = vst [vmem:[#allocation59_spill] sm:$0xff] %v11441_v36 }
 0x2fe   : > { %14547 = vst [vmem:[#allocation65_spill] sm:$0xff] %v11445_v5 }
 0x2ff   : > { %4956 = vrot.lane.b32.xlu2 %v14545_v38, %s9392_s27  ;;  %4720 = vrot.lane.b32.xlu0 %v4635_v30, %s9393_s25 }
 0x301   : > { %v11425_v59 = vpop.permute.xlu1 %4952 }
 0x302   : > { %v11427_v3 = vpop.permute.xlu0 %4950  ;;  %v4021_v34 = vpop.permute.xlu2 %4020 }
 0x303   : > { %v11455_v31 = vpop.f32.mrf.mxu0  ;;  %v11459_v2 = vpop.f32.mrf.mxu1 }
 0x304   : > { %v11462_v4 = vpop.f32.mrf.mxu2  ;;  %v11464_v55 = vpop.f32.mrf.mxu3 }
 0x305   : > { %14548 = vst [vmem:[#allocation16_spill] sm:$0xff] %v11462_v4 }
 0x306   : > { %9084 = vmatmul.msk.bf16.vlgmr.msra.gmra.mxu0 %vm1410_vm2, %v11258_v29  ;;  %14549 = vst [vmem:[#allocation61_spill] sm:$0xff] %v11464_v55 }
 0x307   : > { %4726 = vrot.lane.b32.xlu0 %v4638_v22, %s9393_s25  ;;  %4724 = vrot.lane.b32.xlu2 %v4637_v14, %s9393_s25 }
 0x308   : > { %9085 = vmatmul.msk.bf16.vlgmr.msra.gmra.mxu1 %vm1410_vm2, %v11258_v29 }
 0x309   : > { %9086 = vmatmul.msk.bf16.vlgmr.msra.gmra.mxu2 %vm1410_vm2, %v11258_v29  ;;  %9087 = vmatmul.msk.bf16.vlgmr.msra.gmra.mxu3 %vm1410_vm2, %v11258_v29  ;;  %v4009_v11 = vpop.permute.xlu1 %4008 }
 0x30a   : > { %v4013_v25 = vpop.permute.xlu0 %4012  ;;  %v4053_v16 = vsel %vm1410_vm2, %v4007_v56, %v4009_v11  ;;  %v4054_v63 = vsel %vm1410_vm2, %v4009_v11, %v4011_v18  ;;  %v4707_v49 = vpop.permute.xlu2 %4706 }
 0x30b   : > { %4387 = vmatpush.bf16.msrb.mxu0 %v4053_v16  ;;  %4401 = vmatpush.bf16.msrb.mxu1 %v4054_v63  ;;  %v4055_v60 = vsel %vm1410_vm2, %v4011_v18, %v4013_v25  ;;  %v11471_v38 = vpop.f32.mrf.mxu0  ;;  %v11475_v14 = vpop.f32.mrf.mxu1 }
 0x30c   : > { %4415 = vmatpush.bf16.msrb.mxu2 %v4055_v60  ;;  %14550 = vst [vmem:[#allocation17_spill] sm:$0xff] %v11471_v38  ;;  %v11490_v16 = vpop.f32.mrf.mxu2 }
 0x30d   : > { %14551 = vst [vmem:[#allocation62_spill] sm:$0xff] %v11475_v14  ;;  %v14622_v14 = vld [vmem:[#allocation58_spill] sm:$0xff] }
 0x30e   : > { %14552 = vst [vmem:[#allocation20_spill] sm:$0xff] %v11490_v16  ;;  %v14558_v16 = vld [vmem:[#allocation5_spill] sm:$0xff] }
 0x311   : > { %v4015_v57 = vpop.permute.xlu1 %4014 }
 0x312   : > { %v11466_v1 = vpop.permute.xlu0 %4708  ;;  %v4056_v30 = vsel %vm1410_vm2, %v4013_v25, %v4015_v57 }
 0x313   : > { %v4756_v56 = vsel %vm1410_vm2, %v4707_v49, %v11466_v1  ;;  %4429 = vmatpush.bf16.msrb.mxu3 %v4056_v30  ;;  %v11494_v30 = vpop.f32.mrf.mxu3 }
 0x314   : > { %v4821_v22 = vmul.f32 %v4756_v56, %v10874_v15  ;;  %v4854_v18 = vmul.f32 %v4756_v56, %v10877_v41  ;;  %14553 = vst [vmem:[#allocation66_spill] sm:$0xff] %v11494_v30 }
 0x316   : > { %v4890_v11 = vpack.c.bf16 %v4854_v18, %v4821_v22  ;;  %9088 = vmatmul.msk.bf16.vlgmr.msrb.gmra.mxu0 %vm1410_vm2, %v11258_v29  ;;  %v11500_v22 = vld [vmem:[%s14195_s11 + $0xc8] sm:$0x3f] }
 0x317   : > { %14554 = vst [vmem:[#allocation18_spill] sm:$0xff] %v11500_v22  ;;  %v4639_v18 = vperm.slane %v11500_v22, 2 }
 0x318   : > { %4976 = vrot.lane.b32.xlu2 %v4890_v11, %s9392_s27  ;;  %9089 = vmatmul.msk.bf16.vlgmr.msrb.gmra.mxu1 %vm1410_vm2, %v11258_v29 }
 0x319   : > { %9090 = vmatmul.msk.bf16.vlgmr.msrb.gmra.mxu2 %vm1410_vm2, %v11258_v29  ;;  %9091 = vmatmul.msk.bf16.vlgmr.msrb.gmra.mxu3 %vm1410_vm2, %v11258_v29  ;;  %v11486_v15 = vpop.permute.xlu1 %4704 }
 0x31a   : > { %v4023_v41 = vpop.permute.xlu0 %4022  ;;  %v4755_v25 = vsel %vm1410_vm2, %v11486_v15, %v4707_v49  ;;  %v4750_v49 = vsel %vm1410_vm2, %v11173_v37, %v11286_v21  ;;  %v9332_v37 = vld [vmem:[%s14195_s11 + $0xe0] sm:$0x3f] }
 0x31b   : > { %v4820_v63 = vmul.f32 %v4755_v25, %v10855_v48  ;;  %v4853_v60 = vmul.f32 %v4755_v25, %v10868_v35  ;;  %v4060_v56 = vsel %vm1410_vm2, %v4021_v34, %v4023_v41  ;;  %v11506_v48 = vpop.f32.mrf.mxu0  ;;  %v11508_v35 = vpop.f32.mrf.mxu1  ;;  %v14557_v25 = vld [vmem:[#allocation4_spill] sm:$0xff]  ;;  %v4848_v55 = vmul.f32 %v4750_v49, %v14558_v16 }
 0x31c   : > { %4485 = vmatpush.bf16.msra.mxu3 %v4060_v56  ;;  %14555 = vst [vmem:[#allocation63_spill] sm:$0xff] %v11506_v48  ;;  %v4815_v30 = vmul.f32 %v4750_v49, %v14557_v25  ;;  %v4642_v21 = vperm.slane %v9332_v37, 2  ;;  %v4029_v49 = vpop.permute.xlu2 %4028 }
 0x31d   : > { %v4889_v11 = vpack.c.bf16 %v4853_v60, %v4820_v63  ;;  %14556 = vst [vmem:[#allocation21_spill] sm:$0xff] %v11508_v35  ;;  %v11518_v60 = vpop.f32.mrf.mxu2 }
 0x31e   : > { %14559 = vst [vmem:[#allocation67_spill] sm:$0xff] %v11518_v60  ;;  %v4884_v56 = vpack.c.bf16 %v4848_v55, %v4815_v30 }
 0x31f   : > { %4974 = vrot.lane.b32.xlu1 %v4889_v11, %s9392_s27  ;;  %v11520_v11 = vpop.f32.mrf.mxu3 }
 0x320   : > { %4728 = vrot.lane.b32.xlu2 %v4639_v18, %s9393_s25  ;;  %14560 = vst [vmem:[#allocation71_spill] sm:$0xff] %v11520_v11 }
 0x321   : > { %v4019_v4 = vpop.permute.xlu1 %4018 }
 0x322   : > { %v4025_v22 = vpop.permute.xlu0 %4024  ;;  %v4059_v63 = vsel %vm1410_vm2, %v4019_v4, %v4021_v34 }
 0x323   : > { %4471 = vmatpush.bf16.msra.mxu2 %v4059_v63  ;;  %v11523_v18 = vpop.f32.mrf.mxu0  ;;  %v11526_v16 = vpop.f32.mrf.mxu1  ;;  %v4061_v37 = vsel %vm1410_vm2, %v4023_v41, %v4025_v22 }
 0x324   : > { %14561 = vst [vmem:[#allocation19_spill] sm:$0xff] %v11523_v18 }
 0x325   : > { %14562 = vst [vmem:[#allocation64_spill] sm:$0xff] %v11526_v16  ;;  %v14581_v16 = vld [vmem:[#allocation3_spill] sm:$0xff] }
 0x327   : > { %4964 = vrot.lane.b32.xlu1 %v4884_v56, %s9392_s27  ;;  %v11552_v41 = vpop.f32.mrf.mxu3 }
 0x328   : > { %4734 = vrot.lane.b32.xlu2 %v4642_v21, %s9393_s25  ;;  %v11539_v21 = vld [vmem:[%s14195_s11 + $0xd8] sm:$0x3f]  ;;  %14564 = vst [vmem:[#allocation68_spill] sm:$0xff] %v11552_v41 }
 0x329   : > { %9094 = vmatmul.msk.bf16.vlgmr.msra.gmra.mxu2 %vm1410_vm2, %v11258_v29  ;;  %9095 = vmatmul.msk.bf16.vlgmr.msra.gmra.mxu3 %vm1410_vm2, %v11258_v29  ;;  %v4017_v34 = vpop.permute.xlu1 %4016  ;;  %v4641_v56 = vperm.slane %v11539_v21, 2 }
 0x32a   : > { %v4031_v25 = vpop.permute.xlu0 %4030  ;;  %v4057_v55 = vsel %vm1410_vm2, %v4015_v57, %v4017_v34  ;;  %v4058_v30 = vsel %vm1410_vm2, %v4017_v34, %v4019_v4  ;;  %v5016_v57 = vsel %vm3271_vm3, %v11425_v59, %v11414_v51  ;;  %v11549_v4 = vpop.f32.mrf.mxu2 }
 0x32b   : > { %v4064_v63 = vsel %vm1410_vm2, %v4029_v49, %v4031_v25  ;;  %4443 = vmatpush.bf16.msra.mxu0 %v4057_v55  ;;  %4457 = vmatpush.bf16.msra.mxu1 %v4058_v30  ;;  %14563 = vst [vmem:[#allocation22_spill] sm:$0xff] %v11549_v4  ;;  %v5015_v30 = vsel %vm3271_vm3, %v11427_v3, %v11425_v59 }
 0x32c   : > { %4541 = vmatpush.bf16.msrb.mxu3 %v4064_v63  ;;  %v11559_v63 = vpop.f32.mrf.mxu0 }
 0x32d   : > { %14565 = vst [vmem:[#allocation77_spill] sm:$0xff] %v11559_v63 }
 0x32e   : > { %9092 = vmatmul.msk.bf16.vlgmr.msra.gmra.mxu0 %vm1410_vm2, %v11258_v29  ;;  %9093 = vmatmul.msk.bf16.vlgmr.msra.gmra.mxu1 %vm1410_vm2, %v11258_v29 }
 0x32f   : > { %4499 = vmatpush.bf16.msrb.mxu0 %v4061_v37  ;;  %4732 = vrot.lane.b32.xlu1 %v4641_v56, %s9393_s25  ;;  %v11561_v37 = vpop.f32.mrf.mxu1 }
 0x330   : > { %5129 = vmatpush.bf16.msra.mxu3 %v5016_v57  ;;  %14566 = vst [vmem:[#allocation23_spill] sm:$0xff] %v11561_v37  ;;  %v4959_v57 = vpop.permute.xlu2 %4958 }
 0x331   : > { %v4027_v34 = vpop.permute.xlu1 %4026 }
 0x332   : > { %v4062_v25 = vsel %vm1410_vm2, %v4025_v22, %v4027_v34  ;;  %v4063_v55 = vsel %vm1410_vm2, %v4027_v34, %v4029_v49  ;;  %v11563_v56 = vpop.f32.mrf.mxu2  ;;  %v11571_v49 = vpop.f32.mrf.mxu3 }
 0x333   : > { %4513 = vmatpush.bf16.msrb.mxu1 %v4062_v25  ;;  %4527 = vmatpush.bf16.msrb.mxu2 %v4063_v55  ;;  %14567 = vst [vmem:[#allocation69_spill] sm:$0xff] %v11563_v56  ;;  %v14569_v25 = vld [vmem:[#allocation7_spill] sm:$0xff] }
 0x334   : > { %14568 = vst [vmem:[#allocation24_spill] sm:$0xff] %v11571_v49  ;;  %v11579_v48 = vpop.f32.mrf.mxu0 }
 0x335   : > { %14571 = vst [vmem:[#allocation70_spill] sm:$0xff] %v11579_v48 }
 0x337   : > { %5115 = vmatpush.bf16.msra.mxu2 %v5015_v30  ;;  %v14570_v30 = vld [vmem:[#allocation55_spill] sm:$0xff]  ;;  %v11581_v18 = vpop.f32.mrf.mxu1 }
 0x338   : > { %14572 = vst [vmem:[#allocation73_spill] sm:$0xff] %v11581_v18  ;;  %v14575_v18 = vld [vmem:[#allocation9_spill] sm:$0xff] }
 0x339   : > { %9098 = vmatmul.msk.bf16.vlgmr.msrb.gmra.mxu2 %vm1410_vm2, %v11258_v29  ;;  %9099 = vmatmul.msk.bf16.vlgmr.msrb.gmra.mxu3 %vm1410_vm2, %v11258_v29  ;;  %v11569_v22 = vpop.permute.xlu1 %4710 }
 0x33a   : > { %v4961_v34 = vpop.permute.xlu0 %4960  ;;  %v4757_v59 = vsel %vm1410_vm2, %v11466_v1, %v11569_v22 }
 0x33b   : > { %v4822_v55 = vmul.f32 %v4757_v59, %v14569_v25  ;;  %v4855_v37 = vmul.f32 %v4757_v59, %v14570_v30  ;;  %v5019_v56 = vsel %vm3271_vm3, %v4959_v57, %v4961_v34  ;;  %v11600_v30 = vpop.f32.mrf.mxu3 }
 0x33c   : > { %5171 = vmatpush.bf16.msrb.mxu2 %v5019_v56  ;;  %v11592_v56 = vpop.f32.mrf.mxu2  ;;  %14574 = vst [vmem:[#allocation25_spill] sm:$0xff] %v11600_v30  ;;  %v14576_v30 = vld [vmem:[#allocation10_spill] sm:$0xff]  ;;  %v11626_v11 = vpop.f32.mrf.mxu0 }
 0x33d   : > { %v4891_v63 = vpack.c.bf16 %v4855_v37, %v4822_v55  ;;  %14573 = vst [vmem:[#allocation81_spill] sm:$0xff] %v11592_v56  ;;  %v11597_v37 = vld [vmem:[%s14195_s11 + $0xd0] sm:$0x3f] }
 0x33e   : > { %9096 = vmatmul.msk.bf16.vlgmr.msrb.gmra.mxu0 %vm1410_vm2, %v11258_v29  ;;  %9097 = vmatmul.msk.bf16.vlgmr.msrb.gmra.mxu1 %vm1410_vm2, %v11258_v29  ;;  %v4640_v55 = vperm.slane %v11597_v37, 2  ;;  %v11605_v29 = vld [vmem:[%s14189_s5 + $0x10] sm:$0xff]  ;;  %14579 = vst [vmem:[#allocation26_spill] sm:$0xff] %v11626_v11 }
 0x33f   : > { %4978 = vrot.lane.b32.xlu0 %v4891_v63, %s9392_s27  ;;  %v11628_v60 = vpop.f32.mrf.mxu1 }
 0x340   : > { %v4947_v1 = vpop.permute.xlu2 %4946  ;;  %14580 = vst [vmem:[#allocation74_spill] sm:$0xff] %v11628_v60  ;;  %v11658_v60 = vld [vmem:[%s14195_s11 + $0xf8] sm:$0x3f] }
 0x341   : > { %v11588_v25 = vpop.permute.xlu1 %4962  ;;  %v4645_v11 = vperm.slane %v11658_v60, 2 }
 0x342   : > { %v5020_v59 = vsel %vm3271_vm3, %v4961_v34, %v11588_v25 }
 0x343   : > { %5185 = vmatpush.bf16.msrb.mxu3 %v5020_v59  ;;  %v11623_v4 = vpop.f32.mrf.mxu3 }
 0x344   : > { %v11618_v48 = vpop.f32.mrf.mxu2  ;;  %14578 = vst [vmem:[#allocation79_spill] sm:$0xff] %v11623_v4 }
 0x345   : > { %14577 = vst [vmem:[#allocation72_spill] sm:$0xff] %v11618_v48 }
 0x347   : > { %4730 = vrot.lane.b32.xlu0 %v4640_v55, %s9393_s25  ;;  %v4754_v55 = vsel %vm1410_vm2, %v11344_v0, %v11486_v15 }
 0x348   : > { %v4715_v63 = vpop.permute.xlu2 %4714  ;;  %v4819_v35 = vmul.f32 %v4754_v55, %v14581_v16 }
 0x349   : > { %9108 = vmatmul.msk.bf16.vlgmr.msra.gmra.mxu2 %vm1410_vm2, %v11605_v29  ;;  %9109 = vmatmul.msk.bf16.vlgmr.msra.gmra.mxu3 %vm1410_vm2, %v11605_v29  ;;  %v11612_v34 = vpop.permute.xlu1 %4712 }
 0x34a   : > { %v4759_v59 = vsel %vm1410_vm2, %v11612_v34, %v4715_v63 }
 0x34b   : > { %v4824_v49 = vmul.f32 %v4759_v59, %v14575_v18  ;;  %v4857_v56 = vmul.f32 %v4759_v59, %v14576_v30  ;;  %v14582_v18 = vld [vmem:[#allocation6_spill] sm:$0xff]  ;;  %v11637_v0 = vpop.f32.mrf.mxu3 }
 0x34c   : > { %v4852_v5 = vmul.f32 %v4754_v55, %v14582_v18  ;;  %14584 = vst [vmem:[#allocation76_spill] sm:$0xff] %v11637_v0  ;;  %v11647_v55 = vpop.f32.mrf.mxu1 }
 0x34d   : > { %v4893_v41 = vpack.c.bf16 %v4857_v56, %v4824_v49  ;;  %v11634_v49 = vpop.f32.mrf.mxu2  ;;  %v11645_v56 = vpop.f32.mrf.mxu0  ;;  %14586 = vst [vmem:[#allocation78_spill] sm:$0xff] %v11647_v55 }
 0x34e   : > { %v4888_v59 = vpack.c.bf16 %v4852_v5, %v4819_v35  ;;  %14583 = vst [vmem:[#allocation28_spill] sm:$0xff] %v11634_v49 }
 0x34f   : > { %4982 = vrot.lane.b32.xlu0 %v4893_v41, %s9392_s27  ;;  %14585 = vst [vmem:[#allocation29_spill] sm:$0xff] %v11645_v56 }
 0x351   : > { %v11632_v30 = vpop.permute.xlu2 %4966  ;;  %v11639_v15 = vpop.permute.xlu1 %4718 }
 0x354   : > { %v11677_v56 = vpop.f32.mrf.mxu1 }
 0x355   : > { %v11675_v55 = vpop.f32.mrf.mxu0  ;;  %14590 = vst [vmem:[#allocation27_spill] sm:$0xff] %v11677_v56  ;;  %v14598_v56 = vld [vmem:[#allocation56_spill] sm:$0xff] }
 0x356   : > { %14589 = vst [vmem:[#allocation85_spill] sm:$0xff] %v11675_v55 }
 0x357   : > { %4972 = vrot.lane.b32.xlu0 %v4888_v59, %s9392_s27 }
 0x359   : > { %9112 = vmatmul.msk.bf16.vlgmr.msrb.gmra.mxu2 %vm1410_vm2, %v11605_v29  ;;  %9113 = vmatmul.msk.bf16.vlgmr.msrb.gmra.mxu3 %vm1410_vm2, %v11605_v29  ;;  %v4957_v16 = vpop.permute.xlu2 %4956  ;;  %v4949_v41 = vpop.permute.xlu0 %4948 }
 0x35a   : > { %v5013_v5 = vsel %vm3271_vm3, %v4947_v1, %v4949_v41  ;;  %v5014_v35 = vsel %vm3271_vm3, %v4949_v41, %v11427_v3  ;;  %v5017_v18 = vsel %vm3271_vm3, %v11414_v51, %v4957_v16  ;;  %v5018_v59 = vsel %vm3271_vm3, %v4957_v16, %v4959_v57  ;;  %v14587_v16 = vld [vmem:[#allocation53_spill] sm:$0xff] }
 0x35b   : > { %5087 = vmatpush.bf16.msra.mxu0 %v5013_v5  ;;  %5101 = vmatpush.bf16.msra.mxu1 %v5014_v35  ;;  %v14588_v35 = vld [vmem:[#allocation54_spill] sm:$0xff] }
 0x35e   : > { %9106 = vmatmul.msk.bf16.vlgmr.msra.gmra.mxu0 %vm1410_vm2, %v11605_v29  ;;  %9107 = vmatmul.msk.bf16.vlgmr.msra.gmra.mxu1 %vm1410_vm2, %v11605_v29 }
 0x35f   : > { %5143 = vmatpush.bf16.msrb.mxu0 %v5017_v18  ;;  %5157 = vmatpush.bf16.msrb.mxu1 %v5018_v59 }
 0x360   : > { %4740 = vrot.lane.b32.xlu0 %v4645_v11, %s9393_s25  ;;  %v11679_v11 = vpop.f32.mrf.mxu2 }
 0x361   : > { %v4717_v51 = vpop.permute.xlu0 %4716  ;;  %14591 = vst [vmem:[#allocation75_spill] sm:$0xff] %v11679_v11 }
 0x362   : > { %v4760_v3 = vsel %vm1410_vm2, %v4715_v63, %v4717_v51  ;;  %v4761_v57 = vsel %vm1410_vm2, %v4717_v51, %v11639_v15  ;;  %v11669_v1 = vpop.permute.xlu1 %4970  ;;  %v11681_v63 = vpop.f32.mrf.mxu3 }
 0x363   : > { %v4825_v41 = vmul.f32 %v4760_v3, %v14587_v16  ;;  %v4826_v5 = vmul.f32 %v4761_v57, %v10971_v23  ;;  %v4858_v18 = vmul.f32 %v4760_v3, %v14588_v35  ;;  %v4859_v59 = vmul.f32 %v4761_v57, %v10977_v45  ;;  %14592 = vst [vmem:[#allocation30_spill] sm:$0xff] %v11681_v63  ;;  %v4725_v3 = vpop.permute.xlu2 %4724 }
 0x365   : > { %v4894_v4 = vpack.c.bf16 %v4858_v18, %v4825_v41  ;;  %v4895_v51 = vpack.c.bf16 %v4859_v59, %v4826_v5  ;;  %v11692_v41 = vld [vmem:[%s14195_s11 + $0xe8] sm:$0x3f]  ;;  %v11698_v5 = vld [vmem:[%s14195_s11 + $0xf0] sm:$0x3f]  ;;  %v11701_v18 = vpop.f32.mrf.mxu0  ;;  %v11703_v59 = vpop.f32.mrf.mxu1 }
 0x366   : > { %14593 = vst [vmem:[#allocation80_spill] sm:$0xff] %v11698_v5  ;;  %v4644_v35 = vperm.slane %v11698_v5, 2  ;;  %v14619_v5 = vld [vmem:[#allocation57_spill] sm:$0xff] }
 0x367   : > { %4984 = vrot.lane.b32.xlu1 %v4894_v4, %s9392_s27  ;;  %4986 = vrot.lane.b32.xlu2 %v4895_v51, %s9392_s27  ;;  %v4643_v4 = vperm.slane %v11692_v41, 2  ;;  %14594 = vst [vmem:[#allocation89_spill] sm:$0xff] %v11701_v18 }
 0x368   : > { %14595 = vst [vmem:[#allocation31_spill] sm:$0xff] %v11703_v59  ;;  %v11709_v51 = vpop.f32.mrf.mxu2 }
 0x369   : > { %v4969_v16 = vpop.permute.xlu0 %4968  ;;  %14596 = vst [vmem:[#allocation82_spill] sm:$0xff] %v11709_v51 }
 0x36a   : > { %v5023_v23 = vsel %vm3271_vm3, %v11632_v30, %v4969_v16  ;;  %v5024_v45 = vsel %vm3271_vm3, %v4969_v16, %v11669_v1  ;;  %v4723_v57 = vpop.permute.xlu1 %4722  ;;  %v11711_v16 = vpop.f32.mrf.mxu3 }
 0x36b   : > { %5227 = vmatpush.bf16.msra.mxu2 %v5023_v23  ;;  %5241 = vmatpush.bf16.msra.mxu3 %v5024_v45  ;;  %14597 = vst [vmem:[#allocation32_spill] sm:$0xff] %v11711_v16  ;;  %v4764_v23 = vsel %vm1410_vm2, %v4723_v57, %v4725_v3 }
 0x36c   : > { %v4829_v63 = vmul.f32 %v4764_v23, %v11050_v17  ;;  %v4862_v51 = vmul.f32 %v4764_v23, %v11053_v6  ;;  %v14601_v23 = vld [vmem:[#allocation52_spill] sm:$0xff] }
 0x36d   : > { %v11735_v6 = vpop.f32.mrf.mxu0 }
 0x36e   : > { %9110 = vmatmul.msk.bf16.vlgmr.msrb.gmra.mxu0 %vm1410_vm2, %v11605_v29  ;;  %9111 = vmatmul.msk.bf16.vlgmr.msrb.gmra.mxu1 %vm1410_vm2, %v11605_v29  ;;  %v4898_v55 = vpack.c.bf16 %v4862_v51, %v4829_v63  ;;  %14599 = vst [vmem:[#allocation83_spill] sm:$0xff] %v11735_v6 }
 0x36f   : > { %9116 = vmatmul.msk.bf16.vlgmr.msra.gmra.mxu2 %vm1410_vm2, %v11605_v29  ;;  %9117 = vmatmul.msk.bf16.vlgmr.msra.gmra.mxu3 %vm1410_vm2, %v11605_v29 }
 0x370   : > { %4736 = vrot.lane.b32.xlu1 %v4643_v4, %s9393_s25  ;;  %4738 = vrot.lane.b32.xlu2 %v4644_v35, %s9393_s25  ;;  %v4758_v4 = vsel %vm1410_vm2, %v11569_v22, %v11612_v34  ;;  %v14600_v35 = vld [vmem:[#allocation8_spill] sm:$0xff] }
 0x371   : > { %v11720_v45 = vpop.permute.xlu0 %4720 }
 0x372   : > { %v4763_v16 = vsel %vm1410_vm2, %v11720_v45, %v4723_v57  ;;  %v4823_v57 = vmul.f32 %v4758_v4, %v14600_v35 }
 0x373   : > { %v4828_v11 = vmul.f32 %v4763_v16, %v11031_v50  ;;  %v4861_v59 = vmul.f32 %v4763_v16, %v14598_v56  ;;  %v4856_v50 = vmul.f32 %v4758_v4, %v14601_v23 }
 0x375   : > { %v4897_v18 = vpack.c.bf16 %v4861_v59, %v4828_v11  ;;  %v11741_v11 = vpop.f32.mrf.mxu2  ;;  %v11747_v59 = vpop.f32.mrf.mxu1 }
 0x376   : > { %14602 = vst [vmem:[#allocation33_spill] sm:$0xff] %v11741_v11  ;;  %v11751_v51 = vpop.f32.mrf.mxu0 }
 0x377   : > { %14604 = vst [vmem:[#allocation36_spill] sm:$0xff] %v11747_v59 }
 0x378   : > { %4992 = vrot.lane.b32.xlu2 %v4898_v55, %s9392_s27  ;;  %4990 = vrot.lane.b32.xlu1 %v4897_v18, %s9392_s27  ;;  %v11745_v55 = vpop.f32.mrf.mxu3  ;;  %v4892_v18 = vpack.c.bf16 %v4856_v50, %v4823_v57  ;;  %14605 = vst [vmem:[#allocation90_spill] sm:$0xff] %v11751_v51 }
 0x379   : > { %v11733_v17 = vpop.permute.xlu0 %4726  ;;  %14603 = vst [vmem:[#allocation84_spill] sm:$0xff] %v11745_v55 }
 0x37a   : > { %v4765_v56 = vsel %vm1410_vm2, %v4725_v3, %v11733_v17 }
 0x37b   : > { %v4830_v63 = vmul.f32 %v4765_v56, %v11061_v44  ;;  %v4863_v22 = vmul.f32 %v4765_v56, %v11064_v52  ;;  %v4977_v44 = vpop.permute.xlu2 %4976 }
 0x37d   : > { %v4899_v34 = vpack.c.bf16 %v4863_v22, %v4830_v63  ;;  %v11753_v16 = vpop.f32.mrf.mxu2  ;;  %v11757_v4 = vpop.f32.mrf.mxu1 }
 0x37e   : > { %14606 = vst [vmem:[#allocation94_spill] sm:$0xff] %v11753_v16  ;;  %v11759_v52 = vpop.f32.mrf.mxu0 }
 0x37f   : > { %4994 = vrot.lane.b32.xlu0 %v4899_v34, %s9392_s27  ;;  %14608 = vst [vmem:[#allocation34_spill] sm:$0xff] %v11757_v4 }
 0x380   : > { %4980 = vrot.lane.b32.xlu1 %v4892_v18, %s9392_s27  ;;  %v11755_v3 = vpop.f32.mrf.mxu3  ;;  %14609 = vst [vmem:[#allocation86_spill] sm:$0xff] %v11759_v52 }
 0x381   : > { %14607 = vst [vmem:[#allocation96_spill] sm:$0xff] %v11755_v3 }
 0x383   : > { %v11773_v63 = vpop.permute.xlu2 %4728 }
 0x385   : > { %v11761_v35 = vpop.f32.mrf.mxu2  ;;  %v11769_v56 = vpop.f32.mrf.mxu1 }
 0x386   : > { %14610 = vst [vmem:[#allocation37_spill] sm:$0xff] %v11769_v56  ;;  %v11775_v22 = vpop.f32.mrf.mxu0 }
 0x387   : > { %14611 = vst [vmem:[#allocation91_spill] sm:$0xff] %v11775_v22 }
 0x388   : > { %v11765_v23 = vpop.f32.mrf.mxu3 }
 0x38b   : > { %v11791_v22 = vpop.permute.xlu2 %4734 }
 0x38d   : > { %v11777_v34 = vpop.f32.mrf.mxu2 }
 0x38e   : > { %v11793_v16 = vpop.f32.mrf.mxu0 }
 0x390   : > { %v11783_v56 = vpop.f32.mrf.mxu3 }
 0x391   : > { %v11763_v57 = vpop.permute.xlu1 %4974 }
 0x392   : > { %v5027_v50 = vsel %vm3271_vm3, %v11763_v57, %v4977_v44 }
 0x393   : > { %5283 = vmatpush.bf16.msrb.mxu2 %v5027_v50  ;;  %v11785_v50 = vpop.f32.mrf.mxu1 }
 0x394   : > { %14612 = vst [vmem:[#allocation88_spill] sm:$0xff] %v11785_v50 }
 0x396   : > { %9120 = vmatmul.msk.bf16.vlgmr.msrb.gmra.mxu2 %vm1410_vm2, %v11605_v29  ;;  %v11806_v6 = vpop.f32.mrf.mxu0 }
 0x398   : > { %v11801_v50 = vpop.f32.mrf.mxu3 }
 0x399   : > { %v4965_v18 = vpop.permute.xlu1 %4964  ;;  %14614 = vst [vmem:[#allocation87_spill] sm:$0xff] %v11801_v50 }
 0x39a   : > { %v5021_v52 = vsel %vm3271_vm3, %v11588_v25, %v4965_v18  ;;  %v5022_v4 = vsel %vm3271_vm3, %v4965_v18, %v11632_v30  ;;  %v11797_v30 = vpop.f32.mrf.mxu2 }
 0x39b   : > { %5199 = vmatpush.bf16.msra.mxu0 %v5021_v52  ;;  %5213 = vmatpush.bf16.msra.mxu1 %v5022_v4  ;;  %14613 = vst [vmem:[#allocation35_spill] sm:$0xff] %v11797_v30  ;;  %v11803_v59 = vpop.f32.mrf.mxu1 }
 0x39e   : > { %9114 = vmatmul.msk.bf16.vlgmr.msra.gmra.mxu0 %vm1410_vm2, %v11605_v29  ;;  %9115 = vmatmul.msk.bf16.vlgmr.msra.gmra.mxu1 %vm1410_vm2, %v11605_v29 }
 0x3a0   : > { %v11810_v3 = vpop.f32.mrf.mxu3 }
 0x3a1   : > { %v4733_v51 = vpop.permute.xlu1 %4732  ;;  %14616 = vst [vmem:[#allocation92_spill] sm:$0xff] %v11810_v3 }
 0x3a2   : > { %v4769_v25 = vsel %vm1410_vm2, %v4733_v51, %v11791_v22  ;;  %v11808_v11 = vpop.f32.mrf.mxu2 }
 0x3a3   : > { %v4834_v4 = vmul.f32 %v4769_v25, %v11145_v24  ;;  %v4867_v52 = vmul.f32 %v4769_v25, %v11151_v20  ;;  %14615 = vst [vmem:[#allocation38_spill] sm:$0xff] %v11808_v11  ;;  %v11812_v55 = vpop.f32.mrf.mxu1  ;;  %v11818_v20 = vpop.f32.mrf.mxu0  ;;  %v14621_v11 = vld [vmem:[#allocation14_spill] sm:$0xff] }
 0x3a5   : > { %v4903_v18 = vpack.c.bf16 %v4867_v52, %v4834_v4 }
 0x3a7   : > { %5002 = vrot.lane.b32.xlu1 %v4903_v18, %s9392_s27 }
 0x3a8   : > { %v11824_v52 = vpop.f32.mrf.mxu3 }
 0x3a9   : > { %14618 = vst [vmem:[#allocation93_spill] sm:$0xff] %v11824_v52  ;;  %v4762_v52 = vsel %vm1410_vm2, %v11639_v15, %v11720_v45 }
 0x3aa   : > { %v11822_v25 = vpop.f32.mrf.mxu2 }
 0x3ab   : > { %14617 = vst [vmem:[#allocation39_spill] sm:$0xff] %v11822_v25  ;;  %v11829_v49 = vpop.f32.mrf.mxu1 }
 0x3b1   : > { %v11814_v48 = vpop.permute.xlu0 %4978 }
 0x3b2   : > { %v5028_v24 = vsel %vm3271_vm3, %v4977_v44, %v11814_v48  ;;  %v11844_v30 = vpop.f32.mrf.mxu2 }
 0x3b3   : > { %5297 = vmatpush.bf16.msrb.mxu3 %v5028_v24  ;;  %v14620_v24 = vld [vmem:[#allocation60_spill] sm:$0xff] }
 0x3b6   : > { %9121 = vmatmul.msk.bf16.vlgmr.msrb.gmra.mxu3 %vm1410_vm2, %v11605_v29 }
 0x3b9   : > { %v4731_v4 = vpop.permute.xlu0 %4730 }
 0x3ba   : > { %v4767_v18 = vsel %vm1410_vm2, %v11773_v63, %v4731_v4  ;;  %v4768_v0 = vsel %vm1410_vm2, %v4731_v4, %v4733_v51  ;;  %v11840_v51 = vpop.f32.mrf.mxu0  ;;  %v14623_v4 = vld [vmem:[#allocation12_spill] sm:$0xff] }
 0x3bb   : > { %v4832_v44 = vmul.f32 %v4767_v18, %v14619_v5  ;;  %v4833_v3 = vmul.f32 %v4768_v0, %v14620_v24  ;;  %v4865_v36 = vmul.f32 %v4767_v18, %v14621_v11  ;;  %v4866_v38 = vmul.f32 %v4768_v0, %v14622_v14 }
 0x3bc   : > { %v4827_v5 = vmul.f32 %v4762_v52, %v14623_v4  ;;  %v4860_v24 = vmul.f32 %v4762_v52, %v14624_v28 }
 0x3bd   : > { %v4901_v50 = vpack.c.bf16 %v4865_v36, %v4832_v44  ;;  %v4902_v25 = vpack.c.bf16 %v4866_v38, %v4833_v3  ;;  %v11848_v36 = vpop.f32.mrf.mxu3  ;;  %v11850_v38 = vpop.f32.mrf.mxu1 }
 0x3be   : > { %v4896_v14 = vpack.c.bf16 %v4860_v24, %v4827_v5 }
 0x3bf   : > { %4998 = vrot.lane.b32.xlu2 %v4901_v50, %s9392_s27  ;;  %5000 = vrot.lane.b32.xlu0 %v4902_v25, %s9392_s27  ;;  %v11861_v50 = vpop.f32.mrf.mxu2 }
 0x3c0   : > { %14626 = vst [vmem:[#allocation97_spill] sm:$0xff] %v11861_v50  ;;  %v14689_v50 = vld [vmem:[#allocation20_spill] sm:$0xff] }
 0x3c1   : > { %v11846_v11 = vpop.permute.xlu0 %4982  ;;  %v11852_v0 = vpop.permute.xlu2 %4986 }
 0x3c2   : > { %v11855_v45 = vpop.f32.mrf.mxu0 }
 0x3c3   : > { %14625 = vst [vmem:[#allocation40_spill] sm:$0xff] %v11855_v45 }
 0x3c5   : > { %v11863_v25 = vpop.f32.mrf.mxu3  ;;  %v11869_v52 = vpop.f32.mrf.mxu1 }
 0x3c6   : > { %14627 = vst [vmem:[#allocation101_spill] sm:$0xff] %v11863_v25 }
 0x3c7   : > { %4988 = vrot.lane.b32.xlu2 %v4896_v14, %s9392_s27 }
 0x3c9   : > { %v4973_v15 = vpop.permute.xlu0 %4972 }
 0x3ca   : > { %v5025_v3 = vsel %vm3271_vm3, %v11669_v1, %v4973_v15  ;;  %v5026_v28 = vsel %vm3271_vm3, %v4973_v15, %v11763_v57  ;;  %v4739_v18 = vpop.permute.xlu2 %4738  ;;  %v11874_v24 = vpop.f32.mrf.mxu0 }
 0x3cb   : > { %5255 = vmatpush.bf16.msrb.mxu0 %v5025_v3  ;;  %5269 = vmatpush.bf16.msrb.mxu1 %v5026_v28  ;;  %14628 = vst [vmem:[#allocation41_spill] sm:$0xff] %v11874_v24  ;;  %v11876_v15 = vpop.f32.mrf.mxu2 }
 0x3cc   : > { %14629 = vst [vmem:[#allocation98_spill] sm:$0xff] %v11876_v15  ;;  %v14687_v15 = vld [vmem:[#allocation61_spill] sm:$0xff] }
 0x3cd   : > { %v11880_v28 = vpop.f32.mrf.mxu3  ;;  %v11882_v45 = vpop.f32.mrf.mxu1 }
 0x3ce   : > { %9118 = vmatmul.msk.bf16.vlgmr.msrb.gmra.mxu0 %vm1410_vm2, %v11605_v29  ;;  %9119 = vmatmul.msk.bf16.vlgmr.msrb.gmra.mxu1 %vm1410_vm2, %v11605_v29  ;;  %14630 = vst [vmem:[#allocation42_spill] sm:$0xff] %v11880_v28 }
 0x3d2   : > { %v4741_v44 = vpop.permute.xlu0 %4740 }
 0x3d3   : > { %v4772_v1 = vsel %vm1410_vm2, %v4739_v18, %v4741_v44  ;;  %v4838_v4 = vmul.f32 0.0, %v4741_v44  ;;  %v5592_v44 = vld [vmem:[%s14190_s6] sm:$0xff] }
 0x3d4   : > { %v4837_v57 = vmul.f32 %v4772_v1, %v11212_v10  ;;  %v4870_v5 = vmul.f32 %v4772_v1, %v11224_v32  ;;  %v11891_v1 = vpop.f32.mrf.mxu0 }
 0x3d5   : > { %v4907_v14 = vpack.c.bf16 %v4838_v4, %v4838_v4  ;;  %14631 = vst [vmem:[#allocation99_spill] sm:$0xff] %v11891_v1  ;;  %v11895_v4 = vpop.f32.mrf.mxu2 }
 0x3d6   : > { %v4906_v3 = vpack.c.bf16 %v4870_v5, %v4837_v57  ;;  %14632 = vst [vmem:[#allocation44_spill] sm:$0xff] %v11895_v4  ;;  %v11899_v57 = vpop.f32.mrf.mxu3  ;;  %v11904_v5 = vld [vmem:[%s14195_s11 + $0x10] sm:$0x3f] }
 0x3d7   : > { %5010 = vrot.lane.b32.xlu2 %v4907_v14, %s9392_s27  ;;  %14633 = vst [vmem:[#allocation102_spill] sm:$0xff] %v11899_v57  ;;  %v5800_v14 = vperm.slane %v11904_v5, 3 }
 0x3d8   : > { %5008 = vrot.lane.b32.xlu1 %v4906_v3, %s9392_s27  ;;  %v11907_v3 = vpop.f32.mrf.mxu1 }
 0x3d9   : > { %v4985_v25 = vpop.permute.xlu1 %4984  ;;  %14634 = vst [vmem:[#allocation45_spill] sm:$0xff] %v11907_v3  ;;  %v4766_v3 = vsel %vm1410_vm2, %v11733_v17, %v11773_v63 }
 0x3da   : > { %v5031_v10 = vsel %vm3271_vm3, %v11846_v11, %v4985_v25  ;;  %v5032_v32 = vsel %vm3271_vm3, %v4985_v25, %v11852_v0 }
 0x3db   : > { %5339 = vmatpush.bf16.msra.mxu2 %v5031_v10  ;;  %5353 = vmatpush.bf16.msra.mxu3 %v5032_v32 }
 0x3de   : > { %9124 = vmatmul.msk.bf16.vlgmr.msra.gmra.mxu2 %vm1410_vm2, %v11605_v29  ;;  %9125 = vmatmul.msk.bf16.vlgmr.msra.gmra.mxu3 %vm1410_vm2, %v11605_v29 }
 0x3df   : > { %5596 = vperm.xlu2 %9312, %v5592_v44  }
 0x3e2   : > { %v4737_v25 = vpop.permute.xlu1 %4736 }
 0x3e3   : > { %v4770_v10 = vsel %vm1410_vm2, %v11791_v22, %v4737_v25  ;;  %v4771_v32 = vsel %vm1410_vm2, %v4737_v25, %v4739_v18  ;;  %v11920_v22 = vpop.f32.mrf.mxu0  ;;  %v4993_v18 = vpop.permute.xlu2 %4992 }
 0x3e4   : > { %v4835_v44 = vmul.f32 %v4770_v10, %v11158_v58  ;;  %v4836_v4 = vmul.f32 %v4771_v32, %v11205_v39  ;;  %v4868_v57 = vmul.f32 %v4770_v10, %v11161_v53  ;;  %v4869_v1 = vmul.f32 %v4771_v32, %v11217_v19  ;;  %14635 = vst [vmem:[#allocation104_spill] sm:$0xff] %v11920_v22  ;;  %v11924_v58 = vpop.f32.mrf.mxu2  ;;  %v14637_v39 = vld [vmem:[#allocation13_spill] sm:$0xff]  ;;  %v14685_v22 = vld [vmem:[#allocation39_spill] sm:$0xff] }
 0x3e5   : > { %14636 = vst [vmem:[#allocation43_spill] sm:$0xff] %v11924_v58  ;;  %v4831_v53 = vmul.f32 %v4766_v3, %v11070_v54  ;;  %v4864_v19 = vmul.f32 %v4766_v3, %v14637_v39  ;;  %v11943_v54 = vld [vmem:[%s14195_s11 + $0x8] sm:$0x3f]  ;;  %v9341_v32 = vld [vmem:[%s14195_s11 + $0x38] sm:$0x3f]  ;;  %v4138_v58 = vadd.f32 %v11761_v35, %v11336_v42  ;;  %v4166_v42 = vadd.f32 %v11818_v20, %v11455_v31 }
 0x3e6   : > { %v4905_v24 = vpack.c.bf16 %v4869_v1, %v4836_v4  ;;  %v4904_v28 = vpack.c.bf16 %v4868_v57, %v4835_v44  ;;  %v11933_v1 = vld [vmem:[%s14195_s11] sm:$0x3f]  ;;  %14640 = vst [vmem:[#allocation105_spill] sm:$0xff] %v11943_v54  ;;  %v11946_v4 = vpop.f32.mrf.mxu1  ;;  %v5805_v44 = vperm.slane %v9341_v32, 3  ;;  %v14678_v35 = vld [vmem:[#allocation17_spill] sm:$0xff]  ;;  %v14680_v31 = vld [vmem:[#allocation59_spill] sm:$0xff] }
 0x3e7   : > { %5866 = vrot.lane.b32.xlu2 %v5800_v14, %s9394_s18  ;;  %14638 = vst [vmem:[#allocation100_spill] sm:$0xff] %v11933_v1  ;;  %v5798_v17 = vperm.slane %v11933_v1, 3  ;;  %v4900_v57 = vpack.c.bf16 %v4864_v19, %v4831_v53  ;;  %v4112_v1 = vadd.f32 %v11806_v6, %v11421_v8 }
 0x3e8   : > { %5006 = vrot.lane.b32.xlu0 %v4905_v24, %s9392_s27  ;;  %5004 = vrot.lane.b32.xlu1 %v4904_v28, %s9392_s27  ;;  %v11938_v24 = vpop.f32.mrf.mxu3  ;;  %v5799_v28 = vperm.slane %v11943_v54, 3  ;;  %14641 = vst [vmem:[#allocation46_spill] sm:$0xff] %v11946_v4 }
 0x3e9   : > { %14639 = vst [vmem:[#allocation103_spill] sm:$0xff] %v11938_v24 }
 0x3ea   : > { %v11928_v25 = vpop.permute.xlu1 %4990 }
 0x3eb   : > { %v5035_v63 = vsel %vm3271_vm3, %v11928_v25, %v4993_v18  ;;  %v11955_v3 = vpop.f32.mrf.mxu0 }
 0x3ec   : > { %5395 = vmatpush.bf16.msrb.mxu2 %v5035_v63  ;;  %14642 = vst [vmem:[#allocation106_spill] sm:$0xff] %v11955_v3  ;;  %v11962_v53 = vpop.f32.mrf.mxu2 }
 0x3ed   : > { %14643 = vst [vmem:[#allocation47_spill] sm:$0xff] %v11962_v53 }
 0x3ef   : > { %5862 = vrot.lane.b32.xlu2 %v5798_v17, %s9394_s18  ;;  %9128 = vmatmul.msk.bf16.vlgmr.msrb.gmra.mxu2 %vm1410_vm2, %v11605_v29 }
 0x3f0   : > { %4996 = vrot.lane.b32.xlu0 %v4900_v57, %s9392_s27  ;;  %5864 = vrot.lane.b32.xlu1 %v5799_v28, %s9394_s18  ;;  %v11974_v28 = vpop.f32.mrf.mxu3  ;;  %v9343_v57 = vld [vmem:[%s14195_s11 + $0x50] sm:$0x3f]  ;;  %s9395_s27 = smov 1  }
 0x3f1   : > { %v11953_v14 = vpop.permute.xlu0 %4994  ;;  %14645 = vst [vmem:[#allocation109_spill] sm:$0xff] %v11974_v28 }
 0x3f2   : > { %v5036_v10 = vsel %vm3271_vm3, %v4993_v18, %v11953_v14  ;;  %v4981_v39 = vpop.permute.xlu1 %4980  ;;  %v11971_v18 = vld [vmem:[%s14195_s11 + $0x20] sm:$0x3f] }
 0x3f3   : > { %5409 = vmatpush.bf16.msrb.mxu3 %v5036_v10  ;;  %v5029_v19 = vsel %vm3271_vm3, %v11814_v48, %v4981_v39  ;;  %v5030_v17 = vsel %vm3271_vm3, %v4981_v39, %v11846_v11  ;;  %14644 = vst [vmem:[#allocation107_spill] sm:$0xff] %v11971_v18  ;;  %v5802_v63 = vperm.slane %v11971_v18, 3  ;;  %v5593_v48 = vld [vmem:[%s14190_s6 + $0x8] sm:$0xff]  ;;  %v11982_v11 = vpop.f32.mrf.mxu1  ;;  %v5808_v10 = vperm.slane %v9343_v57, 3  ;;  %v11992_v32 = vpop.f32.mrf.mxu0 }
 0x3f4   : > { %5311 = vmatpush.bf16.msra.mxu0 %v5029_v19  ;;  %5325 = vmatpush.bf16.msra.mxu1 %v5030_v17  ;;  %14646 = vst [vmem:[#allocation95_spill] sm:$0xff] %v11982_v11  ;;  %v11994_v39 = vpop.f32.mrf.mxu2  ;;  %v12005_v17 = vld [vmem:[%s14195_s11 + $0x30] sm:$0x3f]  ;;  %v9346_v11 = vld [vmem:[%s14195_s11 + $0x68] sm:$0x3f] }
 0x3f5   : > { %14647 = vst [vmem:[#allocation48_spill] sm:$0xff] %v11992_v32  ;;  %v5811_v3 = vperm.slane %v9346_v11, 3  ;;  %v12021_v32 = vld [vmem:[%s14195_s11 + $0x28] sm:$0x3f] }
 0x3f6   : > { %9129 = vmatmul.msk.bf16.vlgmr.msrb.gmra.mxu3 %vm1410_vm2, %v11605_v29  ;;  %14648 = vst [vmem:[#allocation108_spill] sm:$0xff] %v11994_v39 }
 0x3f7   : > { %5876 = vrot.lane.b32.xlu2 %v5805_v44, %s9394_s18  ;;  %9122 = vmatmul.msk.bf16.vlgmr.msra.gmra.mxu0 %vm1410_vm2, %v11605_v29  ;;  %v11999_v44 = vld [vmem:[%s14195_s11 + $0x18] sm:$0x3f]  ;;  %14649 = vst [vmem:[#allocation112_spill] sm:$0xff] %v12005_v17 }
 0x3f8   : > { %9123 = vmatmul.msk.bf16.vlgmr.msra.gmra.mxu1 %vm1410_vm2, %v11605_v29  ;;  %5601 = vperm.xlu0 %9310, %v5593_v48   ;;  %v5801_v19 = vperm.slane %v11999_v44, 3  ;;  %v12009_v48 = vpop.f32.mrf.mxu3  ;;  %14652 = vst [vmem:[#allocation50_spill] sm:$0xff] %v12021_v32 }
 0x3f9   : > { %5870 = vrot.lane.b32.xlu1 %v5802_v63, %s9394_s18  ;;  %v5804_v63 = vperm.slane %v12005_v17, 3  ;;  %14650 = vst [vmem:[#allocation49_spill] sm:$0xff] %v12009_v48 }
 0x3fb   : > { %v12011_v57 = vpop.f32.mrf.mxu1 }
 0x3fc   : > { %14651 = vst [vmem:[#allocation110_spill] sm:$0xff] %v12011_v57  ;;  %v9348_v57 = vld [vmem:[%s14195_s11 + $0x48] sm:$0x3f] }
 0x3fd   : > { %v5807_v28 = vperm.slane %v9348_v57, 3  ;;  %v12044_v57 = vld [vmem:[%s14195_s11 + $0x40] sm:$0x3f] }
 0x3fe   : > { %14657 = vst [vmem:[#allocation116_spill] sm:$0xff] %v12044_v57 }
 0x3ff   : > { %5882 = vrot.lane.b32.xlu2 %v5808_v10, %s9394_s18  ;;  %v5803_v10 = vperm.slane %v12021_v32, 3  ;;  %v9349_v32 = vld [vmem:[%s14195_s11 + $0x80] sm:$0x3f] }
 0x400   : > { %5868 = vrot.lane.b32.xlu0 %v5801_v19, %s9394_s18  ;;  %v12027_v19 = vpop.f32.mrf.mxu0  ;;  %v12034_v11 = vpop.f32.mrf.mxu3  ;;  %v5814_v53 = vperm.slane %v9349_v32, 3  ;;  %v9352_v32 = vld [vmem:[%s14195_s11 + $0x88] sm:$0x3f] }
 0x401   : > { %5874 = vrot.lane.b32.xlu1 %v5804_v63, %s9394_s18  ;;  %14653 = vst [vmem:[#allocation51_spill] sm:$0xff] %v12027_v19  ;;  %v12030_v63 = vpop.f32.mrf.mxu2 }
 0x402   : > { %14654 = vst [vmem:[#allocation113_spill] sm:$0xff] %v12030_v63 }
 0x403   : > { %14655 = vst [vmem:[#allocation111_spill] sm:$0xff] %v12034_v11  ;;  %v12039_v48 = vpop.f32.mrf.mxu1 }
 0x404   : > { %14656 = vst [vmem:[#allocation114_spill] sm:$0xff] %v12039_v48 }
 0x407   : > { %5888 = vrot.lane.b32.xlu2 %v5811_v3, %s9394_s18  ;;  %v5806_v3 = vperm.slane %v12044_v57, 3  ;;  %v5815_v57 = vperm.slane %v9352_v32, 3 }
 0x408   : > { %5872 = vrot.lane.b32.xlu0 %v5803_v10, %s9394_s18  ;;  %v12051_v11 = vpop.f32.mrf.mxu0  ;;  %v12060_v48 = vpop.f32.mrf.mxu3 }
 0x409   : > { %5880 = vrot.lane.b32.xlu1 %v5807_v28, %s9394_s18  ;;  %v9351_v28 = vld [vmem:[%s14195_s11 + $0x60] sm:$0x3f]  ;;  %14658 = vst [vmem:[#allocation115_spill] sm:$0xff] %v12051_v11  ;;  %v12053_v63 = vpop.f32.mrf.mxu2 }
 0x40a   : > { %v5810_v10 = vperm.slane %v9351_v28, 3  ;;  %14659 = vst [vmem:[#allocation4_spill] sm:$0xff] %v12053_v63  ;;  %v5818_v63 = vperm.slane %v11316_v61, 3 }
 0x40b   : > { %14660 = vst [vmem:[#allocation5_spill] sm:$0xff] %v12060_v48  ;;  %v12062_v19 = vpop.f32.mrf.mxu1 }
 0x40c   : > { %14661 = vst [vmem:[#allocation7_spill] sm:$0xff] %v12062_v19 }
 0x40f   : > { %5894 = vrot.lane.b32.xlu2 %v5814_v53, %s9394_s18  ;;  %v12067_v53 = vld [vmem:[%s14195_s11 + $0x58] sm:$0x3f] }
 0x410   : > { %5878 = vrot.lane.b32.xlu0 %v5806_v3, %s9394_s18  ;;  %14662 = vst [vmem:[#allocation55_spill] sm:$0xff] %v12067_v53  ;;  %v5809_v28 = vperm.slane %v12067_v53, 3  ;;  %v9354_v3 = vld [vmem:[%s14195_s11 + $0x78] sm:$0x3f]  ;;  %v12078_v48 = vpop.f32.mrf.mxu0  ;;  %v9355_v53 = vld [vmem:[%s14195_s11 + $0x70] sm:$0x3f] }
 0x411   : > { %5886 = vrot.lane.b32.xlu1 %v5810_v10, %s9394_s18  ;;  %v5813_v10 = vperm.slane %v9354_v3, 3  ;;  %14663 = vst [vmem:[#allocation9_spill] sm:$0xff] %v12078_v48  ;;  %v12081_v19 = vpop.f32.mrf.mxu2  ;;  %v5812_v11 = vperm.slane %v9355_v53, 3  ;;  %v5817_v3 = vperm.slane %v11355_v26, 3  ;;  %v5820_v26 = vperm.slane %v11380_v27, 3 }
 0x412   : > { %14664 = vst [vmem:[#allocation10_spill] sm:$0xff] %v12081_v19  ;;  %v5822_v27 = vperm.slane %v11432_v46, 3 }
 0x417   : > { %5896 = vrot.lane.b32.xlu2 %v5815_v57, %s9394_s18  ;;  %v12087_v57 = vpop.f32.mrf.mxu3 }
 0x418   : > { %5884 = vrot.lane.b32.xlu0 %v5809_v28, %s9394_s18  ;;  %14665 = vst [vmem:[#allocation3_spill] sm:$0xff] %v12087_v57  ;;  %v12090_v28 = vpop.f32.mrf.mxu1  ;;  %v12099_v53 = vpop.f32.mrf.mxu0 }
 0x419   : > { %5892 = vrot.lane.b32.xlu1 %v5813_v10, %s9394_s18  ;;  %v12076_v32 = vpop.permute.xlu2 %4998  ;;  %14666 = vst [vmem:[#allocation6_spill] sm:$0xff] %v12090_v28  ;;  %v5819_v28 = vperm.slane %v11407_v47, 3  ;;  %v5825_v47 = vperm.slane %v11539_v21, 3  ;;  %v5824_v21 = vperm.slane %v11597_v37, 3 }
 0x41a   : > { %14667 = vst [vmem:[#allocation53_spill] sm:$0xff] %v12099_v53 }
 0x41f   : > { %5902 = vrot.lane.b32.xlu2 %v5818_v63, %s9394_s18  ;;  %v12101_v63 = vpop.f32.mrf.mxu2 }
 0x420   : > { %5890 = vrot.lane.b32.xlu0 %v5812_v11, %s9394_s18  ;;  %14668 = vst [vmem:[#allocation54_spill] sm:$0xff] %v12101_v63 }
 0x421   : > { %5900 = vrot.lane.b32.xlu1 %v5817_v3, %s9394_s18  ;;  %v4989_v61 = vpop.permute.xlu2 %4988 }
 0x422   : > { %v5033_v10 = vsel %vm3271_vm3, %v11852_v0, %v4989_v61  ;;  %v5034_v48 = vsel %vm3271_vm3, %v4989_v61, %v11928_v25  ;;  %v12109_v0 = vpop.f32.mrf.mxu3  ;;  %v12111_v25 = vpop.f32.mrf.mxu1 }
 0x423   : > { %5367 = vmatpush.bf16.msrb.mxu0 %v5033_v10  ;;  %5381 = vmatpush.bf16.msrb.mxu1 %v5034_v48  ;;  %14669 = vst [vmem:[#allocation56_spill] sm:$0xff] %v12109_v0  ;;  %v12115_v48 = vpop.f32.mrf.mxu0  ;;  %v12121_v61 = vpop.permute.xlu1 %5002 }
 0x424   : > { %14670 = vst [vmem:[#allocation8_spill] sm:$0xff] %v12111_v25 }
 0x425   : > { %14671 = vst [vmem:[#allocation52_spill] sm:$0xff] %v12115_v48 }
 0x426   : > { %9126 = vmatmul.msk.bf16.vlgmr.msrb.gmra.mxu0 %vm1410_vm2, %v11605_v29  ;;  %9127 = vmatmul.msk.bf16.vlgmr.msrb.gmra.mxu1 %vm1410_vm2, %v11605_v29 }
 0x427   : > { %5906 = vrot.lane.b32.xlu2 %v5820_v26, %s9394_s18  ;;  %v12118_v11 = vpop.f32.mrf.mxu2 }
 0x429   : > { %5904 = vrot.lane.b32.xlu1 %v5819_v28, %s9394_s18 }
 0x42a   : > { %v12124_v26 = vpop.f32.mrf.mxu3  ;;  %v12130_v48 = vpop.f32.mrf.mxu1 }
 0x42b   : > { %14672 = vst [vmem:[#allocation57_spill] sm:$0xff] %v12130_v48 }
 0x42f   : > { %5916 = vrot.lane.b32.xlu2 %v5825_v47, %s9394_s18  ;;  %v5827_v47 = vperm.slane %v11692_v41, 3  ;;  %v5829_v41 = vperm.slane %v11658_v60, 3 }
 0x431   : > { %v5011_v3 = vpop.permute.xlu2 %5010  ;;  %5910 = vrot.lane.b32.xlu1 %v5822_v27, %s9394_s18  ;;  %v5001_v10 = vpop.permute.xlu0 %5000 }
 0x432   : > { %v5039_v28 = vsel %vm3271_vm3, %v12076_v32, %v5001_v10  ;;  %v5040_v46 = vsel %vm3271_vm3, %v5001_v10, %v12121_v61  ;;  %v12138_v27 = vpop.f32.mrf.mxu0  ;;  %v12143_v10 = vpop.f32.mrf.mxu2 }
 0x433   : > { %5451 = vmatpush.bf16.msra.mxu2 %v5039_v28  ;;  %5465 = vmatpush.bf16.msra.mxu3 %v5040_v46  ;;  %14673 = vst [vmem:[#allocation60_spill] sm:$0xff] %v12138_v27  ;;  %v12146_v28 = vpop.f32.mrf.mxu3  ;;  %v12148_v37 = vpop.f32.mrf.mxu1  ;;  %v7272_v46 = vperm.slane %v11999_v44, 5 }
 0x434   : > { %14674 = vst [vmem:[#allocation14_spill] sm:$0xff] %v12148_v37 }
 0x436   : > { %9132 = vmatmul.msk.bf16.vlgmr.msra.gmra.mxu2 %vm1410_vm2, %v11605_v29  ;;  %9133 = vmatmul.msk.bf16.vlgmr.msra.gmra.mxu3 %vm1410_vm2, %v11605_v29 }
 0x437   : > { %5920 = vrot.lane.b32.xlu2 %v5827_v47, %s9394_s18 }
 0x439   : > { %v12140_v25 = vpop.permute.xlu2 %5596  ;;  %5914 = vrot.lane.b32.xlu1 %v5824_v21, %s9394_s18  ;;  %v7271_v21 = vperm.slane %v11904_v5, 5 }
 0x43a   : > { %v12156_v47 = vpop.f32.mrf.mxu0  ;;  %v12158_v27 = vpop.f32.mrf.mxu2 }
 0x43b   : > { %v12161_v53 = vpop.f32.mrf.mxu3  ;;  %v12163_v37 = vpop.f32.mrf.mxu1 }
 0x43f   : > { %7339 = vrot.lane.b32.xlu2 %v7272_v46, %s9395_s27 }
 0x441   : > { %v12152_v48 = vpop.permute.xlu2 %5866  ;;  %5924 = vrot.lane.b32.xlu1 %v5829_v41, %s9394_s18 }
 0x442   : > { %v12170_v19 = vpop.f32.mrf.mxu0  ;;  %v12172_v0 = vpop.f32.mrf.mxu2 }
 0x443   : > { %v12177_v5 = vpop.f32.mrf.mxu3  ;;  %v5105_v57 = vpop.f32.mrf.mxu1 }
 0x449   : > { %v12165_v60 = vpop.permute.xlu2 %5862  ;;  %7337 = vrot.lane.b32.xlu1 %v7271_v21, %s9395_s27  ;;  %v9356_v21 = vld [vmem:[%s14195_s11 + $0x90] sm:$0x3f] }
 0x44a   : > { %v5991_v44 = vmul.f32 0.0, %v12165_v60  ;;  %v5009_v41 = vpop.permute.xlu1 %5008  ;;  %v5816_v39 = vperm.slane %v9356_v21, 3  ;;  %v4110_v21 = vadd.f32 %v11793_v16, %v11383_v7  ;;  %v4140_v7 = vadd.f32 %v11777_v34, %v11363_v13  ;;  %v14683_v34 = vld [vmem:[#allocation92_spill] sm:$0xff] }
 0x44b   : > { %v5044_v63 = vsel %vm3271_vm3, %v5009_v41, %v5011_v3  ;;  %v12182_v3 = vpop.f32.mrf.mxu2  ;;  %v12188_v4 = vpop.f32.mrf.mxu1  ;;  %v12224_v13 = vadd.f32 %v11840_v51, %v14678_v35  ;;  %v14688_v51 = vld [vmem:[#allocation93_spill] sm:$0xff] }
 0x44c   : > { %v6059_v46 = vpack.c.bf16 %v5991_v44, %v5991_v44  ;;  %5521 = vmatpush.bf16.msrb.mxu3 %v5044_v63  ;;  %v5145_v63 = vpop.f32.mrf.mxu0  ;;  %v12185_v44 = vpop.f32.mrf.mxu3  ;;  %v12239_v35 = vadd.f32 %v14688_v51, %v14687_v15  ;;  %v5530_v15 = vadd.f32 %v12118_v11, %v4138_v58 }
 0x44e   : > { %6621 = vrot.lane.b32.xlu0 %v6059_v46, %s9395_s27  ;;  %v5821_v46 = vperm.slane %v11438_v40, 3  ;;  %v4152_v40 = vadd.f32 %v11765_v23, %v11338_v12  ;;  %v12214_v12 = vadd.f32 %v11829_v49, %v11459_v2  ;;  %v14682_v49 = vld [vmem:[#allocation65_spill] sm:$0xff] }
 0x44f   : > { %9137 = vmatmul.msk.bf16.vlgmr.msrb.gmra.mxu3 %vm1410_vm2, %v11605_v29  ;;  %v4210_v20 = vadd.f32 %v14683_v34, %v14682_v49  ;;  %v14690_v49 = vld [vmem:[#allocation66_spill] sm:$0xff] }
 0x454   : > { %v12216_v8 = vpop.f32.mrf.mxu0 }
 0x456   : > { %5898 = vrot.lane.b32.xlu0 %v5816_v39, %s9394_s18  ;;  %v4124_v39 = vadd.f32 %v11803_v59, %v11387_v43  ;;  %v4154_v43 = vadd.f32 %v11783_v56, %v11371_v62  ;;  %v14677_v59 = vld [vmem:[#allocation87_spill] sm:$0xff]  ;;  %v14679_v62 = vld [vmem:[#allocation62_spill] sm:$0xff] }
 0x457   : > { %v12228_v23 = vadd.f32 %v11850_v38, %v14679_v62  ;;  %v14681_v56 = vld [vmem:[#allocation38_spill] sm:$0xff]  ;;  %v4252_v38 = vadd.f32 %v11844_v30, %v14689_v50  ;;  %v5531_v30 = vadd.f32 %v12124_v26, %v4152_v40  ;;  %v5562_v50 = vadd.f32 %v12143_v10, %v4140_v7 }
 0x458   : > { %v4196_v2 = vadd.f32 %v14681_v56, %v14680_v31  ;;  %v5567_v10 = vadd.f32 %v12177_v5, %v4210_v20  ;;  %v9357_v5 = vld [vmem:[%s14195_s11 + $0xe0] sm:$0x3f] }
 0x459   : > { %v12301_v40 = vadd.f32 %v12140_v25, %v5531_v30 }
 0x45a   : > { %v5007_v17 = vpop.permute.xlu0 %5006  ;;  %v5005_v18 = vpop.permute.xlu1 %5004  ;;  %v5566_v26 = vadd.f32 %v12172_v0, %v4196_v2 }
 0x45b   : > { %v5043_v24 = vsel %vm3271_vm3, %v5007_v17, %v5009_v41  ;;  %v5231_v41 = vpop.f32.mrf.mxu2  ;;  %v5041_v34 = vsel %vm3271_vm3, %v12121_v61, %v5005_v18 }
 0x45c   : > { %5507 = vmatpush.bf16.msrb.mxu2 %v5043_v24  ;;  %v4126_v24 = vadd.f32 %v11812_v55, %v11423_v9  ;;  %v14675_v9 = vld [vmem:[#allocation35_spill] sm:$0xff] }
 0x45d   : > { %v4194_v6 = vadd.f32 %v14675_v9, %v11410_v33  ;;  %v14676_v55 = vld [vmem:[#allocation15_spill] sm:$0xff]  ;;  %v5245_v9 = vpop.f32.mrf.mxu3 }
 0x45e   : > { %5908 = vrot.lane.b32.xlu0 %v5821_v46, %s9394_s18  ;;  %v4208_v16 = vadd.f32 %v14677_v59, %v14676_v55  ;;  %v14684_v46 = vld [vmem:[#allocation16_spill] sm:$0xff]  ;;  %v14686_v55 = vld [vmem:[#allocation18_spill] sm:$0xff]  ;;  %v5561_v11 = vadd.f32 %v5105_v57, %v4126_v24  ;;  %v5570_v57 = vadd.f32 %v5231_v41, %v4252_v38 }
 0x45f   : > { %9136 = vmatmul.msk.bf16.vlgmr.msrb.gmra.mxu2 %vm1410_vm2, %v11605_v29  ;;  %v4250_v33 = vadd.f32 %v14685_v22, %v14684_v46  ;;  %v5823_v59 = vperm.slane %v14686_v55, 3  ;;  %v4266_v22 = vadd.f32 %v11848_v36, %v14690_v49  ;;  %v5042_v46 = vsel %vm3271_vm3, %v5005_v18, %v5007_v17 }
 0x460   : > { %v5563_v36 = vadd.f32 %v12146_v28, %v4154_v43  ;;  %v5534_v18 = vadd.f32 %v12158_v27, %v4194_v6  ;;  %v5535_v58 = vadd.f32 %v12161_v53, %v4208_v16  ;;  %v5560_v17 = vadd.f32 %v12170_v19, %v4112_v1  ;;  %v12274_v28 = vpop.f32.mrf.mxu0 }
 0x461   : > { %v12272_v27 = vadd.f32 %v5145_v63, %v4166_v42  ;;  %v5538_v19 = vadd.f32 %v12182_v3, %v4250_v33  ;;  %v5571_v53 = vadd.f32 %v5245_v9, %v4266_v22  ;;  %v12293_v3 = vadd.f32 %v12140_v25, %v5530_v15  ;;  %v12357_v15 = vld [vmem:[%s14191_s7 + $0x8] sm:$0xff] }
 0x462   : > { %v4997_v54 = vpop.permute.xlu0 %4996  ;;  %v5865_v56 = vpop.permute.xlu1 %5864  ;;  %v12304_v24 = vadd.f32 %v12140_v25, %v5534_v18  ;;  %v12307_v41 = vadd.f32 %v12140_v25, %v5535_v58  ;;  %v5539_v22 = vadd.f32 %v12185_v44, %v12239_v35  ;;  %v5533_v18 = vadd.f32 %v12188_v4, %v12214_v12 }
 0x463   : > { %v5037_v62 = vsel %vm3271_vm3, %v11953_v14, %v4997_v54  ;;  %v5038_v31 = vsel %vm3271_vm3, %v4997_v54, %v12076_v32  ;;  %v12255_v14 = vpop.f32.mrf.mxu1  ;;  %v5528_v54 = vadd.f32 %v12156_v47, %v4110_v21  ;;  %v5529_v32 = vadd.f32 %v12163_v37, %v4124_v39  ;;  %v12264_v61 = vpop.f32.mrf.mxu2 }
 0x464   : > { %5423 = vmatpush.bf16.msra.mxu0 %v5037_v62  ;;  %5437 = vmatpush.bf16.msra.mxu1 %v5038_v31  ;;  %v5927_v1 = vsel %vm5926_vm4, %v12165_v60, %v5865_v56  ;;  %v5928_v0 = vsel %vm5926_vm4, %v5865_v56, %v12152_v48  ;;  %v5826_v60 = vperm.slane %v9357_v5, 3  ;;  %14691 = vst [vmem:[#allocation58_spill] sm:$0xff] %v12307_v41 }
 0x465   : > { %v12280_v37 = vadd.f32 %v12140_v25, %v5528_v54  ;;  %v12282_v47 = vpop.f32.mrf.mxu3  ;;  %v12363_v35 = vadd.f32 %v12140_v25, %v5538_v19  ;;  %v12370_v54 = vadd.f32 %v12140_v25, %v5539_v22 }
 0x466   : > { %5912 = vrot.lane.b32.xlu0 %v5823_v59, %s9394_s18 }
 0x467   : > { %9130 = vmatmul.msk.bf16.vlgmr.msra.gmra.mxu0 %vm1410_vm2, %v11605_v29  ;;  %9131 = vmatmul.msk.bf16.vlgmr.msra.gmra.mxu1 %vm1410_vm2, %v11605_v29  ;;  %v12285_v29 = vadd.f32 %v12140_v25, %v5529_v32  ;;  %v5992_v63 = vmul.f32 %v5927_v1, %v12280_v37  ;;  %14695 = vst [vmem:[#allocation35_spill] sm:$0xff] %v12363_v35 }
 0x468   : > { %5479 = vmatpush.bf16.msrb.mxu0 %v5041_v34  ;;  %5493 = vmatpush.bf16.msrb.mxu1 %v5042_v46  ;;  %v5564_v34 = vadd.f32 %v12216_v8, %v12224_v13  ;;  %v12352_v46 = vpop.permute.xlu2 %5876  ;;  %v5565_v8 = vadd.f32 %v12255_v14, %v12228_v23  ;;  %v12367_v13 = vpop.f32.mrf.mxu0  ;;  %14696 = vst [vmem:[#allocation15_spill] sm:$0xff] %v12370_v54 }
 0x469   : > { %v5993_v2 = vmul.f32 %v5928_v0, %v12285_v29 }
 0x46a   : > { %v12296_v21 = vpop.permute.xlu0 %5601 }
 0x46b   : > { %v12298_v39 = vpop.permute.xlu1 %5870  ;;  %v12310_v7 = vadd.f32 %v12296_v21, %v5560_v17  ;;  %v12313_v43 = vadd.f32 %v12296_v21, %v5561_v11  ;;  %v12316_v42 = vadd.f32 %v12296_v21, %v5562_v50  ;;  %v12319_v6 = vadd.f32 %v12296_v21, %v5563_v36  ;;  %v12321_v16 = vpop.f32.mrf.mxu1  ;;  %v14697_v17 = vld [vmem:[#allocation80_spill] sm:$0xff] }
 0x46c   : > { %v12325_v20 = vadd.f32 %v12296_v21, %v5566_v26  ;;  %v12328_v33 = vadd.f32 %v12296_v21, %v5567_v10  ;;  %v12331_v9 = vadd.f32 %v12296_v21, %v5570_v57  ;;  %v12360_v30 = vadd.f32 %v12296_v21, %v5571_v53  ;;  %v5287_v50 = vpop.f32.mrf.mxu2 }
 0x46d   : > { %v6095_v55 = vpack.c.bf16 %v12310_v7, %v12280_v37  ;;  %v6096_v59 = vpack.c.bf16 %v12313_v43, %v12285_v29  ;;  %v6097_v51 = vpack.c.bf16 %v12316_v42, %v12293_v3  ;;  %v6098_v38 = vpack.c.bf16 %v12319_v6, %v12301_v40  ;;  %v5301_v10 = vpop.f32.mrf.mxu3 }
 0x46e   : > { %14692 = vst [vmem:[#allocation12_spill] sm:$0xff] %v12328_v33  ;;  %5918 = vrot.lane.b32.xlu0 %v5826_v60, %s9394_s18  ;;  %v6101_v62 = vpack.c.bf16 %v12325_v20, %v12304_v24  ;;  %v6102_v31 = vpack.c.bf16 %v12328_v33, %v12307_v41  ;;  %v6026_v56 = vmul.f32 %v5928_v0, %v12313_v43  ;;  %v5828_v11 = vperm.slane %v14697_v17, 3  ;;  %v9358_v60 = vld [vmem:[%s14189_s5 + $0x10] sm:$0xff] }
 0x46f   : > { %14693 = vst [vmem:[#allocation11_spill] sm:$0xff] %v12331_v9  ;;  %v6025_v49 = vmul.f32 %v5927_v1, %v12310_v7  ;;  %6142 = vmatpush.bf16.msra.mxu0 %v6095_v55  ;;  %6156 = vmatpush.bf16.msra.mxu1 %v6096_v59  ;;  %v12373_v32 = vadd.f32 %v12296_v21, %v5564_v34  ;;  %v14701_v55 = vld [vmem:[#allocation64_spill] sm:$0xff] }
 0x470   : > { %14694 = vst [vmem:[#allocation13_spill] sm:$0xff] %v12360_v30  ;;  %6170 = vmatpush.bf16.msra.mxu2 %v6097_v51  ;;  %6184 = vmatpush.bf16.msra.mxu3 %v6098_v38  ;;  %v6061_v36 = vpack.c.bf16 %v6026_v56, %v5993_v2  ;;  %v6105_v14 = vpack.c.bf16 %v12331_v9, %v12363_v35  ;;  %v5257_v34 = vpop.f32.mrf.mxu0  ;;  %v14708_v17 = vld [vmem:[#allocation68_spill] sm:$0xff] }
 0x471   : > { %v6060_v44 = vpack.c.bf16 %v6025_v49, %v5992_v63  ;;  %v12388_v26 = vadd.f32 %v12140_v25, %v12272_v27  ;;  %v6106_v12 = vpack.c.bf16 %v12360_v30, %v12370_v54  ;;  %v12400_v1 = vadd.f32 %v12296_v21, %v5565_v8  ;;  %v14700_v63 = vld [vmem:[#allocation21_spill] sm:$0xff]  ;;  %v14706_v8 = vld [vmem:[#allocation22_spill] sm:$0xff] }
 0x472   : > { %6625 = vrot.lane.b32.xlu2 %v6061_v36, %s9395_s27  ;;  %v12379_v58 = vpop.permute.xlu0 %5868  ;;  %v12407_v53 = vadd.f32 %v12140_v25, %v5533_v18  ;;  %v4236_v2 = vadd.f32 %v11869_v52, %v14700_v63  ;;  %v4238_v59 = vadd.f32 %v11882_v45, %v14701_v55  ;;  %v12426_v36 = vpop.permute.xlu2 %5882  ;;  %v14704_v52 = vld [vmem:[#allocation71_spill] sm:$0xff]  ;;  %v14705_v45 = vld [vmem:[#allocation101_spill] sm:$0xff]  ;;  %v14707_v18 = vld [vmem:[#allocation98_spill] sm:$0xff] }
 0x473   : > { %6623 = vrot.lane.b32.xlu1 %v6060_v44, %s9395_s27  ;;  %v12381_v23 = vpop.permute.xlu1 %5874  ;;  %v5930_v4 = vsel %vm5926_vm4, %v12379_v58, %v12298_v39  ;;  %9146 = vmatmul.msk.bf16.vlgmr.msra.gmra.mxu2 %vm1410_vm2, %v12357_v15  ;;  %14698 = vst [vmem:[#allocation87_spill] sm:$0xff] %v12400_v1  ;;  %v6099_v57 = vpack.c.bf16 %v12373_v32, %v12388_v26  ;;  %v5217_v0 = vpop.f32.mrf.mxu1 }
 0x474   : > { %6226 = vmatpush.bf16.msrb.mxu2 %v6101_v62  ;;  %6240 = vmatpush.bf16.msrb.mxu3 %v6102_v31  ;;  %v5995_v27 = vmul.f32 %v5930_v4, %v12301_v40  ;;  %v6028_v19 = vmul.f32 %v5930_v4, %v12319_v6  ;;  %14699 = vst [vmem:[#allocation17_spill] sm:$0xff] %v12407_v53  ;;  %v12421_v38 = vpop.f32.mrf.mxu2  ;;  %v14702_v62 = vld [vmem:[#allocation67_spill] sm:$0xff]  ;;  %v14703_v31 = vld [vmem:[#allocation97_spill] sm:$0xff] }
 0x475   : > { %9147 = vmatmul.msk.bf16.vlgmr.msra.gmra.mxu3 %vm1410_vm2, %v12357_v15  ;;  %v6100_v51 = vpack.c.bf16 %v12400_v1, %v12407_v53  ;;  %v4306_v56 = vadd.f32 %v14703_v31, %v14702_v62  ;;  %v5537_v49 = vadd.f32 %v12321_v16, %v4236_v2  ;;  %v5569_v22 = vadd.f32 %v5217_v0, %v4238_v59  ;;  %v14710_v16 = vld [vmem:[#allocation105_spill] sm:$0xff] }
 0x476   : > { %v6063_v5 = vpack.c.bf16 %v6028_v19, %v5995_v27  ;;  %5922 = vrot.lane.b32.xlu0 %v5828_v11, %s9394_s18  ;;  %v4320_v44 = vadd.f32 %v14705_v45, %v14704_v52  ;;  %v14709_v11 = vld [vmem:[#allocation42_spill] sm:$0xff]  ;;  %v7270_v19 = vperm.slane %v14710_v16, 5  ;;  %v14713_v52 = vld [vmem:[#allocation19_spill] sm:$0xff]  ;;  %v14714_v45 = vld [vmem:[#allocation41_spill] sm:$0xff] }
 0x477   : > { %9134 = vmatmul.msk.bf16.vlgmr.msrb.gmra.mxu0 %vm1410_vm2, %v9358_v60  ;;  %9135 = vmatmul.msk.bf16.vlgmr.msrb.gmra.mxu1 %vm1410_vm2, %v9358_v60  ;;  %v4322_v4 = vadd.f32 %v14709_v11, %v14708_v17  ;;  %v12443_v60 = vadd.f32 %v12140_v25, %v5537_v49  ;;  %v12446_v63 = vadd.f32 %v12296_v21, %v5569_v22 }
 0x478   : > { %6282 = vmatpush.bf16.msra.mxu2 %v6105_v14  ;;  %6296 = vmatpush.bf16.msra.mxu3 %v6106_v12  ;;  %v4308_v14 = vadd.f32 %v14707_v18, %v14706_v8  ;;  %v5543_v55 = vadd.f32 %v12282_v47, %v4320_v44  ;;  %v4224_v8 = vadd.f32 %v14714_v45, %v14713_v52  ;;  %v14716_v44 = vld [vmem:[#allocation63_spill] sm:$0xff] }
 0x479   : > { %6198 = vmatpush.bf16.msrb.mxu0 %v6099_v57  ;;  %6212 = vmatpush.bf16.msrb.mxu1 %v6100_v51  ;;  %v12438_v57 = vpop.f32.mrf.mxu3  ;;  %14711 = vst [vmem:[#allocation62_spill] sm:$0xff] %v12443_v60  ;;  %v5575_v62 = vadd.f32 %v5301_v10, %v4322_v4  ;;  %v5542_v18 = vadd.f32 %v12264_v61, %v4306_v56  ;;  %v14717_v10 = vld [vmem:[#allocation40_spill] sm:$0xff] }
 0x47a   : > { %v5873_v12 = vpop.permute.xlu0 %5872  ;;  %14712 = vst [vmem:[#allocation59_spill] sm:$0xff] %v12446_v63  ;;  %v5574_v2 = vadd.f32 %v5287_v50, %v4308_v14  ;;  %v4222_v14 = vadd.f32 %v14717_v10, %v14716_v44  ;;  %v5568_v4 = vadd.f32 %v12367_v13, %v4224_v8  ;;  %v12480_v16 = vadd.f32 %v12140_v25, %v5543_v55  ;;  %v5259_v55 = vpop.f32.mrf.mxu0  ;;  %v14725_v8 = vld [vmem:[#allocation70_spill] sm:$0xff] }
 0x47b   : > { %6629 = vrot.lane.b32.xlu1 %v6063_v5, %s9395_s27  ;;  %v12435_v27 = vpop.permute.xlu1 %5880  ;;  %v5932_v0 = vsel %vm5926_vm4, %v5873_v12, %v12381_v23  ;;  %v5931_v31 = vsel %vm5926_vm4, %v12298_v39, %v5873_v12  ;;  %v12467_v17 = vpop.f32.mrf.mxu1  ;;  %v12470_v11 = vadd.f32 %v12296_v21, %v5575_v62  ;;  %v12477_v56 = vadd.f32 %v12140_v25, %v5542_v18  ;;  %v14726_v18 = vld [vmem:[#allocation104_spill] sm:$0xff] }
 0x47c   : > { %v5936_v5 = vsel %vm5926_vm4, %v12435_v27, %v12426_v36  ;;  %v5997_v59 = vmul.f32 %v5932_v0, %v12407_v53  ;;  %v6030_v51 = vmul.f32 %v5932_v0, %v12400_v1  ;;  %v12463_v47 = vadd.f32 %v12296_v21, %v5574_v2  ;;  %14720 = vst [vmem:[#allocation16_spill] sm:$0xff] %v12480_v16  ;;  %v5343_v0 = vpop.f32.mrf.mxu2  ;;  %v14758_v1 = vld [vmem:[#allocation29_spill] sm:$0xff]  ;;  %v14761_v53 = vld [vmem:[#allocation110_spill] sm:$0xff] }
 0x47d   : > { %v6001_v49 = vmul.f32 %v5936_v5, %v12443_v60  ;;  %v6034_v22 = vmul.f32 %v5936_v5, %v12446_v63  ;;  %14718 = vst [vmem:[#allocation65_spill] sm:$0xff] %v12470_v11  ;;  %v5996_v12 = vmul.f32 %v5931_v31, %v12388_v26  ;;  %v6029_v61 = vmul.f32 %v5931_v31, %v12373_v32 }
 0x47e   : > { %v6065_v50 = vpack.c.bf16 %v6030_v51, %v5997_v59  ;;  %7335 = vrot.lane.b32.xlu0 %v7270_v19, %s9395_s27  ;;  %14715 = vst [vmem:[#allocation38_spill] sm:$0xff] %v12463_v47  ;;  %v5536_v19 = vadd.f32 %v12274_v28, %v4222_v14  ;;  %v12485_v5 = vadd.f32 %v12296_v21, %v5568_v4  ;;  %v14722_v59 = vld [vmem:[#allocation77_spill] sm:$0xff]  ;;  %v14723_v51 = vld [vmem:[#allocation99_spill] sm:$0xff]  ;;  %v14727_v14 = vld [vmem:[#allocation100_spill] sm:$0xff] }
 0x47f   : > { %v6069_v39 = vpack.c.bf16 %v6034_v22, %v6001_v49  ;;  %14719 = vst [vmem:[#allocation92_spill] sm:$0xff] %v12477_v56  ;;  %v6109_v2 = vpack.c.bf16 %v12463_v47, %v12477_v56  ;;  %v4278_v62 = vadd.f32 %v14723_v51, %v14722_v59  ;;  %v6110_v28 = vpack.c.bf16 %v12470_v11, %v12480_v16  ;;  %v14728_v59 = vld [vmem:[#allocation81_spill] sm:$0xff]  ;;  %v14729_v51 = vld [vmem:[#allocation43_spill] sm:$0xff] }
 0x480   : > { %6633 = vrot.lane.b32.xlu2 %v6065_v50, %s9395_s27  ;;  %14721 = vst [vmem:[#allocation39_spill] sm:$0xff] %v12485_v5  ;;  %v6064_v49 = vpack.c.bf16 %v6029_v61, %v5996_v12  ;;  %v12500_v22 = vadd.f32 %v12140_v25, %v5536_v19  ;;  %v4280_v50 = vadd.f32 %v14726_v18, %v14725_v8  ;;  %v14732_v18 = vld [vmem:[#allocation69_spill] sm:$0xff] }
 0x481   : > { %v5357_v44 = vpop.f32.mrf.mxu3  ;;  %v5929_v10 = vsel %vm5926_vm4, %v12152_v48, %v12379_v58  ;;  %v5540_v4 = vadd.f32 %v5257_v34, %v4278_v62  ;;  %v12523_v48 = vpop.permute.xlu2 %5888 }
 0x482   : > { %v5879_v13 = vpop.permute.xlu0 %5878  ;;  %14724 = vst [vmem:[#allocation18_spill] sm:$0xff] %v12500_v22  ;;  %v6103_v19 = vpack.c.bf16 %v12485_v5, %v12500_v22  ;;  %v5572_v8 = vadd.f32 %v5259_v55, %v4280_v50  ;;  %v5994_v58 = vmul.f32 %v5929_v10, %v12293_v3  ;;  %v6027_v34 = vmul.f32 %v5929_v10, %v12316_v42  ;;  %v14733_v50 = vld [vmem:[#allocation44_spill] sm:$0xff] }
 0x483   : > { %6641 = vrot.lane.b32.xlu1 %v6069_v39, %s9395_s27  ;;  %v5934_v31 = vsel %vm5926_vm4, %v12352_v46, %v5879_v13  ;;  %9150 = vmatmul.msk.bf16.vlgmr.msrb.gmra.mxu2 %vm1410_vm2, %v12357_v15  ;;  %v7269_v39 = vperm.slane %v14727_v14, 5  ;;  %v12510_v61 = vpop.permute.xlu1 %5886  ;;  %v5935_v62 = vsel %vm5926_vm4, %v5879_v13, %v12435_v27  ;;  %v4362_v14 = vadd.f32 %v14733_v50, %v14732_v18  ;;  %v14736_v13 = vld [vmem:[#allocation24_spill] sm:$0xff] }
 0x484   : > { %v5999_v52 = vmul.f32 %v5934_v31, %v12307_v41  ;;  %v6032_v45 = vmul.f32 %v5934_v31, %v12328_v33  ;;  %6338 = vmatpush.bf16.msrb.mxu2 %v6109_v2  ;;  %v6104_v2 = vpack.c.bf16 %v12446_v63, %v12443_v60  ;;  %v4364_v31 = vadd.f32 %v14729_v51, %v14728_v59  ;;  %v5397_v50 = vpop.f32.mrf.mxu2 }
 0x485   : > { %9151 = vmatmul.msk.bf16.vlgmr.msrb.gmra.mxu3 %vm1410_vm2, %v12357_v15  ;;  %v12538_v10 = vadd.f32 %v12140_v25, %v5540_v4  ;;  %v12541_v27 = vadd.f32 %v12296_v21, %v5572_v8  ;;  %v6062_v18 = vpack.c.bf16 %v6027_v34, %v5994_v58  ;;  %v14738_v8 = vld [vmem:[#allocation23_spill] sm:$0xff] }
 0x486   : > { %6352 = vmatpush.bf16.msrb.mxu3 %v6110_v28  ;;  %v6067_v12 = vpack.c.bf16 %v6032_v45, %v5999_v52  ;;  %6631 = vrot.lane.b32.xlu0 %v6064_v49, %s9395_s27  ;;  %v14730_v28 = vld [vmem:[#allocation25_spill] sm:$0xff]  ;;  %v14731_v49 = vld [vmem:[#allocation103_spill] sm:$0xff]  ;;  %v5273_v52 = vpop.f32.mrf.mxu1  ;;  %v5939_v45 = vsel %vm5926_vm4, %v12510_v61, %v12523_v48  ;;  %v5578_v59 = vadd.f32 %v5343_v0, %v4364_v31 }
 0x487   : > { %9144 = vmatmul.msk.bf16.vlgmr.msra.gmra.mxu0 %vm1410_vm2, %v12357_v15  ;;  %9145 = vmatmul.msk.bf16.vlgmr.msra.gmra.mxu1 %vm1410_vm2, %v12357_v15  ;;  %v4378_v55 = vadd.f32 %v14731_v49, %v14730_v28  ;;  %14734 = vst [vmem:[#allocation61_spill] sm:$0xff] %v12538_v10  ;;  %v6000_v28 = vmul.f32 %v5935_v62, %v12500_v22 }
 0x488   : > { %6254 = vmatpush.bf16.msra.mxu0 %v6103_v19  ;;  %6268 = vmatpush.bf16.msra.mxu1 %v6104_v2  ;;  %14735 = vst [vmem:[#allocation93_spill] sm:$0xff] %v12541_v27  ;;  %v14737_v19 = vld [vmem:[#allocation102_spill] sm:$0xff]  ;;  %v5546_v49 = vadd.f32 %v12421_v38, %v4362_v14  ;;  %v6004_v4 = vmul.f32 %v5939_v45, %v12538_v10 }
 0x489   : > { %7333 = vrot.lane.b32.xlu2 %v7269_v39, %s9395_s27  ;;  %v4376_v2 = vadd.f32 %v14737_v19, %v14736_v13  ;;  %v5579_v51 = vadd.f32 %v5357_v44, %v4378_v55  ;;  %v6033_v39 = vmul.f32 %v5935_v62, %v12485_v5  ;;  %v6037_v0 = vmul.f32 %v5939_v45, %v12541_v27  ;;  %v5411_v44 = vpop.f32.mrf.mxu3  ;;  %v14740_v55 = vld [vmem:[#allocation73_spill] sm:$0xff]  ;;  %v14741_v19 = vld [vmem:[#allocation46_spill] sm:$0xff] }
 0x48a   : > { %v12551_v31 = vpop.permute.xlu0 %5884  ;;  %v4294_v60 = vadd.f32 %v14741_v19, %v14740_v55  ;;  %v12560_v38 = vadd.f32 %v12296_v21, %v5578_v59  ;;  %v12567_v14 = vadd.f32 %v12140_v25, %v5546_v49  ;;  %v5933_v49 = vsel %vm5926_vm4, %v12381_v23, %v12352_v46  ;;  %v14749_v55 = vld [vmem:[#allocation112_spill] sm:$0xff]  ;;  %v14753_v23 = vld [vmem:[#allocation49_spill] sm:$0xff] }
 0x48b   : > { %6637 = vrot.lane.b32.xlu1 %v6067_v12, %s9395_s27  ;;  %v14739_v12 = vld [vmem:[#allocation45_spill] sm:$0xff]  ;;  %v5547_v13 = vadd.f32 %v12438_v57, %v4376_v2  ;;  %v6068_v34 = vpack.c.bf16 %v6033_v39, %v6000_v28  ;;  %v12564_v62 = vadd.f32 %v12296_v21, %v5579_v51  ;;  %v5313_v57 = vpop.f32.mrf.mxu0  ;;  %v6072_v2 = vpack.c.bf16 %v6037_v0, %v6004_v4  ;;  %v14752_v46 = vld [vmem:[#allocation76_spill] sm:$0xff] }
 0x48c   : > { %v4292_v63 = vadd.f32 %v14739_v12, %v14738_v8  ;;  %14742 = vst [vmem:[#allocation20_spill] sm:$0xff] %v12560_v38  ;;  %v5573_v45 = vadd.f32 %v5273_v52, %v4294_v60  ;;  %v5937_v8 = vsel %vm5926_vm4, %v12426_v36, %v12551_v31  ;;  %v6113_v60 = vpack.c.bf16 %v12560_v38, %v12567_v14  ;;  %v5399_v4 = vpop.f32.mrf.mxu2 }
 0x48d   : > { %14743 = vst [vmem:[#allocation66_spill] sm:$0xff] %v12564_v62  ;;  %v6002_v51 = vmul.f32 %v5937_v8, %v12363_v35  ;;  %v6035_v36 = vmul.f32 %v5937_v8, %v12331_v9  ;;  %v6107_v12 = vpack.c.bf16 %v12541_v27, %v12538_v10  ;;  %v7275_v19 = vperm.slane %v14749_v55, 5  ;;  %v14756_v27 = vld [vmem:[#allocation79_spill] sm:$0xff]  ;;  %v14757_v10 = vld [vmem:[#allocation109_spill] sm:$0xff] }
 0x48e   : > { %6627 = vrot.lane.b32.xlu0 %v6062_v18, %s9395_s27  ;;  %v5541_v58 = vadd.f32 %v12467_v17, %v4292_v63  ;;  %14744 = vst [vmem:[#allocation80_spill] sm:$0xff] %v12567_v14  ;;  %v12573_v18 = vadd.f32 %v12140_v25, %v5547_v13  ;;  %v5327_v59 = vpop.f32.mrf.mxu1  ;;  %v12578_v63 = vadd.f32 %v12296_v21, %v5573_v45  ;;  %v14747_v17 = vld [vmem:[#allocation107_spill] sm:$0xff] }
 0x48f   : > { %v7273_v52 = vperm.slane %v14747_v17, 5  ;;  %v6070_v8 = vpack.c.bf16 %v6035_v36, %v6002_v51  ;;  %v4434_v17 = vadd.f32 %v14753_v23, %v14752_v46  ;;  %v6031_v55 = vmul.f32 %v5933_v49, %v12325_v20  ;;  %v14754_v51 = vld [vmem:[#allocation72_spill] sm:$0xff]  ;;  %v14755_v36 = vld [vmem:[#allocation47_spill] sm:$0xff] }
 0x490   : > { %14745 = vst [vmem:[#allocation21_spill] sm:$0xff] %v12573_v18  ;;  %v6114_v28 = vpack.c.bf16 %v12564_v62, %v12573_v18  ;;  %v12592_v39 = vadd.f32 %v12140_v25, %v5541_v58  ;;  %v14750_v58 = vld [vmem:[#allocation28_spill] sm:$0xff]  ;;  %v4432_v9 = vadd.f32 %v14757_v10, %v14756_v27  ;;  %v14762_v10 = vld [vmem:[#allocation26_spill] sm:$0xff] }
 0x491   : > { %6639 = vrot.lane.b32.xlu2 %v6068_v34, %s9395_s27  ;;  %14746 = vst [vmem:[#allocation64_spill] sm:$0xff] %v12578_v63  ;;  %v14751_v34 = vld [vmem:[#allocation108_spill] sm:$0xff]  ;;  %v14763_v27 = vld [vmem:[#allocation106_spill] sm:$0xff] }
 0x492   : > { %14748 = vst [vmem:[#allocation67_spill] sm:$0xff] %v12592_v39  ;;  %v5891_v0 = vpop.permute.xlu0 %5890  ;;  %v6108_v13 = vpack.c.bf16 %v12578_v63, %v12592_v39  ;;  %v4420_v45 = vadd.f32 %v14751_v34, %v14750_v58  ;;  %v4418_v58 = vadd.f32 %v14755_v36, %v14754_v51  ;;  %v5551_v22 = vadd.f32 %v5411_v44, %v4432_v9 }
 0x493   : > { %6647 = vrot.lane.b32.xlu1 %v6072_v2, %s9395_s27  ;;  %9154 = vmatmul.msk.bf16.vlgmr.msra.gmra.mxu2 %vm1410_vm2, %v12357_v15  ;;  %v5413_v2 = vpop.f32.mrf.mxu3  ;;  %v5315_v23 = vpop.f32.mrf.mxu0 }
 0x494   : > { %6394 = vmatpush.bf16.msra.mxu2 %v6113_v60  ;;  %v12605_v60 = vpop.permute.xlu1 %5892  ;;  %v5582_v46 = vadd.f32 %v5399_v4, %v4420_v45  ;;  %v5583_v35 = vadd.f32 %v5413_v2, %v4434_v17  ;;  %v5550_v51 = vadd.f32 %v5397_v50, %v4418_v58  ;;  %v4334_v4 = vadd.f32 %v14763_v27, %v14762_v10  ;;  %v14764_v45 = vld [vmem:[#allocation74_spill] sm:$0xff]  ;;  %v14765_v2 = vld [vmem:[#allocation95_spill] sm:$0xff] }
 0x495   : > { %9155 = vmatmul.msk.bf16.vlgmr.msra.gmra.mxu3 %vm1410_vm2, %v12357_v15  ;;  %v5941_v34 = vsel %vm5926_vm4, %v5891_v0, %v12605_v60  ;;  %v12648_v58 = vadd.f32 %v12140_v25, %v5551_v22 }
 0x496   : > { %6408 = vmatpush.bf16.msra.mxu3 %v6114_v28  ;;  %7341 = vrot.lane.b32.xlu0 %v7273_v52, %s9395_s27  ;;  %v12613_v52 = vpop.permute.xlu2 %5894  ;;  %v5998_v28 = vmul.f32 %v5933_v49, %v12304_v24  ;;  %v14759_v49 = vld [vmem:[#allocation48_spill] sm:$0xff]  ;;  %v5329_v36 = vpop.f32.mrf.mxu1  ;;  %v6039_v41 = vmul.f32 %v5941_v34, %v12463_v47  ;;  %v12638_v17 = vadd.f32 %v12296_v21, %v5582_v46 }
 0x497   : > { %9148 = vmatmul.msk.bf16.vlgmr.msrb.gmra.mxu0 %vm1410_vm2, %v12357_v15  ;;  %9149 = vmatmul.msk.bf16.vlgmr.msrb.gmra.mxu1 %vm1410_vm2, %v12357_v15  ;;  %v12641_v9 = vadd.f32 %v12296_v21, %v5583_v35  ;;  %v12645_v44 = vadd.f32 %v12140_v25, %v5550_v51  ;;  %14769 = vst [vmem:[#allocation22_spill] sm:$0xff] %v12648_v58  ;;  %v14775_v51 = vld [vmem:[#allocation51_spill] sm:$0xff] }
 0x498   : > { %6310 = vmatpush.bf16.msrb.mxu0 %v6107_v12  ;;  %6324 = vmatpush.bf16.msrb.mxu1 %v6108_v13  ;;  %v4336_v12 = vadd.f32 %v14759_v49, %v14758_v1  ;;  %v14760_v13 = vld [vmem:[#allocation78_spill] sm:$0xff]  ;;  %v6066_v33 = vpack.c.bf16 %v6031_v55, %v5998_v28  ;;  %v5940_v1 = vsel %vm5926_vm4, %v12523_v48, %v5891_v0 }
 0x499   : > { %6643 = vrot.lane.b32.xlu2 %v6070_v8, %s9395_s27  ;;  %v4350_v5 = vadd.f32 %v14761_v53, %v14760_v13  ;;  %v6006_v8 = vmul.f32 %v5941_v34, %v12477_v56  ;;  %14766 = vst [vmem:[#allocation97_spill] sm:$0xff] %v12638_v17  ;;  %v5544_v28 = vadd.f32 %v5313_v57, %v4334_v4  ;;  %v14774_v13 = vld [vmem:[#allocation85_spill] sm:$0xff] }
 0x49a   : > { %v5576_v53 = vadd.f32 %v5315_v23, %v4336_v12  ;;  %14767 = vst [vmem:[#allocation71_spill] sm:$0xff] %v12641_v9  ;;  %v6005_v48 = vmul.f32 %v5940_v1, %v12592_v39  ;;  %v6038_v0 = vmul.f32 %v5940_v1, %v12578_v63  ;;  %v6117_v22 = vpack.c.bf16 %v12638_v17, %v12645_v44 }
 0x49b   : > { %7345 = vrot.lane.b32.xlu1 %v7275_v19, %s9395_s27  ;;  %v4348_v19 = vadd.f32 %v14765_v2, %v14764_v45  ;;  %v5577_v50 = vadd.f32 %v5329_v36, %v4350_v5  ;;  %14768 = vst [vmem:[#allocation101_spill] sm:$0xff] %v12645_v44  ;;  %v6074_v34 = vpack.c.bf16 %v6039_v41, %v6006_v8 }
 0x49c   : > { %v12652_v46 = vpop.permute.xlu1 %5900  ;;  %v12657_v35 = vadd.f32 %v12296_v21, %v5576_v53  ;;  %v6118_v57 = vpack.c.bf16 %v12641_v9, %v12648_v58  ;;  %v12672_v23 = vadd.f32 %v12140_v25, %v5544_v28  ;;  %v6073_v12 = vpack.c.bf16 %v6038_v0, %v6005_v48  ;;  %v14779_v0 = vld [vmem:[#allocation31_spill] sm:$0xff] }
 0x49d   : > { %v5545_v55 = vadd.f32 %v5327_v59, %v4348_v19  ;;  %v4390_v36 = vadd.f32 %v14775_v51, %v14774_v13  ;;  %v5938_v8 = vsel %vm5926_vm4, %v12551_v31, %v12510_v61  ;;  %v14776_v61 = vld [vmem:[#allocation89_spill] sm:$0xff]  ;;  %v14777_v31 = vld [vmem:[#allocation115_spill] sm:$0xff]  ;;  %v14783_v51 = vld [vmem:[#allocation114_spill] sm:$0xff] }
 0x49e   : > { %6635 = vrot.lane.b32.xlu0 %v6066_v33, %s9395_s27  ;;  %v12654_v5 = vpop.permute.xlu2 %5896  ;;  %14770 = vst [vmem:[#allocation98_spill] sm:$0xff] %v12657_v35  ;;  %v12660_v33 = vadd.f32 %v12296_v21, %v5577_v50  ;;  %v6111_v10 = vpack.c.bf16 %v12657_v35, %v12672_v23  ;;  %v6003_v45 = vmul.f32 %v5938_v8, %v12370_v54  ;;  %v14782_v13 = vld [vmem:[#allocation27_spill] sm:$0xff]  ;;  %v14824_v54 = vld [vmem:[#allocation14_spill] sm:$0xff] }
 0x49f   : > { %14772 = vst [vmem:[#allocation42_spill] sm:$0xff] %v12672_v23  ;;  %v12675_v49 = vadd.f32 %v12140_v25, %v5545_v55  ;;  %v6036_v2 = vmul.f32 %v5938_v8, %v12360_v30  ;;  %v4392_v19 = vadd.f32 %v14777_v31, %v14776_v61 }
 0x4a0   : > { %14771 = vst [vmem:[#allocation68_spill] sm:$0xff] %v12660_v33 }
 0x4a1   : > { %14773 = vst [vmem:[#allocation105_spill] sm:$0xff] %v12675_v49  ;;  %v6112_v27 = vpack.c.bf16 %v12660_v33, %v12675_v49 }
 0x4a3   : > { %6651 = vrot.lane.b32.xlu1 %v6074_v34, %s9395_s27  ;;  %v5369_v59 = vpop.f32.mrf.mxu0  ;;  %9158 = vmatmul.msk.bf16.vlgmr.msrb.gmra.mxu2 %vm1410_vm2, %v12357_v15  ;;  %v5383_v41 = vpop.f32.mrf.mxu1  ;;  %v14780_v34 = vld [vmem:[#allocation7_spill] sm:$0xff] }
 0x4a4   : > { %6450 = vmatpush.bf16.msrb.mxu2 %v6117_v22  ;;  %v5548_v4 = vadd.f32 %v5369_v59, %v4390_v36  ;;  %v5905_v50 = vpop.permute.xlu1 %5904  ;;  %v4406_v22 = vadd.f32 %v14780_v34, %v14779_v0  ;;  %v4404_v36 = vadd.f32 %v14783_v51, %v14782_v13  ;;  %v14789_v13 = vld [vmem:[#allocation75_spill] sm:$0xff]  ;;  %v14790_v51 = vld [vmem:[#allocation113_spill] sm:$0xff] }
 0x4a5   : > { %9159 = vmatmul.msk.bf16.vlgmr.msrb.gmra.mxu3 %vm1410_vm2, %v12357_v15 }
 0x4a6   : > { %6464 = vmatpush.bf16.msrb.mxu3 %v6118_v57  ;;  %6649 = vrot.lane.b32.xlu0 %v6073_v12, %s9395_s27  ;;  %v5903_v1 = vpop.permute.xlu2 %5902  ;;  %v12696_v28 = vadd.f32 %v12140_v25, %v5548_v4  ;;  %v6071_v57 = vpack.c.bf16 %v6036_v2, %v6003_v45  ;;  %v5549_v4 = vadd.f32 %v5383_v41, %v4404_v36  ;;  %v14785_v45 = vld [vmem:[#allocation50_spill] sm:$0xff] }
 0x4a7   : > { %9152 = vmatmul.msk.bf16.vlgmr.msra.gmra.mxu0 %vm1410_vm2, %v12357_v15  ;;  %9153 = vmatmul.msk.bf16.vlgmr.msra.gmra.mxu1 %vm1410_vm2, %v12357_v15  ;;  %v5947_v59 = vsel %vm5926_vm4, %v5903_v1, %v5905_v50  ;;  %v7274_v2 = vperm.slane %v14785_v45, 5  ;;  %v4474_v36 = vadd.f32 %v14790_v51, %v14789_v13  ;;  %v14796_v13 = vld [vmem:[#allocation5_spill] sm:$0xff] }
 0x4a8   : > { %6366 = vmatpush.bf16.msra.mxu0 %v6111_v10  ;;  %6380 = vmatpush.bf16.msra.mxu1 %v6112_v27  ;;  %14778 = vst [vmem:[#allocation19_spill] sm:$0xff] %v12696_v28  ;;  %v6012_v10 = vmul.f32 %v5947_v59, %v12696_v28 }
 0x4ab   : > { %v5371_v53 = vpop.f32.mrf.mxu0  ;;  %v5385_v48 = vpop.f32.mrf.mxu1 }
 0x4ac   : > { %v5580_v55 = vadd.f32 %v5371_v53, %v4392_v19  ;;  %v5581_v8 = vadd.f32 %v5385_v48, %v4406_v22  ;;  %v12717_v19 = vadd.f32 %v12140_v25, %v5549_v4  ;;  %v5946_v22 = vsel %vm5926_vm4, %v12652_v46, %v5903_v1 }
 0x4ad   : > { %v6011_v4 = vmul.f32 %v5946_v22, %v12573_v18 }
 0x4ae   : > { %v12702_v12 = vadd.f32 %v12296_v21, %v5580_v55  ;;  %6645 = vrot.lane.b32.xlu0 %v6071_v57, %s9395_s27  ;;  %v12710_v31 = vadd.f32 %v12296_v21, %v5581_v8  ;;  %14786 = vst [vmem:[#allocation40_spill] sm:$0xff] %v12717_v19  ;;  %v14787_v55 = vld [vmem:[#allocation55_spill] sm:$0xff]  ;;  %v14788_v57 = vld [vmem:[#allocation116_spill] sm:$0xff]  ;;  %v14791_v8 = vld [vmem:[#allocation30_spill] sm:$0xff]  ;;  %v12741_v45 = vpop.permute.xlu2 %5906 }
 0x4af   : > { %v7280_v48 = vperm.slane %v14787_v55, 5  ;;  %v14794_v55 = vld [vmem:[#allocation4_spill] sm:$0xff] }
 0x4b0   : > { %14781 = vst [vmem:[#allocation41_spill] sm:$0xff] %v12702_v12  ;;  %v6045_v27 = vmul.f32 %v5947_v59, %v12702_v12  ;;  %v6115_v41 = vpack.c.bf16 %v12702_v12, %v12696_v28  ;;  %v6116_v53 = vpack.c.bf16 %v12710_v31, %v12717_v19  ;;  %v7277_v59 = vperm.slane %v14788_v57, 5  ;;  %v14795_v57 = vld [vmem:[#allocation32_spill] sm:$0xff] }
 0x4b1   : > { %14784 = vst [vmem:[#allocation63_spill] sm:$0xff] %v12710_v31  ;;  %v4490_v51 = vadd.f32 %v14796_v13, %v14795_v57 }
 0x4b2   : > { %v6080_v61 = vpack.c.bf16 %v6045_v27, %v6012_v10  ;;  %v14792_v10 = vld [vmem:[#allocation111_spill] sm:$0xff] }
 0x4b3   : > { %9162 = vmatmul.msk.bf16.vlgmr.msra.gmra.mxu2 %vm1410_vm2, %v12357_v15  ;;  %v4488_v27 = vadd.f32 %v14792_v10, %v14791_v8  ;;  %v5948_v8 = vsel %vm5926_vm4, %v5905_v50, %v12741_v45 }
 0x4b4   : > { %6663 = vrot.lane.b32.xlu1 %v6080_v61, %s9395_s27  ;;  %v6044_v61 = vmul.f32 %v5946_v22, %v12564_v62  ;;  %v6046_v22 = vmul.f32 %v5948_v8, %v12710_v31 }
 0x4b5   : > { %9163 = vmatmul.msk.bf16.vlgmr.msra.gmra.mxu3 %vm1410_vm2, %v12357_v15 }
 0x4b6   : > { %7343 = vrot.lane.b32.xlu0 %v7274_v2, %s9395_s27  ;;  %v12743_v2 = vpop.permute.xlu1 %5910  ;;  %v6079_v28 = vpack.c.bf16 %v6044_v61, %v6011_v4 }
 0x4b7   : > { %9156 = vmatmul.msk.bf16.vlgmr.msrb.gmra.mxu0 %vm1410_vm2, %v12357_v15  ;;  %9157 = vmatmul.msk.bf16.vlgmr.msrb.gmra.mxu1 %vm1410_vm2, %v12357_v15 }
 0x4b8   : > { %6422 = vmatpush.bf16.msrb.mxu0 %v6115_v41  ;;  %6436 = vmatpush.bf16.msrb.mxu1 %v6116_v53  ;;  %v14793_v53 = vld [vmem:[#allocation82_spill] sm:$0xff] }
 0x4b9   : > { %v5453_v0 = vpop.f32.mrf.mxu2  ;;  %v5467_v34 = vpop.f32.mrf.mxu3 }
 0x4ba   : > { %v5554_v41 = vadd.f32 %v5453_v0, %v4474_v36  ;;  %v5555_v10 = vadd.f32 %v5467_v34, %v4488_v27 }
 0x4bc   : > { %7355 = vrot.lane.b32.xlu1 %v7280_v48, %s9395_s27  ;;  %v4476_v48 = vadd.f32 %v14794_v55, %v14793_v53  ;;  %v12757_v18 = vadd.f32 %v12140_v25, %v5554_v41  ;;  %v12760_v53 = vadd.f32 %v12140_v25, %v5555_v10  ;;  %v12796_v10 = vpop.permute.xlu2 %5916 }
 0x4be   : > { %7349 = vrot.lane.b32.xlu0 %v7277_v59, %s9395_s27  ;;  %v6013_v59 = vmul.f32 %v5948_v8, %v12717_v19  ;;  %v12782_v61 = vpop.permute.xlu1 %5914  ;;  %v5943_v8 = vsel %vm5926_vm4, %v12613_v52, %v12654_v5  ;;  %v14805_v19 = vld [vmem:[#allocation36_spill] sm:$0xff] }
 0x4c0   : > { %v12746_v1 = vpop.permute.xlu0 %6621 }
 0x4c1   : > { %v5455_v12 = vpop.f32.mrf.mxu2  ;;  %v5469_v62 = vpop.f32.mrf.mxu3 }
 0x4c2   : > { %v5586_v0 = vadd.f32 %v5455_v12, %v4476_v48  ;;  %v5587_v36 = vadd.f32 %v5469_v62, %v4490_v51  ;;  %v6081_v62 = vpack.c.bf16 %v6046_v22, %v6013_v59  ;;  %v6041_v22 = vmul.f32 %v5943_v8, %v12657_v35 }
 0x4c3   : > { %9166 = vmatmul.msk.bf16.vlgmr.msrb.gmra.mxu2 %vm1410_vm2, %v12357_v15 }
 0x4c4   : > { %v12763_v55 = vadd.f32 %v12296_v21, %v5586_v0  ;;  %v12766_v50 = vadd.f32 %v12296_v21, %v5587_v36  ;;  %6661 = vrot.lane.b32.xlu1 %v6079_v28, %s9395_s27  ;;  %v6008_v36 = vmul.f32 %v5943_v8, %v12672_v23 }
 0x4c5   : > { %9167 = vmatmul.msk.bf16.vlgmr.msrb.gmra.mxu3 %vm1410_vm2, %v12357_v15 }
 0x4c6   : > { %v6121_v12 = vpack.c.bf16 %v12763_v55, %v12757_v18  ;;  %v6122_v34 = vpack.c.bf16 %v12766_v50, %v12760_v53  ;;  %6665 = vrot.lane.b32.xlu0 %v6081_v62, %s9395_s27  ;;  %v12803_v62 = vpop.permute.xlu1 %5924 }
 0x4c7   : > { %9160 = vmatmul.msk.bf16.vlgmr.msra.gmra.mxu0 %vm1410_vm2, %v12357_v15  ;;  %9161 = vmatmul.msk.bf16.vlgmr.msra.gmra.mxu1 %vm1410_vm2, %v12357_v15 }
 0x4c8   : > { %v5899_v27 = vpop.permute.xlu0 %5898  ;;  %6506 = vmatpush.bf16.msra.mxu2 %v6121_v12  ;;  %6520 = vmatpush.bf16.msra.mxu3 %v6122_v34  ;;  %v6076_v12 = vpack.c.bf16 %v6041_v22, %v6008_v36  ;;  %v9359_v34 = vld [vmem:[%s14195_s11 + $0x50] sm:$0x3f] }
 0x4c9   : > { %v5944_v4 = vsel %vm5926_vm4, %v12654_v5, %v5899_v27  ;;  %v5945_v28 = vsel %vm5926_vm4, %v5899_v27, %v12652_v46  ;;  %v7279_v27 = vperm.slane %v9359_v34, 5  ;;  %v5942_v5 = vsel %vm5926_vm4, %v12605_v60, %v12613_v52  ;;  %v12823_v52 = vpop.permute.xlu2 %5920 }
 0x4ca   : > { %v6009_v41 = vmul.f32 %v5944_v4, %v12675_v49  ;;  %v6010_v48 = vmul.f32 %v5945_v28, %v12567_v14  ;;  %v6042_v57 = vmul.f32 %v5944_v4, %v12660_v33  ;;  %v6043_v13 = vmul.f32 %v5945_v28, %v12560_v38  ;;  %v14797_v4 = vld [vmem:[#allocation84_spill] sm:$0xff]  ;;  %v14798_v28 = vld [vmem:[#allocation3_spill] sm:$0xff]  ;;  %v14807_v49 = vld [vmem:[#allocation94_spill] sm:$0xff] }
 0x4cb   : > { %v14808_v38 = vld [vmem:[#allocation54_spill] sm:$0xff] }
 0x4cc   : > { %v6077_v51 = vpack.c.bf16 %v6042_v57, %v6009_v41  ;;  %v6078_v46 = vpack.c.bf16 %v6043_v13, %v6010_v48  ;;  %v4544_v41 = vadd.f32 %v14798_v28, %v14797_v4  ;;  %v6007_v48 = vmul.f32 %v5942_v5, %v12480_v16  ;;  %v14799_v13 = vld [vmem:[#allocation96_spill] sm:$0xff]  ;;  %v9360_v28 = vld [vmem:[%s14195_s11 + $0x38] sm:$0x3f] }
 0x4cd   : > { %v6040_v57 = vmul.f32 %v5942_v5, %v12470_v11  ;;  %v4532_v14 = vadd.f32 %v14808_v38, %v14807_v49  ;;  %v14810_v38 = vld [vmem:[#allocation53_spill] sm:$0xff] }
 0x4ce   : > { %6657 = vrot.lane.b32.xlu2 %v6077_v51, %s9395_s27  ;;  %6659 = vrot.lane.b32.xlu0 %v6078_v46, %s9395_s27  ;;  %v14800_v51 = vld [vmem:[#allocation56_spill] sm:$0xff]  ;;  %v12835_v5 = vpop.permute.xlu1 %7337 }
 0x4cf   : > { %v4546_v60 = vadd.f32 %v14800_v51, %v14799_v13 }
 0x4d0   : > { %v12800_v0 = vpop.permute.xlu0 %5908 }
 0x4d2   : > { %v5523_v59 = vpop.f32.mrf.mxu3 }
 0x4d3   : > { %9170 = vmatmul.msk.bf16.vlgmr.msra.gmra.mxu2 %vm1410_vm2, %v12357_v15  ;;  %v5559_v46 = vadd.f32 %v5523_v59, %v4544_v41  ;;  %v7276_v41 = vperm.slane %v9360_v28, 5  ;;  %v14806_v28 = vld [vmem:[#allocation6_spill] sm:$0xff] }
 0x4d4   : > { %v4460_v33 = vadd.f32 %v14806_v28, %v14805_v19  ;;  %v14812_v28 = vld [vmem:[#allocation8_spill] sm:$0xff] }
 0x4d5   : > { %9171 = vmatmul.msk.bf16.vlgmr.msra.gmra.mxu3 %vm1410_vm2, %v12357_v15  ;;  %v12830_v34 = vadd.f32 %v12140_v25, %v5559_v46  ;;  %v14801_v46 = vld [vmem:[#allocation33_spill] sm:$0xff] }
 0x4d6   : > { %6655 = vrot.lane.b32.xlu2 %v6076_v12, %s9395_s27  ;;  %7353 = vrot.lane.b32.xlu0 %v7279_v27, %s9395_s27  ;;  %v6075_v12 = vpack.c.bf16 %v6040_v57, %v6007_v48  ;;  %v12845_v48 = vpop.permute.xlu2 %7339 }
 0x4d7   : > { %9164 = vmatmul.msk.bf16.vlgmr.msrb.gmra.mxu0 %vm1410_vm2, %v12357_v15  ;;  %9165 = vmatmul.msk.bf16.vlgmr.msrb.gmra.mxu1 %vm1410_vm2, %v12357_v15 }
 0x4d8   : > { %v5913_v8 = vpop.permute.xlu0 %5912 }
 0x4da   : > { %v5525_v22 = vpop.f32.mrf.mxu3 }
 0x4db   : > { %v5591_v36 = vadd.f32 %v5525_v22, %v4546_v60  ;;  %v14802_v22 = vld [vmem:[#allocation10_spill] sm:$0xff] }
 0x4dd   : > { %v12833_v27 = vadd.f32 %v12296_v21, %v5591_v36  ;;  %v4530_v36 = vadd.f32 %v14802_v22, %v14801_v46 }
 0x4de   : > { %6653 = vrot.lane.b32.xlu2 %v6075_v12, %s9395_s27  ;;  %v14803_v12 = vld [vmem:[#allocation83_spill] sm:$0xff]  ;;  %v12865_v11 = vpop.permute.xlu2 %6625 }
 0x4df   : > { %v6126_v59 = vpack.c.bf16 %v12833_v27, %v12830_v34 }
 0x4e0   : > { %v12840_v4 = vpop.permute.xlu0 %5918 }
 0x4e1   : > { %6576 = vmatpush.bf16.msrb.mxu3 %v6126_v59  ;;  %v14804_v59 = vld [vmem:[#allocation9_spill] sm:$0xff] }
 0x4e2   : > { %v5509_v57 = vpop.f32.mrf.mxu2  ;;  %v4446_v31 = vadd.f32 %v14804_v59, %v14803_v12  ;;  %v14809_v59 = vld [vmem:[#allocation90_spill] sm:$0xff] }
 0x4e3   : > { %v5558_v63 = vadd.f32 %v5509_v57, %v4530_v36  ;;  %v4448_v49 = vadd.f32 %v14810_v38, %v14809_v59  ;;  %v14811_v36 = vld [vmem:[#allocation34_spill] sm:$0xff]  ;;  %v5951_v38 = vsel %vm5926_vm4, %v12743_v2, %v5913_v8 }
 0x4e4   : > { %v5425_v13 = vpop.f32.mrf.mxu0  ;;  %v5439_v60 = vpop.f32.mrf.mxu1  ;;  %v4462_v23 = vadd.f32 %v14812_v28, %v14811_v36 }
 0x4e5   : > { %v12847_v51 = vpop.permute.xlu1 %6623  ;;  %9175 = vmatmul.msk.bf16.vlgmr.msrb.gmra.mxu3 %vm1410_vm2, %v12357_v15  ;;  %v5552_v46 = vadd.f32 %v5425_v13, %v4446_v31  ;;  %v5553_v22 = vadd.f32 %v5439_v60, %v4460_v33 }
 0x4e6   : > { %7347 = vrot.lane.b32.xlu2 %v7276_v41, %s9395_s27  ;;  %v9361_v41 = vld [vmem:[%s14195_s11 + $0x48] sm:$0x3f] }
 0x4e7   : > { %v7278_v35 = vperm.slane %v9361_v41, 5  ;;  %v12877_v41 = vadd.f32 %v12140_v25, %v5558_v63  ;;  %v12886_v47 = vadd.f32 %v12140_v25, %v5552_v46 }
 0x4e8   : > { %v12860_v39 = vpop.permute.xlu0 %5922 }
 0x4e9   : > { %v12870_v12 = vsel %vm5926_vm4, %v12860_v39, %v12803_v62  ;;  %14813 = vst [vmem:[#allocation77_spill] sm:$0xff] %v12886_v47 }
 0x4ea   : > { %v5511_v19 = vpop.f32.mrf.mxu2 }
 0x4eb   : > { %v5590_v57 = vadd.f32 %v5511_v19, %v4532_v14  ;;  %v12889_v14 = vadd.f32 %v12140_v25, %v5553_v22 }
 0x4ec   : > { %v5427_v16 = vpop.f32.mrf.mxu0  ;;  %v5441_v60 = vpop.f32.mrf.mxu1 }
 0x4ed   : > { %v12880_v31 = vadd.f32 %v12296_v21, %v5590_v57  ;;  %v12882_v33 = vpop.permute.xlu1 %6629  ;;  %v5584_v13 = vadd.f32 %v5427_v16, %v4448_v49  ;;  %14814 = vst [vmem:[#allocation99_spill] sm:$0xff] %v12889_v14  ;;  %v5585_v19 = vadd.f32 %v5441_v60, %v4462_v23  ;;  %v12908_v49 = vpop.permute.xlu2 %6633  ;;  %v6016_v57 = vmul.f32 %v5951_v38, %v12886_v47 }
 0x4ee   : > { %7351 = vrot.lane.b32.xlu2 %v7278_v35, %s9395_s27  ;;  %v5952_v35 = vsel %vm5926_vm4, %v5913_v8, %v12782_v61 }
 0x4ef   : > { %v12892_v59 = vadd.f32 %v12296_v21, %v5584_v13  ;;  %v6125_v63 = vpack.c.bf16 %v12880_v31, %v12877_v41  ;;  %v12899_v16 = vadd.f32 %v12296_v21, %v5585_v19  ;;  %v6017_v36 = vmul.f32 %v5952_v35, %v12889_v14 }
 0x4f0   : > { %v12904_v22 = vpop.permute.xlu0 %7335 }
 0x4f1   : > { %14815 = vst [vmem:[#allocation70_spill] sm:$0xff] %v12892_v59  ;;  %v6049_v46 = vmul.f32 %v5951_v38, %v12892_v59  ;;  %6562 = vmatpush.bf16.msrb.mxu2 %v6125_v63  ;;  %v6119_v23 = vpack.c.bf16 %v12892_v59, %v12886_v47  ;;  %v6050_v28 = vmul.f32 %v5952_v35, %v12899_v16  ;;  %v14822_v47 = vld [vmem:[#allocation60_spill] sm:$0xff] }
 0x4f2   : > { %14816 = vst [vmem:[#allocation104_spill] sm:$0xff] %v12899_v16  ;;  %v6120_v13 = vpack.c.bf16 %v12899_v16, %v12889_v14  ;;  %v5949_v63 = vsel %vm5926_vm4, %v12741_v45, %v12800_v0  ;;  %v5950_v35 = vsel %vm5926_vm4, %v12800_v0, %v12743_v2  ;;  %v14821_v14 = vld [vmem:[#allocation91_spill] sm:$0xff] }
 0x4f3   : > { %6478 = vmatpush.bf16.msra.mxu0 %v6119_v23  ;;  %v6084_v60 = vpack.c.bf16 %v6049_v46, %v6016_v57  ;;  %v6085_v19 = vpack.c.bf16 %v6050_v28, %v6017_v36  ;;  %v6014_v46 = vmul.f32 %v5949_v63, %v12645_v44  ;;  %v6047_v45 = vmul.f32 %v5949_v63, %v12638_v17  ;;  %v14817_v23 = vld [vmem:[#allocation86_spill] sm:$0xff]  ;;  %v14818_v57 = vld [vmem:[#allocation52_spill] sm:$0xff] }
 0x4f4   : > { %6492 = vmatpush.bf16.msra.mxu1 %v6120_v13  ;;  %v5481_v8 = vpop.f32.mrf.mxu0  ;;  %9174 = vmatmul.msk.bf16.vlgmr.msrb.gmra.mxu2 %vm1410_vm2, %v12357_v15  ;;  %v5495_v59 = vpop.f32.mrf.mxu1  ;;  %v4502_v36 = vadd.f32 %v14818_v57, %v14817_v23  ;;  %v6015_v28 = vmul.f32 %v5950_v35, %v12648_v58  ;;  %v6048_v2 = vmul.f32 %v5950_v35, %v12641_v9  ;;  %v14819_v13 = vld [vmem:[#allocation37_spill] sm:$0xff] }
 0x4f5   : > { %v12920_v38 = vpop.permute.xlu1 %6641  ;;  %6671 = vrot.lane.b32.xlu1 %v6084_v60, %s9395_s27  ;;  %v14820_v60 = vld [vmem:[#allocation57_spill] sm:$0xff]  ;;  %v4504_v56 = vadd.f32 %v14822_v47, %v14821_v14  ;;  %v6082_v63 = vpack.c.bf16 %v6047_v45, %v6014_v46  ;;  %v12943_v17 = vpop.permute.xlu2 %7333  ;;  %v7399_v35 = vsel %vm6687_vm5, %v12904_v22, %v12835_v5 }
 0x4f6   : > { %9168 = vmatmul.msk.bf16.vlgmr.msra.gmra.mxu0 %vm1410_vm2, %v12357_v15  ;;  %6673 = vrot.lane.b32.xlu2 %v6085_v19, %s9395_s27  ;;  %v4516_v16 = vadd.f32 %v14820_v60, %v14819_v13  ;;  %v5556_v30 = vadd.f32 %v5481_v8, %v4502_v36  ;;  %v14823_v19 = vld [vmem:[#allocation88_spill] sm:$0xff]  ;;  %v6083_v58 = vpack.c.bf16 %v6048_v2, %v6015_v28  ;;  %v9362_v36 = vld [vmem:[%s14195_s11 + $0x60] sm:$0x3f] }
 0x4f7   : > { %9169 = vmatmul.msk.bf16.vlgmr.msra.gmra.mxu1 %vm1410_vm2, %v12357_v15  ;;  %v4518_v44 = vadd.f32 %v14824_v54, %v14823_v19  ;;  %v7281_v28 = vperm.slane %v9362_v36, 5 }
 0x4f8   : > { %v6632_v0 = vpop.permute.xlu0 %6631  ;;  %v5557_v23 = vadd.f32 %v5495_v59, %v4516_v16  ;;  %v12952_v54 = vadd.f32 %v12140_v25, %v5556_v30  ;;  %v7464_v59 = vmul.f32 %v7399_v35, %v12293_v3  ;;  %v7497_v16 = vmul.f32 %v7399_v35, %v12316_v42 }
 0x4f9   : > { %v6689_v42 = vsel %vm6687_vm5, %v12847_v51, %v12865_v11 }
 0x4fa   : > { %v12961_v8 = vadd.f32 %v12140_v25, %v5557_v23  ;;  %v12977_v25 = vld [vmem:[%s14191_s7] sm:$0xff]  ;;  %v7533_v45 = vpack.c.bf16 %v7497_v16, %v7464_v59 }
 0x4fc   : > { %v5483_v57 = vpop.f32.mrf.mxu0  ;;  %v5497_v60 = vpop.f32.mrf.mxu1 }
 0x4fd   : > { %v12948_v9 = vpop.permute.xlu1 %6637  ;;  %v5588_v13 = vadd.f32 %v5483_v57, %v4504_v56  ;;  %v5589_v47 = vadd.f32 %v5497_v60, %v4518_v44  ;;  %6667 = vrot.lane.b32.xlu1 %v6082_v63, %s9395_s27  ;;  %v6640_v19 = vpop.permute.xlu2 %6639 }
 0x4fe   : > { %6669 = vrot.lane.b32.xlu2 %v6083_v58, %s9395_s27  ;;  %v6696_v36 = vsel %vm6687_vm5, %v12948_v9, %v6640_v19 }
 0x4ff   : > { %v12955_v14 = vadd.f32 %v12296_v21, %v5588_v13  ;;  %v12964_v56 = vadd.f32 %v12296_v21, %v5589_v47  ;;  %v6688_v21 = vsel %vm6687_vm5, %v12746_v1, %v12847_v51  ;;  %v6692_v1 = vsel %vm6687_vm5, %v12882_v33, %v6632_v0 }
 0x500   : > { %v6628_v44 = vpop.permute.xlu0 %6627  ;;  %v6693_v51 = vsel %vm6687_vm5, %v6632_v0, %v12908_v49  ;;  %v9363_v0 = vld [vmem:[%s14195_s11 + $0x68] sm:$0x3f]  ;;  %v5954_v13 = vsel %vm5926_vm4, %v12796_v10, %v12840_v4 }
 0x501   : > { %v6123_v30 = vpack.c.bf16 %v12955_v14, %v12952_v54  ;;  %v6690_v46 = vsel %vm6687_vm5, %v12865_v11, %v6628_v44  ;;  %v6691_v58 = vsel %vm6687_vm5, %v6628_v44, %v12882_v33  ;;  %v6124_v3 = vpack.c.bf16 %v12964_v56, %v12961_v8 }
 0x502   : > { %6790 = vmatpush.bf16.msra.mxu2 %v6690_v46  ;;  %6804 = vmatpush.bf16.msra.mxu3 %v6691_v58  ;;  %v7400_v11 = vsel %vm6687_vm5, %v12835_v5, %v12845_v48  ;;  %v7282_v23 = vperm.slane %v9363_v0, 5  ;;  %v6023_v0 = vmul.f32 %v12803_v62, %v12830_v34 }
 0x503   : > { %6534 = vmatpush.bf16.msrb.mxu0 %v6123_v30  ;;  %6548 = vmatpush.bf16.msrb.mxu1 %v6124_v3  ;;  %v7465_v5 = vmul.f32 %v7400_v11, %v12301_v40  ;;  %v7498_v33 = vmul.f32 %v7400_v11, %v12319_v6  ;;  %v9364_v3 = vld [vmem:[%s14195_s11 + $0x70] sm:$0x3f]  ;;  %v5956_v11 = vsel %vm5926_vm4, %v12823_v52, %v12860_v39 }
 0x505   : > { %v12988_v2 = vpop.permute.xlu1 %6647  ;;  %7606 = vrot.lane.b32.xlu1 %v7533_v45, %s9394_s18  ;;  %9182 = vmatmul.msk.bf16.vlgmr.msra.gmra.mxu2 %vm1410_vm2, %v12977_v25  ;;  %v7534_v60 = vpack.c.bf16 %v7498_v33, %v7465_v5  ;;  %v6644_v47 = vpop.permute.xlu2 %6643  ;;  %v6697_v45 = vsel %vm6687_vm5, %v6640_v19, %v12920_v38  ;;  %v6056_v33 = vmul.f32 %v12803_v62, %v12833_v27 }
 0x506   : > { %9172 = vmatmul.msk.bf16.vlgmr.msrb.gmra.mxu0 %vm1410_vm2, %v12357_v15  ;;  %7357 = vrot.lane.b32.xlu2 %v7281_v28, %s9395_s27  ;;  %v6698_v46 = vsel %vm6687_vm5, %v12920_v38, %v6644_v47  ;;  %v9365_v38 = vld [vmem:[%s14195_s11 + $0x80] sm:$0x3f] }
 0x507   : > { %6762 = vmatpush.bf16.msra.mxu0 %v6688_v21  ;;  %6776 = vmatpush.bf16.msra.mxu1 %v6689_v42  ;;  %v7283_v21 = vperm.slane %v9364_v3, 5  ;;  %v7285_v19 = vperm.slane %v9365_v38, 5 }
 0x508   : > { %9173 = vmatmul.msk.bf16.vlgmr.msrb.gmra.mxu1 %vm1410_vm2, %v12357_v15  ;;  %v13005_v63 = vpop.permute.xlu0 %7341  ;;  %9183 = vmatmul.msk.bf16.vlgmr.msra.gmra.mxu3 %vm1410_vm2, %v12977_v25 }
 0x509   : > { %v7401_v15 = vsel %vm6687_vm5, %v12845_v48, %v13005_v63  ;;  %v5955_v48 = vsel %vm5926_vm4, %v12840_v4, %v12823_v52  ;;  %v6021_v52 = vmul.f32 %v5956_v11, %v12961_v8 }
 0x50a   : > { %v7466_v57 = vmul.f32 %v7401_v15, %v12388_v26  ;;  %v7499_v35 = vmul.f32 %v7401_v15, %v12373_v32  ;;  %v6019_v26 = vmul.f32 %v5954_v13, %v12760_v53  ;;  %v6052_v32 = vmul.f32 %v5954_v13, %v12766_v50  ;;  %v9366_v13 = vld [vmem:[%s14195_s11 + $0x78] sm:$0x3f] }
 0x50b   : > { %6818 = vmatpush.bf16.msrb.mxu0 %v6692_v1  ;;  %6832 = vmatpush.bf16.msrb.mxu1 %v6693_v51  ;;  %v6053_v59 = vmul.f32 %v5955_v48, %v12955_v14  ;;  %v6020_v4 = vmul.f32 %v5955_v48, %v12952_v54 }
 0x50c   : > { %v7535_v40 = vpack.c.bf16 %v7499_v35, %v7466_v57  ;;  %v6087_v58 = vpack.c.bf16 %v6052_v32, %v6019_v26  ;;  %v7495_v57 = vmul.f32 %v12943_v17, %v12310_v7  ;;  %v6055_v26 = vmul.f32 %v12870_v12, %v12880_v31 }
 0x50d   : > { %7359 = vrot.lane.b32.xlu1 %v7282_v23, %s9395_s27  ;;  %v13023_v6 = vpop.permute.xlu1 %7345  ;;  %v6088_v42 = vpack.c.bf16 %v6053_v59, %v6020_v4  ;;  %v7462_v23 = vmul.f32 %v12943_v17, %v12280_v37  ;;  %v7398_v4 = vsel %vm6687_vm5, %v12943_v17, %v12904_v22 }
 0x50e   : > { %7610 = vrot.lane.b32.xlu0 %v7535_v40, %s9394_s18  ;;  %7608 = vrot.lane.b32.xlu2 %v7534_v60, %s9394_s18  ;;  %v7284_v40 = vperm.slane %v9366_v13, 5  ;;  %v6091_v60 = vpack.c.bf16 %v6056_v33, %v6023_v0  ;;  %v7463_v3 = vmul.f32 %v7398_v4, %v12285_v29  ;;  %v14827_v33 = vld [vmem:[#allocation12_spill] sm:$0xff]  ;;  %v14828_v0 = vld [vmem:[#allocation39_spill] sm:$0xff] }
 0x50f   : > { %v7531_v48 = vpack.c.bf16 %v7495_v57, %v7462_v23 }
 0x510   : > { %v6636_v16 = vpop.permute.xlu0 %6635 }
 0x511   : > { %v6694_v44 = vsel %vm6687_vm5, %v12908_v49, %v6636_v16  ;;  %v6695_v30 = vsel %vm6687_vm5, %v6636_v16, %v12948_v9  ;;  %v5953_v49 = vsel %vm5926_vm4, %v12782_v61, %v12796_v10  ;;  %v6054_v10 = vmul.f32 %v5956_v11, %v12964_v56 }
 0x512   : > { %6846 = vmatpush.bf16.msrb.mxu2 %v6694_v44  ;;  %6860 = vmatpush.bf16.msrb.mxu3 %v6695_v30  ;;  %v6051_v28 = vmul.f32 %v5953_v49, %v12763_v55  ;;  %v6018_v39 = vmul.f32 %v5953_v49, %v12757_v18 }
 0x513   : > { %v6089_v5 = vpack.c.bf16 %v6054_v10, %v6021_v52  ;;  %v13153_v10 = vpop.f32.mrf.mxu1 }
 0x514   : > { %v6086_v51 = vpack.c.bf16 %v6051_v28, %v6018_v39  ;;  %v9368_v28 = vld [vmem:[%s14195_s11 + $0xa0] sm:$0x3f] }
 0x515   : > { %6677 = vrot.lane.b32.xlu1 %v6087_v58, %s9395_s27  ;;  %9186 = vmatmul.msk.bf16.vlgmr.msrb.gmra.mxu2 %vm1410_vm2, %v12977_v25  ;;  %v13063_v1 = vpop.permute.xlu1 %6651  ;;  %v7289_v11 = vperm.slane %v9368_v28, 5  ;;  %v14825_v39 = vld [vmem:[#allocation58_spill] sm:$0xff] }
 0x516   : > { %6902 = vmatpush.bf16.msra.mxu2 %v6698_v46  ;;  %6679 = vrot.lane.b32.xlu0 %v6088_v42, %s9395_s27 }
 0x517   : > { %9180 = vmatmul.msk.bf16.vlgmr.msra.gmra.mxu0 %vm1410_vm2, %v12977_v25  ;;  %7361 = vrot.lane.b32.xlu2 %v7283_v21, %s9395_s27 }
 0x518   : > { %9181 = vmatmul.msk.bf16.vlgmr.msra.gmra.mxu1 %vm1410_vm2, %v12977_v25  ;;  %6874 = vmatpush.bf16.msra.mxu0 %v6696_v36  ;;  %v6650_v61 = vpop.permute.xlu0 %6649  ;;  %v13144_v36 = vpop.f32.mrf.mxu2 }
 0x519   : > { %6888 = vmatpush.bf16.msra.mxu1 %v6697_v45  ;;  %v6702_v9 = vsel %vm6687_vm5, %v6650_v61, %v13063_v1  ;;  %9187 = vmatmul.msk.bf16.vlgmr.msrb.gmra.mxu3 %vm1410_vm2, %v12977_v25  ;;  %v6701_v7 = vsel %vm6687_vm5, %v12988_v2, %v6650_v61  ;;  %v13151_v61 = vpop.f32.mrf.mxu0 }
 0x51a   : > { %6958 = vmatpush.bf16.msrb.mxu2 %v6702_v9 }
 0x51d   : > { %7365 = vrot.lane.b32.xlu1 %v7285_v19, %s9395_s27 }
 0x51e   : > { %6675 = vrot.lane.b32.xlu0 %v6086_v51, %s9395_s27  ;;  %v14826_v51 = vld [vmem:[#allocation18_spill] sm:$0xff] }
 0x51f   : > { %6681 = vrot.lane.b32.xlu2 %v6089_v5, %s9395_s27 }
 0x520   : > { %v6646_v15 = vpop.permute.xlu0 %6645 }
 0x521   : > { %v6699_v35 = vsel %vm6687_vm5, %v6644_v47, %v6646_v15  ;;  %v6700_v62 = vsel %vm6687_vm5, %v6646_v15, %v12988_v2  ;;  %v6022_v2 = vmul.f32 %v12870_v12, %v12877_v41  ;;  %v7496_v12 = vmul.f32 %v7398_v4, %v12313_v43  ;;  %v14829_v4 = vld [vmem:[#allocation15_spill] sm:$0xff] }
 0x522   : > { %6916 = vmatpush.bf16.msra.mxu3 %v6699_v35  ;;  %v13164_v35 = vpop.f32.mrf.mxu3 }
 0x523   : > { %v6090_v46 = vpack.c.bf16 %v6055_v26, %v6022_v2  ;;  %v7532_v42 = vpack.c.bf16 %v7496_v12, %v7463_v3  ;;  %v13181_v26 = vpop.f32.mrf.mxu0  ;;  %v9369_v2 = vld [vmem:[%s14195_s11 + $0x98] sm:$0x3f] }
 0x525   : > { %6685 = vrot.lane.b32.xlu1 %v6091_v60, %s9395_s27  ;;  %9190 = vmatmul.msk.bf16.vlgmr.msra.gmra.mxu2 %vm1410_vm2, %v12977_v25 }
 0x526   : > { %7363 = vrot.lane.b32.xlu0 %v7284_v40, %s9395_s27  ;;  %v6664_v44 = vpop.permute.xlu1 %6663 }
 0x527   : > { %9184 = vmatmul.msk.bf16.vlgmr.msrb.gmra.mxu0 %vm1410_vm2, %v12977_v25  ;;  %7602 = vrot.lane.b32.xlu2 %v7531_v48, %s9394_s18  ;;  %v13170_v48 = vpop.f32.mrf.mxu2 }
 0x528   : > { %v6658_v37 = vpop.permute.xlu2 %6657  ;;  %9185 = vmatmul.msk.bf16.vlgmr.msrb.gmra.mxu1 %vm1410_vm2, %v12977_v25  ;;  %6930 = vmatpush.bf16.msrb.mxu0 %v6700_v62  ;;  %v13105_v32 = vpop.permute.xlu0 %7343 }
 0x529   : > { %6944 = vmatpush.bf16.msrb.mxu1 %v6701_v7  ;;  %v7403_v47 = vsel %vm6687_vm5, %v13105_v32, %v13023_v6  ;;  %9191 = vmatmul.msk.bf16.vlgmr.msra.gmra.mxu3 %vm1410_vm2, %v12977_v25  ;;  %v7402_v3 = vsel %vm6687_vm5, %v13005_v63, %v13105_v32  ;;  %v14834_v32 = vld [vmem:[#allocation11_spill] sm:$0xff] }
 0x52a   : > { %v7468_v59 = vmul.f32 %v7403_v47, %v12304_v24  ;;  %v7501_v16 = vmul.f32 %v7403_v47, %v12325_v20  ;;  %v9367_v24 = vld [vmem:[%s14195_s11 + $0x88] sm:$0x3f]  ;;  %v13197_v12 = vpop.f32.mrf.mxu3 }
 0x52b   : > { %v7286_v20 = vperm.slane %v9367_v24, 5 }
 0x52c   : > { %v7537_v30 = vpack.c.bf16 %v7501_v16, %v7468_v59  ;;  %v7288_v59 = vperm.slane %v9369_v2, 5  ;;  %v9370_v16 = vld [vmem:[%s14195_s11 + $0x90] sm:$0x3f]  ;;  %v9373_v2 = vld [vmem:[%s14195_s11 + $0xc0] sm:$0x3f] }
 0x52e   : > { %6683 = vrot.lane.b32.xlu0 %v6090_v46, %s9395_s27  ;;  %7614 = vrot.lane.b32.xlu1 %v7537_v30, %s9394_s18  ;;  %v13130_v17 = vpop.permute.xlu1 %7355  ;;  %v7287_v30 = vperm.slane %v9370_v16, 5  ;;  %v13191_v46 = vpop.f32.mrf.mxu1 }
 0x530   : > { %v6656_v58 = vpop.permute.xlu2 %6655  ;;  %v13123_v21 = vpop.permute.xlu0 %7349 }
 0x531   : > { %v6705_v43 = vsel %vm6687_vm5, %v6656_v58, %v6658_v37 }
 0x535   : > { %9194 = vmatmul.msk.bf16.vlgmr.msrb.gmra.mxu2 %vm1410_vm2, %v12977_v25 }
 0x536   : > { %7604 = vrot.lane.b32.xlu0 %v7532_v42, %s9394_s18  ;;  %7367 = vrot.lane.b32.xlu1 %v7286_v20, %s9395_s27  ;;  %v6662_v19 = vpop.permute.xlu1 %6661  ;;  %v14830_v20 = vld [vmem:[#allocation13_spill] sm:$0xff] }
 0x537   : > { %9188 = vmatmul.msk.bf16.vlgmr.msra.gmra.mxu0 %vm1410_vm2, %v12977_v25  ;;  %v6708_v7 = vsel %vm6687_vm5, %v6662_v19, %v6664_v44 }
 0x538   : > { %v6654_v29 = vpop.permute.xlu2 %6653  ;;  %9189 = vmatmul.msk.bf16.vlgmr.msra.gmra.mxu1 %vm1410_vm2, %v12977_v25  ;;  %v13142_v45 = vpop.permute.xlu0 %6665 }
 0x539   : > { %v6703_v22 = vsel %vm6687_vm5, %v13063_v1, %v6654_v29  ;;  %v6704_v49 = vsel %vm6687_vm5, %v6654_v29, %v6656_v58  ;;  %7000 = vmatpush.bf16.msra.mxu1 %v6705_v43  ;;  %v6709_v62 = vsel %vm6687_vm5, %v6664_v44, %v13142_v45  ;;  %v14831_v43 = vld [vmem:[#allocation17_spill] sm:$0xff] }
 0x53a   : > { %6972 = vmatpush.bf16.msrb.mxu3 %v6703_v22  ;;  %6986 = vmatpush.bf16.msra.mxu0 %v6704_v49  ;;  %v7467_v22 = vmul.f32 %v7402_v3, %v14831_v43  ;;  %v14832_v49 = vld [vmem:[#allocation87_spill] sm:$0xff] }
 0x53b   : > { %v7500_v28 = vmul.f32 %v7402_v3, %v14832_v49  ;;  %v14840_v3 = vld [vmem:[#allocation93_spill] sm:$0xff] }
 0x53d   : > { %9195 = vmatmul.msk.bf16.vlgmr.msrb.gmra.mxu3 %vm1410_vm2, %v12977_v25 }
 0x53e   : > { %7373 = vrot.lane.b32.xlu1 %v7289_v11, %s9395_s27  ;;  %v14833_v11 = vld [vmem:[#allocation35_spill] sm:$0xff] }
 0x540   : > { %v7348_v1 = vpop.permute.xlu2 %7347  ;;  %v6660_v57 = vpop.permute.xlu0 %6659 }
 0x541   : > { %v7404_v9 = vsel %vm6687_vm5, %v13023_v6, %v7348_v1  ;;  %v7405_v38 = vsel %vm6687_vm5, %v7348_v1, %v13123_v21  ;;  %v6706_v13 = vsel %vm6687_vm5, %v6658_v37, %v6660_v57  ;;  %v6707_v6 = vsel %vm6687_vm5, %v6660_v57, %v6662_v19  ;;  %v13212_v19 = vpop.f32.mrf.mxu0 }
 0x542   : > { %v7469_v52 = vmul.f32 %v7404_v9, %v14825_v39  ;;  %v7470_v5 = vmul.f32 %v7405_v38, %v14826_v51  ;;  %v7502_v15 = vmul.f32 %v7404_v9, %v14827_v33  ;;  %v7503_v23 = vmul.f32 %v7405_v38, %v14828_v0  ;;  %7014 = vmatpush.bf16.msra.mxu2 %v6706_v13  ;;  %v13221_v33 = vpop.f32.mrf.mxu2  ;;  %v13233_v13 = vpop.f32.mrf.mxu3 }
 0x543   : > { %7028 = vmatpush.bf16.msra.mxu3 %v6707_v6  ;;  %v7536_v38 = vpack.c.bf16 %v7500_v28, %v7467_v22  ;;  %v14835_v6 = vld [vmem:[#allocation62_spill] sm:$0xff]  ;;  %v9374_v28 = vld [vmem:[%s14195_s11 + $0xb8] sm:$0x3f] }
 0x544   : > { %v7538_v40 = vpack.c.bf16 %v7502_v15, %v7469_v52  ;;  %v7539_v60 = vpack.c.bf16 %v7503_v23, %v7470_v5  ;;  %v9371_v52 = vld [vmem:[%s14195_s11 + $0xb0] sm:$0x3f]  ;;  %v13217_v5 = vpop.f32.mrf.mxu1  ;;  %v9372_v23 = vld [vmem:[%s14195_s11 + $0xa8] sm:$0x3f] }
 0x545   : > { %9198 = vmatmul.msk.bf16.vlgmr.msra.gmra.mxu2 %vm1410_vm2, %v12977_v25  ;;  %v7291_v51 = vperm.slane %v9371_v52, 5  ;;  %v7290_v57 = vperm.slane %v9372_v23, 5 }
 0x546   : > { %7618 = vrot.lane.b32.xlu0 %v7539_v60, %s9394_s18  ;;  %7616 = vrot.lane.b32.xlu2 %v7538_v40, %s9394_s18  ;;  %v14836_v60 = vld [vmem:[#allocation59_spill] sm:$0xff] }
 0x547   : > { %9192 = vmatmul.msk.bf16.vlgmr.msrb.gmra.mxu0 %vm1410_vm2, %v12977_v25 }
 0x548   : > { %v7352_v37 = vpop.permute.xlu2 %7351  ;;  %9193 = vmatmul.msk.bf16.vlgmr.msrb.gmra.mxu1 %vm1410_vm2, %v12977_v25  ;;  %7042 = vmatpush.bf16.msrb.mxu0 %v6708_v7  ;;  %v7354_v47 = vpop.permute.xlu0 %7353 }
 0x549   : > { %7056 = vmatpush.bf16.msrb.mxu1 %v6709_v62  ;;  %v7408_v44 = vsel %vm6687_vm5, %v7354_v47, %v13130_v17  ;;  %v7407_v24 = vsel %vm6687_vm5, %v7352_v37, %v7354_v47  ;;  %v7406_v15 = vsel %vm6687_vm5, %v13123_v21, %v7352_v37  ;;  %v13237_v7 = vpop.f32.mrf.mxu0 }
 0x54a   : > { %v7473_v58 = vmul.f32 %v7408_v44, %v14829_v4  ;;  %v7506_v42 = vmul.f32 %v7408_v44, %v14830_v20  ;;  %v7472_v63 = vmul.f32 %v7407_v24, %v14833_v11  ;;  %v7505_v1 = vmul.f32 %v7407_v24, %v14834_v32  ;;  %v13242_v47 = vpop.f32.mrf.mxu2  ;;  %v13253_v44 = vpop.f32.mrf.mxu3  ;;  %v14839_v4 = vld [vmem:[#allocation61_spill] sm:$0xff] }
 0x54b   : > { %v7471_v40 = vmul.f32 %v7406_v15, %v14835_v6  ;;  %v7504_v21 = vmul.f32 %v7406_v15, %v14836_v60  ;;  %14837 = vst [vmem:[#allocation100_spill] sm:$0xff] %v13242_v47  ;;  %v7292_v11 = vperm.slane %v9374_v28, 5 }
 0x54c   : > { %v7542_v29 = vpack.c.bf16 %v7506_v42, %v7473_v58  ;;  %v7541_v39 = vpack.c.bf16 %v7505_v1, %v7472_v63  ;;  %v13240_v62 = vpop.f32.mrf.mxu1  ;;  %14838 = vst [vmem:[#allocation81_spill] sm:$0xff] %v13253_v44 }
 0x54d   : > { %9199 = vmatmul.msk.bf16.vlgmr.msra.gmra.mxu3 %vm1410_vm2, %v12977_v25  ;;  %v7540_v37 = vpack.c.bf16 %v7504_v21, %v7471_v40 }
 0x54e   : > { %7371 = vrot.lane.b32.xlu0 %v7288_v59, %s9395_s27  ;;  %7369 = vrot.lane.b32.xlu2 %v7287_v30, %s9395_s27  ;;  %v7293_v59 = vperm.slane %v9373_v2, 5 }
 0x54f   : > { %7624 = vrot.lane.b32.xlu1 %v7542_v29, %s9394_s18 }
 0x550   : > { %v13210_v9 = vpop.permute.xlu2 %6673 }
 0x551   : > { %v13258_v42 = vpop.f32.mrf.mxu0 }
 0x552   : > { %v13270_v49 = vpop.f32.mrf.mxu2  ;;  %v13275_v63 = vpop.f32.mrf.mxu3 }
 0x553   : > { %14841 = vst [vmem:[#allocation43_spill] sm:$0xff] %v13270_v49 }
 0x554   : > { %14842 = vst [vmem:[#allocation25_spill] sm:$0xff] %v13275_v63 }
 0x556   : > { %7622 = vrot.lane.b32.xlu0 %v7541_v39, %s9394_s18  ;;  %7612 = vrot.lane.b32.xlu2 %v7536_v38, %s9394_s18 }
 0x557   : > { %9196 = vmatmul.msk.bf16.vlgmr.msra.gmra.mxu0 %vm1410_vm2, %v12977_v25  ;;  %7377 = vrot.lane.b32.xlu1 %v7291_v51, %s9395_s27 }
 0x558   : > { %9197 = vmatmul.msk.bf16.vlgmr.msra.gmra.mxu1 %vm1410_vm2, %v12977_v25  ;;  %v6670_v0 = vpop.permute.xlu2 %6669 }
 0x559   : > { %v13278_v1 = vpop.f32.mrf.mxu0 }
 0x55a   : > { %14843 = vst [vmem:[#allocation103_spill] sm:$0xff] %v13278_v1  ;;  %v13285_v51 = vpop.f32.mrf.mxu2 }
 0x55b   : > { %14845 = vst [vmem:[#allocation44_spill] sm:$0xff] %v13285_v51 }
 0x55e   : > { %7375 = vrot.lane.b32.xlu0 %v7290_v57, %s9395_s27 }
 0x55f   : > { %7620 = vrot.lane.b32.xlu1 %v7540_v37, %s9394_s18 }
 0x560   : > { %v13248_v16 = vpop.permute.xlu2 %7357 }
 0x561   : > { %v7409_v30 = vsel %vm6687_vm5, %v13130_v17, %v13248_v16  ;;  %v13265_v17 = vpop.f32.mrf.mxu1  ;;  %v13301_v23 = vpop.f32.mrf.mxu0 }
 0x562   : > { %v7474_v58 = vmul.f32 %v7409_v30, %v14839_v4  ;;  %v7507_v24 = vmul.f32 %v7409_v30, %v14840_v3  ;;  %14847 = vst [vmem:[#allocation102_spill] sm:$0xff] %v13301_v23  ;;  %v13305_v6 = vpop.f32.mrf.mxu2  ;;  %v14852_v4 = vld [vmem:[#allocation38_spill] sm:$0xff] }
 0x563   : > { %14849 = vst [vmem:[#allocation45_spill] sm:$0xff] %v13305_v6  ;;  %v14866_v6 = vld [vmem:[#allocation98_spill] sm:$0xff] }
 0x564   : > { %v7543_v20 = vpack.c.bf16 %v7507_v24, %v7474_v58 }
 0x566   : > { %7381 = vrot.lane.b32.xlu0 %v7293_v59, %s9395_s27  ;;  %7626 = vrot.lane.b32.xlu2 %v7543_v20, %s9394_s18  ;;  %v14851_v59 = vld [vmem:[#allocation92_spill] sm:$0xff] }
 0x567   : > { %9200 = vmatmul.msk.bf16.vlgmr.msrb.gmra.mxu0 %vm1410_vm2, %v12977_v25  ;;  %v6672_v29 = vpop.permute.xlu1 %6671 }
 0x568   : > { %9201 = vmatmul.msk.bf16.vlgmr.msrb.gmra.mxu1 %vm1410_vm2, %v12977_v25  ;;  %v6712_v43 = vsel %vm6687_vm5, %v6670_v0, %v6672_v29  ;;  %v6713_v22 = vsel %vm6687_vm5, %v6672_v29, %v13210_v9  ;;  %v13287_v15 = vpop.permute.xlu2 %7608 }
 0x569   : > { %7098 = vmatpush.bf16.msra.mxu0 %v6712_v43  ;;  %7112 = vmatpush.bf16.msra.mxu1 %v6713_v22  ;;  %v13283_v52 = vpop.f32.mrf.mxu1  ;;  %v13317_v24 = vpop.f32.mrf.mxu0 }
 0x56a   : > { %14844 = vst [vmem:[#allocation69_spill] sm:$0xff] %v13283_v52  ;;  %v13322_v29 = vpop.f32.mrf.mxu2 }
 0x56b   : > { %14853 = vst [vmem:[#allocation46_spill] sm:$0xff] %v13317_v24 }
 0x56c   : > { %14855 = vst [vmem:[#allocation112_spill] sm:$0xff] %v13322_v29 }
 0x56e   : > { %7379 = vrot.lane.b32.xlu2 %v7292_v11, %s9395_s27 }
 0x56f   : > { %v6668_v32 = vpop.permute.xlu1 %6667 }
 0x570   : > { %v6710_v38 = vsel %vm6687_vm5, %v13142_v45, %v6668_v32  ;;  %v6711_v39 = vsel %vm6687_vm5, %v6668_v32, %v6670_v0  ;;  %v13295_v45 = vpop.f32.mrf.mxu3 }
 0x571   : > { %7070 = vmatpush.bf16.msrb.mxu2 %v6710_v38  ;;  %7084 = vmatpush.bf16.msrb.mxu3 %v6711_v39  ;;  %14846 = vst [vmem:[#allocation24_spill] sm:$0xff] %v13295_v45  ;;  %v13303_v57 = vpop.f32.mrf.mxu1  ;;  %v7362_v40 = vpop.permute.xlu2 %7361  ;;  %v9375_v38 = vld [vmem:[%s14195_s11 + $0xc8] sm:$0x3f] }
 0x572   : > { %14848 = vst [vmem:[#allocation23_spill] sm:$0xff] %v13303_v57  ;;  %v7294_v39 = vperm.slane %v9375_v38, 5 }
 0x574   : > { %9202 = vmatmul.msk.bf16.vlgmr.msrb.gmra.mxu2 %vm1410_vm2, %v12977_v25  ;;  %9203 = vmatmul.msk.bf16.vlgmr.msrb.gmra.mxu3 %vm1410_vm2, %v12977_v25 }
 0x577   : > { %9204 = vmatmul.msk.bf16.vlgmr.msra.gmra.mxu0 %vm1410_vm2, %v12977_v25  ;;  %v13297_v0 = vpop.permute.xlu1 %7606 }
 0x578   : > { %9205 = vmatmul.msk.bf16.vlgmr.msra.gmra.mxu1 %vm1410_vm2, %v12977_v25  ;;  %v13313_v2 = vpop.f32.mrf.mxu3 }
 0x579   : > { %14850 = vst [vmem:[#allocation73_spill] sm:$0xff] %v13313_v2  ;;  %v13320_v20 = vpop.f32.mrf.mxu1  ;;  %v6682_v22 = vpop.permute.xlu2 %6681  ;;  %v14865_v2 = vld [vmem:[#allocation65_spill] sm:$0xff] }
 0x57a   : > { %14854 = vst [vmem:[#allocation107_spill] sm:$0xff] %v13320_v20 }
 0x57f   : > { %v13307_v60 = vpop.permute.xlu1 %7359 }
 0x580   : > { %v7411_v21 = vsel %vm6687_vm5, %v13307_v60, %v7362_v40  ;;  %v13311_v37 = vpop.permute.xlu0 %7610 }
 0x581   : > { %v7476_v30 = vmul.f32 %v7411_v21, %v14851_v59  ;;  %v7509_v58 = vmul.f32 %v7411_v21, %v14852_v4  ;;  %v13329_v21 = vpop.f32.mrf.mxu3  ;;  %v13334_v59 = vpop.f32.mrf.mxu0 }
 0x582   : > { %14856 = vst [vmem:[#allocation28_spill] sm:$0xff] %v13329_v21  ;;  %v13340_v4 = vpop.f32.mrf.mxu1  ;;  %v7603_v38 = vpop.permute.xlu2 %7602 }
 0x583   : > { %v7545_v3 = vpack.c.bf16 %v7509_v58, %v7476_v30  ;;  %14857 = vst [vmem:[#allocation108_spill] sm:$0xff] %v13334_v59 }
 0x584   : > { %14858 = vst [vmem:[#allocation76_spill] sm:$0xff] %v13340_v4 }
 0x585   : > { %7630 = vrot.lane.b32.xlu2 %v7545_v3, %s9394_s18  ;;  %v13342_v3 = vpop.f32.mrf.mxu2 }
 0x586   : > { %14859 = vst [vmem:[#allocation49_spill] sm:$0xff] %v13342_v3 }
 0x587   : > { %v6678_v43 = vpop.permute.xlu1 %6677 }
 0x588   : > { %v6680_v28 = vpop.permute.xlu0 %6679 }
 0x589   : > { %v6716_v11 = vsel %vm6687_vm5, %v6678_v43, %v6680_v28  ;;  %v6717_v32 = vsel %vm6687_vm5, %v6680_v28, %v6682_v22  ;;  %v13353_v4 = vpop.f32.mrf.mxu0 }
 0x58a   : > { %7154 = vmatpush.bf16.msrb.mxu0 %v6716_v11  ;;  %7168 = vmatpush.bf16.msrb.mxu1 %v6717_v32  ;;  %v13347_v32 = vpop.f32.mrf.mxu3  ;;  %14861 = vst [vmem:[#allocation47_spill] sm:$0xff] %v13353_v4 }
 0x58b   : > { %14860 = vst [vmem:[#allocation72_spill] sm:$0xff] %v13347_v32 }
 0x58d   : > { %7383 = vrot.lane.b32.xlu2 %v7294_v39, %s9395_s27  ;;  %9208 = vmatmul.msk.bf16.vlgmr.msrb.gmra.mxu0 %vm1410_vm2, %v12977_v25  ;;  %v13364_v29 = vpop.f32.mrf.mxu2 }
 0x58e   : > { %9209 = vmatmul.msk.bf16.vlgmr.msrb.gmra.mxu1 %vm1410_vm2, %v12977_v25  ;;  %14867 = vst [vmem:[#allocation109_spill] sm:$0xff] %v13364_v29 }
 0x58f   : > { %v13338_v30 = vpop.permute.xlu1 %7365 }
 0x590   : > { %v6676_v58 = vpop.permute.xlu0 %6675 }
 0x591   : > { %v6714_v28 = vsel %vm6687_vm5, %v13210_v9, %v6676_v58  ;;  %v6715_v11 = vsel %vm6687_vm5, %v6676_v58, %v6678_v43  ;;  %v13358_v43 = vpop.f32.mrf.mxu1  ;;  %v14863_v58 = vld [vmem:[#allocation16_spill] sm:$0xff] }
 0x592   : > { %7126 = vmatpush.bf16.msra.mxu2 %v6714_v28  ;;  %7140 = vmatpush.bf16.msra.mxu3 %v6715_v11  ;;  %14862 = vst [vmem:[#allocation79_spill] sm:$0xff] %v13358_v43  ;;  %v14864_v11 = vld [vmem:[#allocation42_spill] sm:$0xff] }
 0x595   : > { %9206 = vmatmul.msk.bf16.vlgmr.msra.gmra.mxu2 %vm1410_vm2, %v12977_v25  ;;  %9207 = vmatmul.msk.bf16.vlgmr.msra.gmra.mxu3 %vm1410_vm2, %v12977_v25 }
 0x597   : > { %v6686_v39 = vpop.permute.xlu1 %6685 }
 0x598   : > { %v7364_v3 = vpop.permute.xlu0 %7363 }
 0x599   : > { %v7412_v59 = vsel %vm6687_vm5, %v7362_v40, %v7364_v3  ;;  %v7413_v9 = vsel %vm6687_vm5, %v7364_v3, %v13338_v30  ;;  %v9376_v40 = vld [vmem:[%s14195_s11 + $0xe0] sm:$0x3f] }
 0x59a   : > { %v7477_v28 = vmul.f32 %v7412_v59, %v14863_v58  ;;  %v7478_v32 = vmul.f32 %v7413_v9, %v14864_v11  ;;  %v7510_v21 = vmul.f32 %v7412_v59, %v14865_v2  ;;  %v7511_v57 = vmul.f32 %v7413_v9, %v14866_v6  ;;  %v13373_v58 = vpop.f32.mrf.mxu3  ;;  %v13392_v9 = vpop.f32.mrf.mxu1 }
 0x59b   : > { %v7297_v20 = vperm.slane %v9376_v40, 5  ;;  %14868 = vst [vmem:[#allocation29_spill] sm:$0xff] %v13373_v58  ;;  %v7671_v59 = vsel %vm5926_vm4, %v13297_v0, %v13287_v15 }
 0x59c   : > { %v7546_v23 = vpack.c.bf16 %v7510_v21, %v7477_v28  ;;  %v7547_v4 = vpack.c.bf16 %v7511_v57, %v7478_v32  ;;  %v13381_v32 = vpop.f32.mrf.mxu0  ;;  %14870 = vst [vmem:[#allocation78_spill] sm:$0xff] %v13392_v9  ;;  %v13397_v28 = vpop.f32.mrf.mxu2 }
 0x59d   : > { %7389 = vrot.lane.b32.xlu2 %v7297_v20, %s9395_s27  ;;  %14869 = vst [vmem:[#allocation48_spill] sm:$0xff] %v13381_v32  ;;  %v9377_v20 = vld [vmem:[%s14195_s11 + $0xd0] sm:$0x3f] }
 0x59e   : > { %7632 = vrot.lane.b32.xlu0 %v7546_v23, %s9394_s18  ;;  %7634 = vrot.lane.b32.xlu1 %v7547_v4, %s9394_s18  ;;  %v7672_v23 = vsel %vm5926_vm4, %v13287_v15, %v13311_v37  ;;  %v7295_v4 = vperm.slane %v9377_v20, 5  ;;  %v7410_v15 = vsel %vm6687_vm5, %v13248_v16, %v13307_v60  ;;  %14871 = vst [vmem:[#allocation110_spill] sm:$0xff] %v13397_v28  ;;  %v14873_v16 = vld [vmem:[#allocation64_spill] sm:$0xff] }
 0x59f   : > { %v7508_v60 = vmul.f32 %v7410_v15, %v14873_v16 }
 0x5a0   : > { %v13371_v3 = vpop.permute.xlu2 %7616  ;;  %v6684_v6 = vpop.permute.xlu0 %6683 }
 0x5a1   : > { %v7615_v2 = vpop.permute.xlu1 %7614  ;;  %v6718_v21 = vsel %vm6687_vm5, %v6682_v22, %v6684_v6  ;;  %v6719_v57 = vsel %vm6687_vm5, %v6684_v6, %v6686_v39  ;;  %v9378_v22 = vld [vmem:[%s14195_s11 + $0xd8] sm:$0x3f]  ;;  %v14872_v6 = vld [vmem:[#allocation67_spill] sm:$0xff] }
 0x5a2   : > { %7182 = vmatpush.bf16.msrb.mxu2 %v6718_v21  ;;  %7196 = vmatpush.bf16.msrb.mxu3 %v6719_v57  ;;  %v7296_v39 = vperm.slane %v9378_v22, 5  ;;  %v7675_v11 = vsel %vm5926_vm4, %v7615_v2, %v13371_v3  ;;  %v7475_v21 = vmul.f32 %v7410_v15, %v14872_v6 }
 0x5a4   : > { %v7544_v16 = vpack.c.bf16 %v7508_v60, %v7475_v21 }
 0x5a5   : > { %9210 = vmatmul.msk.bf16.vlgmr.msrb.gmra.mxu2 %vm1410_vm2, %v12977_v25  ;;  %9211 = vmatmul.msk.bf16.vlgmr.msrb.gmra.mxu3 %vm1410_vm2, %v12977_v25 }
 0x5a6   : > { %7771 = vmatpush.bf16.msra.mxu2 %v7671_v59  ;;  %7785 = vmatpush.bf16.msra.mxu3 %v7672_v23  ;;  %v13409_v59 = vpop.f32.mrf.mxu3 }
 0x5a7   : > { %7385 = vrot.lane.b32.xlu0 %v7295_v4, %s9395_s27  ;;  %7387 = vrot.lane.b32.xlu1 %v7296_v39, %s9395_s27  ;;  %14874 = vst [vmem:[#allocation26_spill] sm:$0xff] %v13409_v59  ;;  %v13417_v4 = vld [vmem:[%s14191_s7 + $0x10] sm:$0xff]  ;;  %v13422_v59 = vpop.f32.mrf.mxu0 }
 0x5a8   : > { %v7370_v40 = vpop.permute.xlu2 %7369  ;;  %v7605_v57 = vpop.permute.xlu0 %7604  ;;  %v14875_v39 = vld [vmem:[#allocation80_spill] sm:$0xff]  ;;  %14877 = vst [vmem:[#allocation106_spill] sm:$0xff] %v13422_v59 }
 0x5a9   : > { %v7669_v23 = vsel %vm5926_vm4, %v7603_v38, %v7605_v57  ;;  %v7670_v25 = vsel %vm5926_vm4, %v7605_v57, %v13297_v0  ;;  %v7368_v20 = vpop.permute.xlu1 %7367  ;;  %v13428_v0 = vpop.f32.mrf.mxu1 }
 0x5aa   : > { %7827 = vmatpush.bf16.msrb.mxu2 %v7675_v11  ;;  %v7415_v22 = vsel %vm6687_vm5, %v7368_v20, %v7370_v40  ;;  %7743 = vmatpush.bf16.msra.mxu0 %v7669_v23  ;;  %v14876_v11 = vld [vmem:[#allocation20_spill] sm:$0xff]  ;;  %14878 = vst [vmem:[#allocation74_spill] sm:$0xff] %v13428_v0  ;;  %v13431_v23 = vpop.f32.mrf.mxu2 }
 0x5ab   : > { %7757 = vmatpush.bf16.msra.mxu1 %v7670_v25  ;;  %v7480_v15 = vmul.f32 %v7415_v22, %v14875_v39  ;;  %v7513_v6 = vmul.f32 %v7415_v22, %v14876_v11  ;;  %14879 = vst [vmem:[#allocation95_spill] sm:$0xff] %v13431_v23  ;;  %v9379_v22 = vld [vmem:[%s14195_s11 + $0xe8] sm:$0x3f] }
 0x5ac   : > { %v7298_v39 = vperm.slane %v9379_v22, 5 }
 0x5ad   : > { %v7549_v38 = vpack.c.bf16 %v7513_v6, %v7480_v15  ;;  %9218 = vmatmul.msk.bf16.vlgmr.msra.gmra.mxu0 %vm1410_vm2, %v13417_v4 }
 0x5ae   : > { %9219 = vmatmul.msk.bf16.vlgmr.msra.gmra.mxu1 %vm1410_vm2, %v13417_v4  ;;  %v13437_v25 = vpop.f32.mrf.mxu3 }
 0x5af   : > { %7628 = vrot.lane.b32.xlu0 %v7544_v16, %s9394_s18  ;;  %7638 = vrot.lane.b32.xlu1 %v7549_v38, %s9394_s18  ;;  %14880 = vst [vmem:[#allocation85_spill] sm:$0xff] %v13437_v25  ;;  %v13446_v15 = vpop.f32.mrf.mxu0 }
 0x5b0   : > { %v7613_v57 = vpop.permute.xlu2 %7612  ;;  %14881 = vst [vmem:[#allocation51_spill] sm:$0xff] %v13446_v15 }
 0x5b1   : > { %v7673_v21 = vsel %vm5926_vm4, %v13311_v37, %v7613_v57  ;;  %v7674_v60 = vsel %vm5926_vm4, %v7613_v57, %v7615_v2  ;;  %v7414_v37 = vsel %vm6687_vm5, %v13338_v30, %v7368_v20  ;;  %v7374_v6 = vpop.permute.xlu1 %7373  ;;  %v13453_v16 = vpop.f32.mrf.mxu1  ;;  %v14884_v57 = vld [vmem:[#allocation105_spill] sm:$0xff] }
 0x5b2   : > { %7799 = vmatpush.bf16.msrb.mxu0 %v7673_v21  ;;  %7813 = vmatpush.bf16.msrb.mxu1 %v7674_v60  ;;  %14882 = vst [vmem:[#allocation89_spill] sm:$0xff] %v13453_v16  ;;  %v13455_v38 = vpop.f32.mrf.mxu2  ;;  %v7479_v21 = vmul.f32 %v7414_v37, %v14884_v57  ;;  %v14885_v60 = vld [vmem:[#allocation68_spill] sm:$0xff]  ;;  %v14889_v57 = vld [vmem:[#allocation19_spill] sm:$0xff]  ;;  %v14891_v16 = vld [vmem:[#allocation41_spill] sm:$0xff] }
 0x5b3   : > { %14883 = vst [vmem:[#allocation115_spill] sm:$0xff] %v13455_v38  ;;  %v7512_v22 = vmul.f32 %v7414_v37, %v14885_v60 }
 0x5b5   : > { %9220 = vmatmul.msk.bf16.vlgmr.msra.gmra.mxu2 %vm1410_vm2, %v13417_v4  ;;  %9221 = vmatmul.msk.bf16.vlgmr.msra.gmra.mxu3 %vm1410_vm2, %v13417_v4  ;;  %v7548_v25 = vpack.c.bf16 %v7512_v22, %v7479_v21  ;;  %v14890_v21 = vld [vmem:[#allocation66_spill] sm:$0xff] }
 0x5b6   : > { %v13459_v15 = vpop.f32.mrf.mxu3 }
 0x5b7   : > { %7391 = vrot.lane.b32.xlu1 %v7298_v39, %s9395_s27  ;;  %14886 = vst [vmem:[#allocation31_spill] sm:$0xff] %v13459_v15  ;;  %v13468_v39 = vpop.f32.mrf.mxu0 }
 0x5b8   : > { %v7619_v2 = vpop.permute.xlu0 %7618  ;;  %14887 = vst [vmem:[#allocation7_spill] sm:$0xff] %v13468_v39 }
 0x5b9   : > { %v7676_v11 = vsel %vm5926_vm4, %v13371_v3, %v7619_v2  ;;  %v13476_v9 = vpop.f32.mrf.mxu1 }
 0x5ba   : > { %7841 = vmatpush.bf16.msrb.mxu3 %v7676_v11  ;;  %v14888_v11 = vld [vmem:[#allocation21_spill] sm:$0xff]  ;;  %14892 = vst [vmem:[#allocation27_spill] sm:$0xff] %v13476_v9 }
 0x5bd   : > { %9222 = vmatmul.msk.bf16.vlgmr.msrb.gmra.mxu0 %vm1410_vm2, %v13417_v4 }
 0x5be   : > { %9223 = vmatmul.msk.bf16.vlgmr.msrb.gmra.mxu1 %vm1410_vm2, %v13417_v4 }
 0x5bf   : > { %7636 = vrot.lane.b32.xlu1 %v7548_v25, %s9394_s18 }
 0x5c0   : > { %v7372_v30 = vpop.permute.xlu0 %7371  ;;  %v13474_v38 = vpop.permute.xlu2 %7626 }
 0x5c1   : > { %v7416_v3 = vsel %vm6687_vm5, %v7370_v40, %v7372_v30  ;;  %v7417_v20 = vsel %vm6687_vm5, %v7372_v30, %v7374_v6  ;;  %v7625_v28 = vpop.permute.xlu1 %7624  ;;  %v13480_v30 = vpop.f32.mrf.mxu2 }
 0x5c2   : > { %v7481_v37 = vmul.f32 %v7416_v3, %v14888_v11  ;;  %v7482_v60 = vmul.f32 %v7417_v20, %v14889_v57  ;;  %v7514_v22 = vmul.f32 %v7416_v3, %v14890_v21  ;;  %v7515_v15 = vmul.f32 %v7417_v20, %v14891_v16  ;;  %14893 = vst [vmem:[#allocation114_spill] sm:$0xff] %v13480_v30  ;;  %v13488_v3 = vpop.f32.mrf.mxu3  ;;  %v9380_v20 = vld [vmem:[%s14195_s11 + $0xf0] sm:$0x3f]  ;;  %v13497_v21 = vpop.f32.mrf.mxu0 }
 0x5c3   : > { %v7680_v40 = vsel %vm5926_vm4, %v7625_v28, %v13474_v38  ;;  %14894 = vst [vmem:[#allocation50_spill] sm:$0xff] %v13488_v3  ;;  %v7299_v11 = vperm.slane %v9380_v20, 5  ;;  %v14899_v20 = vld [vmem:[#allocation71_spill] sm:$0xff]  ;;  %v14900_v3 = vld [vmem:[#allocation101_spill] sm:$0xff] }
 0x5c4   : > { %v7550_v25 = vpack.c.bf16 %v7514_v22, %v7481_v37  ;;  %v7551_v23 = vpack.c.bf16 %v7515_v15, %v7482_v60  ;;  %7897 = vmatpush.bf16.msra.mxu3 %v7680_v40  ;;  %14895 = vst [vmem:[#allocation55_spill] sm:$0xff] %v13497_v21  ;;  %v14898_v40 = vld [vmem:[#allocation22_spill] sm:$0xff]  ;;  %v14901_v21 = vld [vmem:[#allocation97_spill] sm:$0xff] }
 0x5c5   : > { %9224 = vmatmul.msk.bf16.vlgmr.msrb.gmra.mxu2 %vm1410_vm2, %v13417_v4  ;;  %9225 = vmatmul.msk.bf16.vlgmr.msrb.gmra.mxu3 %vm1410_vm2, %v13417_v4 }
 0x5c6   : > { %7640 = vrot.lane.b32.xlu2 %v7550_v25, %s9394_s18  ;;  %7642 = vrot.lane.b32.xlu0 %v7551_v23, %s9394_s18  ;;  %v9381_v23 = vld [vmem:[%s14195_s11 + $0xf8] sm:$0x3f]  ;;  %v13500_v25 = vpop.f32.mrf.mxu1 }
 0x5c7   : > { %v7300_v37 = vperm.slane %v9381_v23, 5  ;;  %14896 = vst [vmem:[#allocation116_spill] sm:$0xff] %v13500_v25 }
 0x5c8   : > { %v7623_v16 = vpop.permute.xlu0 %7622  ;;  %v7380_v57 = vpop.permute.xlu2 %7379 }
 0x5c9   : > { %v7679_v15 = vsel %vm5926_vm4, %v7623_v16, %v7625_v28  ;;  %v7378_v60 = vpop.permute.xlu1 %7377  ;;  %v13504_v28 = vpop.f32.mrf.mxu2 }
 0x5ca   : > { %7883 = vmatpush.bf16.msra.mxu2 %v7679_v15  ;;  %v7420_v22 = vsel %vm6687_vm5, %v7378_v60, %v7380_v57  ;;  %14897 = vst [vmem:[#allocation75_spill] sm:$0xff] %v13504_v28  ;;  %v13511_v0 = vpop.f32.mrf.mxu3 }
 0x5cb   : > { %v7485_v15 = vmul.f32 %v7420_v22, %v14898_v40  ;;  %v7518_v9 = vmul.f32 %v7420_v22, %v14899_v20  ;;  %14902 = vst [vmem:[#allocation113_spill] sm:$0xff] %v13511_v0  ;;  %v14909_v22 = vld [vmem:[#allocation70_spill] sm:$0xff] }
 0x5cd   : > { %v7554_v59 = vpack.c.bf16 %v7518_v9, %v7485_v15  ;;  %v14905_v9 = vld [vmem:[#allocation40_spill] sm:$0xff] }
 0x5ce   : > { %7393 = vrot.lane.b32.xlu2 %v7299_v11, %s9395_s27  ;;  %7395 = vrot.lane.b32.xlu0 %v7300_v37, %s9395_s27 }
 0x5d0   : > { %v7376_v39 = vpop.permute.xlu0 %7375 }
 0x5d1   : > { %v7419_v23 = vsel %vm6687_vm5, %v7376_v39, %v7378_v60  ;;  %v7621_v25 = vpop.permute.xlu1 %7620  ;;  %v7418_v40 = vsel %vm6687_vm5, %v7374_v6, %v7376_v39  ;;  %v13532_v39 = vpop.f32.mrf.mxu2  ;;  %v14908_v60 = vld [vmem:[#allocation77_spill] sm:$0xff] }
 0x5d2   : > { %v7484_v30 = vmul.f32 %v7419_v23, %v14900_v3  ;;  %v7517_v32 = vmul.f32 %v7419_v23, %v14901_v21  ;;  %v7677_v37 = vsel %vm5926_vm4, %v7619_v2, %v7621_v25  ;;  %v7678_v28 = vsel %vm5926_vm4, %v7621_v25, %v7623_v16  ;;  %v13518_v3 = vpop.f32.mrf.mxu0  ;;  %14907 = vst [vmem:[#allocation82_spill] sm:$0xff] %v13532_v39  ;;  %v13537_v20 = vpop.f32.mrf.mxu3 }
 0x5d3   : > { %7855 = vmatpush.bf16.msra.mxu0 %v7677_v37  ;;  %7869 = vmatpush.bf16.msra.mxu1 %v7678_v28  ;;  %14903 = vst [vmem:[#allocation30_spill] sm:$0xff] %v13518_v3  ;;  %v7483_v2 = vmul.f32 %v7418_v40, %v14905_v9 }
 0x5d4   : > { %v7553_v11 = vpack.c.bf16 %v7517_v32, %v7484_v30  ;;  %v13524_v32 = vpop.f32.mrf.mxu1  ;;  %v14906_v30 = vld [vmem:[#allocation63_spill] sm:$0xff]  ;;  %14910 = vst [vmem:[#allocation4_spill] sm:$0xff] %v13537_v20 }
 0x5d5   : > { %9228 = vmatmul.msk.bf16.vlgmr.msra.gmra.mxu2 %vm1410_vm2, %v13417_v4  ;;  %9229 = vmatmul.msk.bf16.vlgmr.msra.gmra.mxu3 %vm1410_vm2, %v13417_v4  ;;  %14904 = vst [vmem:[#allocation111_spill] sm:$0xff] %v13524_v32  ;;  %v7516_v6 = vmul.f32 %v7418_v40, %v14906_v30 }
 0x5d6   : > { %7648 = vrot.lane.b32.xlu0 %v7554_v59, %s9394_s18  ;;  %7646 = vrot.lane.b32.xlu2 %v7553_v11, %s9394_s18 }
 0x5d7   : > { %9226 = vmatmul.msk.bf16.vlgmr.msra.gmra.mxu0 %vm1410_vm2, %v13417_v4  ;;  %9227 = vmatmul.msk.bf16.vlgmr.msra.gmra.mxu1 %vm1410_vm2, %v13417_v4  ;;  %v7552_v28 = vpack.c.bf16 %v7516_v6, %v7483_v2 }
 0x5d8   : > { %v7382_v59 = vpop.permute.xlu0 %7381 }
 0x5d9   : > { %v7421_v16 = vsel %vm6687_vm5, %v7380_v57, %v7382_v59  ;;  %v13545_v37 = vpop.f32.mrf.mxu2 }
 0x5da   : > { %v7486_v21 = vmul.f32 %v7421_v16, %v14908_v60  ;;  %v7519_v25 = vmul.f32 %v7421_v16, %v14909_v22  ;;  %v13541_v23 = vpop.f32.mrf.mxu0  ;;  %v13547_v40 = vpop.f32.mrf.mxu3 }
 0x5dc   : > { %v7555_v15 = vpack.c.bf16 %v7519_v25, %v7486_v21  ;;  %v13543_v11 = vpop.f32.mrf.mxu1 }
 0x5de   : > { %7650 = vrot.lane.b32.xlu1 %v7555_v15, %s9394_s18  ;;  %7644 = vrot.lane.b32.xlu2 %v7552_v28, %s9394_s18 }
 0x5df   : > { %v7631_v15 = vpop.permute.xlu2 %7630 }
 0x5e1   : > { %v13553_v2 = vpop.f32.mrf.mxu2 }
 0x5e2   : > { %v13549_v57 = vpop.f32.mrf.mxu0  ;;  %v13555_v30 = vpop.f32.mrf.mxu3 }
 0x5e4   : > { %v13551_v9 = vpop.f32.mrf.mxu1 }
 0x5e7   : > { %v7384_v39 = vpop.permute.xlu2 %7383 }
 0x5e9   : > { %v13561_v60 = vpop.f32.mrf.mxu2 }
 0x5ea   : > { %v13557_v6 = vpop.f32.mrf.mxu0  ;;  %v13563_v21 = vpop.f32.mrf.mxu3 }
 0x5ec   : > { %v13559_v16 = vpop.f32.mrf.mxu1 }
 0x5f1   : > { %v13569_v28 = vpop.f32.mrf.mxu2 }
 0x5f2   : > { %v13565_v22 = vpop.f32.mrf.mxu0  ;;  %14911 = vst [vmem:[#allocation32_spill] sm:$0xff] %v13569_v28  ;;  %v13571_v20 = vpop.f32.mrf.mxu3 }
 0x5f3   : > { %14912 = vst [vmem:[#allocation5_spill] sm:$0xff] %v13571_v20 }
 0x5f4   : > { %v13567_v25 = vpop.f32.mrf.mxu1 }
 0x5f9   : > { %v13577_v3 = vpop.f32.mrf.mxu2 }
 0x5fa   : > { %v13573_v0 = vpop.f32.mrf.mxu0  ;;  %14914 = vst [vmem:[#allocation3_spill] sm:$0xff] %v13577_v3  ;;  %v13579_v58 = vpop.f32.mrf.mxu3 }
 0x5fb   : > { %14915 = vst [vmem:[#allocation96_spill] sm:$0xff] %v13579_v58  ;;  %v7390_v3 = vpop.permute.xlu2 %7389 }
 0x5fc   : > { %v13575_v32 = vpop.f32.mrf.mxu1 }
 0x5fd   : > { %14913 = vst [vmem:[#allocation84_spill] sm:$0xff] %v13575_v32 }
 0x601   : > { %v13590_v49 = vpop.f32.mrf.mxu2 }
 0x602   : > { %v13583_v24 = vpop.f32.mrf.mxu0  ;;  %14918 = vst [vmem:[#allocation10_spill] sm:$0xff] %v13590_v49  ;;  %v13596_v58 = vpop.f32.mrf.mxu3 }
 0x603   : > { %14916 = vst [vmem:[#allocation56_spill] sm:$0xff] %v13583_v24 }
 0x604   : > { %v13588_v63 = vpop.f32.mrf.mxu1  ;;  %14919 = vst [vmem:[#allocation83_spill] sm:$0xff] %v13596_v58 }
 0x605   : > { %14917 = vst [vmem:[#allocation33_spill] sm:$0xff] %v13588_v63 }
 0x60a   : > { %v13602_v49 = vpop.f32.mrf.mxu0 }
 0x60b   : > { %14920 = vst [vmem:[#allocation9_spill] sm:$0xff] %v13602_v49  ;;  %v6821_v49 = vadd.f32 %v13557_v6, %v13212_v19  ;;  %v6863_v19 = vadd.f32 %v13563_v21, %v13233_v13  ;;  %v14971_v13 = vld [vmem:[#allocation3_spill] sm:$0xff] }
 0x60c   : > { %v13607_v28 = vpop.f32.mrf.mxu1  ;;  %v14969_v6 = vld [vmem:[#allocation33_spill] sm:$0xff] }
 0x60d   : > { %14921 = vst [vmem:[#allocation36_spill] sm:$0xff] %v13607_v28 }
 0x610   : > { %v7633_v29 = vpop.permute.xlu0 %7632  ;;  %v13581_v43 = vpop.permute.xlu1 %7634 }
 0x611   : > { %v7683_v45 = vsel %vm5926_vm4, %v7631_v15, %v7633_v29  ;;  %v7684_v51 = vsel %vm5926_vm4, %v7633_v29, %v13581_v43 }
 0x612   : > { %7939 = vmatpush.bf16.msrb.mxu2 %v7683_v45  ;;  %7953 = vmatpush.bf16.msrb.mxu3 %v7684_v51 }
 0x615   : > { %9232 = vmatmul.msk.bf16.vlgmr.msrb.gmra.mxu2 %vm1410_vm2, %v13417_v4  ;;  %9233 = vmatmul.msk.bf16.vlgmr.msrb.gmra.mxu3 %vm1410_vm2, %v13417_v4 }
 0x619   : > { %v7386_v52 = vpop.permute.xlu0 %7385  ;;  %v7388_v1 = vpop.permute.xlu1 %7387 }
 0x61a   : > { %v7423_v24 = vsel %vm6687_vm5, %v7384_v39, %v7386_v52  ;;  %v7424_v51 = vsel %vm6687_vm5, %v7386_v52, %v7388_v1  ;;  %v7425_v63 = vsel %vm6687_vm5, %v7388_v1, %v7390_v3 }
 0x61b   : > { %v7488_v29 = vmul.f32 %v7423_v24, %v12757_v18  ;;  %v7521_v45 = vmul.f32 %v7423_v24, %v12763_v55  ;;  %v7489_v20 = vmul.f32 %v7424_v51, %v12760_v53  ;;  %v7522_v44 = vmul.f32 %v7424_v51, %v12766_v50  ;;  %v13612_v55 = vpop.f32.mrf.mxu2  ;;  %v14923_v53 = vld [vmem:[#allocation99_spill] sm:$0xff]  ;;  %v14924_v51 = vld [vmem:[#allocation104_spill] sm:$0xff] }
 0x61c   : > { %v7490_v47 = vmul.f32 %v7425_v63, %v12952_v54  ;;  %v7523_v32 = vmul.f32 %v7425_v63, %v12955_v14  ;;  %v7422_v18 = vsel %vm6687_vm5, %v7382_v59, %v7384_v39  ;;  %14922 = vst [vmem:[#allocation6_spill] sm:$0xff] %v13612_v55  ;;  %v13631_v59 = vpop.f32.mrf.mxu1  ;;  %v6765_v55 = vadd.f32 %v13541_v23, %v13151_v61 }
 0x61d   : > { %v7557_v58 = vpack.c.bf16 %v7521_v45, %v7488_v29  ;;  %v7558_v52 = vpack.c.bf16 %v7522_v44, %v7489_v20  ;;  %v7487_v50 = vmul.f32 %v7422_v18, %v14923_v53  ;;  %v7520_v28 = vmul.f32 %v7422_v18, %v14924_v51  ;;  %v13619_v29 = vpop.f32.mrf.mxu3  ;;  %14926 = vst [vmem:[#allocation54_spill] sm:$0xff] %v13631_v59  ;;  %v14977_v59 = vld [vmem:[#allocation83_spill] sm:$0xff] }
 0x61e   : > { %v7559_v24 = vpack.c.bf16 %v7523_v32, %v7490_v47  ;;  %14925 = vst [vmem:[#allocation94_spill] sm:$0xff] %v13619_v29  ;;  %v13625_v32 = vpop.f32.mrf.mxu0  ;;  %v6835_v61 = vadd.f32 %v13559_v16, %v13217_v5  ;;  %v6877_v5 = vadd.f32 %v13573_v0, %v13258_v42  ;;  %v14972_v42 = vld [vmem:[#allocation25_spill] sm:$0xff]  ;;  %v14973_v0 = vld [vmem:[#allocation96_spill] sm:$0xff] }
 0x61f   : > { %7654 = vrot.lane.b32.xlu0 %v7557_v58, %s9394_s18  ;;  %7656 = vrot.lane.b32.xlu1 %v7558_v52, %s9394_s18  ;;  %v7556_v58 = vpack.c.bf16 %v7520_v28, %v7487_v50 }
 0x620   : > { %v7641_v1 = vpop.permute.xlu2 %7640  ;;  %7658 = vrot.lane.b32.xlu2 %v7559_v24, %s9394_s18 }
 0x621   : > { %v7629_v54 = vpop.permute.xlu0 %7628  ;;  %v7639_v47 = vpop.permute.xlu1 %7638 }
 0x622   : > { %v7681_v14 = vsel %vm5926_vm4, %v13474_v38, %v7629_v54  ;;  %v7682_v44 = vsel %vm5926_vm4, %v7629_v54, %v7631_v15  ;;  %v7687_v63 = vsel %vm5926_vm4, %v7639_v47, %v7641_v1 }
 0x623   : > { %7911 = vmatpush.bf16.msrb.mxu0 %v7681_v14  ;;  %7925 = vmatpush.bf16.msrb.mxu1 %v7682_v44  ;;  %v13636_v39 = vpop.f32.mrf.mxu2 }
 0x624   : > { %7995 = vmatpush.bf16.msra.mxu2 %v7687_v63  ;;  %14927 = vst [vmem:[#allocation90_spill] sm:$0xff] %v13636_v39  ;;  %v13647_v51 = vpop.f32.mrf.mxu1 }
 0x625   : > { %v13639_v15 = vpop.f32.mrf.mxu3  ;;  %14930 = vst [vmem:[#allocation8_spill] sm:$0xff] %v13647_v51 }
 0x626   : > { %9230 = vmatmul.msk.bf16.vlgmr.msrb.gmra.mxu0 %vm1410_vm2, %v13417_v4  ;;  %9231 = vmatmul.msk.bf16.vlgmr.msrb.gmra.mxu1 %vm1410_vm2, %v13417_v4  ;;  %14928 = vst [vmem:[#allocation53_spill] sm:$0xff] %v13639_v15  ;;  %v13644_v50 = vpop.f32.mrf.mxu0 }
 0x627   : > { %9236 = vmatmul.msk.bf16.vlgmr.msra.gmra.mxu2 %vm1410_vm2, %v13417_v4  ;;  %7652 = vrot.lane.b32.xlu0 %v7556_v58, %s9394_s18  ;;  %14929 = vst [vmem:[#allocation34_spill] sm:$0xff] %v13644_v50 }
 0x628   : > { %v7394_v38 = vpop.permute.xlu2 %7393 }
 0x629   : > { %v7392_v20 = vpop.permute.xlu1 %7391 }
 0x62a   : > { %v7427_v28 = vsel %vm6687_vm5, %v7392_v20, %v7394_v38  ;;  %v7426_v24 = vsel %vm6687_vm5, %v7390_v3, %v7392_v20 }
 0x62b   : > { %v7492_v45 = vmul.f32 %v7427_v28, %v12877_v41  ;;  %v7525_v18 = vmul.f32 %v7427_v28, %v12880_v31  ;;  %v13649_v54 = vpop.f32.mrf.mxu2  ;;  %v7491_v14 = vmul.f32 %v7426_v24, %v12961_v8  ;;  %v7524_v44 = vmul.f32 %v7426_v24, %v12964_v56 }
 0x62c   : > { %14931 = vst [vmem:[#allocation86_spill] sm:$0xff] %v13649_v54 }
 0x62d   : > { %v7561_v52 = vpack.c.bf16 %v7525_v18, %v7492_v45  ;;  %v13656_v3 = vpop.f32.mrf.mxu3  ;;  %v7560_v58 = vpack.c.bf16 %v7524_v44, %v7491_v14  ;;  %v13668_v45 = vpop.f32.mrf.mxu1 }
 0x62e   : > { %14932 = vst [vmem:[#allocation52_spill] sm:$0xff] %v13656_v3  ;;  %v13666_v28 = vpop.f32.mrf.mxu0 }
 0x62f   : > { %7662 = vrot.lane.b32.xlu1 %v7561_v52, %s9394_s18  ;;  %14933 = vst [vmem:[#allocation37_spill] sm:$0xff] %v13666_v28 }
 0x630   : > { %v7647_v53 = vpop.permute.xlu2 %7646  ;;  %14934 = vst [vmem:[#allocation57_spill] sm:$0xff] %v13668_v45 }
 0x631   : > { %v7637_v63 = vpop.permute.xlu1 %7636 }
 0x632   : > { %v7685_v41 = vsel %vm5926_vm4, %v13581_v43, %v7637_v63  ;;  %v7686_v31 = vsel %vm5926_vm4, %v7637_v63, %v7639_v47 }
 0x633   : > { %7967 = vmatpush.bf16.msra.mxu0 %v7685_v41  ;;  %7981 = vmatpush.bf16.msra.mxu1 %v7686_v31  ;;  %v13670_v18 = vpop.f32.mrf.mxu2 }
 0x634   : > { %14935 = vst [vmem:[#allocation91_spill] sm:$0xff] %v13670_v18 }
 0x635   : > { %v13678_v44 = vpop.f32.mrf.mxu3 }
 0x636   : > { %9234 = vmatmul.msk.bf16.vlgmr.msra.gmra.mxu0 %vm1410_vm2, %v13417_v4  ;;  %9235 = vmatmul.msk.bf16.vlgmr.msra.gmra.mxu1 %vm1410_vm2, %v13417_v4  ;;  %14936 = vst [vmem:[#allocation60_spill] sm:$0xff] %v13678_v44 }
 0x637   : > { %7660 = vrot.lane.b32.xlu1 %v7560_v58, %s9394_s18 }
 0x638   : > { %v7643_v8 = vpop.permute.xlu0 %7642  ;;  %v7645_v20 = vpop.permute.xlu2 %7644 }
 0x639   : > { %v7688_v56 = vsel %vm5926_vm4, %v7641_v1, %v7643_v8  ;;  %v7689_v43 = vsel %vm5926_vm4, %v7643_v8, %v7645_v20  ;;  %v7690_v47 = vsel %vm5926_vm4, %v7645_v20, %v7647_v53  ;;  %v8357_v1 = vld [vmem:[%s14194_s10] sm:$0xff]  ;;  %v13682_v8 = vpop.f32.mrf.mxu0  ;;  %v13685_v20 = vpop.f32.mrf.mxu1 }
 0x63a   : > { %8009 = vmatpush.bf16.msra.mxu3 %v7688_v56  ;;  %8023 = vmatpush.bf16.msrb.mxu0 %v7689_v43  ;;  %14937 = vst [vmem:[#allocation88_spill] sm:$0xff] %v13682_v8  ;;  %v8248_v43 = vld [vmem:[%s14192_s8] sm:$0xff] }
 0x63b   : > { %8037 = vmatpush.bf16.msrb.mxu1 %v7690_v47  ;;  %14938 = vst [vmem:[#allocation14_spill] sm:$0xff] %v13685_v20  ;;  %v13688_v56 = vpop.f32.mrf.mxu2 }
 0x63c   : > { %14939 = vst [vmem:[#allocation58_spill] sm:$0xff] %v13688_v56 }
 0x63d   : > { %9237 = vmatmul.msk.bf16.vlgmr.msra.gmra.mxu3 %vm1410_vm2, %v13417_v4  ;;  %v13701_v47 = vpop.f32.mrf.mxu3 }
 0x63e   : > { %14940 = vst [vmem:[#allocation18_spill] sm:$0xff] %v13701_v47 }
 0x63f   : > { %8360 = vperm.xlu1 %9311, %v8357_v1  }
 0x640   : > { %v7396_v52 = vpop.permute.xlu0 %7395 }
 0x641   : > { %v7428_v24 = vsel %vm6687_vm5, %v7394_v38, %v7396_v52  ;;  %v7494_v14 = vmul.f32 0.0, %v7396_v52  ;;  %v8249_v38 = vld [vmem:[%s14192_s8 + $0x8] sm:$0xff]  ;;  %v13705_v1 = vpop.f32.mrf.mxu0  ;;  %v13707_v52 = vpop.f32.mrf.mxu1 }
 0x642   : > { %v7493_v63 = vmul.f32 %v7428_v24, %v12830_v34  ;;  %v7526_v41 = vmul.f32 %v7428_v24, %v12833_v27  ;;  %14941 = vst [vmem:[#allocation12_spill] sm:$0xff] %v13705_v1 }
 0x643   : > { %v7563_v31 = vpack.c.bf16 %v7494_v14, %v7494_v14  ;;  %14942 = vst [vmem:[#allocation39_spill] sm:$0xff] %v13707_v52  ;;  %v13709_v24 = vpop.f32.mrf.mxu2 }
 0x644   : > { %v7562_v58 = vpack.c.bf16 %v7526_v41, %v7493_v63  ;;  %14943 = vst [vmem:[#allocation15_spill] sm:$0xff] %v13709_v24 }
 0x645   : > { %7666 = vrot.lane.b32.xlu0 %v7563_v31, %s9394_s18  ;;  %v13714_v63 = vpop.f32.mrf.mxu3 }
 0x646   : > { %7664 = vrot.lane.b32.xlu2 %v7562_v58, %s9394_s18  ;;  %9238 = vmatmul.msk.bf16.vlgmr.msrb.gmra.mxu0 %vm1410_vm2, %v13417_v4  ;;  %14944 = vst [vmem:[#allocation13_spill] sm:$0xff] %v13714_v63 }
 0x647   : > { %9239 = vmatmul.msk.bf16.vlgmr.msrb.gmra.mxu1 %vm1410_vm2, %v13417_v4 }
 0x648   : > { %v7649_v34 = vpop.permute.xlu0 %7648 }
 0x649   : > { %v7691_v27 = vsel %vm5926_vm4, %v7647_v53, %v7649_v34  ;;  %v13716_v41 = vpop.f32.mrf.mxu0  ;;  %v13718_v31 = vpop.f32.mrf.mxu1 }
 0x64a   : > { %8051 = vmatpush.bf16.msrb.mxu2 %v7691_v27  ;;  %14945 = vst [vmem:[#allocation17_spill] sm:$0xff] %v13716_v41 }
 0x64b   : > { %14946 = vst [vmem:[#allocation87_spill] sm:$0xff] %v13718_v31  ;;  %v13720_v58 = vpop.f32.mrf.mxu2 }
 0x64c   : > { %14947 = vst [vmem:[#allocation35_spill] sm:$0xff] %v13720_v58 }
 0x64d   : > { %8257 = vperm.xlu0 %9310, %v8249_v38   ;;  %9240 = vmatmul.msk.bf16.vlgmr.msrb.gmra.mxu2 %vm1410_vm2, %v13417_v4  ;;  %v13722_v27 = vpop.f32.mrf.mxu3 }
 0x64e   : > { %8252 = vperm.xlu2 %9312, %v8248_v43   ;;  %14948 = vst [vmem:[#allocation11_spill] sm:$0xff] %v13722_v27 }
 0x650   : > { %v7651_v53 = vpop.permute.xlu1 %7650 }
 0x651   : > { %v7692_v14 = vsel %vm5926_vm4, %v7649_v34, %v7651_v53  ;;  %v13724_v38 = vpop.f32.mrf.mxu0  ;;  %v13726_v43 = vpop.f32.mrf.mxu1 }
 0x652   : > { %8065 = vmatpush.bf16.msrb.mxu3 %v7692_v14  ;;  %14949 = vst [vmem:[#allocation62_spill] sm:$0xff] %v13724_v38 }
 0x653   : > { %14950 = vst [vmem:[#allocation59_spill] sm:$0xff] %v13726_v43  ;;  %v13728_v47 = vpop.f32.mrf.mxu2 }
 0x654   : > { %14951 = vst [vmem:[#allocation61_spill] sm:$0xff] %v13728_v47 }
 0x655   : > { %9241 = vmatmul.msk.bf16.vlgmr.msrb.gmra.mxu3 %vm1410_vm2, %v13417_v4  ;;  %v13730_v34 = vpop.f32.mrf.mxu3 }
 0x656   : > { %14952 = vst [vmem:[#allocation93_spill] sm:$0xff] %v13730_v34 }
 0x659   : > { %v13732_v14 = vpop.f32.mrf.mxu0  ;;  %v13734_v56 = vpop.f32.mrf.mxu1 }
 0x65a   : > { %14953 = vst [vmem:[#allocation92_spill] sm:$0xff] %v13732_v14 }
 0x65b   : > { %14954 = vst [vmem:[#allocation38_spill] sm:$0xff] %v13734_v56  ;;  %v13736_v63 = vpop.f32.mrf.mxu2 }
 0x65c   : > { %14955 = vst [vmem:[#allocation16_spill] sm:$0xff] %v13736_v63 }
 0x65d   : > { %v13738_v41 = vpop.f32.mrf.mxu3 }
 0x65e   : > { %14956 = vst [vmem:[#allocation42_spill] sm:$0xff] %v13738_v41 }
 0x661   : > { %v13740_v31 = vpop.f32.mrf.mxu0  ;;  %v13742_v58 = vpop.f32.mrf.mxu1 }
 0x662   : > { %14957 = vst [vmem:[#allocation65_spill] sm:$0xff] %v13740_v31 }
 0x663   : > { %14958 = vst [vmem:[#allocation98_spill] sm:$0xff] %v13742_v58  ;;  %v13744_v27 = vpop.f32.mrf.mxu2 }
 0x664   : > { %14959 = vst [vmem:[#allocation67_spill] sm:$0xff] %v13744_v27 }
 0x665   : > { %v13746_v38 = vpop.f32.mrf.mxu3 }
 0x666   : > { %14960 = vst [vmem:[#allocation64_spill] sm:$0xff] %v13746_v38 }
 0x669   : > { %v13748_v43 = vpop.f32.mrf.mxu0  ;;  %v13750_v47 = vpop.f32.mrf.mxu1 }
 0x66b   : > { %v13752_v34 = vpop.f32.mrf.mxu2 }
 0x66d   : > { %v13754_v14 = vpop.f32.mrf.mxu3 }
 0x671   : > { %v13756_v56 = vpop.f32.mrf.mxu0  ;;  %v13758_v63 = vpop.f32.mrf.mxu1 }
 0x673   : > { %v13760_v41 = vpop.f32.mrf.mxu2 }
 0x675   : > { %v13762_v31 = vpop.f32.mrf.mxu3 }
 0x679   : > { %v13766_v8 = vpop.f32.mrf.mxu0  ;;  %v13768_v52 = vpop.f32.mrf.mxu1 }
 0x67a   : > { %v7659_v27 = vpop.permute.xlu2 %7658 }
 0x67b   : > { %v13770_v1 = vpop.f32.mrf.mxu2 }
 0x683   : > { %v13788_v54 = vpop.f32.mrf.mxu2 }
 0x68b   : > { %v7885_v51 = vpop.f32.mrf.mxu2 }
 0x691   : > { %v7655_v58 = vpop.permute.xlu0 %7654  ;;  %v7657_v20 = vpop.permute.xlu1 %7656 }
 0x692   : > { %v7695_v38 = vsel %vm5926_vm4, %v7655_v58, %v7657_v20  ;;  %v7696_v24 = vsel %vm5926_vm4, %v7657_v20, %v7659_v27  ;;  %v13778_v20 = vpop.f32.mrf.mxu3 }
 0x693   : > { %8107 = vmatpush.bf16.msra.mxu2 %v7695_v38  ;;  %8121 = vmatpush.bf16.msra.mxu3 %v7696_v24  ;;  %v13780_v24 = vpop.f32.mrf.mxu0  ;;  %v13786_v38 = vpop.f32.mrf.mxu1 }
 0x694   : > { %v7887_v23 = vpop.f32.mrf.mxu2 }
 0x696   : > { %9244 = vmatmul.msk.bf16.vlgmr.msra.gmra.mxu2 %vm1410_vm2, %v13417_v4  ;;  %9245 = vmatmul.msk.bf16.vlgmr.msra.gmra.mxu3 %vm1410_vm2, %v13417_v4 }
 0x699   : > { %v7653_v3 = vpop.permute.xlu0 %7652 }
 0x69a   : > { %v7693_v44 = vsel %vm5926_vm4, %v7651_v53, %v7653_v3  ;;  %v7694_v18 = vsel %vm5926_vm4, %v7653_v3, %v7655_v58  ;;  %v7845_v58 = vpop.f32.mrf.mxu3 }
 0x69b   : > { %8079 = vmatpush.bf16.msra.mxu0 %v7693_v44  ;;  %8093 = vmatpush.bf16.msra.mxu1 %v7694_v18  ;;  %v13791_v44 = vpop.f32.mrf.mxu0  ;;  %v13793_v18 = vpop.f32.mrf.mxu1 }
 0x69e   : > { %9242 = vmatmul.msk.bf16.vlgmr.msra.gmra.mxu0 %vm1410_vm2, %v13417_v4  ;;  %9243 = vmatmul.msk.bf16.vlgmr.msra.gmra.mxu1 %vm1410_vm2, %v13417_v4 }
 0x6a0   : > { %v7665_v45 = vpop.permute.xlu2 %7664 }
 0x6a1   : > { %v7663_v53 = vpop.permute.xlu1 %7662 }
 0x6a2   : > { %v7699_v3 = vsel %vm5926_vm4, %v7663_v53, %v7665_v45  ;;  %v13799_v15 = vpop.f32.mrf.mxu3 }
 0x6a3   : > { %8163 = vmatpush.bf16.msrb.mxu2 %v7699_v3  ;;  %v7859_v3 = vpop.f32.mrf.mxu0  ;;  %v7873_v39 = vpop.f32.mrf.mxu1 }
 0x6a6   : > { %9248 = vmatmul.msk.bf16.vlgmr.msrb.gmra.mxu2 %vm1410_vm2, %v13417_v4 }
 0x6a9   : > { %v7661_v28 = vpop.permute.xlu1 %7660 }
 0x6aa   : > { %v7697_v50 = vsel %vm5926_vm4, %v7659_v27, %v7661_v28  ;;  %v7698_v29 = vsel %vm5926_vm4, %v7661_v28, %v7663_v53  ;;  %v6779_v27 = vadd.f32 %v13543_v11, %v13153_v10  ;;  %v6793_v28 = vadd.f32 %v13545_v37, %v13144_v36  ;;  %v14963_v37 = vld [vmem:[#allocation32_spill] sm:$0xff] }
 0x6ab   : > { %8135 = vmatpush.bf16.msrb.mxu0 %v7697_v50  ;;  %8149 = vmatpush.bf16.msrb.mxu1 %v7698_v29  ;;  %v6767_v50 = vadd.f32 %v13549_v57, %v13181_v26  ;;  %v6781_v29 = vadd.f32 %v13551_v9, %v13191_v46  ;;  %v6807_v53 = vadd.f32 %v13547_v40, %v13164_v35  ;;  %v14965_v57 = vld [vmem:[#allocation5_spill] sm:$0xff] }
 0x6ac   : > { %v6795_v10 = vadd.f32 %v13553_v2, %v13170_v48  ;;  %v6809_v26 = vadd.f32 %v13555_v30, %v13197_v12  ;;  %v6823_v46 = vadd.f32 %v13565_v22, %v13237_v7  ;;  %v6837_v36 = vadd.f32 %v13567_v25, %v13240_v62  ;;  %v14961_v48 = vld [vmem:[#allocation84_spill] sm:$0xff]  ;;  %v14964_v7 = vld [vmem:[#allocation81_spill] sm:$0xff]  ;;  %v14966_v62 = vld [vmem:[#allocation103_spill] sm:$0xff] }
 0x6ad   : > { %v6849_v35 = vadd.f32 %v13561_v60, %v13221_v33  ;;  %v6891_v11 = vadd.f32 %v14961_v48, %v13265_v17  ;;  %v14962_v12 = vld [vmem:[#allocation100_spill] sm:$0xff]  ;;  %v6865_v9 = vadd.f32 %v14965_v57, %v14964_v7  ;;  %v14968_v33 = vld [vmem:[#allocation69_spill] sm:$0xff]  ;;  %v14970_v60 = vld [vmem:[#allocation43_spill] sm:$0xff]  ;;  %v13849_v25 = vadd.f32 %v14973_v0, %v14972_v42 }
 0x6ae   : > { %9246 = vmatmul.msk.bf16.vlgmr.msrb.gmra.mxu0 %vm1410_vm2, %v13417_v4  ;;  %9247 = vmatmul.msk.bf16.vlgmr.msrb.gmra.mxu1 %vm1410_vm2, %v13417_v4  ;;  %v6851_v40 = vadd.f32 %v14963_v37, %v14962_v12  ;;  %v14967_v2 = vld [vmem:[#allocation56_spill] sm:$0xff]  ;;  %v6893_v16 = vadd.f32 %v14969_v6, %v14968_v33  ;;  %v6905_v21 = vadd.f32 %v14971_v13, %v14970_v60  ;;  %v14975_v48 = vld [vmem:[#allocation10_spill] sm:$0xff]  ;;  %v13862_v60 = vpop.f32.mrf.mxu0 }
 0x6af   : > { %v6879_v30 = vadd.f32 %v14967_v2, %v14966_v62  ;;  %v14974_v17 = vld [vmem:[#allocation44_spill] sm:$0xff]  ;;  %v8184_v62 = vadd.f32 %v13748_v43, %v6765_v55  ;;  %v8185_v2 = vadd.f32 %v13750_v47, %v6779_v27  ;;  %v8216_v33 = vadd.f32 %v13756_v56, %v6767_v50  ;;  %v13874_v43 = vpop.permute.xlu2 %8252  ;;  %v13883_v27 = vpop.f32.mrf.mxu2 }
 0x6b0   : > { %v6907_v12 = vadd.f32 %v14975_v48, %v14974_v17  ;;  %v14976_v37 = vld [vmem:[#allocation24_spill] sm:$0xff]  ;;  %v8217_v6 = vadd.f32 %v13758_v63, %v6781_v29  ;;  %v8186_v13 = vadd.f32 %v13752_v34, %v6793_v28  ;;  %v8187_v42 = vadd.f32 %v13754_v14, %v6807_v53 }
 0x6b1   : > { %v13855_v7 = vadd.f32 %v14977_v59, %v14976_v37  ;;  %v8188_v59 = vadd.f32 %v13766_v8, %v6821_v49  ;;  %v8189_v0 = vadd.f32 %v13768_v52, %v6835_v61  ;;  %v8218_v55 = vadd.f32 %v13760_v41, %v6795_v10 }
 0x6b2   : > { %v8219_v56 = vadd.f32 %v13762_v31, %v6809_v26  ;;  %v8220_v47 = vadd.f32 %v13780_v24, %v6823_v46  ;;  %v8221_v63 = vadd.f32 %v13786_v38, %v6837_v36  ;;  %v8190_v34 = vadd.f32 %v13770_v1, %v6849_v35 }
 0x6b3   : > { %v8191_v14 = vadd.f32 %v13778_v20, %v6863_v19  ;;  %v8222_v49 = vadd.f32 %v13788_v54, %v6851_v40  ;;  %v8223_v8 = vadd.f32 %v7845_v58, %v6865_v9  ;;  %v8192_v52 = vadd.f32 %v13791_v44, %v6877_v5 }
 0x6b4   : > { %v8193_v41 = vadd.f32 %v13793_v18, %v6891_v11  ;;  %v8194_v31 = vadd.f32 %v7885_v51, %v6905_v21  ;;  %v8224_v24 = vadd.f32 %v7859_v3, %v6879_v30  ;;  %v8225_v38 = vadd.f32 %v7873_v39, %v6893_v16  ;;  %v13908_v21 = vld [vmem:[%s14193_s9] sm:$0xf] }
 0x6b5   : > { %v8226_v50 = vadd.f32 %v7887_v23, %v6907_v12  ;;  %v8260_v1 = vadd.f32 %v13874_v43, %v8184_v62  ;;  %v8261_v20 = vadd.f32 %v13874_v43, %v8185_v2  ;;  %v8262_v54 = vadd.f32 %v13874_v43, %v8186_v13 }
 0x6b6   : > { %v8264_v58 = vadd.f32 %v13874_v43, %v8188_v59  ;;  %v8265_v44 = vadd.f32 %v13874_v43, %v8189_v0  ;;  %v8266_v61 = vadd.f32 %v13874_v43, %v8190_v34  ;;  %v7915_v19 = vpop.f32.mrf.mxu0  ;;  %v8267_v9 = vadd.f32 %v13874_v43, %v8191_v14  ;;  %v14979_v34 = vld [vmem:[#allocation107_spill] sm:$0xff]  ;;  %v14980_v14 = vld [vmem:[#allocation54_spill] sm:$0xff] }
 0x6b7   : > { %v7667_v22 = vpop.permute.xlu0 %7666  ;;  %v8268_v37 = vadd.f32 %v13874_v43, %v8192_v52  ;;  %v8269_v2 = vadd.f32 %v13874_v43, %v8193_v41  ;;  %v7943_v13 = vpop.f32.mrf.mxu2  ;;  %v14982_v52 = vld [vmem:[#allocation9_spill] sm:$0xff] }
 0x6b8   : > { %v7700_v57 = vsel %vm5926_vm4, %v7665_v45, %v7667_v22  ;;  %v7901_v45 = vpop.f32.mrf.mxu3  ;;  %v13868_v22 = vpop.f32.mrf.mxu1 }
 0x6b9   : > { %8177 = vmatpush.bf16.msrb.mxu3 %v7700_v57  ;;  %v8227_v12 = vadd.f32 %v7901_v45, %v13855_v7 }
 0x6bc   : > { %9249 = vmatmul.msk.bf16.vlgmr.msrb.gmra.mxu3 %vm1410_vm2, %v13417_v4  ;;  %v8263_v4 = vadd.f32 %v13874_v43, %v8187_v42 }
 0x6bf   : > { %v13887_v29 = vpop.permute.xlu0 %8257 }
 0x6c0   : > { %v8292_v51 = vadd.f32 %v13887_v29, %v8216_v33  ;;  %v8293_v18 = vadd.f32 %v13887_v29, %v8217_v6  ;;  %v8294_v39 = vadd.f32 %v13887_v29, %v8218_v55  ;;  %v8295_v3 = vadd.f32 %v13887_v29, %v8219_v56  ;;  %v13901_v26 = vpop.f32.mrf.mxu3  ;;  %v7929_v30 = vpop.f32.mrf.mxu1  ;;  %v14978_v56 = vld [vmem:[#allocation46_spill] sm:$0xff] }
 0x6c1   : > { %v8296_v28 = vadd.f32 %v13887_v29, %v8220_v47  ;;  %v8297_v53 = vadd.f32 %v13887_v29, %v8221_v63  ;;  %v8298_v10 = vadd.f32 %v13887_v29, %v8222_v49  ;;  %v8299_v16 = vadd.f32 %v13887_v29, %v8223_v8  ;;  %v7969_v55 = vpop.f32.mrf.mxu0  ;;  %v14981_v8 = vld [vmem:[#allocation102_spill] sm:$0xff] }
 0x6c2   : > { %v8325_v46 = vpack.c.bf16 %v8292_v51, %v8260_v1  ;;  %v8326_v36 = vpack.c.bf16 %v8293_v18, %v8261_v20  ;;  %v8327_v35 = vpack.c.bf16 %v8294_v39, %v8262_v54  ;;  %v8328_v23 = vpack.c.bf16 %v8295_v3, %v8263_v4  ;;  %v14985_v1 = vld [vmem:[#allocation23_spill] sm:$0xff]  ;;  %v14986_v20 = vld [vmem:[#allocation36_spill] sm:$0xff]  ;;  %v7997_v4 = vpop.f32.mrf.mxu2  ;;  %v14988_v51 = vld [vmem:[#allocation6_spill] sm:$0xff] }
 0x6c3   : > { %v8329_v5 = vpack.c.bf16 %v8296_v28, %v8264_v58  ;;  %v8330_v11 = vpack.c.bf16 %v8297_v53, %v8265_v44  ;;  %v8331_v40 = vpack.c.bf16 %v8298_v10, %v8266_v61  ;;  %v8300_v17 = vadd.f32 %v13887_v29, %v8224_v24  ;;  %v14984_v24 = vld [vmem:[#allocation90_spill] sm:$0xff]  ;;  %v14987_v44 = vld [vmem:[#allocation45_spill] sm:$0xff]  ;;  %v14989_v28 = vld [vmem:[#allocation28_spill] sm:$0xff] }
 0x6c4   : > { %8373 = vmatpush.bf16.msra.mxu0 %v8325_v46  ;;  %8386 = vmatpush.bf16.msra.mxu1 %v8326_v36  ;;  %v8301_v48 = vadd.f32 %v13887_v29, %v8225_v38  ;;  %v8302_v57 = vadd.f32 %v13887_v29, %v8226_v50  ;;  %v8332_v62 = vpack.c.bf16 %v8299_v16, %v8267_v9  ;;  %v14990_v53 = vld [vmem:[#allocation53_spill] sm:$0xff] }
 0x6c5   : > { %8399 = vmatpush.bf16.msra.mxu2 %v8327_v35  ;;  %8412 = vmatpush.bf16.msra.mxu3 %v8328_v23  ;;  %v8270_v33 = vadd.f32 %v13874_v43, %v8194_v31  ;;  %v8195_v6 = vadd.f32 %v13799_v15, %v13849_v25  ;;  %v8333_v7 = vpack.c.bf16 %v8300_v17, %v8268_v37  ;;  %v14983_v31 = vld [vmem:[#allocation112_spill] sm:$0xff] }
 0x6c6   : > { %v8303_v42 = vadd.f32 %v13887_v29, %v8227_v12  ;;  %v8334_v59 = vpack.c.bf16 %v8301_v48, %v8269_v2  ;;  %v6935_v47 = vadd.f32 %v13625_v32, %v14978_v56  ;;  %v6949_v49 = vadd.f32 %v14980_v14, %v14979_v34  ;;  %v14993_v2 = vld [vmem:[#allocation108_spill] sm:$0xff]  ;;  %v15000_v56 = vld [vmem:[#allocation57_spill] sm:$0xff]  ;;  %v15002_v14 = vld [vmem:[#allocation86_spill] sm:$0xff] }
 0x6c7   : > { %9250 = vmatmul.msk.bf16.vlgmr.msra.gmra.mxu0 %vm1410_vm2, %v13908_v21  ;;  %9251 = vmatmul.msk.bf16.vlgmr.msra.gmra.mxu1 %vm1410_vm2, %v13908_v21  ;;  %v8335_v0 = vpack.c.bf16 %v8302_v57, %v8270_v33  ;;  %v8271_v15 = vadd.f32 %v13874_v43, %v8195_v6  ;;  %v6933_v41 = vadd.f32 %v14982_v52, %v14981_v8  ;;  %v14994_v33 = vld [vmem:[#allocation34_spill] sm:$0xff]  ;;  %v15001_v34 = vld [vmem:[#allocation49_spill] sm:$0xff]  ;;  %v15004_v52 = vld [vmem:[#allocation91_spill] sm:$0xff] }
 0x6c8   : > { %8425 = vmatpush.bf16.msrb.mxu0 %v8329_v5  ;;  %8438 = vmatpush.bf16.msrb.mxu1 %v8330_v11  ;;  %v7957_v45 = vpop.f32.mrf.mxu3  ;;  %v7983_v63 = vpop.f32.mrf.mxu1  ;;  %v6963_v38 = vadd.f32 %v14984_v24, %v14983_v31  ;;  %v8228_v50 = vadd.f32 %v7915_v19, %v6935_v47  ;;  %v6947_v54 = vadd.f32 %v14986_v20, %v14985_v1  ;;  %v14991_v5 = vld [vmem:[#allocation73_spill] sm:$0xff]  ;;  %v14992_v11 = vld [vmem:[#allocation94_spill] sm:$0xff] }
 0x6c9   : > { %8451 = vmatpush.bf16.msrb.mxu2 %v8331_v40  ;;  %8464 = vmatpush.bf16.msrb.mxu3 %v8332_v62  ;;  %v8336_v25 = vpack.c.bf16 %v8303_v42, %v8271_v15  ;;  %v8229_v58 = vadd.f32 %v7929_v30, %v6949_v49  ;;  %v6961_v18 = vadd.f32 %v14988_v51, %v14987_v44  ;;  %v7971_v17 = vpop.f32.mrf.mxu0  ;;  %v14998_v15 = vld [vmem:[#allocation8_spill] sm:$0xff]  ;;  %v15003_v8 = vld [vmem:[#allocation109_spill] sm:$0xff] }
 0x6ca   : > { %9252 = vmatmul.msk.bf16.vlgmr.msra.gmra.mxu2 %vm1410_vm2, %v13908_v21  ;;  %v8230_v32 = vadd.f32 %v7943_v13, %v6963_v38  ;;  %v8196_v39 = vadd.f32 %v13862_v60, %v6933_v41  ;;  %v8304_v3 = vadd.f32 %v13887_v29, %v8228_v50  ;;  %v6977_v61 = vadd.f32 %v14990_v53, %v14989_v28  ;;  %v14995_v13 = vld [vmem:[#allocation47_spill] sm:$0xff]  ;;  %v15005_v38 = vld [vmem:[#allocation29_spill] sm:$0xff]  ;;  %v15006_v50 = vld [vmem:[#allocation60_spill] sm:$0xff] }
 0x6cb   : > { %v8197_v10 = vadd.f32 %v13868_v22, %v6947_v54  ;;  %v8305_v46 = vadd.f32 %v13887_v29, %v8229_v58  ;;  %v8198_v36 = vadd.f32 %v13883_v27, %v6961_v18  ;;  %v6975_v40 = vadd.f32 %v14992_v11, %v14991_v5 }
 0x6cc   : > { %8477 = vmatpush.bf16.msra.mxu0 %v8333_v7  ;;  %8490 = vmatpush.bf16.msra.mxu1 %v8334_v59  ;;  %v8272_v23 = vadd.f32 %v13874_v43, %v8196_v39  ;;  %v8306_v19 = vadd.f32 %v13887_v29, %v8230_v32  ;;  %v8231_v60 = vadd.f32 %v7957_v45, %v6977_v61  ;;  %v14996_v7 = vld [vmem:[#allocation37_spill] sm:$0xff]  ;;  %v14999_v45 = vld [vmem:[#allocation79_spill] sm:$0xff]  ;;  %v15007_v39 = vld [vmem:[#allocation72_spill] sm:$0xff] }
 0x6cd   : > { %8503 = vmatpush.bf16.msra.mxu2 %v8335_v0  ;;  %9253 = vmatmul.msk.bf16.vlgmr.msra.gmra.mxu3 %vm1410_vm2, %v13908_v21  ;;  %v8273_v9 = vadd.f32 %v13874_v43, %v8197_v10  ;;  %v8274_v16 = vadd.f32 %v13874_v43, %v8198_v36  ;;  %v8199_v22 = vadd.f32 %v13901_v26, %v6975_v40  ;;  %v7999_v26 = vpop.f32.mrf.mxu2  ;;  %v14997_v0 = vld [vmem:[#allocation76_spill] sm:$0xff] }
 0x6ce   : > { %8516 = vmatpush.bf16.msra.mxu3 %v8336_v25  ;;  %v8337_v30 = vpack.c.bf16 %v8304_v3, %v8272_v23  ;;  %v8307_v48 = vadd.f32 %v13887_v29, %v8231_v60  ;;  %v6989_v6 = vadd.f32 %v14994_v33, %v14993_v2  ;;  %v6991_v42 = vadd.f32 %v14996_v7, %v14995_v13  ;;  %v15008_v3 = vld [vmem:[#allocation52_spill] sm:$0xff]  ;;  %v15015_v2 = vld [vmem:[#allocation95_spill] sm:$0xff]  ;;  %v15017_v7 = vld [vmem:[#allocation78_spill] sm:$0xff] }
 0x6cf   : > { %v8338_v27 = vpack.c.bf16 %v8305_v46, %v8273_v9  ;;  %v8339_v37 = vpack.c.bf16 %v8306_v19, %v8274_v16  ;;  %v8275_v57 = vadd.f32 %v13874_v43, %v8199_v22  ;;  %v7003_v25 = vadd.f32 %v14998_v15, %v14997_v0  ;;  %v15010_v16 = vld [vmem:[#allocation12_spill] sm:$0xff]  ;;  %v15016_v33 = vld [vmem:[#allocation15_spill] sm:$0xff]  ;;  %v15019_v15 = vld [vmem:[#allocation110_spill] sm:$0xff] }
 0x6d0   : > { %v8011_v35 = vpop.f32.mrf.mxu3  ;;  %v7985_v12 = vpop.f32.mrf.mxu1  ;;  %v7005_v47 = vadd.f32 %v15000_v56, %v14999_v45  ;;  %v7017_v49 = vadd.f32 %v15002_v14, %v15001_v34  ;;  %v7019_v41 = vadd.f32 %v15004_v52, %v15003_v8  ;;  %v8200_v31 = vadd.f32 %v7969_v55, %v6989_v6  ;;  %v15021_v14 = vld [vmem:[#allocation85_spill] sm:$0xff] }
 0x6d1   : > { %v8340_v62 = vpack.c.bf16 %v8307_v48, %v8275_v57  ;;  %v8232_v24 = vadd.f32 %v7971_v17, %v6991_v42  ;;  %v7033_v1 = vadd.f32 %v15006_v50, %v15005_v38  ;;  %v8201_v20 = vadd.f32 %v7983_v63, %v7003_v25  ;;  %v8025_v58 = vpop.f32.mrf.mxu0  ;;  %v15012_v48 = vld [vmem:[#allocation39_spill] sm:$0xff]  ;;  %v15013_v57 = vld [vmem:[#allocation48_spill] sm:$0xff]  ;;  %v15018_v42 = vld [vmem:[#allocation14_spill] sm:$0xff] }
 0x6d2   : > { %v8233_v54 = vadd.f32 %v7985_v12, %v7005_v47  ;;  %v8202_v44 = vadd.f32 %v7997_v4, %v7017_v49  ;;  %v8234_v51 = vadd.f32 %v7999_v26, %v7019_v41  ;;  %v7031_v28 = vadd.f32 %v15008_v3, %v15007_v39  ;;  %v15014_v26 = vld [vmem:[#allocation88_spill] sm:$0xff]  ;;  %v15020_v25 = vld [vmem:[#allocation58_spill] sm:$0xff]  ;;  %v15022_v49 = vld [vmem:[#allocation13_spill] sm:$0xff] }
 0x6d3   : > { %v8308_v32 = vadd.f32 %v13887_v29, %v8232_v24  ;;  %v8276_v55 = vadd.f32 %v13874_v43, %v8200_v31  ;;  %v8277_v63 = vadd.f32 %v13874_v43, %v8201_v20  ;;  %v7075_v6 = vadd.f32 %v15016_v33, %v15015_v2  ;;  %v15023_v24 = vld [vmem:[#allocation26_spill] sm:$0xff] }
 0x6d4   : > { %v8309_v10 = vadd.f32 %v13887_v29, %v8233_v54  ;;  %v8310_v46 = vadd.f32 %v13887_v29, %v8234_v51  ;;  %v8203_v36 = vadd.f32 %v8011_v35, %v7031_v28  ;;  %v8278_v4 = vadd.f32 %v13874_v43, %v8202_v44  ;;  %v15024_v38 = vld [vmem:[#allocation18_spill] sm:$0xff] }
 0x6d5   : > { %v8053_v61 = vpop.f32.mrf.mxu2  ;;  %v8341_v19 = vpack.c.bf16 %v8308_v32, %v8276_v55  ;;  %v7073_v45 = vadd.f32 %v15020_v25, %v15019_v15  ;;  %v7089_v8 = vadd.f32 %v15022_v49, %v15021_v14  ;;  %v7087_v50 = vadd.f32 %v15024_v38, %v15023_v24  ;;  %v15038_v2 = vld [vmem:[#allocation62_spill] sm:$0xff] }
 0x6d6   : > { %v8342_v11 = vpack.c.bf16 %v8309_v10, %v8277_v63  ;;  %v8343_v40 = vpack.c.bf16 %v8310_v46, %v8278_v4  ;;  %v8279_v60 = vadd.f32 %v13874_v43, %v8203_v36  ;;  %v15025_v36 = vld [vmem:[#allocation115_spill] sm:$0xff] }
 0x6d7   : > { %9254 = vmatmul.msk.bf16.vlgmr.msrb.gmra.mxu0 %vm1410_vm2, %v13908_v21  ;;  %9255 = vmatmul.msk.bf16.vlgmr.msrb.gmra.mxu1 %vm1410_vm2, %v13908_v21  ;;  %v8206_v31 = vadd.f32 %v8053_v61, %v7073_v45  ;;  %v15026_v4 = vld [vmem:[#allocation35_spill] sm:$0xff] }
 0x6d8   : > { %8529 = vmatpush.bf16.msrb.mxu0 %v8337_v30  ;;  %8542 = vmatpush.bf16.msrb.mxu1 %v8338_v27  ;;  %v8013_v59 = vpop.f32.mrf.mxu3  ;;  %v8039_v18 = vpop.f32.mrf.mxu1  ;;  %v15009_v30 = vld [vmem:[#allocation106_spill] sm:$0xff] }
 0x6d9   : > { %v8235_v53 = vadd.f32 %v8013_v59, %v7033_v1  ;;  %v8027_v9 = vpop.f32.mrf.mxu0  ;;  %v7047_v22 = vadd.f32 %v15010_v16, %v15009_v30  ;;  %v15011_v27 = vld [vmem:[#allocation74_spill] sm:$0xff]  ;;  %v7059_v59 = vadd.f32 %v15018_v42, %v15017_v7  ;;  %v8282_v39 = vadd.f32 %v13874_v43, %v8206_v31  ;;  %v15032_v30 = vld [vmem:[#allocation87_spill] sm:$0xff] }
 0x6da   : > { %9256 = vmatmul.msk.bf16.vlgmr.msrb.gmra.mxu2 %vm1410_vm2, %v13908_v21  ;;  %v7061_v12 = vadd.f32 %v15012_v48, %v15011_v27  ;;  %v15035_v48 = vld [vmem:[#allocation50_spill] sm:$0xff] }
 0x6db   : > { %8555 = vmatpush.bf16.msrb.mxu2 %v8339_v37  ;;  %v8311_v5 = vadd.f32 %v13887_v29, %v8235_v53  ;;  %v8236_v13 = vadd.f32 %v8027_v9, %v7047_v22  ;;  %v8205_v52 = vadd.f32 %v8039_v18, %v7059_v59  ;;  %v15031_v9 = vld [vmem:[#allocation89_spill] sm:$0xff]  ;;  %v15033_v22 = vld [vmem:[#allocation114_spill] sm:$0xff] }
 0x6dc   : > { %v7115_v16 = vadd.f32 %v15032_v30, %v15031_v9  ;;  %v15052_v9 = vld [vmem:[#allocation98_spill] sm:$0xff] }
 0x6dd   : > { %9257 = vmatmul.msk.bf16.vlgmr.msrb.gmra.mxu3 %vm1410_vm2, %v13908_v21  ;;  %v8344_v35 = vpack.c.bf16 %v8311_v5, %v8279_v60  ;;  %v8055_v37 = vpop.f32.mrf.mxu2  ;;  %v8312_v41 = vadd.f32 %v13887_v29, %v8236_v13  ;;  %v15028_v5 = vld [vmem:[#allocation11_spill] sm:$0xff]  ;;  %v15030_v60 = vld [vmem:[#allocation17_spill] sm:$0xff] }
 0x6de   : > { %8568 = vmatpush.bf16.msrb.mxu3 %v8340_v62  ;;  %v7045_v62 = vadd.f32 %v15014_v26, %v15013_v57  ;;  %v8238_v47 = vadd.f32 %v8055_v37, %v7075_v6  ;;  %v15039_v6 = vld [vmem:[#allocation27_spill] sm:$0xff] }
 0x6df   : > { %v15040_v13 = vld [vmem:[#allocation59_spill] sm:$0xff] }
 0x6e0   : > { %v8067_v23 = vpop.f32.mrf.mxu3  ;;  %v8041_v17 = vpop.f32.mrf.mxu1  ;;  %v8204_v56 = vadd.f32 %v8025_v58, %v7045_v62  ;;  %v8314_v44 = vadd.f32 %v13887_v29, %v8238_v47  ;;  %v8281_v58 = vadd.f32 %v13874_v43, %v8205_v52  ;;  %v15037_v62 = vld [vmem:[#allocation7_spill] sm:$0xff]  ;;  %v7117_v7 = vadd.f32 %v15040_v13, %v15039_v6 }
 0x6e1   : > { %v8237_v0 = vadd.f32 %v8041_v17, %v7061_v12  ;;  %v8207_v51 = vadd.f32 %v8067_v23, %v7087_v50  ;;  %v7129_v23 = vadd.f32 %v15026_v4, %v15025_v36  ;;  %v15034_v17 = vld [vmem:[#allocation61_spill] sm:$0xff]  ;;  %v7103_v33 = vadd.f32 %v15038_v2, %v15037_v62  ;;  %v15048_v36 = vld [vmem:[#allocation67_spill] sm:$0xff] }
 0x6e2   : > { %v8280_v54 = vadd.f32 %v13874_v43, %v8204_v56  ;;  %v8347_v28 = vpack.c.bf16 %v8314_v44, %v8282_v39  ;;  %v7131_v27 = vadd.f32 %v15034_v17, %v15033_v22  ;;  %v15036_v12 = vld [vmem:[#allocation93_spill] sm:$0xff]  ;;  %v15041_v39 = vld [vmem:[#allocation75_spill] sm:$0xff] }
 0x6e3   : > { %v8313_v1 = vadd.f32 %v13887_v29, %v8237_v0  ;;  %v8283_v53 = vadd.f32 %v13874_v43, %v8207_v51  ;;  %v7145_v37 = vadd.f32 %v15036_v12, %v15035_v48 }
 0x6e4   : > { %v8345_v32 = vpack.c.bf16 %v8312_v41, %v8280_v54 }
 0x6e5   : > { %v8346_v18 = vpack.c.bf16 %v8313_v1, %v8281_v58 }
 0x6e7   : > { %9258 = vmatmul.msk.bf16.vlgmr.msra.gmra.mxu0 %vm1410_vm2, %v13908_v21  ;;  %9259 = vmatmul.msk.bf16.vlgmr.msra.gmra.mxu1 %vm1410_vm2, %v13908_v21 }
 0x6e8   : > { %8581 = vmatpush.bf16.msra.mxu0 %v8341_v19  ;;  %8594 = vmatpush.bf16.msra.mxu1 %v8342_v11  ;;  %v8069_v34 = vpop.f32.mrf.mxu3  ;;  %v15027_v19 = vld [vmem:[#allocation31_spill] sm:$0xff] }
 0x6e9   : > { %v8239_v20 = vadd.f32 %v8069_v34, %v7089_v8  ;;  %v7143_v11 = vadd.f32 %v15028_v5, %v15027_v19 }
 0x6ea   : > { %9260 = vmatmul.msk.bf16.vlgmr.msra.gmra.mxu2 %vm1410_vm2, %v13908_v21 }
 0x6eb   : > { %8607 = vmatpush.bf16.msra.mxu2 %v8343_v40  ;;  %v8315_v3 = vadd.f32 %v13887_v29, %v8239_v20  ;;  %v15029_v40 = vld [vmem:[#allocation51_spill] sm:$0xff] }
 0x6ed   : > { %9261 = vmatmul.msk.bf16.vlgmr.msra.gmra.mxu3 %vm1410_vm2, %v13908_v21  ;;  %v8348_v61 = vpack.c.bf16 %v8315_v3, %v8283_v53  ;;  %v15044_v53 = vld [vmem:[#allocation92_spill] sm:$0xff] }
 0x6ee   : > { %8620 = vmatpush.bf16.msra.mxu3 %v8344_v35  ;;  %v7101_v35 = vadd.f32 %v15030_v60, %v15029_v40  ;;  %v15050_v40 = vld [vmem:[#allocation65_spill] sm:$0xff] }
 0x6f7   : > { %9262 = vmatmul.msk.bf16.vlgmr.msrb.gmra.mxu0 %vm1410_vm2, %v13908_v21  ;;  %9263 = vmatmul.msk.bf16.vlgmr.msrb.gmra.mxu1 %vm1410_vm2, %v13908_v21 }
 0x6f8   : > { %8633 = vmatpush.bf16.msrb.mxu0 %v8345_v32  ;;  %8646 = vmatpush.bf16.msrb.mxu1 %v8346_v18  ;;  %v15042_v18 = vld [vmem:[#allocation16_spill] sm:$0xff] }
 0x6f9   : > { %v7185_v3 = vadd.f32 %v15042_v18, %v15041_v39 }
 0x6fa   : > { %9264 = vmatmul.msk.bf16.vlgmr.msrb.gmra.mxu2 %vm1410_vm2, %v13908_v21 }
 0x6fb   : > { %8659 = vmatpush.bf16.msrb.mxu2 %v8347_v28  ;;  %v15043_v28 = vld [vmem:[#allocation55_spill] sm:$0xff] }
 0x6fd   : > { %9265 = vmatmul.msk.bf16.vlgmr.msrb.gmra.mxu3 %vm1410_vm2, %v13908_v21 }
 0x6fe   : > { %8672 = vmatpush.bf16.msrb.mxu3 %v8348_v61  ;;  %v7157_v61 = vadd.f32 %v15044_v53, %v15043_v28 }
 0x707   : > { %9266 = vmatmul.msk.bf16.vlgmr.msra.gmra.mxu0 %vm1410_vm2, %v13908_v21  ;;  %9267 = vmatmul.msk.bf16.vlgmr.msra.gmra.mxu1 %vm1410_vm2, %v13908_v21 }
 0x70a   : > { %9268 = vmatmul.msk.bf16.vlgmr.msra.gmra.mxu2 %vm1410_vm2, %v13908_v21 }
 0x70d   : > { %9269 = vmatmul.msk.bf16.vlgmr.msra.gmra.mxu3 %vm1410_vm2, %v13908_v21 }
 0x717   : > { %9270 = vmatmul.msk.bf16.vlgmr.msrb.gmra.mxu0 %vm1410_vm2, %v13908_v21  ;;  %9271 = vmatmul.msk.bf16.vlgmr.msrb.gmra.mxu1 %vm1410_vm2, %v13908_v21 }
 0x719   : > { %v8109_v10 = vpop.f32.mrf.mxu2  ;;  %v8123_v55 = vpop.f32.mrf.mxu3 }
 0x71a   : > { %9272 = vmatmul.msk.bf16.vlgmr.msrb.gmra.mxu2 %vm1410_vm2, %v13908_v21  ;;  %v8210_v57 = vadd.f32 %v8109_v10, %v7129_v23  ;;  %v8211_v26 = vadd.f32 %v8123_v55, %v7143_v11  ;;  %v15045_v10 = vld [vmem:[#allocation116_spill] sm:$0xff]  ;;  %v15046_v55 = vld [vmem:[#allocation38_spill] sm:$0xff] }
 0x71b   : > { %v8081_v46 = vpop.f32.mrf.mxu0  ;;  %v8095_v63 = vpop.f32.mrf.mxu1  ;;  %v15049_v11 = vld [vmem:[#allocation30_spill] sm:$0xff] }
 0x71c   : > { %v8208_v42 = vadd.f32 %v8081_v46, %v7101_v35  ;;  %v8209_v59 = vadd.f32 %v8095_v63, %v7115_v16  ;;  %v8286_v49 = vadd.f32 %v13874_v43, %v8210_v57  ;;  %v8287_v8 = vadd.f32 %v13874_v43, %v8211_v26  ;;  %v15047_v63 = vld [vmem:[#allocation82_spill] sm:$0xff]  ;;  %v15051_v35 = vld [vmem:[#allocation111_spill] sm:$0xff] }
 0x71d   : > { %9273 = vmatmul.msk.bf16.vlgmr.msrb.gmra.mxu3 %vm1410_vm2, %v13908_v21  ;;  %v7171_v46 = vadd.f32 %v15046_v55, %v15045_v10  ;;  %v7187_v4 = vadd.f32 %v15048_v36, %v15047_v63  ;;  %v7159_v60 = vadd.f32 %v15050_v40, %v15049_v11  ;;  %v7173_v30 = vadd.f32 %v15052_v9, %v15051_v35 }
 0x71e   : > { %v8284_v31 = vadd.f32 %v13874_v43, %v8208_v42  ;;  %v8285_v24 = vadd.f32 %v13874_v43, %v8209_v59  ;;  %v15053_v59 = vld [vmem:[#allocation113_spill] sm:$0xff] }
 0x721   : > { %v8111_v0 = vpop.f32.mrf.mxu2  ;;  %v8125_v15 = vpop.f32.mrf.mxu3 }
 0x722   : > { %v8242_v25 = vadd.f32 %v8111_v0, %v7131_v27  ;;  %v8243_v45 = vadd.f32 %v8125_v15, %v7145_v37  ;;  %v15054_v0 = vld [vmem:[#allocation42_spill] sm:$0xff] }
 0x723   : > { %v8083_v56 = vpop.f32.mrf.mxu0  ;;  %v8097_v47 = vpop.f32.mrf.mxu1  ;;  %v7199_v15 = vadd.f32 %v15054_v0, %v15053_v59 }
 0x724   : > { %v8240_v34 = vadd.f32 %v8083_v56, %v7103_v33  ;;  %v8241_v14 = vadd.f32 %v8097_v47, %v7117_v7  ;;  %v8318_v52 = vadd.f32 %v13887_v29, %v8242_v25  ;;  %v8319_v41 = vadd.f32 %v13887_v29, %v8243_v45  ;;  %v14104_v25 = vpop.permute.xlu1 %8360 }
 0x726   : > { %v8316_v38 = vadd.f32 %v13887_v29, %v8240_v34  ;;  %v8317_v50 = vadd.f32 %v13887_v29, %v8241_v14  ;;  %v8351_v1 = vpack.c.bf16 %v8318_v52, %v8286_v49  ;;  %v8352_v20 = vpack.c.bf16 %v8319_v41, %v8287_v8  ;;  %v15055_v34 = vld [vmem:[#allocation4_spill] sm:$0xff] }
 0x727   : > { %v15056_v14 = vld [vmem:[#allocation64_spill] sm:$0xff] }
 0x728   : > { %v8349_v54 = vpack.c.bf16 %v8316_v38, %v8284_v31  ;;  %v8350_v44 = vpack.c.bf16 %v8317_v50, %v8285_v24  ;;  %8711 = vmatpush.bf16.msra.mxu2 %v8351_v1  ;;  %8724 = vmatpush.bf16.msra.mxu3 %v8352_v20  ;;  %v7201_v49 = vadd.f32 %v15056_v14, %v15055_v34 }
 0x729   : > { %v8165_v58 = vpop.f32.mrf.mxu2 }
 0x72a   : > { %8685 = vmatpush.bf16.msra.mxu0 %v8349_v54  ;;  %8698 = vmatpush.bf16.msra.mxu1 %v8350_v44  ;;  %v8214_v23 = vadd.f32 %v8165_v58, %v7185_v3 }
 0x72b   : > { %v8137_v51 = vpop.f32.mrf.mxu0  ;;  %v8151_v32 = vpop.f32.mrf.mxu1  ;;  %9276 = vmatmul.msk.bf16.vlgmr.msra.gmra.mxu2 %vm1410_vm2, %v13908_v21 }
 0x72c   : > { %v8212_v19 = vadd.f32 %v8137_v51, %v7157_v61  ;;  %v8213_v16 = vadd.f32 %v8151_v32, %v7171_v46  ;;  %v8290_v48 = vadd.f32 %v13874_v43, %v8214_v23 }
 0x72d   : > { %9277 = vmatmul.msk.bf16.vlgmr.msra.gmra.mxu3 %vm1410_vm2, %v13908_v21  ;;  %9274 = vmatmul.msk.bf16.vlgmr.msra.gmra.mxu0 %vm1410_vm2, %v13908_v21 }
 0x72e   : > { %9275 = vmatmul.msk.bf16.vlgmr.msra.gmra.mxu1 %vm1410_vm2, %v13908_v21  ;;  %v8288_v26 = vadd.f32 %v13874_v43, %v8212_v19  ;;  %v8289_v62 = vadd.f32 %v13874_v43, %v8213_v16 }
 0x731   : > { %v8167_v5 = vpop.f32.mrf.mxu2 }
 0x732   : > { %v8246_v22 = vadd.f32 %v8167_v5, %v7187_v4 }
 0x733   : > { %v8139_v17 = vpop.f32.mrf.mxu0  ;;  %v8153_v27 = vpop.f32.mrf.mxu1 }
 0x734   : > { %v8322_v12 = vadd.f32 %v13887_v29, %v8246_v22  ;;  %v8244_v37 = vadd.f32 %v8139_v17, %v7159_v60  ;;  %v8245_v57 = vadd.f32 %v8153_v27, %v7173_v30 }
 0x736   : > { %v8355_v2 = vpack.c.bf16 %v8322_v12, %v8290_v48  ;;  %v8320_v33 = vadd.f32 %v13887_v29, %v8244_v37  ;;  %v8321_v6 = vadd.f32 %v13887_v29, %v8245_v57 }
 0x738   : > { %v8353_v13 = vpack.c.bf16 %v8320_v33, %v8288_v26  ;;  %v8354_v7 = vpack.c.bf16 %v8321_v6, %v8289_v62  ;;  %8763 = vmatpush.bf16.msrb.mxu2 %v8355_v2 }
 0x73a   : > { %8737 = vmatpush.bf16.msrb.mxu0 %v8353_v13  ;;  %8750 = vmatpush.bf16.msrb.mxu1 %v8354_v7 }
 0x73b   : > { %9280 = vmatmul.msk.bf16.vlgmr.msrb.gmra.mxu2 %vm1410_vm2, %v13908_v21 }
 0x73d   : > { %9278 = vmatmul.msk.bf16.vlgmr.msrb.gmra.mxu0 %vm1410_vm2, %v13908_v21 }
 0x73e   : > { %9279 = vmatmul.msk.bf16.vlgmr.msrb.gmra.mxu1 %vm1410_vm2, %v13908_v21 }
 0x73f   : > { %v8179_v42 = vpop.f32.mrf.mxu3 }
 0x740   : > { %v8215_v8 = vadd.f32 %v8179_v42, %v7199_v15 }
 0x742   : > { %v8291_v24 = vadd.f32 %v13874_v43, %v8215_v8 }
 0x744   : > { %v8375_v45 = vpop.f32.mrf.mxu0  ;;  %v8388_v47 = vpop.f32.mrf.mxu1 }
 0x745   : > { %v8376_v56 = vadd.f32 %v8375_v45, %v14104_v25  ;;  %v8389_v52 = vadd.f32 %v8388_v47, %v14104_v25 }
 0x747   : > { %8782 = vst [vmem:[%s14109_s24] sm:$0xff] %v8376_v56  ;;  %v8181_v41 = vpop.f32.mrf.mxu3 }
 0x748   : > { %8783 = vst [vmem:[%s14109_s24 + $0x8] sm:$0xff] %v8389_v52  ;;  %v8247_v31 = vadd.f32 %v8181_v41, %v7201_v49 }
 0x74a   : > { %v8323_v38 = vadd.f32 %v13887_v29, %v8247_v31 }
 0x74c   : > { %v8356_v50 = vpack.c.bf16 %v8323_v38, %v8291_v24  ;;  %v8377_v20 = vpop.f32.mrf.mxu0  ;;  %v8390_v44 = vpop.f32.mrf.mxu1 }
 0x74d   : > { %v8401_v1 = vpop.f32.mrf.mxu2 }
 0x74e   : > { %v8402_v54 = vadd.f32 %v8401_v1, %v14104_v25  ;;  %8776 = vmatpush.bf16.msrb.mxu3 %v8356_v50 }
 0x750   : > { %8784 = vst [vmem:[%s14109_s24 + $0x10] sm:$0xff] %v8402_v54  ;;  %v8414_v58 = vpop.f32.mrf.mxu3 }
 0x751   : > { %v8415_v51 = vadd.f32 %v8414_v58, %v14104_v25  ;;  %9281 = vmatmul.msk.bf16.vlgmr.msrb.gmra.mxu3 %vm1410_vm2, %v13908_v21 }
 0x753   : > { %8785 = vst [vmem:[%s14109_s24 + $0x18] sm:$0xff] %v8415_v51 }
 0x754   : > { %v8427_v29 = vpop.f32.mrf.mxu0  ;;  %v8440_v39 = vpop.f32.mrf.mxu1 }
 0x755   : > { %v8403_v43 = vpop.f32.mrf.mxu2  ;;  %v8428_v32 = vadd.f32 %v8427_v29, %v14104_v25  ;;  %v8441_v18 = vadd.f32 %v8440_v39, %v14104_v25 }
 0x757   : > { %8786 = vst [vmem:[%s14109_s24 + $0x20] sm:$0xff] %v8428_v32 }
 0x758   : > { %v8416_v3 = vpop.f32.mrf.mxu3  ;;  %8787 = vst [vmem:[%s14109_s24 + $0x28] sm:$0xff] %v8441_v18 }
 0x75c   : > { %v8429_v53 = vpop.f32.mrf.mxu0  ;;  %v8442_v10 = vpop.f32.mrf.mxu1 }
 0x75d   : > { %v8453_v28 = vpop.f32.mrf.mxu2 }
 0x75e   : > { %v8454_v61 = vadd.f32 %v8453_v28, %v14104_v25 }
 0x760   : > { %8788 = vst [vmem:[%s14109_s24 + $0x30] sm:$0xff] %v8454_v61  ;;  %v8466_v21 = vpop.f32.mrf.mxu3 }
 0x761   : > { %v8467_v55 = vadd.f32 %v8466_v21, %v14104_v25 }
 0x763   : > { %8789 = vst [vmem:[%s14109_s24 + $0x38] sm:$0xff] %v8467_v55 }
 0x764   : > { %v8479_v63 = vpop.f32.mrf.mxu0  ;;  %v8492_v4 = vpop.f32.mrf.mxu1 }
 0x765   : > { %v8455_v46 = vpop.f32.mrf.mxu2  ;;  %v8480_v36 = vadd.f32 %v8479_v63, %v14104_v25  ;;  %v8493_v23 = vadd.f32 %v8492_v4, %v14104_v25 }
 0x767   : > { %8790 = vst [vmem:[%s14109_s24 + $0x40] sm:$0xff] %v8480_v36 }
 0x768   : > { %v8468_v19 = vpop.f32.mrf.mxu3  ;;  %8791 = vst [vmem:[%s14109_s24 + $0x48] sm:$0xff] %v8493_v23 }
 0x76c   : > { %v8481_v11 = vpop.f32.mrf.mxu0  ;;  %v8494_v60 = vpop.f32.mrf.mxu1 }
 0x76d   : > { %v8505_v5 = vpop.f32.mrf.mxu2 }
 0x76e   : > { %v8506_v40 = vadd.f32 %v8505_v5, %v14104_v25 }
 0x770   : > { %8792 = vst [vmem:[%s14109_s24 + $0x50] sm:$0xff] %v8506_v40  ;;  %v8518_v35 = vpop.f32.mrf.mxu3 }
 0x771   : > { %v8519_v9 = vadd.f32 %v8518_v35, %v14104_v25 }
 0x773   : > { %8793 = vst [vmem:[%s14109_s24 + $0x58] sm:$0xff] %v8519_v9 }
 0x774   : > { %v8531_v16 = vpop.f32.mrf.mxu0  ;;  %v8544_v17 = vpop.f32.mrf.mxu1 }
 0x775   : > { %v8507_v30 = vpop.f32.mrf.mxu2  ;;  %v8532_v22 = vadd.f32 %v8531_v16, %v14104_v25  ;;  %v8545_v27 = vadd.f32 %v8544_v17, %v14104_v25 }
 0x777   : > { %8794 = vst [vmem:[%s14109_s24 + $0x60] sm:$0xff] %v8532_v22 }
 0x778   : > { %v8520_v48 = vpop.f32.mrf.mxu3  ;;  %8795 = vst [vmem:[%s14109_s24 + $0x68] sm:$0xff] %v8545_v27 }
 0x77c   : > { %v8533_v37 = vpop.f32.mrf.mxu0  ;;  %v8546_v26 = vpop.f32.mrf.mxu1 }
 0x77d   : > { %v8557_v12 = vpop.f32.mrf.mxu2 }
 0x77e   : > { %v8558_v57 = vadd.f32 %v8557_v12, %v14104_v25 }
 0x780   : > { %8796 = vst [vmem:[%s14109_s24 + $0x70] sm:$0xff] %v8558_v57  ;;  %v8570_v62 = vpop.f32.mrf.mxu3 }
 0x781   : > { %v8571_v2 = vadd.f32 %v8570_v62, %v14104_v25 }
 0x783   : > { %8797 = vst [vmem:[%s14109_s24 + $0x78] sm:$0xff] %v8571_v2 }
 0x784   : > { %v8583_v6 = vpop.f32.mrf.mxu0  ;;  %v8596_v7 = vpop.f32.mrf.mxu1 }
 0x785   : > { %v8559_v33 = vpop.f32.mrf.mxu2  ;;  %v8584_v13 = vadd.f32 %v8583_v6, %v14104_v25  ;;  %v8597_v42 = vadd.f32 %v8596_v7, %v14104_v25 }
 0x787   : > { %8798 = vst [vmem:[%s14109_s24 + $0x80] sm:$0xff] %v8584_v13 }
 0x788   : > { %v8572_v59 = vpop.f32.mrf.mxu3  ;;  %8799 = vst [vmem:[%s14109_s24 + $0x88] sm:$0xff] %v8597_v42 }
 0x78c   : > { %v8585_v15 = vpop.f32.mrf.mxu0  ;;  %v8598_v56 = vpop.f32.mrf.mxu1 }
 0x78d   : > { %v8609_v0 = vpop.f32.mrf.mxu2 }
 0x78e   : > { %v8610_v45 = vadd.f32 %v8609_v0, %v14104_v25 }
 0x790   : > { %8800 = vst [vmem:[%s14109_s24 + $0x90] sm:$0xff] %v8610_v45  ;;  %v8622_v47 = vpop.f32.mrf.mxu3 }
 0x791   : > { %v8623_v34 = vadd.f32 %v8622_v47, %v14104_v25 }
 0x793   : > { %8801 = vst [vmem:[%s14109_s24 + $0x98] sm:$0xff] %v8623_v34 }
 0x794   : > { %v8635_v49 = vpop.f32.mrf.mxu0  ;;  %v8648_v52 = vpop.f32.mrf.mxu1 }
 0x795   : > { %v8611_v14 = vpop.f32.mrf.mxu2  ;;  %v8636_v8 = vadd.f32 %v8635_v49, %v14104_v25  ;;  %v8649_v41 = vadd.f32 %v8648_v52, %v14104_v25 }
 0x797   : > { %8802 = vst [vmem:[%s14109_s24 + $0xa0] sm:$0xff] %v8636_v8 }
 0x798   : > { %v8624_v31 = vpop.f32.mrf.mxu3  ;;  %8803 = vst [vmem:[%s14109_s24 + $0xa8] sm:$0xff] %v8649_v41 }
 0x79c   : > { %v8637_v38 = vpop.f32.mrf.mxu0  ;;  %v8650_v1 = vpop.f32.mrf.mxu1 }
 0x79d   : > { %v8661_v24 = vpop.f32.mrf.mxu2 }
 0x79e   : > { %v8662_v50 = vadd.f32 %v8661_v24, %v14104_v25 }
 0x7a0   : > { %8804 = vst [vmem:[%s14109_s24 + $0xb0] sm:$0xff] %v8662_v50  ;;  %v8674_v20 = vpop.f32.mrf.mxu3 }
 0x7a1   : > { %v8675_v54 = vadd.f32 %v8674_v20, %v14104_v25 }
 0x7a3   : > { %8805 = vst [vmem:[%s14109_s24 + $0xb8] sm:$0xff] %v8675_v54 }
 0x7a5   : > { %v8663_v44 = vpop.f32.mrf.mxu2 }
 0x7a8   : > { %v8676_v58 = vpop.f32.mrf.mxu3 }
 0x7aa   : > { %v8687_v51 = vpop.f32.mrf.mxu0 }
 0x7ab   : > { %v8700_v43 = vpop.f32.mrf.mxu1  ;;  %v8688_v29 = vadd.f32 %v8687_v51, %v14104_v25 }
 0x7ac   : > { %v8701_v32 = vadd.f32 %v8700_v43, %v14104_v25 }
 0x7ad   : > { %8806 = vst [vmem:[%s14109_s24 + $0xc0] sm:$0xff] %v8688_v29 }
 0x7ae   : > { %8807 = vst [vmem:[%s14109_s24 + $0xc8] sm:$0xff] %v8701_v32  ;;  %v8713_v39 = vpop.f32.mrf.mxu2 }
 0x7af   : > { %v8714_v3 = vadd.f32 %v8713_v39, %v14104_v25 }
 0x7b0   : > { %v8726_v18 = vpop.f32.mrf.mxu3 }
 0x7b1   : > { %v8727_v28 = vadd.f32 %v8726_v18, %v14104_v25  ;;  %8808 = vst [vmem:[%s14109_s24 + $0xd0] sm:$0xff] %v8714_v3 }
 0x7b2   : > { %v8689_v53 = vpop.f32.mrf.mxu0 }
 0x7b3   : > { %v8702_v61 = vpop.f32.mrf.mxu1  ;;  %8809 = vst [vmem:[%s14109_s24 + $0xd8] sm:$0xff] %v8727_v28 }
 0x7b6   : > { %v8715_v10 = vpop.f32.mrf.mxu2 }
 0x7b8   : > { %v8728_v21 = vpop.f32.mrf.mxu3 }
 0x7ba   : > { %v8739_v55 = vpop.f32.mrf.mxu0 }
 0x7bb   : > { %v8752_v46 = vpop.f32.mrf.mxu1  ;;  %v8740_v63 = vadd.f32 %v8739_v55, %v14104_v25 }
 0x7bc   : > { %v8753_v36 = vadd.f32 %v8752_v46, %v14104_v25 }
 0x7bd   : > { %8810 = vst [vmem:[%s14109_s24 + $0xe0] sm:$0xff] %v8740_v63 }
 0x7be   : > { %8811 = vst [vmem:[%s14109_s24 + $0xe8] sm:$0xff] %v8753_v36  ;;  %v8765_v4 = vpop.f32.mrf.mxu2 }
 0x7bf   : > { %v8766_v23 = vadd.f32 %v8765_v4, %v14104_v25 }
 0x7c1   : > { %8812 = vst [vmem:[%s14109_s24 + $0xf0] sm:$0xff] %v8766_v23 }
 0x7c2   : > { %v8741_v19 = vpop.f32.mrf.mxu0 }
 0x7c3   : > { %v8754_v5 = vpop.f32.mrf.mxu1 }
 0x7c6   : > { %v8767_v11 = vpop.f32.mrf.mxu2 }
 0x7d4   : > { %v8778_v40 = vpop.f32.mrf.mxu3 }
 0x7d5   : > { %v8779_v60 = vadd.f32 %v8778_v40, %v14104_v25 }
 0x7d7   : > { %8813 = vst [vmem:[%s14109_s24 + $0xf8] sm:$0xff] %v8779_v60 }
 0x7dc   : > { %v8780_v35 = vpop.f32.mrf.mxu3 }
 0x7dd PF: > { %s22_s21 = sadd.s32 1, %s9388_s21  }
 0x7de   : > { %p19_p4 = scmp.ge.s32.totalorder %s22_s21, 4  }
 0x7e0   :  { %21 = sbr.rel (!%p19_p4) target bundleno = 1 (0x1), region = 107 }

</bundles_post_ra>
